<compile_context>
chip_gen: v6e
topology: v6e:2x2x1
jax: 0.10.0
libtpu: 0.0.40
codegen_flags: <defaults>
</compile_context>

<pallas_src>
import functools

import numpy as np
import jax
import jax.numpy as jnp
from jax import lax
from jax.experimental import pallas as pl
from jax.experimental.pallas import tpu as pltpu

M = 16
N_PLANES = [M, 2 * M, 4 * M, 8 * M, 16 * M]
REPS = 2
BN_EPS = 1e-4
ROW_TILE_CAP = 128      # max rows per grid step (multiple of 16 for bf16 tiles)
SRC_CHUNK = 256         # source-window chunk (rows of x resident per grid step)


def _vmem_limit():
    try:
        cap = int(pltpu.get_tpu_info().vmem_capacity_bytes)
    except Exception:
        cap = 64 << 20                      # conservative (v7x has 64 MiB / TC)
    return int(min(100 << 20, max(32 << 20, cap * 3 // 4)))


VMEM_LIMIT = _vmem_limit()


# --------------------------------- helpers -----------------------------------

def _round_up(n, m):
    return ((n + m - 1) // m) * m


def _row_tile(n_rows, cap=ROW_TILE_CAP):
    """Row tile: multiple of 16, <= cap, and >= 2 tiles per call when possible
    (so the 'parallel' row axis can still shard across v7x's two TCs)."""
    n_rows = int(max(n_rows, 1))
    if n_rows <= 16:
        return 16
    half = _round_up((n_rows + 1) // 2, 16)
    return int(min(cap, half))


def _pad_rows(x, rows):
    n = x.shape[0]
    if rows == n:
        return x
    return jnp.concatenate(
        [x, jnp.zeros((rows - n,) + x.shape[1:], x.dtype)], axis=0)


def _src_chunking(n_src):
    """(chunk_rows, padded_rows, n_chunks) for the source-window axis."""
    sc = int(min(SRC_CHUNK, _round_up(max(n_src, 1), 16)))
    ns_pad = _round_up(max(n_src, 1), sc)
    return sc, ns_pad, ns_pad // sc


def _tile_windows(nbr_rows, tr, sc, n_chunks):
    """Per row-tile source window start (in chunks) + the static window span."""
    n_tiles = nbr_rows.shape[0] // tr
    win_lo = np.zeros((n_tiles,), np.int32)
    span = 1
    for t in range(n_tiles):
        ent = nbr_rows[t * tr:(t + 1) * tr]
        ent = ent[ent >= 0]
        if ent.size:
            lo = int(ent.min()) // sc
            hi = int(ent.max()) // sc
            win_lo[t] = lo
            span = max(span, hi - lo + 1)
    win_lo = np.minimum(win_lo, max(n_chunks - span, 0)).astype(np.int32)
    return win_lo, span


# ------------------------------ Pallas kernels --------------------------------

def _gather_conv_kernel(*refs, fuse_bn, n_prefetch):
    """(BatchNormReLU +) sparse gather-convolution over one source window chunk.

    Grid = (row_tile i, source_chunk j).  Per offset k the neighbour gather is
    a one-hot-selection matmul against the resident [SC, C_in] source chunk
    (MXU), BN+ReLU is applied to the *gathered* tile with a validity mask
    (missing / out-of-window neighbours contribute exactly 0), and the result
    is accumulated into a VMEM f32 scratch across the window axis.
    """
    lo_ref = refs[0]
    idx = n_prefetch
    nbr_ref, x_ref, w_ref = refs[idx], refs[idx + 1], refs[idx + 2]
    if fuse_bn:
        scale_ref, shift_ref = refs[idx + 3], refs[idx + 4]
    o_ref, acc_ref = refs[-2], refs[-1]

    i = pl.program_id(0)
    j = pl.program_id(1)

    @pl.when(j == 0)
    def _init():
        acc_ref[...] = jnp.zeros_like(acc_ref)

    sc = x_ref.shape[0]
    tr, kk = nbr_ref.shape
    base = (lo_ref[i] + j) * sc
    local = nbr_ref[...] - base                                   # [TR, K] int32
    ids = lax.broadcasted_iota(jnp.int32, (tr, sc), 1)            # hoisted once
    x_chunk = x_ref[...]                                          # bf16 [SC, C_in]
    if fuse_bn:
        scale = scale_ref[...]
        shift = shift_ref[...]

    acc = acc_ref[...]
    for k in range(kk):                                           # unrolled taps
        lk = local[:, k:k + 1]                                    # [TR, 1]
        sel = (lk == ids).astype(jnp.bfloat16)                    # [TR, SC] one-hot
        g = jnp.dot(sel, x_chunk, preferred_element_type=jnp.float32)  # [TR, C_in]
        if fuse_bn:
            # BN + ReLU on the gathered tile; the validity mask keeps missing /
            # out-of-window neighbours at exactly 0 (no ReLU(shift) leakage).
            valid = ((lk >= 0) & (lk < sc)).astype(jnp.float32)   # [TR, 1]
            g = jnp.maximum(g * scale + shift * valid, 0.0)
        acc = acc + jnp.dot(g.astype(jnp.bfloat16), w_ref[k],
                            preferred_element_type=jnp.float32)
    acc_ref[...] = acc

    @pl.when(j == pl.num_programs(1) - 1)
    def _store():
        o_ref[...] = acc_ref[...].astype(o_ref.dtype)


def _head_kernel(x_ref, scale_ref, shift_ref, wt_ref, b_ref, o_ref):
    """Final BatchNormReLU + Linear(M -> n_classes) + sigmoid, fused."""
    y = jnp.maximum(
        x_ref[...].astype(jnp.float32) * scale_ref[...] + shift_ref[...], 0.0)
    if o_ref.shape[1] == 1:
        # K=16, N=1 is the worst possible MXU shape -- reduce on the VPU/XLU.
        logits = jnp.sum(y * wt_ref[...], axis=1, keepdims=True)
    else:
        logits = lax.dot_general(y, wt_ref[...], (((1,), (1,)), ((), ())),
                                 preferred_element_type=jnp.float32)
    logits = logits + b_ref[...]
    o_ref[...] = 1.0 / (1.0 + jnp.exp(-logits))


# ------------------------------ kernel wrappers --------------------------------

def fused_sparse_conv(x, nbr, w, scale=None, shift=None):
    """x: [N_src, C_in] (cast to bf16), nbr: [N_out, K] int32 (-1 = missing),
    w: [K, C_in, C_out] bf16, optional BN scale/shift [1, C_in] f32.
    Returns bf16 [N_out, C_out]."""
    x = x.astype(jnp.bfloat16)
    n_src, c_in = x.shape
    nbr = np.asarray(nbr, np.int32)
    n_out, kk = nbr.shape
    c_out = int(w.shape[2])

    tr = _row_tile(n_out)
    no_pad = _round_up(n_out, tr)
    n_tiles = no_pad // tr

    sc, ns_pad, n_chunks = _src_chunking(n_src)
    x_p = _pad_rows(x, ns_pad)

    nbr_p = np.full((no_pad, kk), -1, np.int32)
    nbr_p[:n_out] = nbr
    win_lo, span = _tile_windows(nbr_p, tr, sc, n_chunks)

    fuse_bn = scale is not None
    kernel = functools.partial(_gather_conv_kernel, fuse_bn=fuse_bn, n_prefetch=1)

    in_specs = [pl.BlockSpec((tr, kk), lambda i, j, lo: (i, 0)),
                pl.BlockSpec((sc, c_in), lambda i, j, lo: (lo[i] + j, 0)),
                pl.BlockSpec((kk, c_in, c_out), lambda i, j, lo: (0, 0, 0))]
    args = [jnp.asarray(nbr_p), x_p, w]
    if fuse_bn:
        in_specs += [pl.BlockSpec((1, c_in), lambda i, j, lo: (0, 0)),
                     pl.BlockSpec((1, c_in), lambda i, j, lo: (0, 0))]
        args += [scale, shift]

    flops = 2 * no_pad * span * kk * (sc * c_in + c_in * c_out)
    bytes_accessed = (no_pad * kk * 4 + n_tiles * span * sc * c_in * 2
                      + kk * c_in * c_out * 2 + no_pad * c_out * 2)
    out = pl.pallas_call(
        kernel,
        out_shape=jax.ShapeDtypeStruct((no_pad, c_out), jnp.bfloat16),
        grid_spec=pltpu.PrefetchScalarGridSpec(
            num_scalar_prefetch=1,
            grid=(n_tiles, span),
            in_specs=in_specs,
            out_specs=pl.BlockSpec((tr, c_out), lambda i, j, lo: (i, 0)),
            scratch_shapes=[pltpu.VMEM((tr, c_out), jnp.float32)]),
        compiler_params=pltpu.CompilerParams(
            dimension_semantics=("parallel", "arbitrary"),
            vmem_limit_bytes=VMEM_LIMIT),
        cost_estimate=pl.CostEstimate(flops=int(flops), transcendentals=0,
                                      bytes_accessed=int(bytes_accessed)),
    )(jnp.asarray(win_lo), *args)
    return out[:n_out]


def fused_deconv(x_coarse, up_parent, up_off, w, scale, shift):
    """BNReLU + Deconvolution(filter 2, stride 2) from coarse to fine sites.

    Fine sites are grouped host-side by intra-parent offset so each row tile
    uses exactly one [C_in, C_out] weight slice (no 8x one-hot zero FLOPs);
    the coarse source is windowed exactly like the forward convolutions.
    """
    x_coarse = x_coarse.astype(jnp.bfloat16)
    up_parent = np.asarray(up_parent, np.int32)
    up_off = np.asarray(up_off, np.int32)
    nf = up_parent.shape[0]
    nc, c_in = x_coarse.shape
    c_out = int(w.shape[2])
    tr = _row_tile(max(-(-nf // 8), 16))

    parent_chunks, tile_w, cur = [], [], 0
    out_pos = np.zeros(nf, np.int32)
    for o in range(8):
        rows = np.where(up_off == o)[0]
        m = rows.shape[0]
        if m == 0:
            continue
        mp = _round_up(m, tr)
        chunk = np.full((mp,), -1, np.int32)
        chunk[:m] = up_parent[rows]
        parent_chunks.append(chunk)
        out_pos[rows] = cur + np.arange(m, dtype=np.int32)
        tile_w += [o] * (mp // tr)
        cur += mp
    pidx = np.concatenate(parent_chunks).reshape(-1, 1).astype(np.int32)
    tile_w = np.asarray(tile_w, np.int32)
    n_rows = int(pidx.shape[0])
    n_tiles = n_rows // tr

    sc, nc_pad, n_chunks = _src_chunking(nc)
    x_p = _pad_rows(x_coarse, nc_pad)
    win_lo, span = _tile_windows(pidx[:, 0], tr, sc, n_chunks)

    kernel = functools.partial(_gather_conv_kernel, fuse_bn=True, n_prefetch=2)
    out = pl.pallas_call(
        kernel,
        out_shape=jax.ShapeDtypeStruct((n_rows, c_out), jnp.bfloat16),
        grid_spec=pltpu.PrefetchScalarGridSpec(
            num_scalar_prefetch=2,
            grid=(n_tiles, span),
            in_specs=[pl.BlockSpec((tr, 1), lambda i, j, lo, tw: (i, 0)),
                      pl.BlockSpec((sc, c_in), lambda i, j, lo, tw: (lo[i] + j, 0)),
                      pl.BlockSpec((1, c_in, c_out),
                                   lambda i, j, lo, tw: (tw[i], 0, 0)),
                      pl.BlockSpec((1, c_in), lambda i, j, lo, tw: (0, 0)),
                      pl.BlockSpec((1, c_in), lambda i, j, lo, tw: (0, 0))],
            out_specs=pl.BlockSpec((tr, c_out), lambda i, j, lo, tw: (i, 0)),
            scratch_shapes=[pltpu.VMEM((tr, c_out), jnp.float32)]),
        compiler_params=pltpu.CompilerParams(
            dimension_semantics=("arbitrary", "arbitrary"),
            vmem_limit_bytes=VMEM_LIMIT),
    )(jnp.asarray(win_lo), jnp.asarray(tile_w), jnp.asarray(pidx), x_p,
      w, scale, shift)
    # Undo the offset grouping (cheap [N_fine, C_out] gather).
    return jnp.take(out, jnp.asarray(out_pos), axis=0)


def fused_head(x, scale, shift, w_t, b):
    """BatchNormReLU(M) + Linear(M -> n_classes) + sigmoid in one kernel."""
    x = x.astype(jnp.bfloat16)
    n, c = x.shape
    nc = int(w_t.shape[0])
    tr = _row_tile(n)
    n_pad = _round_up(n, tr)
    x_p = _pad_rows(x, n_pad)
    out = pl.pallas_call(
        _head_kernel,
        out_shape=jax.ShapeDtypeStruct((n_pad, nc), jnp.float32),
        grid=(n_pad // tr,),
        in_specs=[pl.BlockSpec((tr, c), lambda i: (i, 0)),
                  pl.BlockSpec((1, c), lambda i: (0, 0)),
                  pl.BlockSpec((1, c), lambda i: (0, 0)),
                  pl.BlockSpec((nc, c), lambda i: (0, 0)),
                  pl.BlockSpec((1, nc), lambda i: (0, 0))],
        out_specs=pl.BlockSpec((tr, nc), lambda i: (i, 0)),
        compiler_params=pltpu.CompilerParams(
            dimension_semantics=("parallel",),
            vmem_limit_bytes=VMEM_LIMIT),
    )(x_p, scale, shift, w_t, b)
    return out[:n]


# ------------------------- host-side sparse rulebook --------------------------

_OFF3 = [(dx, dy, dz) for dx in (-1, 0, 1) for dy in (-1, 0, 1) for dz in (-1, 0, 1)]
_OFF2 = [(dx, dy, dz) for dx in (0, 1) for dy in (0, 1) for dz in (0, 1)]


def _morton_sort_order(coords):
    """Sort order by (batch, z-order(x, y, z)) -- keeps neighbour windows tight."""
    c = np.asarray(coords, np.int64)
    key = np.zeros(c.shape[0], np.int64)
    for bit in range(16):
        key |= ((c[:, 0] >> bit) & 1) << (3 * bit)
        key |= ((c[:, 1] >> bit) & 1) << (3 * bit + 1)
        key |= ((c[:, 2] >> bit) & 1) << (3 * bit + 2)
    key |= c[:, 3] << 48
    return np.argsort(key, kind='stable')


def build_geometry(coords0, n_levels):
    """Morton-sorted sparse rulebooks per resolution level (-1 = missing site)."""
    coords = np.asarray(coords0, dtype=np.int64)
    perm0 = _morton_sort_order(coords)
    coords = coords[perm0]
    geom = {'nbr': [], 'down': [], 'up_parent': [], 'up_off': [], 'perm0': perm0}
    for lvl in range(n_levels):
        n = coords.shape[0]
        cmap = {tuple(c): i for i, c in enumerate(coords)}
        nbr = np.full((n, 27), -1, dtype=np.int32)
        for i, c in enumerate(coords):
            for k, d in enumerate(_OFF3):
                j = cmap.get((c[0] + d[0], c[1] + d[1], c[2] + d[2], c[3]))
                if j is not None:
                    nbr[i, k] = j
        geom['nbr'].append(nbr)
        if lvl < n_levels - 1:
            coarse = coords.copy()
            coarse[:, :3] //= 2
            ccoords = np.unique(coarse, axis=0)
            ccoords = ccoords[_morton_sort_order(ccoords)]
            ccmap = {tuple(c): i for i, c in enumerate(ccoords)}
            down = np.full((ccoords.shape[0], 8), -1, dtype=np.int32)
            for i, cc in enumerate(ccoords):
                for k, d in enumerate(_OFF2):
                    j = cmap.get((2 * cc[0] + d[0], 2 * cc[1] + d[1],
                                  2 * cc[2] + d[2], cc[3]))
                    if j is not None:
                        down[i, k] = j
            up_parent = np.zeros((n,), dtype=np.int32)
            up_off = np.zeros((n,), dtype=np.int32)
            for i, c in enumerate(coords):
                up_parent[i] = ccmap[(c[0] // 2, c[1] // 2, c[2] // 2, c[3])]
                up_off[i] = (c[0] % 2) * 4 + (c[1] % 2) * 2 + (c[2] % 2)
            geom['down'].append(down)
            geom['up_parent'].append(up_parent)
            geom['up_off'].append(up_off)
            coords = ccoords
    return geom


# ---------------------------- model (synthetic init) ---------------------------

class ParamGen:
    """Deterministic parameter generator (synthetic weights, no checkpoint)."""

    def __init__(self, key):
        self._key = key

    def normal(self, shape, scale=0.05):
        self._key, sub = jax.random.split(self._key)
        return (scale * jax.random.normal(sub, shape)).astype(jnp.float32)

    def conv_w(self, k, c_in, c_out):
        return self.normal((k, c_in, c_out)).astype(jnp.bfloat16)

    def bn(self, c):
        gamma = 1.0 + self.normal((c,), 0.1)
        beta = self.normal((c,), 0.1)
        # Eval-mode BatchNormReLU: running_mean = 0, running_var = 1.
        # TODO(synk): SCN's training-mode batch statistics are not computed here.
        scale = (gamma / jnp.sqrt(1.0 + BN_EPS)).reshape(1, -1)
        shift = beta.reshape(1, -1)
        return scale, shift


def sm_block(feats, nbr, n_out, pg):
    """BatchNormReLU + SubmanifoldConvolution(3^3, no bias), fully fused."""
    c_in = feats.shape[1]
    scale, shift = pg.bn(c_in)
    w = pg.conv_w(27, c_in, n_out)
    return fused_sparse_conv(feats, nbr, w, scale, shift)


def unet_level(level, feats, geom, pg):
    p = N_PLANES[level]
    for _ in range(REPS):
        feats = sm_block(feats, geom['nbr'][level], p, pg)
    if level < len(N_PLANES) - 1:
        q = N_PLANES[level + 1]
        identity = feats
        # BNReLU(p) + Convolution(p -> q, filter 2, stride 2), fused.
        scale, shift = pg.bn(p)
        w_down = pg.conv_w(8, p, q)
        x = fused_sparse_conv(feats, geom['down'][level], w_down, scale, shift)
        x = unet_level(level + 1, x, geom, pg)
        # BNReLU(q) + Deconvolution(q -> p, filter 2, stride 2), fused.
        scale, shift = pg.bn(q)
        w_up = pg.conv_w(8, q, p)
        x = fused_deconv(x, geom['up_parent'][level], geom['up_off'][level],
                         w_up, scale, shift)
        feats = jnp.concatenate([identity, x], axis=1)          # JoinTable
        for _ in range(REPS):
            feats = sm_block(feats, geom['nbr'][level], p, pg)
    return feats


def deepvtx_forward(coords, feats, n_classes=1):
    """coords: int32 [N, 4] (x, y, z, batch); feats: float32 [N, n_in]."""
    # InputLayer(mode=3): duplicate coordinates would be summed; the example
    # inputs are generated with unique coordinates so this is the identity.
    coords_np = np.asarray(coords)
    geom = build_geometry(coords_np, len(N_PLANES))
    perm0 = geom['perm0']
    inv_perm = np.argsort(perm0)
    pg = ParamGen(jax.random.PRNGKey(42))

    # Run everything in Morton-sorted order (tight source windows); un-permute
    # the head output back to input row order at the very end.
    x = jnp.take(feats.astype(jnp.float32), jnp.asarray(perm0), axis=0)

    # SubmanifoldConvolution(n_input_features -> M, filter 3, no bias).
    # Zero-pad C_in to 16 so the MXU contraction never sees K=1 (zeros inert).
    c0 = x.shape[1]
    c0_pad = max(16, _round_up(c0, 16))
    w0 = pg.normal((27, c0, M))
    if c0_pad != c0:
        x = jnp.concatenate(
            [x, jnp.zeros((x.shape[0], c0_pad - c0), jnp.float32)], axis=1)
        w0 = jnp.concatenate(
            [w0, jnp.zeros((27, c0_pad - c0, M), jnp.float32)], axis=1)
    x = fused_sparse_conv(x, geom['nbr'][0], w0.astype(jnp.bfloat16))

    # UNet(reps=2, nPlanes=[16, 32, 64, 128, 256], downsample=[2, 2]).
    x = unet_level(0, x, geom, pg)

    # BatchNormReLU(M) + OutputLayer + Linear(M -> n_classes) + sigmoid, fused.
    scale, shift = pg.bn(M)
    w_lin = pg.normal((M, n_classes), 0.1)
    b_lin = pg.normal((1, n_classes), 0.1)
    out = fused_head(x, scale, shift, jnp.transpose(w_lin), b_lin)
    return jnp.take(out, jnp.asarray(inv_perm), axis=0)


# ------------------------------------ main -------------------------------------

if __name__ == "__main__":
    S, B, PTS = 16, 2, 100                        # spatial size, batch, pts/batch
    kc, kf = jax.random.split(jax.random.PRNGKey(0))
    coords_list = []
    for b in range(B):
        kb = jax.random.fold_in(kc, b)
        flat = jax.random.permutation(kb, S ** 3)[:PTS]      # unique active sites
        cx, cy, cz = flat // (S * S), (flat // S) % S, flat % S
        coords_list.append(jnp.stack([cx, cy, cz, jnp.full_like(cx, b)], axis=1))
    coords = jnp.concatenate(coords_list, axis=0).astype(jnp.int32)    # [200, 4]
    feats = jax.random.normal(kf, (coords.shape[0], 1), jnp.float32)   # [200, 1]

    out = deepvtx_forward(coords, feats, n_classes=1)
    out = jax.block_until_ready(out)
    assert out.shape == (coords.shape[0], 1)
    assert bool(jnp.all(jnp.isfinite(out))) and bool(jnp.all((out >= 0) & (out <= 1)))
    print("KERNEL_OK")
</pallas_src>

<mosaic_0001>
module attributes {stable_mosaic.version = 11 : i64} {
  func.func @_gather_conv_kernel(%arg0: i32, %arg1: i32, %arg2: memref<2xi32, #tpu.memory_space<smem>>, %arg3: memref<112x27xi32, #tpu.memory_space<vmem>>, %arg4: memref<208x16xbf16, #tpu.memory_space<vmem>>, %arg5: memref<27x16x16xbf16, #tpu.memory_space<vmem>>, %arg6: memref<112x16xbf16, #tpu.memory_space<vmem>>, %arg7: memref<112x16xf32, #tpu.memory_space<vmem>>) attributes {dimension_semantics = [#tpu.dimension_semantics<parallel>, #tpu.dimension_semantics<arbitrary>], iteration_bounds = array<i64: 2, 1>, scalar_prefetch = 1 : i64, scratch_operands = 1 : i64, tpu.core_type = #tpu.core_type<tc>, window_params = [{transform_indices = @transform_0, window_bounds = array<i64: 112, 27>}, {transform_indices = @transform_1, window_bounds = array<i64: 208, 16>}, {pipeline_mode = #tpu.pipeline_mode<synchronous>, transform_indices = @transform_2, window_bounds = array<i64: 27, 16, 16>}, {transform_indices = @transform_3, window_bounds = array<i64: 112, 16>}]} {
    %c0_i32 = arith.constant 0 : i32
    %0 = arith.cmpi eq, %arg1, %c0_i32 : i32
    %1 = arith.extui %0 : i1 to i32
    %c0_i32_0 = arith.constant 0 : i32
    %2 = arith.cmpi ne, %1, %c0_i32_0 : i32
    scf.if %2 {
      %cst_118 = arith.constant 0.000000e+00 : f32
      %341 = vector.broadcast %cst_118 : f32 to vector<112x16xf32>
      %c0_119 = arith.constant 0 : index
      %c0_120 = arith.constant 0 : index
      %342 = vector.load %arg7[%c0_119, %c0_120] : memref<112x16xf32, #tpu.memory_space<vmem>>, vector<112x16xf32>
      tpu.vector_store %arg7[%c0_119, %c0_120], %341 {strides = array<i32>} : memref<112x16xf32, #tpu.memory_space<vmem>>, vector<112x16xf32>,
    } else {
    }
    %3 = arith.index_cast %arg0 : i32 to index
    %4 = memref.load %arg2[%3] : memref<2xi32, #tpu.memory_space<smem>>
    %5 = arith.addi %4, %arg1 : i32
    %c208_i32 = arith.constant 208 : i32
    %6 = arith.muli %5, %c208_i32 : i32
    %c0 = arith.constant 0 : index
    %c0_1 = arith.constant 0 : index
    %7 = vector.load %arg3[%c0, %c0_1] : memref<112x27xi32, #tpu.memory_space<vmem>>, vector<112x27xi32>
    %8 = vector.broadcast %6 : i32 to vector<112x27xi32>
    %9 = arith.subi %7, %8 : vector<112x27xi32>
    %10 = tpu.iota {dimensions = array<i32: 1>} : vector<112x208xi32>
    %c0_2 = arith.constant 0 : index
    %c0_3 = arith.constant 0 : index
    %11 = vector.load %arg4[%c0_2, %c0_3] : memref<208x16xbf16, #tpu.memory_space<vmem>>, vector<208x16xbf16>
    %c0_4 = arith.constant 0 : index
    %c0_5 = arith.constant 0 : index
    %12 = vector.load %arg7[%c0_4, %c0_5] : memref<112x16xf32, #tpu.memory_space<vmem>>, vector<112x16xf32>
    %13 = vector.extract_strided_slice %9 {offsets = [0, 0], sizes = [112, 1], strides = [1, 1]} : vector<112x27xi32> to vector<112x1xi32>
    %14 = vector.broadcast %13 : vector<112x1xi32> to vector<112x208xi32>
    %15 = arith.cmpi eq, %14, %10 : vector<112x208xi32>
    %16 = arith.extui %15 : vector<112x208xi1> to vector<112x208xi32>
    %17 = arith.sitofp %16 : vector<112x208xi32> to vector<112x208xf32>
    %18 = arith.truncf %17 : vector<112x208xf32> to vector<112x208xbf16>
    %cst = arith.constant dense<0.000000e+00> : vector<112x16xf32>
    %19 = tpu.matmul %18, %11, %cst {dimension_numbers = #tpu.dot_dimension_numbers<[1], [0], [0], [1], [0, 0, 1, 1], [], []>} : vector<112x208xbf16>, vector<208x16xbf16>, vector<112x16xf32> -> vector<112x16xf32>
    %20 = arith.truncf %19 : vector<112x16xf32> to vector<112x16xbf16>
    %c0_6 = arith.constant 0 : index
    %c0_7 = arith.constant 0 : index
    %c0_8 = arith.constant 0 : index
    %21 = vector.load %arg5[%c0_6, %c0_7, %c0_8] : memref<27x16x16xbf16, #tpu.memory_space<vmem>>, vector<1x16x16xbf16>
    %22 = vector.shape_cast %21 : vector<1x16x16xbf16> to vector<16x16xbf16>
    %cst_9 = arith.constant dense<0.000000e+00> : vector<112x16xf32>
    %23 = tpu.matmul %20, %22, %cst_9 {dimension_numbers = #tpu.dot_dimension_numbers<[1], [0], [0], [1], [0, 0, 1, 1], [], []>} : vector<112x16xbf16>, vector<16x16xbf16>, vector<112x16xf32> -> vector<112x16xf32>
    %24 = arith.addf %12, %23 : vector<112x16xf32>
    %25 = vector.extract_strided_slice %9 {offsets = [0, 1], sizes = [112, 1], strides = [1, 1]} : vector<112x27xi32> to vector<112x1xi32>
    %26 = vector.broadcast %25 : vector<112x1xi32> to vector<112x208xi32>
    %27 = arith.cmpi eq, %26, %10 : vector<112x208xi32>
    %28 = arith.extui %27 : vector<112x208xi1> to vector<112x208xi32>
    %29 = arith.sitofp %28 : vector<112x208xi32> to vector<112x208xf32>
    %30 = arith.truncf %29 : vector<112x208xf32> to vector<112x208xbf16>
    %cst_10 = arith.constant dense<0.000000e+00> : vector<112x16xf32>
    %31 = tpu.matmul %30, %11, %cst_10 {dimension_numbers = #tpu.dot_dimension_numbers<[1], [0], [0], [1], [0, 0, 1, 1], [], []>} : vector<112x208xbf16>, vector<208x16xbf16>, vector<112x16xf32> -> vector<112x16xf32>
    %32 = arith.truncf %31 : vector<112x16xf32> to vector<112x16xbf16>
    %c1 = arith.constant 1 : index
    %c0_11 = arith.constant 0 : index
    %c0_12 = arith.constant 0 : index
    %33 = vector.load %arg5[%c1, %c0_11, %c0_12] : memref<27x16x16xbf16, #tpu.memory_space<vmem>>, vector<1x16x16xbf16>
    %34 = vector.shape_cast %33 : vector<1x16x16xbf16> to vector<16x16xbf16>
    %cst_13 = arith.constant dense<0.000000e+00> : vector<112x16xf32>
    %35 = tpu.matmul %32, %34, %cst_13 {dimension_numbers = #tpu.dot_dimension_numbers<[1], [0], [0], [1], [0, 0, 1, 1], [], []>} : vector<112x16xbf16>, vector<16x16xbf16>, vector<112x16xf32> -> vector<112x16xf32>
    %36 = arith.addf %24, %35 : vector<112x16xf32>
    %37 = vector.extract_strided_slice %9 {offsets = [0, 2], sizes = [112, 1], strides = [1, 1]} : vector<112x27xi32> to vector<112x1xi32>
    %38 = vector.broadcast %37 : vector<112x1xi32> to vector<112x208xi32>
    %39 = arith.cmpi eq, %38, %10 : vector<112x208xi32>
    %40 = arith.extui %39 : vector<112x208xi1> to vector<112x208xi32>
    %41 = arith.sitofp %40 : vector<112x208xi32> to vector<112x208xf32>
    %42 = arith.truncf %41 : vector<112x208xf32> to vector<112x208xbf16>
    %cst_14 = arith.constant dense<0.000000e+00> : vector<112x16xf32>
    %43 = tpu.matmul %42, %11, %cst_14 {dimension_numbers = #tpu.dot_dimension_numbers<[1], [0], [0], [1], [0, 0, 1, 1], [], []>} : vector<112x208xbf16>, vector<208x16xbf16>, vector<112x16xf32> -> vector<112x16xf32>
    %44 = arith.truncf %43 : vector<112x16xf32> to vector<112x16xbf16>
    %c2 = arith.constant 2 : index
    %c0_15 = arith.constant 0 : index
    %c0_16 = arith.constant 0 : index
    %45 = vector.load %arg5[%c2, %c0_15, %c0_16] : memref<27x16x16xbf16, #tpu.memory_space<vmem>>, vector<1x16x16xbf16>
    %46 = vector.shape_cast %45 : vector<1x16x16xbf16> to vector<16x16xbf16>
    %cst_17 = arith.constant dense<0.000000e+00> : vector<112x16xf32>
    %47 = tpu.matmul %44, %46, %cst_17 {dimension_numbers = #tpu.dot_dimension_numbers<[1], [0], [0], [1], [0, 0, 1, 1], [], []>} : vector<112x16xbf16>, vector<16x16xbf16>, vector<112x16xf32> -> vector<112x16xf32>
    %48 = arith.addf %36, %47 : vector<112x16xf32>
    %49 = vector.extract_strided_slice %9 {offsets = [0, 3], sizes = [112, 1], strides = [1, 1]} : vector<112x27xi32> to vector<112x1xi32>
    %50 = vector.broadcast %49 : vector<112x1xi32> to vector<112x208xi32>
    %51 = arith.cmpi eq, %50, %10 : vector<112x208xi32>
    %52 = arith.extui %51 : vector<112x208xi1> to vector<112x208xi32>
    %53 = arith.sitofp %52 : vector<112x208xi32> to vector<112x208xf32>
    %54 = arith.truncf %53 : vector<112x208xf32> to vector<112x208xbf16>
    %cst_18 = arith.constant dense<0.000000e+00> : vector<112x16xf32>
    %55 = tpu.matmul %54, %11, %cst_18 {dimension_numbers = #tpu.dot_dimension_numbers<[1], [0], [0], [1], [0, 0, 1, 1], [], []>} : vector<112x208xbf16>, vector<208x16xbf16>, vector<112x16xf32> -> vector<112x16xf32>
    %56 = arith.truncf %55 : vector<112x16xf32> to vector<112x16xbf16>
    %c3 = arith.constant 3 : index
    %c0_19 = arith.constant 0 : index
    %c0_20 = arith.constant 0 : index
    %57 = vector.load %arg5[%c3, %c0_19, %c0_20] : memref<27x16x16xbf16, #tpu.memory_space<vmem>>, vector<1x16x16xbf16>
    %58 = vector.shape_cast %57 : vector<1x16x16xbf16> to vector<16x16xbf16>
    %cst_21 = arith.constant dense<0.000000e+00> : vector<112x16xf32>
    %59 = tpu.matmul %56, %58, %cst_21 {dimension_numbers = #tpu.dot_dimension_numbers<[1], [0], [0], [1], [0, 0, 1, 1], [], []>} : vector<112x16xbf16>, vector<16x16xbf16>, vector<112x16xf32> -> vector<112x16xf32>
    %60 = arith.addf %48, %59 : vector<112x16xf32>
    %61 = vector.extract_strided_slice %9 {offsets = [0, 4], sizes = [112, 1], strides = [1, 1]} : vector<112x27xi32> to vector<112x1xi32>
    %62 = vector.broadcast %61 : vector<112x1xi32> to vector<112x208xi32>
    %63 = arith.cmpi eq, %62, %10 : vector<112x208xi32>
    %64 = arith.extui %63 : vector<112x208xi1> to vector<112x208xi32>
    %65 = arith.sitofp %64 : vector<112x208xi32> to vector<112x208xf32>
    %66 = arith.truncf %65 : vector<112x208xf32> to vector<112x208xbf16>
    %cst_22 = arith.constant dense<0.000000e+00> : vector<112x16xf32>
    %67 = tpu.matmul %66, %11, %cst_22 {dimension_numbers = #tpu.dot_dimension_numbers<[1], [0], [0], [1], [0, 0, 1, 1], [], []>} : vector<112x208xbf16>, vector<208x16xbf16>, vector<112x16xf32> -> vector<112x16xf32>
    %68 = arith.truncf %67 : vector<112x16xf32> to vector<112x16xbf16>
    %c4 = arith.constant 4 : index
    %c0_23 = arith.constant 0 : index
    %c0_24 = arith.constant 0 : index
    %69 = vector.load %arg5[%c4, %c0_23, %c0_24] : memref<27x16x16xbf16, #tpu.memory_space<vmem>>, vector<1x16x16xbf16>
    %70 = vector.shape_cast %69 : vector<1x16x16xbf16> to vector<16x16xbf16>
    %cst_25 = arith.constant dense<0.000000e+00> : vector<112x16xf32>
    %71 = tpu.matmul %68, %70, %cst_25 {dimension_numbers = #tpu.dot_dimension_numbers<[1], [0], [0], [1], [0, 0, 1, 1], [], []>} : vector<112x16xbf16>, vector<16x16xbf16>, vector<112x16xf32> -> vector<112x16xf32>
    %72 = arith.addf %60, %71 : vector<112x16xf32>
    %73 = vector.extract_strided_slice %9 {offsets = [0, 5], sizes = [112, 1], strides = [1, 1]} : vector<112x27xi32> to vector<112x1xi32>
    %74 = vector.broadcast %73 : vector<112x1xi32> to vector<112x208xi32>
    %75 = arith.cmpi eq, %74, %10 : vector<112x208xi32>
    %76 = arith.extui %75 : vector<112x208xi1> to vector<112x208xi32>
    %77 = arith.sitofp %76 : vector<112x208xi32> to vector<112x208xf32>
    %78 = arith.truncf %77 : vector<112x208xf32> to vector<112x208xbf16>
    %cst_26 = arith.constant dense<0.000000e+00> : vector<112x16xf32>
    %79 = tpu.matmul %78, %11, %cst_26 {dimension_numbers = #tpu.dot_dimension_numbers<[1], [0], [0], [1], [0, 0, 1, 1], [], []>} : vector<112x208xbf16>, vector<208x16xbf16>, vector<112x16xf32> -> vector<112x16xf32>
    %80 = arith.truncf %79 : vector<112x16xf32> to vector<112x16xbf16>
    %c5 = arith.constant 5 : index
    %c0_27 = arith.constant 0 : index
    %c0_28 = arith.constant 0 : index
    %81 = vector.load %arg5[%c5, %c0_27, %c0_28] : memref<27x16x16xbf16, #tpu.memory_space<vmem>>, vector<1x16x16xbf16>
    %82 = vector.shape_cast %81 : vector<1x16x16xbf16> to vector<16x16xbf16>
    %cst_29 = arith.constant dense<0.000000e+00> : vector<112x16xf32>
    %83 = tpu.matmul %80, %82, %cst_29 {dimension_numbers = #tpu.dot_dimension_numbers<[1], [0], [0], [1], [0, 0, 1, 1], [], []>} : vector<112x16xbf16>, vector<16x16xbf16>, vector<112x16xf32> -> vector<112x16xf32>
    %84 = arith.addf %72, %83 : vector<112x16xf32>
    %85 = vector.extract_strided_slice %9 {offsets = [0, 6], sizes = [112, 1], strides = [1, 1]} : vector<112x27xi32> to vector<112x1xi32>
    %86 = vector.broadcast %85 : vector<112x1xi32> to vector<112x208xi32>
    %87 = arith.cmpi eq, %86, %10 : vector<112x208xi32>
    %88 = arith.extui %87 : vector<112x208xi1> to vector<112x208xi32>
    %89 = arith.sitofp %88 : vector<112x208xi32> to vector<112x208xf32>
    %90 = arith.truncf %89 : vector<112x208xf32> to vector<112x208xbf16>
    %cst_30 = arith.constant dense<0.000000e+00> : vector<112x16xf32>
    %91 = tpu.matmul %90, %11, %cst_30 {dimension_numbers = #tpu.dot_dimension_numbers<[1], [0], [0], [1], [0, 0, 1, 1], [], []>} : vector<112x208xbf16>, vector<208x16xbf16>, vector<112x16xf32> -> vector<112x16xf32>
    %92 = arith.truncf %91 : vector<112x16xf32> to vector<112x16xbf16>
    %c6 = arith.constant 6 : index
    %c0_31 = arith.constant 0 : index
    %c0_32 = arith.constant 0 : index
    %93 = vector.load %arg5[%c6, %c0_31, %c0_32] : memref<27x16x16xbf16, #tpu.memory_space<vmem>>, vector<1x16x16xbf16>
    %94 = vector.shape_cast %93 : vector<1x16x16xbf16> to vector<16x16xbf16>
    %cst_33 = arith.constant dense<0.000000e+00> : vector<112x16xf32>
    %95 = tpu.matmul %92, %94, %cst_33 {dimension_numbers = #tpu.dot_dimension_numbers<[1], [0], [0], [1], [0, 0, 1, 1], [], []>} : vector<112x16xbf16>, vector<16x16xbf16>, vector<112x16xf32> -> vector<112x16xf32>
    %96 = arith.addf %84, %95 : vector<112x16xf32>
    %97 = vector.extract_strided_slice %9 {offsets = [0, 7], sizes = [112, 1], strides = [1, 1]} : vector<112x27xi32> to vector<112x1xi32>
    %98 = vector.broadcast %97 : vector<112x1xi32> to vector<112x208xi32>
    %99 = arith.cmpi eq, %98, %10 : vector<112x208xi32>
    %100 = arith.extui %99 : vector<112x208xi1> to vector<112x208xi32>
    %101 = arith.sitofp %100 : vector<112x208xi32> to vector<112x208xf32>
    %102 = arith.truncf %101 : vector<112x208xf32> to vector<112x208xbf16>
    %cst_34 = arith.constant dense<0.000000e+00> : vector<112x16xf32>
    %103 = tpu.matmul %102, %11, %cst_34 {dimension_numbers = #tpu.dot_dimension_numbers<[1], [0], [0], [1], [0, 0, 1, 1], [], []>} : vector<112x208xbf16>, vector<208x16xbf16>, vector<112x16xf32> -> vector<112x16xf32>
    %104 = arith.truncf %103 : vector<112x16xf32> to vector<112x16xbf16>
    %c7 = arith.constant 7 : index
    %c0_35 = arith.constant 0 : index
    %c0_36 = arith.constant 0 : index
    %105 = vector.load %arg5[%c7, %c0_35, %c0_36] : memref<27x16x16xbf16, #tpu.memory_space<vmem>>, vector<1x16x16xbf16>
    %106 = vector.shape_cast %105 : vector<1x16x16xbf16> to vector<16x16xbf16>
    %cst_37 = arith.constant dense<0.000000e+00> : vector<112x16xf32>
    %107 = tpu.matmul %104, %106, %cst_37 {dimension_numbers = #tpu.dot_dimension_numbers<[1], [0], [0], [1], [0, 0, 1, 1], [], []>} : vector<112x16xbf16>, vector<16x16xbf16>, vector<112x16xf32> -> vector<112x16xf32>
    %108 = arith.addf %96, %107 : vector<112x16xf32>
    %109 = vector.extract_strided_slice %9 {offsets = [0, 8], sizes = [112, 1], strides = [1, 1]} : vector<112x27xi32> to vector<112x1xi32>
    %110 = vector.broadcast %109 : vector<112x1xi32> to vector<112x208xi32>
    %111 = arith.cmpi eq, %110, %10 : vector<112x208xi32>
    %112 = arith.extui %111 : vector<112x208xi1> to vector<112x208xi32>
    %113 = arith.sitofp %112 : vector<112x208xi32> to vector<112x208xf32>
    %114 = arith.truncf %113 : vector<112x208xf32> to vector<112x208xbf16>
    %cst_38 = arith.constant dense<0.000000e+00> : vector<112x16xf32>
    %115 = tpu.matmul %114, %11, %cst_38 {dimension_numbers = #tpu.dot_dimension_numbers<[1], [0], [0], [1], [0, 0, 1, 1], [], []>} : vector<112x208xbf16>, vector<208x16xbf16>, vector<112x16xf32> -> vector<112x16xf32>
    %116 = arith.truncf %115 : vector<112x16xf32> to vector<112x16xbf16>
    %c8 = arith.constant 8 : index
    %c0_39 = arith.constant 0 : index
    %c0_40 = arith.constant 0 : index
    %117 = vector.load %arg5[%c8, %c0_39, %c0_40] : memref<27x16x16xbf16, #tpu.memory_space<vmem>>, vector<1x16x16xbf16>
    %118 = vector.shape_cast %117 : vector<1x16x16xbf16> to vector<16x16xbf16>
    %cst_41 = arith.constant dense<0.000000e+00> : vector<112x16xf32>
    %119 = tpu.matmul %116, %118, %cst_41 {dimension_numbers = #tpu.dot_dimension_numbers<[1], [0], [0], [1], [0, 0, 1, 1], [], []>} : vector<112x16xbf16>, vector<16x16xbf16>, vector<112x16xf32> -> vector<112x16xf32>
    %120 = arith.addf %108, %119 : vector<112x16xf32>
    %121 = vector.extract_strided_slice %9 {offsets = [0, 9], sizes = [112, 1], strides = [1, 1]} : vector<112x27xi32> to vector<112x1xi32>
    %122 = vector.broadcast %121 : vector<112x1xi32> to vector<112x208xi32>
    %123 = arith.cmpi eq, %122, %10 : vector<112x208xi32>
    %124 = arith.extui %123 : vector<112x208xi1> to vector<112x208xi32>
    %125 = arith.sitofp %124 : vector<112x208xi32> to vector<112x208xf32>
    %126 = arith.truncf %125 : vector<112x208xf32> to vector<112x208xbf16>
    %cst_42 = arith.constant dense<0.000000e+00> : vector<112x16xf32>
    %127 = tpu.matmul %126, %11, %cst_42 {dimension_numbers = #tpu.dot_dimension_numbers<[1], [0], [0], [1], [0, 0, 1, 1], [], []>} : vector<112x208xbf16>, vector<208x16xbf16>, vector<112x16xf32> -> vector<112x16xf32>
    %128 = arith.truncf %127 : vector<112x16xf32> to vector<112x16xbf16>
    %c9 = arith.constant 9 : index
    %c0_43 = arith.constant 0 : index
    %c0_44 = arith.constant 0 : index
    %129 = vector.load %arg5[%c9, %c0_43, %c0_44] : memref<27x16x16xbf16, #tpu.memory_space<vmem>>, vector<1x16x16xbf16>
    %130 = vector.shape_cast %129 : vector<1x16x16xbf16> to vector<16x16xbf16>
    %cst_45 = arith.constant dense<0.000000e+00> : vector<112x16xf32>
    %131 = tpu.matmul %128, %130, %cst_45 {dimension_numbers = #tpu.dot_dimension_numbers<[1], [0], [0], [1], [0, 0, 1, 1], [], []>} : vector<112x16xbf16>, vector<16x16xbf16>, vector<112x16xf32> -> vector<112x16xf32>
    %132 = arith.addf %120, %131 : vector<112x16xf32>
    %133 = vector.extract_strided_slice %9 {offsets = [0, 10], sizes = [112, 1], strides = [1, 1]} : vector<112x27xi32> to vector<112x1xi32>
    %134 = vector.broadcast %133 : vector<112x1xi32> to vector<112x208xi32>
    %135 = arith.cmpi eq, %134, %10 : vector<112x208xi32>
    %136 = arith.extui %135 : vector<112x208xi1> to vector<112x208xi32>
    %137 = arith.sitofp %136 : vector<112x208xi32> to vector<112x208xf32>
    %138 = arith.truncf %137 : vector<112x208xf32> to vector<112x208xbf16>
    %cst_46 = arith.constant dense<0.000000e+00> : vector<112x16xf32>
    %139 = tpu.matmul %138, %11, %cst_46 {dimension_numbers = #tpu.dot_dimension_numbers<[1], [0], [0], [1], [0, 0, 1, 1], [], []>} : vector<112x208xbf16>, vector<208x16xbf16>, vector<112x16xf32> -> vector<112x16xf32>
    %140 = arith.truncf %139 : vector<112x16xf32> to vector<112x16xbf16>
    %c10 = arith.constant 10 : index
    %c0_47 = arith.constant 0 : index
    %c0_48 = arith.constant 0 : index
    %141 = vector.load %arg5[%c10, %c0_47, %c0_48] : memref<27x16x16xbf16, #tpu.memory_space<vmem>>, vector<1x16x16xbf16>
    %142 = vector.shape_cast %141 : vector<1x16x16xbf16> to vector<16x16xbf16>
    %cst_49 = arith.constant dense<0.000000e+00> : vector<112x16xf32>
    %143 = tpu.matmul %140, %142, %cst_49 {dimension_numbers = #tpu.dot_dimension_numbers<[1], [0], [0], [1], [0, 0, 1, 1], [], []>} : vector<112x16xbf16>, vector<16x16xbf16>, vector<112x16xf32> -> vector<112x16xf32>
    %144 = arith.addf %132, %143 : vector<112x16xf32>
    %145 = vector.extract_strided_slice %9 {offsets = [0, 11], sizes = [112, 1], strides = [1, 1]} : vector<112x27xi32> to vector<112x1xi32>
    %146 = vector.broadcast %145 : vector<112x1xi32> to vector<112x208xi32>
    %147 = arith.cmpi eq, %146, %10 : vector<112x208xi32>
    %148 = arith.extui %147 : vector<112x208xi1> to vector<112x208xi32>
    %149 = arith.sitofp %148 : vector<112x208xi32> to vector<112x208xf32>
    %150 = arith.truncf %149 : vector<112x208xf32> to vector<112x208xbf16>
    %cst_50 = arith.constant dense<0.000000e+00> : vector<112x16xf32>
    %151 = tpu.matmul %150, %11, %cst_50 {dimension_numbers = #tpu.dot_dimension_numbers<[1], [0], [0], [1], [0, 0, 1, 1], [], []>} : vector<112x208xbf16>, vector<208x16xbf16>, vector<112x16xf32> -> vector<112x16xf32>
    %152 = arith.truncf %151 : vector<112x16xf32> to vector<112x16xbf16>
    %c11 = arith.constant 11 : index
    %c0_51 = arith.constant 0 : index
    %c0_52 = arith.constant 0 : index
    %153 = vector.load %arg5[%c11, %c0_51, %c0_52] : memref<27x16x16xbf16, #tpu.memory_space<vmem>>, vector<1x16x16xbf16>
    %154 = vector.shape_cast %153 : vector<1x16x16xbf16> to vector<16x16xbf16>
    %cst_53 = arith.constant dense<0.000000e+00> : vector<112x16xf32>
    %155 = tpu.matmul %152, %154, %cst_53 {dimension_numbers = #tpu.dot_dimension_numbers<[1], [0], [0], [1], [0, 0, 1, 1], [], []>} : vector<112x16xbf16>, vector<16x16xbf16>, vector<112x16xf32> -> vector<112x16xf32>
    %156 = arith.addf %144, %155 : vector<112x16xf32>
    %157 = vector.extract_strided_slice %9 {offsets = [0, 12], sizes = [112, 1], strides = [1, 1]} : vector<112x27xi32> to vector<112x1xi32>
    %158 = vector.broadcast %157 : vector<112x1xi32> to vector<112x208xi32>
    %159 = arith.cmpi eq, %158, %10 : vector<112x208xi32>
    %160 = arith.extui %159 : vector<112x208xi1> to vector<112x208xi32>
    %161 = arith.sitofp %160 : vector<112x208xi32> to vector<112x208xf32>
    %162 = arith.truncf %161 : vector<112x208xf32> to vector<112x208xbf16>
    %cst_54 = arith.constant dense<0.000000e+00> : vector<112x16xf32>
    %163 = tpu.matmul %162, %11, %cst_54 {dimension_numbers = #tpu.dot_dimension_numbers<[1], [0], [0], [1], [0, 0, 1, 1], [], []>} : vector<112x208xbf16>, vector<208x16xbf16>, vector<112x16xf32> -> vector<112x16xf32>
    %164 = arith.truncf %163 : vector<112x16xf32> to vector<112x16xbf16>
    %c12 = arith.constant 12 : index
    %c0_55 = arith.constant 0 : index
    %c0_56 = arith.constant 0 : index
    %165 = vector.load %arg5[%c12, %c0_55, %c0_56] : memref<27x16x16xbf16, #tpu.memory_space<vmem>>, vector<1x16x16xbf16>
    %166 = vector.shape_cast %165 : vector<1x16x16xbf16> to vector<16x16xbf16>
    %cst_57 = arith.constant dense<0.000000e+00> : vector<112x16xf32>
    %167 = tpu.matmul %164, %166, %cst_57 {dimension_numbers = #tpu.dot_dimension_numbers<[1], [0], [0], [1], [0, 0, 1, 1], [], []>} : vector<112x16xbf16>, vector<16x16xbf16>, vector<112x16xf32> -> vector<112x16xf32>
    %168 = arith.addf %156, %167 : vector<112x16xf32>
    %169 = vector.extract_strided_slice %9 {offsets = [0, 13], sizes = [112, 1], strides = [1, 1]} : vector<112x27xi32> to vector<112x1xi32>
    %170 = vector.broadcast %169 : vector<112x1xi32> to vector<112x208xi32>
    %171 = arith.cmpi eq, %170, %10 : vector<112x208xi32>
    %172 = arith.extui %171 : vector<112x208xi1> to vector<112x208xi32>
    %173 = arith.sitofp %172 : vector<112x208xi32> to vector<112x208xf32>
    %174 = arith.truncf %173 : vector<112x208xf32> to vector<112x208xbf16>
    %cst_58 = arith.constant dense<0.000000e+00> : vector<112x16xf32>
    %175 = tpu.matmul %174, %11, %cst_58 {dimension_numbers = #tpu.dot_dimension_numbers<[1], [0], [0], [1], [0, 0, 1, 1], [], []>} : vector<112x208xbf16>, vector<208x16xbf16>, vector<112x16xf32> -> vector<112x16xf32>
    %176 = arith.truncf %175 : vector<112x16xf32> to vector<112x16xbf16>
    %c13 = arith.constant 13 : index
    %c0_59 = arith.constant 0 : index
    %c0_60 = arith.constant 0 : index
    %177 = vector.load %arg5[%c13, %c0_59, %c0_60] : memref<27x16x16xbf16, #tpu.memory_space<vmem>>, vector<1x16x16xbf16>
    %178 = vector.shape_cast %177 : vector<1x16x16xbf16> to vector<16x16xbf16>
    %cst_61 = arith.constant dense<0.000000e+00> : vector<112x16xf32>
    %179 = tpu.matmul %176, %178, %cst_61 {dimension_numbers = #tpu.dot_dimension_numbers<[1], [0], [0], [1], [0, 0, 1, 1], [], []>} : vector<112x16xbf16>, vector<16x16xbf16>, vector<112x16xf32> -> vector<112x16xf32>
    %180 = arith.addf %168, %179 : vector<112x16xf32>
    %181 = vector.extract_strided_slice %9 {offsets = [0, 14], sizes = [112, 1], strides = [1, 1]} : vector<112x27xi32> to vector<112x1xi32>
    %182 = vector.broadcast %181 : vector<112x1xi32> to vector<112x208xi32>
    %183 = arith.cmpi eq, %182, %10 : vector<112x208xi32>
    %184 = arith.extui %183 : vector<112x208xi1> to vector<112x208xi32>
    %185 = arith.sitofp %184 : vector<112x208xi32> to vector<112x208xf32>
    %186 = arith.truncf %185 : vector<112x208xf32> to vector<112x208xbf16>
    %cst_62 = arith.constant dense<0.000000e+00> : vector<112x16xf32>
    %187 = tpu.matmul %186, %11, %cst_62 {dimension_numbers = #tpu.dot_dimension_numbers<[1], [0], [0], [1], [0, 0, 1, 1], [], []>} : vector<112x208xbf16>, vector<208x16xbf16>, vector<112x16xf32> -> vector<112x16xf32>
    %188 = arith.truncf %187 : vector<112x16xf32> to vector<112x16xbf16>
    %c14 = arith.constant 14 : index
    %c0_63 = arith.constant 0 : index
    %c0_64 = arith.constant 0 : index
    %189 = vector.load %arg5[%c14, %c0_63, %c0_64] : memref<27x16x16xbf16, #tpu.memory_space<vmem>>, vector<1x16x16xbf16>
    %190 = vector.shape_cast %189 : vector<1x16x16xbf16> to vector<16x16xbf16>
    %cst_65 = arith.constant dense<0.000000e+00> : vector<112x16xf32>
    %191 = tpu.matmul %188, %190, %cst_65 {dimension_numbers = #tpu.dot_dimension_numbers<[1], [0], [0], [1], [0, 0, 1, 1], [], []>} : vector<112x16xbf16>, vector<16x16xbf16>, vector<112x16xf32> -> vector<112x16xf32>
    %192 = arith.addf %180, %191 : vector<112x16xf32>
    %193 = vector.extract_strided_slice %9 {offsets = [0, 15], sizes = [112, 1], strides = [1, 1]} : vector<112x27xi32> to vector<112x1xi32>
    %194 = vector.broadcast %193 : vector<112x1xi32> to vector<112x208xi32>
    %195 = arith.cmpi eq, %194, %10 : vector<112x208xi32>
    %196 = arith.extui %195 : vector<112x208xi1> to vector<112x208xi32>
    %197 = arith.sitofp %196 : vector<112x208xi32> to vector<112x208xf32>
    %198 = arith.truncf %197 : vector<112x208xf32> to vector<112x208xbf16>
    %cst_66 = arith.constant dense<0.000000e+00> : vector<112x16xf32>
    %199 = tpu.matmul %198, %11, %cst_66 {dimension_numbers = #tpu.dot_dimension_numbers<[1], [0], [0], [1], [0, 0, 1, 1], [], []>} : vector<112x208xbf16>, vector<208x16xbf16>, vector<112x16xf32> -> vector<112x16xf32>
    %200 = arith.truncf %199 : vector<112x16xf32> to vector<112x16xbf16>
    %c15 = arith.constant 15 : index
    %c0_67 = arith.constant 0 : index
    %c0_68 = arith.constant 0 : index
    %201 = vector.load %arg5[%c15, %c0_67, %c0_68] : memref<27x16x16xbf16, #tpu.memory_space<vmem>>, vector<1x16x16xbf16>
    %202 = vector.shape_cast %201 : vector<1x16x16xbf16> to vector<16x16xbf16>
    %cst_69 = arith.constant dense<0.000000e+00> : vector<112x16xf32>
    %203 = tpu.matmul %200, %202, %cst_69 {dimension_numbers = #tpu.dot_dimension_numbers<[1], [0], [0], [1], [0, 0, 1, 1], [], []>} : vector<112x16xbf16>, vector<16x16xbf16>, vector<112x16xf32> -> vector<112x16xf32>
    %204 = arith.addf %192, %203 : vector<112x16xf32>
    %205 = vector.extract_strided_slice %9 {offsets = [0, 16], sizes = [112, 1], strides = [1, 1]} : vector<112x27xi32> to vector<112x1xi32>
    %206 = vector.broadcast %205 : vector<112x1xi32> to vector<112x208xi32>
    %207 = arith.cmpi eq, %206, %10 : vector<112x208xi32>
    %208 = arith.extui %207 : vector<112x208xi1> to vector<112x208xi32>
    %209 = arith.sitofp %208 : vector<112x208xi32> to vector<112x208xf32>
    %210 = arith.truncf %209 : vector<112x208xf32> to vector<112x208xbf16>
    %cst_70 = arith.constant dense<0.000000e+00> : vector<112x16xf32>
    %211 = tpu.matmul %210, %11, %cst_70 {dimension_numbers = #tpu.dot_dimension_numbers<[1], [0], [0], [1], [0, 0, 1, 1], [], []>} : vector<112x208xbf16>, vector<208x16xbf16>, vector<112x16xf32> -> vector<112x16xf32>
    %212 = arith.truncf %211 : vector<112x16xf32> to vector<112x16xbf16>
    %c16 = arith.constant 16 : index
    %c0_71 = arith.constant 0 : index
    %c0_72 = arith.constant 0 : index
    %213 = vector.load %arg5[%c16, %c0_71, %c0_72] : memref<27x16x16xbf16, #tpu.memory_space<vmem>>, vector<1x16x16xbf16>
    %214 = vector.shape_cast %213 : vector<1x16x16xbf16> to vector<16x16xbf16>
    %cst_73 = arith.constant dense<0.000000e+00> : vector<112x16xf32>
    %215 = tpu.matmul %212, %214, %cst_73 {dimension_numbers = #tpu.dot_dimension_numbers<[1], [0], [0], [1], [0, 0, 1, 1], [], []>} : vector<112x16xbf16>, vector<16x16xbf16>, vector<112x16xf32> -> vector<112x16xf32>
    %216 = arith.addf %204, %215 : vector<112x16xf32>
    %217 = vector.extract_strided_slice %9 {offsets = [0, 17], sizes = [112, 1], strides = [1, 1]} : vector<112x27xi32> to vector<112x1xi32>
    %218 = vector.broadcast %217 : vector<112x1xi32> to vector<112x208xi32>
    %219 = arith.cmpi eq, %218, %10 : vector<112x208xi32>
    %220 = arith.extui %219 : vector<112x208xi1> to vector<112x208xi32>
    %221 = arith.sitofp %220 : vector<112x208xi32> to vector<112x208xf32>
    %222 = arith.truncf %221 : vector<112x208xf32> to vector<112x208xbf16>
    %cst_74 = arith.constant dense<0.000000e+00> : vector<112x16xf32>
    %223 = tpu.matmul %222, %11, %cst_74 {dimension_numbers = #tpu.dot_dimension_numbers<[1], [0], [0], [1], [0, 0, 1, 1], [], []>} : vector<112x208xbf16>, vector<208x16xbf16>, vector<112x16xf32> -> vector<112x16xf32>
    %224 = arith.truncf %223 : vector<112x16xf32> to vector<112x16xbf16>
    %c17 = arith.constant 17 : index
    %c0_75 = arith.constant 0 : index
    %c0_76 = arith.constant 0 : index
    %225 = vector.load %arg5[%c17, %c0_75, %c0_76] : memref<27x16x16xbf16, #tpu.memory_space<vmem>>, vector<1x16x16xbf16>
    %226 = vector.shape_cast %225 : vector<1x16x16xbf16> to vector<16x16xbf16>
    %cst_77 = arith.constant dense<0.000000e+00> : vector<112x16xf32>
    %227 = tpu.matmul %224, %226, %cst_77 {dimension_numbers = #tpu.dot_dimension_numbers<[1], [0], [0], [1], [0, 0, 1, 1], [], []>} : vector<112x16xbf16>, vector<16x16xbf16>, vector<112x16xf32> -> vector<112x16xf32>
    %228 = arith.addf %216, %227 : vector<112x16xf32>
    %229 = vector.extract_strided_slice %9 {offsets = [0, 18], sizes = [112, 1], strides = [1, 1]} : vector<112x27xi32> to vector<112x1xi32>
    %230 = vector.broadcast %229 : vector<112x1xi32> to vector<112x208xi32>
    %231 = arith.cmpi eq, %230, %10 : vector<112x208xi32>
    %232 = arith.extui %231 : vector<112x208xi1> to vector<112x208xi32>
    %233 = arith.sitofp %232 : vector<112x208xi32> to vector<112x208xf32>
    %234 = arith.truncf %233 : vector<112x208xf32> to vector<112x208xbf16>
    %cst_78 = arith.constant dense<0.000000e+00> : vector<112x16xf32>
    %235 = tpu.matmul %234, %11, %cst_78 {dimension_numbers = #tpu.dot_dimension_numbers<[1], [0], [0], [1], [0, 0, 1, 1], [], []>} : vector<112x208xbf16>, vector<208x16xbf16>, vector<112x16xf32> -> vector<112x16xf32>
    %236 = arith.truncf %235 : vector<112x16xf32> to vector<112x16xbf16>
    %c18 = arith.constant 18 : index
    %c0_79 = arith.constant 0 : index
    %c0_80 = arith.constant 0 : index
    %237 = vector.load %arg5[%c18, %c0_79, %c0_80] : memref<27x16x16xbf16, #tpu.memory_space<vmem>>, vector<1x16x16xbf16>
    %238 = vector.shape_cast %237 : vector<1x16x16xbf16> to vector<16x16xbf16>
    %cst_81 = arith.constant dense<0.000000e+00> : vector<112x16xf32>
    %239 = tpu.matmul %236, %238, %cst_81 {dimension_numbers = #tpu.dot_dimension_numbers<[1], [0], [0], [1], [0, 0, 1, 1], [], []>} : vector<112x16xbf16>, vector<16x16xbf16>, vector<112x16xf32> -> vector<112x16xf32>
    %240 = arith.addf %228, %239 : vector<112x16xf32>
    %241 = vector.extract_strided_slice %9 {offsets = [0, 19], sizes = [112, 1], strides = [1, 1]} : vector<112x27xi32> to vector<112x1xi32>
    %242 = vector.broadcast %241 : vector<112x1xi32> to vector<112x208xi32>
    %243 = arith.cmpi eq, %242, %10 : vector<112x208xi32>
    %244 = arith.extui %243 : vector<112x208xi1> to vector<112x208xi32>
    %245 = arith.sitofp %244 : vector<112x208xi32> to vector<112x208xf32>
    %246 = arith.truncf %245 : vector<112x208xf32> to vector<112x208xbf16>
    %cst_82 = arith.constant dense<0.000000e+00> : vector<112x16xf32>
    %247 = tpu.matmul %246, %11, %cst_82 {dimension_numbers = #tpu.dot_dimension_numbers<[1], [0], [0], [1], [0, 0, 1, 1], [], []>} : vector<112x208xbf16>, vector<208x16xbf16>, vector<112x16xf32> -> vector<112x16xf32>
    %248 = arith.truncf %247 : vector<112x16xf32> to vector<112x16xbf16>
    %c19 = arith.constant 19 : index
    %c0_83 = arith.constant 0 : index
    %c0_84 = arith.constant 0 : index
    %249 = vector.load %arg5[%c19, %c0_83, %c0_84] : memref<27x16x16xbf16, #tpu.memory_space<vmem>>, vector<1x16x16xbf16>
    %250 = vector.shape_cast %249 : vector<1x16x16xbf16> to vector<16x16xbf16>
    %cst_85 = arith.constant dense<0.000000e+00> : vector<112x16xf32>
    %251 = tpu.matmul %248, %250, %cst_85 {dimension_numbers = #tpu.dot_dimension_numbers<[1], [0], [0], [1], [0, 0, 1, 1], [], []>} : vector<112x16xbf16>, vector<16x16xbf16>, vector<112x16xf32> -> vector<112x16xf32>
    %252 = arith.addf %240, %251 : vector<112x16xf32>
    %253 = vector.extract_strided_slice %9 {offsets = [0, 20], sizes = [112, 1], strides = [1, 1]} : vector<112x27xi32> to vector<112x1xi32>
    %254 = vector.broadcast %253 : vector<112x1xi32> to vector<112x208xi32>
    %255 = arith.cmpi eq, %254, %10 : vector<112x208xi32>
    %256 = arith.extui %255 : vector<112x208xi1> to vector<112x208xi32>
    %257 = arith.sitofp %256 : vector<112x208xi32> to vector<112x208xf32>
    %258 = arith.truncf %257 : vector<112x208xf32> to vector<112x208xbf16>
    %cst_86 = arith.constant dense<0.000000e+00> : vector<112x16xf32>
    %259 = tpu.matmul %258, %11, %cst_86 {dimension_numbers = #tpu.dot_dimension_numbers<[1], [0], [0], [1], [0, 0, 1, 1], [], []>} : vector<112x208xbf16>, vector<208x16xbf16>, vector<112x16xf32> -> vector<112x16xf32>
    %260 = arith.truncf %259 : vector<112x16xf32> to vector<112x16xbf16>
    %c20 = arith.constant 20 : index
    %c0_87 = arith.constant 0 : index
    %c0_88 = arith.constant 0 : index
    %261 = vector.load %arg5[%c20, %c0_87, %c0_88] : memref<27x16x16xbf16, #tpu.memory_space<vmem>>, vector<1x16x16xbf16>
    %262 = vector.shape_cast %261 : vector<1x16x16xbf16> to vector<16x16xbf16>
    %cst_89 = arith.constant dense<0.000000e+00> : vector<112x16xf32>
    %263 = tpu.matmul %260, %262, %cst_89 {dimension_numbers = #tpu.dot_dimension_numbers<[1], [0], [0], [1], [0, 0, 1, 1], [], []>} : vector<112x16xbf16>, vector<16x16xbf16>, vector<112x16xf32> -> vector<112x16xf32>
    %264 = arith.addf %252, %263 : vector<112x16xf32>
    %265 = vector.extract_strided_slice %9 {offsets = [0, 21], sizes = [112, 1], strides = [1, 1]} : vector<112x27xi32> to vector<112x1xi32>
    %266 = vector.broadcast %265 : vector<112x1xi32> to vector<112x208xi32>
    %267 = arith.cmpi eq, %266, %10 : vector<112x208xi32>
    %268 = arith.extui %267 : vector<112x208xi1> to vector<112x208xi32>
    %269 = arith.sitofp %268 : vector<112x208xi32> to vector<112x208xf32>
    %270 = arith.truncf %269 : vector<112x208xf32> to vector<112x208xbf16>
    %cst_90 = arith.constant dense<0.000000e+00> : vector<112x16xf32>
    %271 = tpu.matmul %270, %11, %cst_90 {dimension_numbers = #tpu.dot_dimension_numbers<[1], [0], [0], [1], [0, 0, 1, 1], [], []>} : vector<112x208xbf16>, vector<208x16xbf16>, vector<112x16xf32> -> vector<112x16xf32>
    %272 = arith.truncf %271 : vector<112x16xf32> to vector<112x16xbf16>
    %c21 = arith.constant 21 : index
    %c0_91 = arith.constant 0 : index
    %c0_92 = arith.constant 0 : index
    %273 = vector.load %arg5[%c21, %c0_91, %c0_92] : memref<27x16x16xbf16, #tpu.memory_space<vmem>>, vector<1x16x16xbf16>
    %274 = vector.shape_cast %273 : vector<1x16x16xbf16> to vector<16x16xbf16>
    %cst_93 = arith.constant dense<0.000000e+00> : vector<112x16xf32>
    %275 = tpu.matmul %272, %274, %cst_93 {dimension_numbers = #tpu.dot_dimension_numbers<[1], [0], [0], [1], [0, 0, 1, 1], [], []>} : vector<112x16xbf16>, vector<16x16xbf16>, vector<112x16xf32> -> vector<112x16xf32>
    %276 = arith.addf %264, %275 : vector<112x16xf32>
    %277 = vector.extract_strided_slice %9 {offsets = [0, 22], sizes = [112, 1], strides = [1, 1]} : vector<112x27xi32> to vector<112x1xi32>
    %278 = vector.broadcast %277 : vector<112x1xi32> to vector<112x208xi32>
    %279 = arith.cmpi eq, %278, %10 : vector<112x208xi32>
    %280 = arith.extui %279 : vector<112x208xi1> to vector<112x208xi32>
    %281 = arith.sitofp %280 : vector<112x208xi32> to vector<112x208xf32>
    %282 = arith.truncf %281 : vector<112x208xf32> to vector<112x208xbf16>
    %cst_94 = arith.constant dense<0.000000e+00> : vector<112x16xf32>
    %283 = tpu.matmul %282, %11, %cst_94 {dimension_numbers = #tpu.dot_dimension_numbers<[1], [0], [0], [1], [0, 0, 1, 1], [], []>} : vector<112x208xbf16>, vector<208x16xbf16>, vector<112x16xf32> -> vector<112x16xf32>
    %284 = arith.truncf %283 : vector<112x16xf32> to vector<112x16xbf16>
    %c22 = arith.constant 22 : index
    %c0_95 = arith.constant 0 : index
    %c0_96 = arith.constant 0 : index
    %285 = vector.load %arg5[%c22, %c0_95, %c0_96] : memref<27x16x16xbf16, #tpu.memory_space<vmem>>, vector<1x16x16xbf16>
    %286 = vector.shape_cast %285 : vector<1x16x16xbf16> to vector<16x16xbf16>
    %cst_97 = arith.constant dense<0.000000e+00> : vector<112x16xf32>
    %287 = tpu.matmul %284, %286, %cst_97 {dimension_numbers = #tpu.dot_dimension_numbers<[1], [0], [0], [1], [0, 0, 1, 1], [], []>} : vector<112x16xbf16>, vector<16x16xbf16>, vector<112x16xf32> -> vector<112x16xf32>
    %288 = arith.addf %276, %287 : vector<112x16xf32>
    %289 = vector.extract_strided_slice %9 {offsets = [0, 23], sizes = [112, 1], strides = [1, 1]} : vector<112x27xi32> to vector<112x1xi32>
    %290 = vector.broadcast %289 : vector<112x1xi32> to vector<112x208xi32>
    %291 = arith.cmpi eq, %290, %10 : vector<112x208xi32>
    %292 = arith.extui %291 : vector<112x208xi1> to vector<112x208xi32>
    %293 = arith.sitofp %292 : vector<112x208xi32> to vector<112x208xf32>
    %294 = arith.truncf %293 : vector<112x208xf32> to vector<112x208xbf16>
    %cst_98 = arith.constant dense<0.000000e+00> : vector<112x16xf32>
    %295 = tpu.matmul %294, %11, %cst_98 {dimension_numbers = #tpu.dot_dimension_numbers<[1], [0], [0], [1], [0, 0, 1, 1], [], []>} : vector<112x208xbf16>, vector<208x16xbf16>, vector<112x16xf32> -> vector<112x16xf32>
    %296 = arith.truncf %295 : vector<112x16xf32> to vector<112x16xbf16>
    %c23 = arith.constant 23 : index
    %c0_99 = arith.constant 0 : index
    %c0_100 = arith.constant 0 : index
    %297 = vector.load %arg5[%c23, %c0_99, %c0_100] : memref<27x16x16xbf16, #tpu.memory_space<vmem>>, vector<1x16x16xbf16>
    %298 = vector.shape_cast %297 : vector<1x16x16xbf16> to vector<16x16xbf16>
    %cst_101 = arith.constant dense<0.000000e+00> : vector<112x16xf32>
    %299 = tpu.matmul %296, %298, %cst_101 {dimension_numbers = #tpu.dot_dimension_numbers<[1], [0], [0], [1], [0, 0, 1, 1], [], []>} : vector<112x16xbf16>, vector<16x16xbf16>, vector<112x16xf32> -> vector<112x16xf32>
    %300 = arith.addf %288, %299 : vector<112x16xf32>
    %301 = vector.extract_strided_slice %9 {offsets = [0, 24], sizes = [112, 1], strides = [1, 1]} : vector<112x27xi32> to vector<112x1xi32>
    %302 = vector.broadcast %301 : vector<112x1xi32> to vector<112x208xi32>
    %303 = arith.cmpi eq, %302, %10 : vector<112x208xi32>
    %304 = arith.extui %303 : vector<112x208xi1> to vector<112x208xi32>
    %305 = arith.sitofp %304 : vector<112x208xi32> to vector<112x208xf32>
    %306 = arith.truncf %305 : vector<112x208xf32> to vector<112x208xbf16>
    %cst_102 = arith.constant dense<0.000000e+00> : vector<112x16xf32>
    %307 = tpu.matmul %306, %11, %cst_102 {dimension_numbers = #tpu.dot_dimension_numbers<[1], [0], [0], [1], [0, 0, 1, 1], [], []>} : vector<112x208xbf16>, vector<208x16xbf16>, vector<112x16xf32> -> vector<112x16xf32>
    %308 = arith.truncf %307 : vector<112x16xf32> to vector<112x16xbf16>
    %c24 = arith.constant 24 : index
    %c0_103 = arith.constant 0 : index
    %c0_104 = arith.constant 0 : index
    %309 = vector.load %arg5[%c24, %c0_103, %c0_104] : memref<27x16x16xbf16, #tpu.memory_space<vmem>>, vector<1x16x16xbf16>
    %310 = vector.shape_cast %309 : vector<1x16x16xbf16> to vector<16x16xbf16>
    %cst_105 = arith.constant dense<0.000000e+00> : vector<112x16xf32>
    %311 = tpu.matmul %308, %310, %cst_105 {dimension_numbers = #tpu.dot_dimension_numbers<[1], [0], [0], [1], [0, 0, 1, 1], [], []>} : vector<112x16xbf16>, vector<16x16xbf16>, vector<112x16xf32> -> vector<112x16xf32>
    %312 = arith.addf %300, %311 : vector<112x16xf32>
    %313 = vector.extract_strided_slice %9 {offsets = [0, 25], sizes = [112, 1], strides = [1, 1]} : vector<112x27xi32> to vector<112x1xi32>
    %314 = vector.broadcast %313 : vector<112x1xi32> to vector<112x208xi32>
    %315 = arith.cmpi eq, %314, %10 : vector<112x208xi32>
    %316 = arith.extui %315 : vector<112x208xi1> to vector<112x208xi32>
    %317 = arith.sitofp %316 : vector<112x208xi32> to vector<112x208xf32>
    %318 = arith.truncf %317 : vector<112x208xf32> to vector<112x208xbf16>
    %cst_106 = arith.constant dense<0.000000e+00> : vector<112x16xf32>
    %319 = tpu.matmul %318, %11, %cst_106 {dimension_numbers = #tpu.dot_dimension_numbers<[1], [0], [0], [1], [0, 0, 1, 1], [], []>} : vector<112x208xbf16>, vector<208x16xbf16>, vector<112x16xf32> -> vector<112x16xf32>
    %320 = arith.truncf %319 : vector<112x16xf32> to vector<112x16xbf16>
    %c25 = arith.constant 25 : index
    %c0_107 = arith.constant 0 : index
    %c0_108 = arith.constant 0 : index
    %321 = vector.load %arg5[%c25, %c0_107, %c0_108] : memref<27x16x16xbf16, #tpu.memory_space<vmem>>, vector<1x16x16xbf16>
    %322 = vector.shape_cast %321 : vector<1x16x16xbf16> to vector<16x16xbf16>
    %cst_109 = arith.constant dense<0.000000e+00> : vector<112x16xf32>
    %323 = tpu.matmul %320, %322, %cst_109 {dimension_numbers = #tpu.dot_dimension_numbers<[1], [0], [0], [1], [0, 0, 1, 1], [], []>} : vector<112x16xbf16>, vector<16x16xbf16>, vector<112x16xf32> -> vector<112x16xf32>
    %324 = arith.addf %312, %323 : vector<112x16xf32>
    %325 = vector.extract_strided_slice %9 {offsets = [0, 26], sizes = [112, 1], strides = [1, 1]} : vector<112x27xi32> to vector<112x1xi32>
    %326 = vector.broadcast %325 : vector<112x1xi32> to vector<112x208xi32>
    %327 = arith.cmpi eq, %326, %10 : vector<112x208xi32>
    %328 = arith.extui %327 : vector<112x208xi1> to vector<112x208xi32>
    %329 = arith.sitofp %328 : vector<112x208xi32> to vector<112x208xf32>
    %330 = arith.truncf %329 : vector<112x208xf32> to vector<112x208xbf16>
    %cst_110 = arith.constant dense<0.000000e+00> : vector<112x16xf32>
    %331 = tpu.matmul %330, %11, %cst_110 {dimension_numbers = #tpu.dot_dimension_numbers<[1], [0], [0], [1], [0, 0, 1, 1], [], []>} : vector<112x208xbf16>, vector<208x16xbf16>, vector<112x16xf32> -> vector<112x16xf32>
    %332 = arith.truncf %331 : vector<112x16xf32> to vector<112x16xbf16>
    %c26 = arith.constant 26 : index
    %c0_111 = arith.constant 0 : index
    %c0_112 = arith.constant 0 : index
    %333 = vector.load %arg5[%c26, %c0_111, %c0_112] : memref<27x16x16xbf16, #tpu.memory_space<vmem>>, vector<1x16x16xbf16>
    %334 = vector.shape_cast %333 : vector<1x16x16xbf16> to vector<16x16xbf16>
    %cst_113 = arith.constant dense<0.000000e+00> : vector<112x16xf32>
    %335 = tpu.matmul %332, %334, %cst_113 {dimension_numbers = #tpu.dot_dimension_numbers<[1], [0], [0], [1], [0, 0, 1, 1], [], []>} : vector<112x16xbf16>, vector<16x16xbf16>, vector<112x16xf32> -> vector<112x16xf32>
    %336 = arith.addf %324, %335 : vector<112x16xf32>
    %c0_114 = arith.constant 0 : index
    %c0_115 = arith.constant 0 : index
    %337 = vector.load %arg7[%c0_114, %c0_115] : memref<112x16xf32, #tpu.memory_space<vmem>>, vector<112x16xf32>
    tpu.vector_store %arg7[%c0_114, %c0_115], %336 {strides = array<i32>} : memref<112x16xf32, #tpu.memory_space<vmem>>, vector<112x16xf32>,
    %c0_i32_116 = arith.constant 0 : i32
    %338 = arith.cmpi eq, %arg1, %c0_i32_116 : i32
    %339 = arith.extui %338 : i1 to i32
    %c0_i32_117 = arith.constant 0 : i32
    %340 = arith.cmpi ne, %339, %c0_i32_117 : i32
    scf.if %340 {
      %c0_118 = arith.constant 0 : index
      %c0_119 = arith.constant 0 : index
      %341 = vector.load %arg7[%c0_118, %c0_119] : memref<112x16xf32, #tpu.memory_space<vmem>>, vector<112x16xf32>
      %342 = arith.truncf %341 : vector<112x16xf32> to vector<112x16xbf16>
      %c0_120 = arith.constant 0 : index
      %c0_121 = arith.constant 0 : index
      %343 = vector.load %arg6[%c0_120, %c0_121] : memref<112x16xbf16, #tpu.memory_space<vmem>>, vector<112x16xbf16>
      tpu.vector_store %arg6[%c0_120, %c0_121], %342 {strides = array<i32>} : memref<112x16xbf16, #tpu.memory_space<vmem>>, vector<112x16xbf16>,
    } else {
    }
    return
  }
  func.func @transform_0(%arg0: i32, %arg1: i32, %arg2: memref<2xi32, #tpu.memory_space<smem>>) -> (i32, i32) {
    %c0_i32 = arith.constant 0 : i32
    %c0_i32_0 = arith.constant 0 : i32
    return %arg0, %c0_i32 : i32, i32
  }
  func.func @transform_1(%arg0: i32, %arg1: i32, %arg2: memref<2xi32, #tpu.memory_space<smem>>) -> (i32, i32) {
    %0 = arith.index_cast %arg0 : i32 to index
    %1 = memref.load %arg2[%0] : memref<2xi32, #tpu.memory_space<smem>>
    %2 = arith.addi %1, %arg1 : i32
    %c0_i32 = arith.constant 0 : i32
    %c0_i32_0 = arith.constant 0 : i32
    return %2, %c0_i32 : i32, i32
  }
  func.func @transform_2(%arg0: i32, %arg1: i32, %arg2: memref<2xi32, #tpu.memory_space<smem>>) -> (i32, i32, i32) {
    %c0_i32 = arith.constant 0 : i32
    %c0_i32_0 = arith.constant 0 : i32
    %c0_i32_1 = arith.constant 0 : i32
    %c0_i32_2 = arith.constant 0 : i32
    return %c0_i32, %c0_i32_0, %c0_i32_1 : i32, i32, i32
  }
  func.func @transform_3(%arg0: i32, %arg1: i32, %arg2: memref<2xi32, #tpu.memory_space<smem>>) -> (i32, i32) {
    %c0_i32 = arith.constant 0 : i32
    %c0_i32_0 = arith.constant 0 : i32
    return %arg0, %c0_i32 : i32, i32
  }
}

</mosaic_0001>

<bundles_post_ra>
// kernel: tpu_custom_call.1
= control target key start
LH: loop header
LB: loop body
LE: loop exit
PB: predicated region body
PF: predicated region fallthrough
CT: control target
= control target key end

     0   :  { %s19703_s0 = inlined_call_operand.vmem [shape: s32[2], index: 0, kind: input, shape index: {}]   ;;  %s19704_s1 = inlined_call_operand.vmem [shape: s32[224,27], index: 1, kind: input, shape index: {}]   ;;  %s19705_s2 = inlined_call_operand.vmem [shape: bf16[208,16], index: 2, kind: input, shape index: {}]   ;;  %s19706_s3 = inlined_call_operand.vmem [shape: bf16[27,16,16], index: 3, kind: input, shape index: {}]   ;;  %s19707_s4 = inlined_call_operand.vmem [shape: bf16[224,16], index: 4, kind: output, shape index: {}]  }
   0x1   :  { %s9_s17 = sshll.u32 %s19703_s0, 4  ;;  %s10_s17 = int_to_ptr.vmem [resolvable:$true] %s9_s17 }
   0x2   :  { %s14035_s18 = scalar_lea.vmem %s10_s17, 16  ;;  %p14040_p1 = scmp.lt.s32.totalorder %s10_s17, %s10_s17 }
   0x3   :  { %p14036_p0 = scmp.ne.s32.totalorder %s10_s17, %s14035_s18  ;;  %p14041_p2 = scmp.lt.s32.totalorder %s14035_s18, %s14035_s18 }
   0x5   :  { %p14042_p3 = por %p14041_p2, %p14040_p1 }
   0x7   :  { %p14043_p4 = pnand %p14042_p3, %p14036_p0 }
   0x9   :  { %14046 = shalt.err (!%p14043_p4)  }
   0xa   :  { %s14073_s19 = smov [#allocation4]  }
   0xb   :  { %12 = dma.vmem_to_smem %s10_s17, 16, %s14073_s19, [#allocation3] }
   0xc   :  { %14059 = dma.done.wait [#allocation3], 16 }
   0xd   :  { %14060 = vsyncadd [#allocation3], 4294967280 }
   0xe   :  { %14 = sfence }
   0xf   :  { %s14132_s20 = smov 0   ;;  %s14134_s21 = smov 0  }
  0x10   :  { %s14136_s22 = smov 0  }
  0x11 LB: > { %s32_s0 = sadd.s32 1, %s14067_s21  ;;  %p11116_p5 = scmp.ge.s32.totalorder %s14071_s22, 1  ;;  %s14071_s22 = sphi %s14136_s22, %s20_s22   ;;  %s14067_s21 = sphi %s14134_s21, %s19709_s21   ;;  %s14063_s20 = sphi %s14132_s20, %s19708_s20  }
  0x12   : > { %p34_p6 = scmp.ge.s32.totalorder %s32_s0, 2  ;;  %p176_p7 = scmp.lt.s32.totalorder %s14071_s22, 3 }
  0x14   : > { %s19711_s0 = smov (%p34_p6, %s32_s0), 0  ;;  %p177_p8 = pnand %p11116_p5, %p176_p7 }
  0x15   : > { %s207_s23 = smul.u32 (!%p177_p8), 14, %s14063_s20  ;;  %s249_s24 = sld [smem:[#allocation4 + %s14063_s20]] (!%p177_p8) }
  0x16   : > { %180 = sbr.rel (%p177_p8) target bundleno = 2278 (0x8e6), region = 32  ;;  %s213_s25 = sld [smem:[#allocation4 + %s14063_s20]] (!%p177_p8) }
  0x17   : > { %p208_p9 = scmp.lt.s32.totalorder (!%p177_p8), %s207_s23, 27 }
  0x1b   : > { %v14074_v0 = vmov 0   ;;  %v14075_v1 = vmov 0.0   ;;  %s19713_s23 = smov (!%p208_p9, %s207_s23), 27  ;;  %s251_s27 = smul.u32 208, %s249_s24  ;;  %v14076_v44 = vmov 1   ;;  %v14077_v45 = vmov 2  }
  0x1c   : > { %13838 = vset.pattern.permute.xlu1 %v14074_v0  ;;  %13837 = vset.pattern.permute.xlu0 %v14074_v0  ;;  %s11117_s26 = sshll.u32 %s19713_s23, 3  ;;  %s215_s5 = smul.u32 26, %s213_s25  ;;  %v281_v46 = vlaneseq  ;;  %vm542_vm4 = vcmask 654336   ;;  %v14078_v61 = vmov 1.0|1.0  }
  0x1d   : > { %564 = vmatprep.subr.bf16.mxu0 %v14074_v0  ;;  %12970 = vmatprep.subr.bf16.mxu1 %v14075_v1  ;;  %s14160_s30 = scalar_lea.vmem %s19704_s1, %s11117_s26  ;;  %v266_v3 = vstv %s251_s27  ;;  %s11119_s19 = sshll.u32 %s19713_s23, 2 }
  0x1e   : > { %v254_v2 = vld [vmem:[%s14160_s30 + $0x10] sm:$0xff]  ;;  %v252_v4 = vld [vmem:[%s14160_s30] sm:$0xff]  ;;  %v255_v5 = vld [vmem:[%s14160_s30 + $0x18] sm:$0xff]  ;;  %p216_p10 = scmp.lt.s32.totalorder %s215_s5, 25  ;;  %v14316_v47 = vand.u32 127, %v281_v46  ;;  %s19634_s25 = scalar_lea.vmem %s19707_s4, %s11119_s19 }
  0x1f   : > { %v14165_v6 = vsub.s32 %v254_v2, %v266_v3  ;;  %v14167_v7 = vsub.s32 %v252_v4, %v266_v3  ;;  %v253_v8 = vld [vmem:[%s14160_s30 + $0x8] sm:$0xff]  ;;  %v14172_v9 = vsub.s32 %v255_v5, %v266_v3  ;;  %v256_v12 = vld [vmem:[%s14160_s30 + $0x20] sm:$0xff]  ;;  %v259_v13 = vld [vmem:[%s14160_s30 + $0x38] sm:$0xff] }
  0x20   : > { %v14174_v10 = vsub.s32 %v253_v8, %v266_v3  ;;  %s19715_s5 = smov (!%p216_p10, %s215_s5), 25  ;;  %v257_v11 = vld [vmem:[%s14160_s30 + $0x28] sm:$0xff]  ;;  %v14188_v15 = vsub.s32 %v256_v12, %v266_v3  ;;  %v258_v17 = vld [vmem:[%s14160_s30 + $0x30] sm:$0xff]  ;;  %v14201_v19 = vsub.s32 %v259_v13, %v266_v3  ;;  %v260_v22 = vld [vmem:[%s14160_s30 + $0x40] sm:$0xff]  ;;  %v14319_v48 = vadd.s32 128, %v14316_v47 }
  0x21   : > { %331 = vperm.xlu1 %13838, %v14165_v6   ;;  %325 = vperm.xlu0 %13837, %v14167_v7   ;;  %s11118_s6 = sshll.u32 %s19715_s5, 2  ;;  %v14186_v14 = vsub.s32 %v257_v11, %v266_v3  ;;  %v14203_v20 = vsub.s32 %v258_v17, %v266_v3  ;;  %v261_v21 = vld [vmem:[%s14160_s30 + $0x48] sm:$0xff]  ;;  %v14216_v25 = vsub.s32 %v260_v22, %v266_v3  ;;  %v263_v26 = vld [vmem:[%s14160_s30 + $0x58] sm:$0xff]  ;;  %v262_v27 = vld [vmem:[%s14160_s30 + $0x50] sm:$0xff] }
  0x22   : > { %s14182_s9 = scalar_lea.vmem %s19705_s2, %s11118_s6  ;;  %v14214_v24 = vsub.s32 %v261_v21, %v266_v3  ;;  %v265_v29 = vld [vmem:[%s14160_s30 + $0x68] sm:$0xff]  ;;  %v14228_v30 = vsub.s32 %v263_v26, %v266_v3  ;;  %v14230_v31 = vsub.s32 %v262_v27, %v266_v3  ;;  %v264_v32 = vld [vmem:[%s14160_s30 + $0x60] sm:$0xff] }
  0x23   : > { %v14191_v16 = vld [vmem:[%s14182_s9 + $0x38] sm:$0xff]   ;;  %v14196_v18 = vld [vmem:[%s14182_s9 + $0x30] sm:$0xff]   ;;  %v14209_v23 = vld [vmem:[%s14182_s9 + $0x28] sm:$0xff]   ;;  %v14240_v34 = vsub.s32 %v265_v29, %v266_v3  ;;  %v14242_v35 = vsub.s32 %v264_v32, %v266_v3 }
  0x24   : > { %565 = vmatpush1.bf16.msra.mxu0 %v14191_v16  ;;  %v14222_v28 = vld [vmem:[%s14182_s9 + $0x20] sm:$0xff]   ;;  %v14234_v33 = vld [vmem:[%s14182_s9 + $0x18] sm:$0xff]   ;;  %v14245_v36 = vld [vmem:[%s14182_s9 + $0x10] sm:$0xff]  }
  0x25   : > { %334 = vperm.xlu1 %13838, %v14172_v9   ;;  %328 = vperm.xlu0 %13837, %v14174_v10   ;;  %v14252_v37 = vld [vmem:[%s14182_s9 + $0x8] sm:$0xff]   ;;  %v14258_v38 = vld [vmem:[%s14182_s9] sm:$0xff]   ;;  %v14268_v40 = vld [vmem:[%s14182_s9 + $0x58] sm:$0xff]  }
  0x26   : > { %566 = vmatprep.subr.bf16.mxu0 %v14074_v0  ;;  %v14263_v39 = vld [vmem:[%s14182_s9 + $0x60] sm:$0xff]   ;;  %v14273_v41 = vld [vmem:[%s14182_s9 + $0x50] sm:$0xff]   ;;  %v14278_v42 = vld [vmem:[%s14182_s9 + $0x48] sm:$0xff]  }
  0x27   : > { %v14283_v43 = vld [vmem:[%s14182_s9 + $0x40] sm:$0xff]  }
  0x28   : > { %567 = vmatpush1.bf16.msra.mxu0 %v14196_v18 }
  0x29   : > { %340 = vperm.xlu1 %13838, %v14186_v14   ;;  %337 = vperm.xlu0 %13837, %v14188_v15  }
  0x2a   : > { %568 = vmatprep.subr.bf16.mxu0 %v14074_v0 }
  0x2c   : > { %569 = vmatpush1.bf16.msra.mxu0 %v14209_v23 }
  0x2d   : > { %346 = vperm.xlu1 %13838, %v14201_v19   ;;  %343 = vperm.xlu0 %13837, %v14203_v20  }
  0x2e   : > { %570 = vmatprep.subr.bf16.mxu0 %v14074_v0 }
  0x30   : > { %571 = vmatpush1.bf16.msra.mxu0 %v14222_v28 }
  0x31   : > { %352 = vperm.xlu1 %13838, %v14214_v24   ;;  %349 = vperm.xlu0 %13837, %v14216_v25  }
  0x32   : > { %572 = vmatprep.subr.bf16.mxu0 %v14074_v0 }
  0x34   : > { %573 = vmatpush1.bf16.msra.mxu0 %v14234_v33 }
  0x35   : > { %358 = vperm.xlu1 %13838, %v14228_v30   ;;  %355 = vperm.xlu0 %13837, %v14230_v31  }
  0x36   : > { %574 = vmatprep.subr.bf16.mxu0 %v14074_v0 }
  0x38   : > { %575 = vmatpush1.bf16.msra.mxu0 %v14245_v36 }
  0x39   : > { %364 = vperm.xlu1 %13838, %v14240_v34   ;;  %361 = vperm.xlu0 %13837, %v14242_v35  }
  0x3a   : > { %576 = vmatprep.subr.bf16.mxu0 %v14074_v0 }
  0x3c   : > { %577 = vmatpush1.bf16.msra.mxu0 %v14252_v37 }
  0x3d   : > { %578 = vmatprep.subr.bf16.mxu0 %v14074_v0  ;;  %13840 = vset.pattern.permute.xlu1 %v14076_v44 }
  0x3e   : > { %13839 = vset.pattern.permute.xlu0 %v14076_v44  ;;  %797 = vperm.xlu1 %13840, %v14174_v10  }
  0x3f   : > { %794 = vperm.xlu0 %13839, %v14167_v7  }
  0x40   : > { %579 = vmatpush1.bf16.msra.mxu0 %v14258_v38 }
  0x41   : > { %586 = vmatprep.subr.bf16.mxu0 %v14074_v0 }
  0x42   : > { %800 = vperm.xlu1 %13840, %v14165_v6  }
  0x43   : > { %803 = vperm.xlu0 %13839, %v14172_v9  }
  0x44   : > { %587 = vmatpush2.bf16.msra.mxu0 %v14263_v39 }
  0x45   : > { %588 = vmatprep.subr.bf16.mxu0 %v14074_v0 }
  0x46   : > { %806 = vperm.xlu1 %13840, %v14188_v15  }
  0x47   : > { %809 = vperm.xlu0 %13839, %v14186_v14  }
  0x48   : > { %589 = vmatpush2.bf16.msra.mxu0 %v14268_v40 }
  0x49   : > { %590 = vmatprep.subr.bf16.mxu0 %v14074_v0 }
  0x4a   : > { %812 = vperm.xlu1 %13840, %v14203_v20  }
  0x4b   : > { %815 = vperm.xlu0 %13839, %v14201_v19  }
  0x4c   : > { %591 = vmatpush2.bf16.msra.mxu0 %v14273_v41 }
  0x4d   : > { %592 = vmatprep.subr.bf16.mxu0 %v14074_v0 }
  0x4e   : > { %818 = vperm.xlu1 %13840, %v14216_v25  }
  0x4f   : > { %821 = vperm.xlu0 %13839, %v14214_v24  }
  0x50   : > { %593 = vmatpush2.bf16.msra.mxu0 %v14278_v42 }
  0x51   : > { %594 = vmatprep.subr.bf16.mxu0 %v14074_v0 }
  0x52   : > { %824 = vperm.xlu1 %13840, %v14230_v31  }
  0x53   : > { %827 = vperm.xlu0 %13839, %v14228_v30  }
  0x54   : > { %595 = vmatpush2.bf16.msra.mxu0 %v14283_v43 }
  0x55   : > { %13000 = vmatprep.subr.bf16.mxu0 %v14075_v1 }
  0x56   : > { %830 = vperm.xlu1 %13840, %v14242_v35  }
  0x57   : > { %833 = vperm.xlu0 %13839, %v14240_v34  }
  0x5a   : > { %13841 = vset.pattern.permute.xlu1 %v14077_v45 }
  0x5b   : > { %1184 = vperm.xlu1 %13841, %v14167_v7   ;;  %13842 = vset.pattern.permute.xlu0 %v14077_v45 }
  0x5c   : > { %1187 = vperm.xlu0 %13842, %v14174_v10  }
  0x5f   : > { %1190 = vperm.xlu1 %13841, %v14165_v6  }
  0x60   : > { %1196 = vperm.xlu0 %13842, %v14188_v15  }
  0x63   : > { %1193 = vperm.xlu1 %13841, %v14172_v9  }
  0x64   : > { %1202 = vperm.xlu0 %13842, %v14203_v20  }
  0x67   : > { %1199 = vperm.xlu1 %13841, %v14186_v14  }
  0x68   : > { %1208 = vperm.xlu0 %13842, %v14216_v25  }
  0x6b   : > { %1205 = vperm.xlu1 %13841, %v14201_v19  }
  0x6c   : > { %1214 = vperm.xlu0 %13842, %v14230_v31  }
  0x6f   : > { %1211 = vperm.xlu1 %13841, %v14214_v24  }
  0x70   : > { %1220 = vperm.xlu0 %13842, %v14242_v35  }
  0x73   : > { %1217 = vperm.xlu1 %13841, %v14228_v30  }
  0x77   : > { %1223 = vperm.xlu1 %13841, %v14240_v34  }
  0x9c   : > { %v332_v49 = vpop.permute.xlu1 %331  ;;  %v326_v50 = vpop.permute.xlu0 %325 }
  0x9d   : > { %vm371_vm0 = vcmp.eq.s32.totalorder %v332_v49, %v14319_v48  ;;  %vm367_vm1 = vcmp.eq.s32.totalorder %v326_v50, %v14319_v48  ;;  %vm366_vm6 = vcmp.eq.s32.totalorder %v326_v50, %v14316_v47  ;;  %vm370_vm10 = vcmp.eq.s32.totalorder %v332_v49, %v14316_v47 }
  0x9e   : > { %v11125_v51 = vsel %vm371_vm0, 1.0, %v14075_v1  ;;  %v11121_v55 = vsel %vm367_vm1, 1.0, %v14075_v1 }
  0xa0   : > { %v335_v52 = vpop.permute.xlu1 %334  ;;  %v329_v53 = vpop.permute.xlu0 %328 }
  0xa1   : > { %vm373_vm2 = vcmp.eq.s32.totalorder %v335_v52, %v14319_v48  ;;  %vm369_vm3 = vcmp.eq.s32.totalorder %v329_v53, %v14319_v48  ;;  %vm368_vm5 = vcmp.eq.s32.totalorder %v329_v53, %v14316_v47  ;;  %vm372_vm11 = vcmp.eq.s32.totalorder %v335_v52, %v14316_v47  ;;  %v13904_v52 = vld [vmem:[%s19706_s3] sm:$0xff]  }
  0xa2   : > { %v11127_v54 = vsel %vm373_vm2, 1.0, %v14075_v1  ;;  %v11123_v56 = vsel %vm369_vm3, 1.0, %v14075_v1  ;;  %vm11162_vm7 = vmpackc.low %vm368_vm5, %vm366_vm6  ;;  %12971 = vmatpush3.bf16.msra.mxu1 %v13904_v52  ;;  %v14080_v53 = vmov 3  }
  0xa3   : > { %v453_v57 = vpack.c.bf16 %v11127_v54, %v11125_v51  ;;  %v451_v58 = vpack.c.bf16 %v11123_v56, %v11121_v55  ;;  %vm11165_vm12 = vmpackc.low %vm372_vm11, %vm370_vm10  ;;  %954 = vmatprep.subr.bf16.mxu1 %v14074_v0  ;;  %13844 = vset.pattern.permute.xlu1 %v14080_v53  ;;  %v14081_v54 = vmov 4  }
  0xa4   : > { %v341_v59 = vpop.permute.xlu1 %340  ;;  %v338_v60 = vpop.permute.xlu0 %337  ;;  %13843 = vset.pattern.permute.xlu0 %v14080_v53  ;;  %1577 = vperm.xlu1 %13844, %v14174_v10  }
  0xa5   : > { %11161 = vmatprep.mubr.msk.bf16.mxu0 %vm542_vm4, %v451_v58  ;;  %vm377_vm8 = vcmp.eq.s32.totalorder %v341_v59, %v14319_v48  ;;  %vm375_vm9 = vcmp.eq.s32.totalorder %v338_v60, %v14319_v48  ;;  %vm376_vm15 = vcmp.eq.s32.totalorder %v341_v59, %v14316_v47  ;;  %vm374_vm0 = vcmp.eq.s32.totalorder %v338_v60, %v14316_v47 }
  0xa6   : > { %11163 = vmatmul.mubr.msk.bf16.vlgmr.msra.gmra.mxu0 %vm11162_vm7, %v14078_v61  ;;  %v11131_v62 = vsel %vm377_vm8, 1.0, %v14075_v1  ;;  %v11129_v63 = vsel %vm375_vm9, 1.0, %v14075_v1  ;;  %vm11168_vm1 = vmpackc.low %vm376_vm15, %vm374_vm0  ;;  %1574 = vperm.xlu0 %13843, %v14167_v7   ;;  %v14082_v59 = vmov 5  }
  0xa7   : > { %11164 = vmatprep.mubr.msk.bf16.mxu0 %vm542_vm4, %v453_v57  ;;  %v455_v4 = vpack.c.bf16 %v11131_v62, %v11129_v63 }
  0xa8   : > { %v347_v2 = vpop.permute.xlu1 %346  ;;  %v344_v3 = vpop.permute.xlu0 %343  ;;  %1580 = vperm.xlu1 %13844, %v14165_v6  }
  0xa9   : > { %vm381_vm13 = vcmp.eq.s32.totalorder %v347_v2, %v14319_v48  ;;  %vm379_vm14 = vcmp.eq.s32.totalorder %v344_v3, %v14319_v48  ;;  %vm380_vm5 = vcmp.eq.s32.totalorder %v347_v2, %v14316_v47  ;;  %vm378_vm6 = vcmp.eq.s32.totalorder %v344_v3, %v14316_v47 }
  0xaa   : > { %v11135_v5 = vsel %vm381_vm13, 1.0, %v14075_v1  ;;  %v11133_v8 = vsel %vm379_vm14, 1.0, %v14075_v1  ;;  %vm11171_vm7 = vmpackc.low %vm380_vm5, %vm378_vm6  ;;  %vm14079_vm6 = vmmov 0   ;;  %1583 = vperm.xlu0 %13843, %v14172_v9  }
  0xab   : > { %v457_v13 = vpack.c.bf16 %v11135_v5, %v11133_v8  ;;  %12972 = vmatprep.mubr.msk.bf16.mxu1 %vm14079_vm6, %v14075_v1 }
  0xac   : > { %v353_v11 = vpop.permute.xlu1 %352  ;;  %v350_v12 = vpop.permute.xlu0 %349  ;;  %1586 = vperm.xlu1 %13844, %v14188_v15  }
  0xad   : > { %vm385_vm2 = vcmp.eq.s32.totalorder %v353_v11, %v14319_v48  ;;  %vm383_vm3 = vcmp.eq.s32.totalorder %v350_v12, %v14319_v48  ;;  %vm384_vm10 = vcmp.eq.s32.totalorder %v353_v11, %v14316_v47  ;;  %vm382_vm11 = vcmp.eq.s32.totalorder %v350_v12, %v14316_v47 }
  0xae   : > { %11166 = vmatmul.mubr.msk.bf16.gmra.mxu0 %vm11165_vm12, %v14078_v61  ;;  %v11139_v17 = vsel %vm385_vm2, 1.0, %v14075_v1  ;;  %v11137_v21 = vsel %vm383_vm3, 1.0, %v14075_v1  ;;  %vm11174_vm12 = vmpackc.low %vm384_vm10, %vm382_vm11  ;;  %1589 = vperm.xlu0 %13843, %v14186_v14  }
  0xaf   : > { %11167 = vmatprep.mubr.msk.bf16.mxu0 %vm542_vm4, %v455_v4  ;;  %v459_v27 = vpack.c.bf16 %v11139_v17, %v11137_v21 }
  0xb0   : > { %v359_v22 = vpop.permute.xlu1 %358  ;;  %v356_v26 = vpop.permute.xlu0 %355  ;;  %1592 = vperm.xlu1 %13844, %v14203_v20  }
  0xb1   : > { %vm389_vm8 = vcmp.eq.s32.totalorder %v359_v22, %v14319_v48  ;;  %vm387_vm9 = vcmp.eq.s32.totalorder %v356_v26, %v14319_v48  ;;  %vm388_vm15 = vcmp.eq.s32.totalorder %v359_v22, %v14316_v47  ;;  %vm386_vm0 = vcmp.eq.s32.totalorder %v356_v26, %v14316_v47 }
  0xb2   : > { %v11143_v29 = vsel %vm389_vm8, 1.0, %v14075_v1  ;;  %v11141_v32 = vsel %vm387_vm9, 1.0, %v14075_v1  ;;  %1595 = vperm.xlu0 %13843, %v14201_v19  }
  0xb3   : > { %v461_v46 = vpack.c.bf16 %v11143_v29, %v11141_v32 }
  0xb4   : > { %v365_v44 = vpop.permute.xlu1 %364  ;;  %v362_v45 = vpop.permute.xlu0 %361  ;;  %1598 = vperm.xlu1 %13844, %v14216_v25  }
  0xb5   : > { %vm393_vm13 = vcmp.eq.s32.totalorder %v365_v44, %v14319_v48  ;;  %vm391_vm14 = vcmp.eq.s32.totalorder %v362_v45, %v14319_v48  ;;  %vm392_vm2 = vcmp.eq.s32.totalorder %v365_v44, %v14316_v47  ;;  %vm390_vm3 = vcmp.eq.s32.totalorder %v362_v45, %v14316_v47 }
  0xb6   : > { %11169 = vmatmul.mubr.msk.bf16.gmra.mxu0 %vm11168_vm1, %v14078_v61  ;;  %v11147_v49 = vsel %vm393_vm13, 1.0, %v14075_v1  ;;  %v11145_v50 = vsel %vm391_vm14, 1.0, %v14075_v1  ;;  %vm11177_vm1 = vmpackc.low %vm388_vm15, %vm386_vm0  ;;  %1601 = vperm.xlu0 %13843, %v14214_v24  }
  0xb7   : > { %11170 = vmatprep.mubr.msk.bf16.mxu0 %vm542_vm4, %v457_v13  ;;  %v463_v51 = vpack.c.bf16 %v11147_v49, %v11145_v50  ;;  %vm11180_vm5 = vmpackc.low %vm392_vm2, %vm390_vm3 }
  0xb8   : > { %1604 = vperm.xlu1 %13844, %v14230_v31  }
  0xb9   : > { %v798_v52 = vpop.permute.xlu1 %797 }
  0xba   : > { %1607 = vperm.xlu0 %13843, %v14228_v30   ;;  %v795_v53 = vpop.permute.xlu0 %794  ;;  %vm838_vm8 = vcmp.eq.s32.totalorder %v798_v52, %v14319_v48 }
  0xbb   : > { %vm836_vm9 = vcmp.eq.s32.totalorder %v795_v53, %v14319_v48  ;;  %vm835_vm13 = vcmp.eq.s32.totalorder %v795_v53, %v14316_v47 }
  0xbc   : > { %1610 = vperm.xlu1 %13844, %v14242_v35  }
  0xbe   : > { %11172 = vmatmul.mubr.msk.bf16.gmra.mxu0 %vm11171_vm7, %v14078_v61  ;;  %vm234_vm7 = vcmask 130048   ;;  %1613 = vperm.xlu0 %13843, %v14240_v34  }
  0xbf   : > { %11173 = vmatprep.mubr.msk.bf16.mxu0 %vm542_vm4, %v459_v27  ;;  %235 = vst.msk [vmem:[#allocation2] sm:$0xff] %vm234_vm7, %v14075_v1  ;;  %236 = vst.msk [vmem:[#allocation2 + $0x8] sm:$0xff] %vm234_vm7, %v14075_v1 }
  0xc0   : > { %237 = vst.msk [vmem:[#allocation2 + $0x10] sm:$0xff] %vm234_vm7, %v14075_v1  ;;  %238 = vst.msk [vmem:[#allocation2 + $0x18] sm:$0xff] %vm234_vm7, %v14075_v1  ;;  %13845 = vset.pattern.permute.xlu1 %v14081_v54 }
  0xc1   : > { %239 = vst.msk [vmem:[#allocation2 + $0x20] sm:$0xff] %vm234_vm7, %v14075_v1  ;;  %240 = vst.msk [vmem:[#allocation2 + $0x28] sm:$0xff] %vm234_vm7, %v14075_v1  ;;  %1964 = vperm.xlu1 %13845, %v14167_v7  }
  0xc2   : > { %241 = vst.msk [vmem:[#allocation2 + $0x30] sm:$0xff] %vm234_vm7, %v14075_v1  ;;  %242 = vst.msk [vmem:[#allocation2 + $0x38] sm:$0xff] %vm234_vm7, %v14075_v1  ;;  %13846 = vset.pattern.permute.xlu0 %v14081_v54 }
  0xc3   : > { %243 = vst.msk [vmem:[#allocation2 + $0x40] sm:$0xff] %vm234_vm7, %v14075_v1  ;;  %244 = vst.msk [vmem:[#allocation2 + $0x48] sm:$0xff] %vm234_vm7, %v14075_v1  ;;  %1967 = vperm.xlu0 %13846, %v14174_v10  }
  0xc4   : > { %245 = vst.msk [vmem:[#allocation2 + $0x50] sm:$0xff] %vm234_vm7, %v14075_v1  ;;  %246 = vst.msk [vmem:[#allocation2 + $0x58] sm:$0xff] %vm234_vm7, %v14075_v1 }
  0xc5   : > { %247 = vst.msk [vmem:[#allocation2 + $0x60] sm:$0xff] %vm234_vm7, %v14075_v1  ;;  %248 = vst.msk [vmem:[#allocation2 + $0x68] sm:$0xff] %vm234_vm7, %v14075_v1  ;;  %1970 = vperm.xlu1 %13845, %v14165_v6  }
  0xc6   : > { %11175 = vmatmul.mubr.msk.bf16.gmra.mxu0 %vm11174_vm12, %v14078_v61  ;;  %vm837_vm12 = vcmp.eq.s32.totalorder %v798_v52, %v14316_v47 }
  0xc7   : > { %11176 = vmatprep.mubr.msk.bf16.mxu0 %vm542_vm4, %v461_v46  ;;  %1976 = vperm.xlu0 %13846, %v14188_v15   ;;  %vm11219_vm14 = vmpackc.low %vm837_vm12, %vm835_vm13 }
  0xc9   : > { %1973 = vperm.xlu1 %13845, %v14172_v9  }
  0xcb   : > { %1982 = vperm.xlu0 %13846, %v14203_v20  }
  0xcd   : > { %1979 = vperm.xlu1 %13845, %v14186_v14  }
  0xce   : > { %11178 = vmatmul.mubr.msk.bf16.gmra.mxu0 %vm11177_vm1, %v14078_v61 }
  0xcf   : > { %11179 = vmatprep.mubr.msk.bf16.mxu0 %vm542_vm4, %v463_v51  ;;  %1988 = vperm.xlu0 %13846, %v14216_v25  }
  0xd1   : > { %1985 = vperm.xlu1 %13845, %v14201_v19  }
  0xd3   : > { %1994 = vperm.xlu0 %13846, %v14230_v31  }
  0xd5   : > { %1991 = vperm.xlu1 %13845, %v14214_v24  }
  0xd6   : > { %11181 = vmatmul.mubr.msk.bf16.gmra.mxu0 %vm11180_vm5, %v14078_v61 }
  0xd7   : > { %13002 = vmatprep.mubr.msk.bf16.mxu0 %vm14079_vm6, %v14075_v1  ;;  %2000 = vperm.xlu0 %13846, %v14242_v35  }
  0xd9   : > { %1997 = vperm.xlu1 %13845, %v14228_v30  }
  0xdb   : > { %13847 = vset.pattern.permute.xlu0 %v14082_v59 }
  0xdc   : > { %2354 = vperm.xlu0 %13847, %v14167_v7  }
  0xdd   : > { %2003 = vperm.xlu1 %13845, %v14240_v34  }
  0xe0   : > { %2363 = vperm.xlu0 %13847, %v14172_v9  }
  0xe1   : > { %13848 = vset.pattern.permute.xlu1 %v14082_v59 }
  0xe2   : > { %2357 = vperm.xlu1 %13848, %v14174_v10  }
  0xe4   : > { %2369 = vperm.xlu0 %13847, %v14186_v14  }
  0xe6   : > { %2360 = vperm.xlu1 %13848, %v14165_v6  }
  0xe8   : > { %2375 = vperm.xlu0 %13847, %v14201_v19  }
  0xea   : > { %2366 = vperm.xlu1 %13848, %v14188_v15  }
  0xec   : > { %2381 = vperm.xlu0 %13847, %v14214_v24  }
  0xee   : > { %2372 = vperm.xlu1 %13848, %v14203_v20  }
  0xf0   : > { %2387 = vperm.xlu0 %13847, %v14228_v30  }
  0xf2   : > { %2378 = vperm.xlu1 %13848, %v14216_v25  }
  0xf4   : > { %2393 = vperm.xlu0 %13847, %v14240_v34  }
  0xf6   : > { %2384 = vperm.xlu1 %13848, %v14230_v31  }
  0xfa   : > { %2390 = vperm.xlu1 %13848, %v14242_v35  }
 0x166   : > { %v598_v55 = vpop.f32.mrf.mxu0 }
 0x168   : > { %v600_v56 = vpop.f32.mrf.mxu0 }
 0x16a   : > { %v601_v57 = vpop.f32.mrf.mxu0 }
 0x16b   : > { %v653_v58 = vpack.c.bf16 %v601_v57, %v598_v55  ;;  %v11193_v57 = vsel %vm838_vm8, 1.0, %v14075_v1 }
 0x16c   : > { %v603_v60 = vpop.f32.mrf.mxu0 }
 0x16d   : > { %12973 = vmatmul.mubr.msk.bf16.vlgmr.msra.gmra.mxu1 %vm234_vm7, %v653_v58  ;;  %v11191_v58 = vsel %vm836_vm9, 1.0, %v14075_v1 }
 0x16e   : > { %955 = vmatpush1.bf16.msra.mxu1 %v14191_v16  ;;  %v606_v62 = vpop.f32.mrf.mxu0  ;;  %12976 = vmatprep.mubr.msk.bf16.mxu1 %vm14079_vm6, %v14075_v1  ;;  %v920_v60 = vpack.c.bf16 %v11193_v57, %v11191_v58 }
 0x16f   : > { %956 = vmatprep.subr.bf16.mxu1 %v14074_v0 }
 0x170   : > { %v608_v63 = vpop.f32.mrf.mxu0 }
 0x172   : > { %v609_v2 = vpop.f32.mrf.mxu0  ;;  %957 = vmatpush1.bf16.msra.mxu1 %v14196_v18 }
 0x173   : > { %v654_v3 = vpack.c.bf16 %v609_v2, %v606_v62  ;;  %958 = vmatprep.subr.bf16.mxu1 %v14074_v0 }
 0x174   : > { %v611_v4 = vpop.f32.mrf.mxu0 }
 0x175   : > { %12977 = vmatmul.mubr.msk.bf16.gmra.mxu1 %vm234_vm7, %v654_v3  ;;  %v801_v3 = vpop.permute.xlu1 %800  ;;  %v804_v4 = vpop.permute.xlu0 %803 }
 0x176   : > { %v614_v5 = vpop.f32.mrf.mxu0  ;;  %959 = vmatpush1.bf16.msra.mxu1 %v14209_v23  ;;  %12980 = vmatprep.mubr.msk.bf16.mxu1 %vm14079_vm6, %v14075_v1  ;;  %vm840_vm10 = vcmp.eq.s32.totalorder %v801_v3, %v14319_v48  ;;  %vm842_vm11 = vcmp.eq.s32.totalorder %v804_v4, %v14319_v48  ;;  %vm839_vm1 = vcmp.eq.s32.totalorder %v801_v3, %v14316_v47  ;;  %v14617_v3 = vld [vmem:[%s14182_s9 + $0x38] sm:$0xff]  }
 0x177   : > { %960 = vmatprep.subr.bf16.mxu1 %v14074_v0  ;;  %vm841_vm2 = vcmp.eq.s32.totalorder %v804_v4, %v14316_v47 }
 0x178   : > { %v616_v8 = vpop.f32.mrf.mxu0  ;;  %vm11222_vm3 = vmpackc.low %vm841_vm2, %vm839_vm1 }
 0x179   : > { %v11195_v8 = vsel %vm840_vm10, 1.0, %v14075_v1 }
 0x17a   : > { %v617_v11 = vpop.f32.mrf.mxu0  ;;  %961 = vmatpush1.bf16.msra.mxu1 %v14222_v28 }
 0x17b   : > { %v655_v12 = vpack.c.bf16 %v617_v11, %v614_v5  ;;  %962 = vmatprep.subr.bf16.mxu1 %v14074_v0  ;;  %v14083_v5 = vmov 6   ;;  %v11197_v11 = vsel %vm842_vm11, 1.0, %v14075_v1 }
 0x17c   : > { %v619_v13 = vpop.f32.mrf.mxu0  ;;  %13849 = vset.pattern.permute.xlu1 %v14083_v5  ;;  %13850 = vset.pattern.permute.xlu0 %v14083_v5 }
 0x17d   : > { %12981 = vmatmul.mubr.msk.bf16.gmra.mxu1 %vm234_vm7, %v655_v12  ;;  %2744 = vperm.xlu1 %13849, %v14167_v7   ;;  %v922_v12 = vpack.c.bf16 %v11197_v11, %v11195_v8  ;;  %v807_v13 = vpop.permute.xlu1 %806  ;;  %v14629_v8 = vld [vmem:[%s14182_s9 + $0x30] sm:$0xff]  }
 0x17e   : > { %v622_v17 = vpop.f32.mrf.mxu0  ;;  %963 = vmatpush1.bf16.msra.mxu1 %v14234_v33  ;;  %12984 = vmatprep.mubr.msk.bf16.mxu1 %vm14079_vm6, %v14075_v1  ;;  %vm844_vm15 = vcmp.eq.s32.totalorder %v807_v13, %v14319_v48  ;;  %vm843_vm9 = vcmp.eq.s32.totalorder %v807_v13, %v14316_v47 }
 0x17f   : > { %964 = vmatprep.subr.bf16.mxu1 %v14074_v0  ;;  %2747 = vperm.xlu0 %13850, %v14174_v10  }
 0x180   : > { %v624_v21 = vpop.f32.mrf.mxu0 }
 0x181   : > { %2750 = vperm.xlu1 %13849, %v14165_v6   ;;  %v11199_v21 = vsel %vm844_vm15, 1.0, %v14075_v1 }
 0x182   : > { %v625_v22 = vpop.f32.mrf.mxu0  ;;  %965 = vmatpush1.bf16.msra.mxu1 %v14245_v36 }
 0x183   : > { %v656_v26 = vpack.c.bf16 %v625_v22, %v622_v17  ;;  %966 = vmatprep.subr.bf16.mxu1 %v14074_v0  ;;  %v810_v17 = vpop.permute.xlu0 %809  ;;  %2756 = vperm.xlu0 %13850, %v14188_v15  }
 0x184   : > { %v627_v27 = vpop.f32.mrf.mxu0  ;;  %vm846_vm0 = vcmp.eq.s32.totalorder %v810_v17, %v14319_v48  ;;  %vm845_vm10 = vcmp.eq.s32.totalorder %v810_v17, %v14316_v47  ;;  %v14640_v17 = vld [vmem:[%s14182_s9 + $0x28] sm:$0xff]  }
 0x185   : > { %12985 = vmatmul.mubr.msk.bf16.gmra.mxu1 %vm234_vm7, %v656_v26  ;;  %2753 = vperm.xlu1 %13849, %v14172_v9   ;;  %v11201_v22 = vsel %vm846_vm0, 1.0, %v14075_v1  ;;  %v813_v26 = vpop.permute.xlu1 %812  ;;  %vm11225_vm11 = vmpackc.low %vm845_vm10, %vm843_vm9 }
 0x186   : > { %v630_v29 = vpop.f32.mrf.mxu0  ;;  %967 = vmatpush1.bf16.msra.mxu1 %v14252_v37  ;;  %12988 = vmatprep.mubr.msk.bf16.mxu1 %vm14079_vm6, %v14075_v1  ;;  %vm848_vm5 = vcmp.eq.s32.totalorder %v813_v26, %v14319_v48 }
 0x187   : > { %968 = vmatprep.subr.bf16.mxu1 %v14074_v0  ;;  %2762 = vperm.xlu0 %13850, %v14203_v20   ;;  %v816_v27 = vpop.permute.xlu0 %815 }
 0x188   : > { %v632_v32 = vpop.f32.mrf.mxu0  ;;  %vm850_vm8 = vcmp.eq.s32.totalorder %v816_v27, %v14319_v48  ;;  %vm849_vm15 = vcmp.eq.s32.totalorder %v816_v27, %v14316_v47 }
 0x189   : > { %2759 = vperm.xlu1 %13849, %v14186_v14  }
 0x18a   : > { %v633_v44 = vpop.f32.mrf.mxu0  ;;  %969 = vmatpush1.bf16.msra.mxu1 %v14258_v38 }
 0x18b   : > { %v657_v45 = vpack.c.bf16 %v633_v44, %v630_v29  ;;  %976 = vmatprep.subr.bf16.mxu1 %v14074_v0  ;;  %2768 = vperm.xlu0 %13850, %v14216_v25   ;;  %v11205_v29 = vsel %vm850_vm8, 1.0, %v14075_v1  ;;  %v822_v44 = vpop.permute.xlu0 %821 }
 0x18c   : > { %v635_v46 = vpop.f32.mrf.mxu0  ;;  %vm854_vm13 = vcmp.eq.s32.totalorder %v822_v44, %v14319_v48 }
 0x18d   : > { %12989 = vmatmul.mubr.msk.bf16.gmra.mxu1 %vm234_vm7, %v657_v45  ;;  %2765 = vperm.xlu1 %13849, %v14201_v19   ;;  %v11209_v45 = vsel %vm854_vm13, 1.0, %v14075_v1 }
 0x18e   : > { %v638_v49 = vpop.f32.mrf.mxu0  ;;  %977 = vmatpush2.bf16.msra.mxu1 %v14263_v39  ;;  %12992 = vmatprep.mubr.msk.bf16.mxu1 %vm14079_vm6, %v14075_v1 }
 0x18f   : > { %978 = vmatprep.subr.bf16.mxu1 %v14074_v0  ;;  %2774 = vperm.xlu0 %13850, %v14230_v31  }
 0x190   : > { %v640_v50 = vpop.f32.mrf.mxu0 }
 0x191   : > { %2771 = vperm.xlu1 %13849, %v14214_v24  }
 0x192   : > { %v641_v51 = vpop.f32.mrf.mxu0  ;;  %979 = vmatpush2.bf16.msra.mxu1 %v14268_v40 }
 0x193   : > { %v658_v54 = vpack.c.bf16 %v641_v51, %v638_v49  ;;  %980 = vmatprep.subr.bf16.mxu1 %v14074_v0  ;;  %2780 = vperm.xlu0 %13850, %v14242_v35   ;;  %v828_v49 = vpop.permute.xlu0 %827 }
 0x194   : > { %v643_v55 = vpop.f32.mrf.mxu0  ;;  %vm858_vm2 = vcmp.eq.s32.totalorder %v828_v49, %v14319_v48 }
 0x195   : > { %12993 = vmatmul.mubr.msk.bf16.gmra.mxu1 %vm234_vm7, %v658_v54  ;;  %2777 = vperm.xlu1 %13849, %v14228_v30   ;;  %v11213_v50 = vsel %vm858_vm2, 1.0, %v14075_v1 }
 0x196   : > { %v646_v56 = vpop.f32.mrf.mxu0  ;;  %981 = vmatpush2.bf16.msra.mxu1 %v14273_v41  ;;  %12996 = vmatprep.mubr.msk.bf16.mxu1 %vm14079_vm6, %v14075_v1 }
 0x197   : > { %982 = vmatprep.subr.bf16.mxu1 %v14074_v0  ;;  %v834_v52 = vpop.permute.xlu0 %833 }
 0x198   : > { %v648_v59 = vpop.f32.mrf.mxu0  ;;  %vm862_vm10 = vcmp.eq.s32.totalorder %v834_v52, %v14319_v48 }
 0x199   : > { %2783 = vperm.xlu1 %13849, %v14240_v34  }
 0x19a   : > { %v649_v62 = vpop.f32.mrf.mxu0  ;;  %983 = vmatpush2.bf16.msra.mxu1 %v14278_v42 }
 0x19b   : > { %v659_v63 = vpack.c.bf16 %v649_v62, %v646_v56  ;;  %984 = vmatprep.subr.bf16.mxu1 %v14074_v0  ;;  %v1188_v55 = vpop.permute.xlu0 %1187  ;;  %v14084_v62 = vmov 7  }
 0x19c   : > { %v651_v2 = vpop.f32.mrf.mxu0  ;;  %13851 = vset.pattern.permute.xlu0 %v14084_v62 }
 0x19d   : > { %12997 = vmatmul.mubr.msk.bf16.gmra.mxu1 %vm234_vm7, %v659_v63  ;;  %13852 = vset.pattern.permute.xlu1 %v14084_v62 }
 0x19e   : > { %985 = vmatpush2.bf16.msra.mxu1 %v14283_v43  ;;  %11218 = vmatprep.mubr.msk.bf16.mxu1 %vm542_vm4, %v920_v60 }
 0x19f   : > { %1344 = vmatprep.subr.bf16.mxu1 %v14074_v0  ;;  %3137 = vperm.xlu1 %13852, %v14174_v10   ;;  %v1197_v2 = vpop.permute.xlu0 %1196 }
 0x1a0   : > { %3134 = vperm.xlu0 %13851, %v14167_v7  }
 0x1a3   : > { %3140 = vperm.xlu1 %13852, %v14165_v6   ;;  %v1203_v13 = vpop.permute.xlu0 %1202 }
 0x1a4   : > { %3143 = vperm.xlu0 %13851, %v14172_v9  }
 0x1a5   : > { %11220 = vmatmul.mubr.msk.bf16.vlgmr.msra.gmra.mxu1 %vm11219_vm14, %v14078_v61  ;;  %vm847_vm14 = vcmp.eq.s32.totalorder %v813_v26, %v14316_v47 }
 0x1a6   : > { %1345 = vmatpush1.bf16.msra.mxu1 %v14191_v16  ;;  %11221 = vmatprep.mubr.msk.bf16.mxu1 %vm542_vm4, %v922_v12  ;;  %v924_v16 = vpack.c.bf16 %v11201_v22, %v11199_v21  ;;  %vm11228_vm0 = vmpackc.low %vm849_vm15, %vm847_vm14  ;;  %vm1228_vm14 = vcmp.eq.s32.totalorder %v1188_v55, %v14319_v48 }
 0x1a7   : > { %1346 = vmatprep.subr.bf16.mxu1 %v14074_v0  ;;  %v11252_v58 = vsel %vm1228_vm14, 1.0, %v14075_v1  ;;  %3146 = vperm.xlu1 %13852, %v14188_v15  }
 0x1a8   : > { %3149 = vperm.xlu0 %13851, %v14186_v14  }
 0x1aa   : > { %1347 = vmatpush1.bf16.msra.mxu1 %v14196_v18  ;;  %v11203_v18 = vsel %vm848_vm5, 1.0, %v14075_v1  ;;  %vm853_vm5 = vcmp.eq.s32.totalorder %v822_v44, %v14316_v47  ;;  %v14673_v44 = vld [vmem:[%s14182_s9 + $0x10] sm:$0xff]  }
 0x1ab   : > { %1348 = vmatprep.subr.bf16.mxu1 %v14074_v0  ;;  %v926_v32 = vpack.c.bf16 %v11205_v29, %v11203_v18  ;;  %3152 = vperm.xlu1 %13852, %v14203_v20   ;;  %v1209_v18 = vpop.permute.xlu0 %1208  ;;  %v14662_v29 = vld [vmem:[%s14182_s9 + $0x18] sm:$0xff]  }
 0x1ac   : > { %3155 = vperm.xlu0 %13851, %v14201_v19  }
 0x1ad   : > { %11223 = vmatmul.mubr.msk.bf16.gmra.mxu1 %vm11222_vm3, %v14078_v61 }
 0x1ae   : > { %11224 = vmatprep.mubr.msk.bf16.mxu1 %vm542_vm4, %v924_v16  ;;  %1349 = vmatpush1.bf16.msra.mxu1 %v14209_v23  ;;  %v819_v23 = vpop.permute.xlu1 %818  ;;  %v14651_v16 = vld [vmem:[%s14182_s9 + $0x20] sm:$0xff]  }
 0x1af   : > { %1350 = vmatprep.subr.bf16.mxu1 %v14074_v0  ;;  %vm852_vm12 = vcmp.eq.s32.totalorder %v819_v23, %v14319_v48  ;;  %vm851_vm3 = vcmp.eq.s32.totalorder %v819_v23, %v14316_v47  ;;  %3158 = vperm.xlu1 %13852, %v14216_v25  }
 0x1b0   : > { %vm11231_vm8 = vmpackc.low %vm853_vm5, %vm851_vm3  ;;  %3161 = vperm.xlu0 %13851, %v14214_v24  }
 0x1b2   : > { %1351 = vmatpush1.bf16.msra.mxu1 %v14222_v28  ;;  %v11207_v28 = vsel %vm852_vm12, 1.0, %v14075_v1  ;;  %vm857_vm12 = vcmp.eq.s32.totalorder %v828_v49, %v14316_v47 }
 0x1b3   : > { %1352 = vmatprep.subr.bf16.mxu1 %v14074_v0  ;;  %v928_v46 = vpack.c.bf16 %v11209_v45, %v11207_v28  ;;  %3164 = vperm.xlu1 %13852, %v14230_v31  }
 0x1b4   : > { %3167 = vperm.xlu0 %13851, %v14228_v30  }
 0x1b5   : > { %11226 = vmatmul.mubr.msk.bf16.gmra.mxu1 %vm11225_vm11, %v14078_v61 }
 0x1b6   : > { %11227 = vmatprep.mubr.msk.bf16.mxu1 %vm542_vm4, %v926_v32  ;;  %1353 = vmatpush1.bf16.msra.mxu1 %v14234_v33  ;;  %v825_v33 = vpop.permute.xlu1 %824 }
 0x1b7   : > { %1354 = vmatprep.subr.bf16.mxu1 %v14074_v0  ;;  %vm856_vm1 = vcmp.eq.s32.totalorder %v825_v33, %v14319_v48  ;;  %vm855_vm11 = vcmp.eq.s32.totalorder %v825_v33, %v14316_v47  ;;  %3170 = vperm.xlu1 %13852, %v14242_v35   ;;  %v14684_v33 = vld [vmem:[%s14182_s9 + $0x8] sm:$0xff]  }
 0x1b8   : > { %vm11234_vm15 = vmpackc.low %vm857_vm12, %vm855_vm11  ;;  %vm1234_vm12 = vcmp.eq.s32.totalorder %v1197_v2, %v14319_v48  ;;  %3173 = vperm.xlu0 %13851, %v14240_v34  }
 0x1b9   : > { %v11258_v5 = vsel %vm1234_vm12, 1.0, %v14075_v1 }
 0x1ba   : > { %1355 = vmatpush1.bf16.msra.mxu1 %v14245_v36  ;;  %v11211_v36 = vsel %vm856_vm1, 1.0, %v14075_v1  ;;  %v831_v51 = vpop.permute.xlu1 %830  ;;  %vm861_vm1 = vcmp.eq.s32.totalorder %v834_v52, %v14316_v47 }
 0x1bb   : > { %1356 = vmatprep.subr.bf16.mxu1 %v14074_v0  ;;  %v930_v53 = vpack.c.bf16 %v11213_v50, %v11211_v36  ;;  %vm860_vm9 = vcmp.eq.s32.totalorder %v831_v51, %v14319_v48  ;;  %v14693_v50 = vld [vmem:[%s14182_s9] sm:$0xff]  }
 0x1bd   : > { %11229 = vmatmul.mubr.msk.bf16.gmra.mxu1 %vm11228_vm0, %v14078_v61  ;;  %vm859_vm0 = vcmp.eq.s32.totalorder %v831_v51, %v14316_v47 }
 0x1be   : > { %11230 = vmatprep.mubr.msk.bf16.mxu1 %vm542_vm4, %v928_v46  ;;  %1357 = vmatpush1.bf16.msra.mxu1 %v14252_v37  ;;  %v11215_v37 = vsel %vm860_vm9, 1.0, %v14075_v1  ;;  %v1185_v54 = vpop.permute.xlu1 %1184  ;;  %vm11237_vm2 = vmpackc.low %vm861_vm1, %vm859_vm0  ;;  %vm1227_vm9 = vcmp.eq.s32.totalorder %v1188_v55, %v14316_v47  ;;  %vm1238_vm1 = vcmp.eq.s32.totalorder %v1203_v13, %v14319_v48  ;;  %v1215_v46 = vpop.permute.xlu0 %1214  ;;  %v14711_v55 = vld [vmem:[%s14182_s9 + $0x58] sm:$0xff]  }
 0x1bf   : > { %1358 = vmatprep.subr.bf16.mxu1 %v14074_v0  ;;  %vm1226_vm13 = vcmp.eq.s32.totalorder %v1185_v54, %v14319_v48  ;;  %v11262_v22 = vsel %vm1238_vm1, 1.0, %v14075_v1 }
 0x1c2   : > { %1359 = vmatpush1.bf16.msra.mxu1 %v14258_v38  ;;  %v11217_v38 = vsel %vm862_vm10, 1.0, %v14075_v1  ;;  %v1191_v57 = vpop.permute.xlu1 %1190  ;;  %v1221_v52 = vpop.permute.xlu0 %1220 }
 0x1c3   : > { %1366 = vmatprep.subr.bf16.mxu1 %v14074_v0  ;;  %v932_v56 = vpack.c.bf16 %v11217_v38, %v11215_v37  ;;  %vm1230_vm3 = vcmp.eq.s32.totalorder %v1191_v57, %v14319_v48  ;;  %v14702_v37 = vld [vmem:[%s14182_s9 + $0x60] sm:$0xff]  }
 0x1c5   : > { %11232 = vmatmul.mubr.msk.bf16.gmra.mxu1 %vm11231_vm8, %v14078_v61  ;;  %vm1225_vm8 = vcmp.eq.s32.totalorder %v1185_v54, %v14316_v47 }
 0x1c6   : > { %11233 = vmatprep.mubr.msk.bf16.mxu1 %vm542_vm4, %v930_v53  ;;  %1367 = vmatpush2.bf16.msra.mxu1 %v14263_v39  ;;  %v13905_v39 = vld [vmem:[%s19706_s3 + $0x8] sm:$0xff]   ;;  %vm11278_vm10 = vmpackc.low %vm1227_vm9, %vm1225_vm8  ;;  %vm1242_vm9 = vcmp.eq.s32.totalorder %v1209_v18, %v14319_v48 }
 0x1c7   : > { %1368 = vmatprep.subr.bf16.mxu1 %v14074_v0  ;;  %13001 = vmatpush3.bf16.msra.mxu0 %v13905_v39  ;;  %v11266_v23 = vsel %vm1242_vm9, 1.0, %v14075_v1 }
 0x1c8   : > { %13030 = vmatprep.subr.bf16.mxu0 %v14075_v1 }
 0x1ca   : > { %1369 = vmatpush2.bf16.msra.mxu1 %v14268_v40  ;;  %v11250_v40 = vsel %vm1226_vm13, 1.0, %v14075_v1  ;;  %vm1229_vm13 = vcmp.eq.s32.totalorder %v1191_v57, %v14316_v47  ;;  %v14720_v57 = vld [vmem:[%s14182_s9 + $0x50] sm:$0xff]  }
 0x1cb   : > { %1370 = vmatprep.subr.bf16.mxu1 %v14074_v0  ;;  %v1310_v59 = vpack.c.bf16 %v11252_v58, %v11250_v40 }
 0x1cd   : > { %11235 = vmatmul.mubr.msk.bf16.gmra.mxu1 %vm11234_vm15, %v14078_v61 }
 0x1ce   : > { %11236 = vmatprep.mubr.msk.bf16.mxu1 %vm542_vm4, %v932_v56  ;;  %1371 = vmatpush2.bf16.msra.mxu1 %v14273_v41  ;;  %v1194_v41 = vpop.permute.xlu1 %1193  ;;  %v1575_v56 = vpop.permute.xlu0 %1574 }
 0x1cf   : > { %1372 = vmatprep.subr.bf16.mxu1 %v14074_v0  ;;  %vm1232_vm5 = vcmp.eq.s32.totalorder %v1194_v41, %v14319_v48  ;;  %vm1231_vm14 = vcmp.eq.s32.totalorder %v1194_v41, %v14316_v47 }
 0x1d0   : > { %v11256_v60 = vsel %vm1232_vm5, 1.0, %v14075_v1  ;;  %vm11281_vm15 = vmpackc.low %vm1231_vm14, %vm1229_vm13  ;;  %vm1246_vm14 = vcmp.eq.s32.totalorder %v1215_v46, %v14319_v48 }
 0x1d1   : > { %v11270_v36 = vsel %vm1246_vm14, 1.0, %v14075_v1 }
 0x1d2   : > { %1373 = vmatpush2.bf16.msra.mxu1 %v14278_v42  ;;  %v11254_v42 = vsel %vm1230_vm3, 1.0, %v14075_v1  ;;  %vm1233_vm3 = vcmp.eq.s32.totalorder %v1197_v2, %v14316_v47  ;;  %v1584_v62 = vpop.permute.xlu0 %1583 }
 0x1d3   : > { %1374 = vmatprep.subr.bf16.mxu1 %v14074_v0  ;;  %v1312_v63 = vpack.c.bf16 %v11256_v60, %v11254_v42  ;;  %v14729_v42 = vld [vmem:[%s14182_s9 + $0x48] sm:$0xff]  }
 0x1d5   : > { %11238 = vmatmul.mubr.msk.bf16.gmra.mxu1 %vm11237_vm2, %v14078_v61 }
 0x1d6   : > { %1375 = vmatpush2.bf16.msra.mxu1 %v14283_v43  ;;  %11277 = vmatprep.mubr.msk.bf16.mxu1 %vm542_vm4, %v1310_v59  ;;  %v1200_v43 = vpop.permute.xlu1 %1199 }
 0x1d7   : > { %1734 = vmatprep.subr.bf16.mxu1 %v14074_v0  ;;  %vm1236_vm11 = vcmp.eq.s32.totalorder %v1200_v43, %v14319_v48  ;;  %vm1235_vm2 = vcmp.eq.s32.totalorder %v1200_v43, %v14316_v47  ;;  %v14085_v43 = vmov 8  }
 0x1d8   : > { %v11260_v4 = vsel %vm1236_vm11, 1.0, %v14075_v1  ;;  %vm11284_vm5 = vmpackc.low %vm1235_vm2, %vm1233_vm3  ;;  %vm1237_vm11 = vcmp.eq.s32.totalorder %v1203_v13, %v14316_v47  ;;  %vm1250_vm3 = vcmp.eq.s32.totalorder %v1221_v52, %v14319_v48  ;;  %13853 = vset.pattern.permute.xlu1 %v14085_v43  ;;  %13854 = vset.pattern.permute.xlu0 %v14085_v43 }
 0x1d9   : > { %v1314_v11 = vpack.c.bf16 %v11260_v4, %v11258_v5  ;;  %v11274_v54 = vsel %vm1250_vm3, 1.0, %v14075_v1  ;;  %3524 = vperm.xlu1 %13853, %v14167_v7   ;;  %3527 = vperm.xlu0 %13854, %v14174_v10  }
 0x1da   : > { %v1206_v12 = vpop.permute.xlu1 %1205 }
 0x1db   : > { %vm1240_vm0 = vcmp.eq.s32.totalorder %v1206_v12, %v14319_v48 }
 0x1dc   : > { %v11264_v21 = vsel %vm1240_vm0, 1.0, %v14075_v1  ;;  %vm1241_vm0 = vcmp.eq.s32.totalorder %v1209_v18, %v14316_v47 }
 0x1dd   : > { %11279 = vmatmul.mubr.msk.bf16.vlgmr.msra.gmra.mxu1 %vm11278_vm10, %v14078_v61  ;;  %v1316_v26 = vpack.c.bf16 %v11264_v21, %v11262_v22  ;;  %vm1239_vm10 = vcmp.eq.s32.totalorder %v1206_v12, %v14316_v47  ;;  %3530 = vperm.xlu1 %13853, %v14165_v6   ;;  %v1590_v12 = vpop.permute.xlu0 %1589 }
 0x1de   : > { %1735 = vmatpush1.bf16.msra.mxu1 %v14617_v3  ;;  %11280 = vmatprep.mubr.msk.bf16.mxu1 %vm542_vm4, %v1312_v63  ;;  %v1212_v27 = vpop.permute.xlu1 %1211  ;;  %vm11287_vm12 = vmpackc.low %vm1239_vm10, %vm1237_vm11  ;;  %vm1616_vm10 = vcmp.eq.s32.totalorder %v1575_v56, %v14319_v48  ;;  %v14737_v63 = vld [vmem:[%s14182_s9 + $0x40] sm:$0xff]  }
 0x1df   : > { %1736 = vmatprep.subr.bf16.mxu1 %v14074_v0  ;;  %vm1244_vm8 = vcmp.eq.s32.totalorder %v1212_v27, %v14319_v48  ;;  %v11309_v59 = vsel %vm1616_vm10, 1.0, %v14075_v1  ;;  %3536 = vperm.xlu0 %13854, %v14188_v15   ;;  %vm1621_vm10 = vcmp.eq.s32.totalorder %v1584_v62, %v14316_v47 }
 0x1e0   : > { %v11268_v32 = vsel %vm1244_vm8, 1.0, %v14075_v1  ;;  %vm1245_vm8 = vcmp.eq.s32.totalorder %v1215_v46, %v14316_v47 }
 0x1e1   : > { %v1318_v28 = vpack.c.bf16 %v11268_v32, %v11266_v23  ;;  %3533 = vperm.xlu1 %13853, %v14172_v9  }
 0x1e2   : > { %1737 = vmatpush1.bf16.msra.mxu1 %v14629_v8  ;;  %v1218_v45 = vpop.permute.xlu1 %1217 }
 0x1e3   : > { %1738 = vmatprep.subr.bf16.mxu1 %v14074_v0  ;;  %vm1248_vm13 = vcmp.eq.s32.totalorder %v1218_v45, %v14319_v48  ;;  %3542 = vperm.xlu0 %13854, %v14203_v20  }
 0x1e4   : > { %v11272_v49 = vsel %vm1248_vm13, 1.0, %v14075_v1  ;;  %vm1249_vm13 = vcmp.eq.s32.totalorder %v1221_v52, %v14316_v47 }
 0x1e5   : > { %11282 = vmatmul.mubr.msk.bf16.gmra.mxu1 %vm11281_vm15, %v14078_v61  ;;  %vm1243_vm15 = vcmp.eq.s32.totalorder %v1212_v27, %v14316_v47  ;;  %v1320_v53 = vpack.c.bf16 %v11272_v49, %v11270_v36  ;;  %3539 = vperm.xlu1 %13853, %v14186_v14   ;;  %v1596_v27 = vpop.permute.xlu0 %1595 }
 0x1e6   : > { %11283 = vmatprep.mubr.msk.bf16.mxu1 %vm542_vm4, %v1314_v11  ;;  %1739 = vmatpush1.bf16.msra.mxu1 %v14640_v17  ;;  %v1224_v51 = vpop.permute.xlu1 %1223  ;;  %vm11290_vm1 = vmpackc.low %vm1243_vm15, %vm1241_vm0  ;;  %vm1622_vm0 = vcmp.eq.s32.totalorder %v1584_v62, %v14319_v48 }
 0x1e7   : > { %1740 = vmatprep.subr.bf16.mxu1 %v14074_v0  ;;  %vm1252_vm2 = vcmp.eq.s32.totalorder %v1224_v51, %v14319_v48  ;;  %v11315_v4 = vsel %vm1622_vm0, 1.0, %v14075_v1  ;;  %3548 = vperm.xlu0 %13854, %v14216_v25  }
 0x1e8   : > { %v11276_v38 = vsel %vm1252_vm2, 1.0, %v14075_v1  ;;  %vm1615_vm2 = vcmp.eq.s32.totalorder %v1575_v56, %v14316_v47 }
 0x1e9   : > { %v1322_v40 = vpack.c.bf16 %v11276_v38, %v11274_v54  ;;  %3545 = vperm.xlu1 %13853, %v14201_v19  }
 0x1ea   : > { %1741 = vmatpush1.bf16.msra.mxu1 %v14651_v16  ;;  %v1578_v39 = vpop.permute.xlu1 %1577 }
 0x1eb   : > { %1742 = vmatprep.subr.bf16.mxu1 %v14074_v0  ;;  %vm1618_vm9 = vcmp.eq.s32.totalorder %v1578_v39, %v14319_v48  ;;  %3554 = vperm.xlu0 %13854, %v14230_v31  }
 0x1ec   : > { %v11311_v58 = vsel %vm1618_vm9, 1.0, %v14075_v1 }
 0x1ed   : > { %11285 = vmatmul.mubr.msk.bf16.gmra.mxu1 %vm11284_vm5, %v14078_v61  ;;  %vm1247_vm5 = vcmp.eq.s32.totalorder %v1218_v45, %v14316_v47  ;;  %v1700_v41 = vpack.c.bf16 %v11311_v58, %v11309_v59  ;;  %3551 = vperm.xlu1 %13853, %v14214_v24   ;;  %v1602_v45 = vpop.permute.xlu0 %1601 }
 0x1ee   : > { %11286 = vmatprep.mubr.msk.bf16.mxu1 %vm542_vm4, %v1316_v26  ;;  %1743 = vmatpush1.bf16.msra.mxu1 %v14662_v29  ;;  %vm11293_vm11 = vmpackc.low %vm1247_vm5, %vm1245_vm8  ;;  %v1581_v60 = vpop.permute.xlu1 %1580  ;;  %vm1626_vm8 = vcmp.eq.s32.totalorder %v1590_v12, %v14319_v48 }
 0x1ef   : > { %1744 = vmatprep.subr.bf16.mxu1 %v14074_v0  ;;  %vm1620_vm15 = vcmp.eq.s32.totalorder %v1581_v60, %v14319_v48  ;;  %vm1619_vm9 = vcmp.eq.s32.totalorder %v1581_v60, %v14316_v47  ;;  %v11319_v21 = vsel %vm1626_vm8, 1.0, %v14075_v1  ;;  %3560 = vperm.xlu0 %13854, %v14242_v35  }
 0x1f0   : > { %v11313_v2 = vsel %vm1620_vm15, 1.0, %v14075_v1  ;;  %vm1625_vm15 = vcmp.eq.s32.totalorder %v1590_v12, %v14316_v47 }
 0x1f1   : > { %v1702_v5 = vpack.c.bf16 %v11315_v4, %v11313_v2  ;;  %3557 = vperm.xlu1 %13853, %v14228_v30   ;;  %v1608_v52 = vpop.permute.xlu0 %1607 }
 0x1f2   : > { %1745 = vmatpush1.bf16.msra.mxu1 %v14673_v44  ;;  %v1587_v11 = vpop.permute.xlu1 %1586 }
 0x1f3   : > { %1746 = vmatprep.subr.bf16.mxu1 %v14074_v0  ;;  %vm1624_vm5 = vcmp.eq.s32.totalorder %v1587_v11, %v14319_v48 }
 0x1f4   : > { %v11317_v13 = vsel %vm1624_vm5, 1.0, %v14075_v1  ;;  %vm1629_vm5 = vcmp.eq.s32.totalorder %v1596_v27, %v14316_v47 }
 0x1f5   : > { %11288 = vmatmul.mubr.msk.bf16.gmra.mxu1 %vm11287_vm12, %v14078_v61  ;;  %vm1251_vm12 = vcmp.eq.s32.totalorder %v1224_v51, %v14316_v47  ;;  %v1704_v22 = vpack.c.bf16 %v11319_v21, %v11317_v13  ;;  %3563 = vperm.xlu1 %13853, %v14240_v34   ;;  %v1614_v58 = vpop.permute.xlu0 %1613 }
 0x1f6   : > { %11289 = vmatprep.mubr.msk.bf16.mxu1 %vm542_vm4, %v1318_v28  ;;  %1747 = vmatpush1.bf16.msra.mxu1 %v14684_v33  ;;  %vm11296_vm14 = vmpackc.low %vm1251_vm12, %vm1249_vm13  ;;  %v1593_v26 = vpop.permute.xlu1 %1592  ;;  %vm1630_vm13 = vcmp.eq.s32.totalorder %v1596_v27, %v14319_v48 }
 0x1f7   : > { %1748 = vmatprep.subr.bf16.mxu1 %v14074_v0  ;;  %vm1628_vm12 = vcmp.eq.s32.totalorder %v1593_v26, %v14319_v48  ;;  %v11323_v32 = vsel %vm1630_vm13, 1.0, %v14075_v1 }
 0x1f8   : > { %v11321_v18 = vsel %vm1628_vm12, 1.0, %v14075_v1  ;;  %vm1633_vm12 = vcmp.eq.s32.totalorder %v1602_v45, %v14316_v47 }
 0x1f9   : > { %v1706_v23 = vpack.c.bf16 %v11323_v32, %v11321_v18 }
 0x1fa   : > { %1749 = vmatpush1.bf16.msra.mxu1 %v14693_v50  ;;  %v1599_v28 = vpop.permute.xlu1 %1598 }
 0x1fb   : > { %1756 = vmatprep.subr.bf16.mxu1 %v14074_v0 }
 0x1fd   : > { %11291 = vmatmul.mubr.msk.bf16.gmra.mxu1 %vm11290_vm1, %v14078_v61  ;;  %vm1617_vm1 = vcmp.eq.s32.totalorder %v1578_v39, %v14316_v47 }
 0x1fe   : > { %11292 = vmatprep.mubr.msk.bf16.mxu1 %vm542_vm4, %v1320_v53  ;;  %1757 = vmatpush2.bf16.msra.mxu1 %v14702_v37  ;;  %vm11337_vm3 = vmpackc.low %vm1617_vm1, %vm1615_vm2  ;;  %vm1632_vm1 = vcmp.eq.s32.totalorder %v1599_v28, %v14319_v48  ;;  %vm1634_vm2 = vcmp.eq.s32.totalorder %v1602_v45, %v14319_v48  ;;  %v1605_v51 = vpop.permute.xlu1 %1604 }
 0x1ff   : > { %1758 = vmatprep.subr.bf16.mxu1 %v14074_v0  ;;  %v11325_v46 = vsel %vm1632_vm1, 1.0, %v14075_v1  ;;  %v11327_v49 = vsel %vm1634_vm2, 1.0, %v14075_v1  ;;  %vm1637_vm1 = vcmp.eq.s32.totalorder %v1608_v52, %v14316_v47 }
 0x200   : > { %v1708_v36 = vpack.c.bf16 %v11327_v49, %v11325_v46 }
 0x202   : > { %1759 = vmatpush2.bf16.msra.mxu1 %v14711_v55 }
 0x203   : > { %1760 = vmatprep.subr.bf16.mxu1 %v14074_v0 }
 0x205   : > { %11294 = vmatmul.mubr.msk.bf16.gmra.mxu1 %vm11293_vm11, %v14078_v61  ;;  %vm11340_vm11 = vmpackc.low %vm1621_vm10, %vm1619_vm9  ;;  %vm1636_vm9 = vcmp.eq.s32.totalorder %v1605_v51, %v14319_v48  ;;  %vm1638_vm10 = vcmp.eq.s32.totalorder %v1608_v52, %v14319_v48 }
 0x206   : > { %11295 = vmatprep.mubr.msk.bf16.mxu1 %vm542_vm4, %v1322_v40  ;;  %1761 = vmatpush2.bf16.msra.mxu1 %v14720_v57  ;;  %v11329_v54 = vsel %vm1636_vm9, 1.0, %v14075_v1  ;;  %v11331_v39 = vsel %vm1638_vm10, 1.0, %v14075_v1  ;;  %v1611_v40 = vpop.permute.xlu1 %1610  ;;  %vm1641_vm9 = vcmp.eq.s32.totalorder %v1614_v58, %v14316_v47 }
 0x207   : > { %1762 = vmatprep.subr.bf16.mxu1 %v14074_v0 }
 0x20a   : > { %1763 = vmatpush2.bf16.msra.mxu1 %v14729_v42  ;;  %v1965_v4 = vpop.permute.xlu1 %1964 }
 0x20b   : > { %1764 = vmatprep.subr.bf16.mxu1 %v14074_v0  ;;  %vm2006_vm2 = vcmp.eq.s32.totalorder %v1965_v4, %v14319_v48 }
 0x20d   : > { %11297 = vmatmul.mubr.msk.bf16.gmra.mxu1 %vm11296_vm14, %v14078_v61  ;;  %vm1623_vm14 = vcmp.eq.s32.totalorder %v1587_v11, %v14316_v47  ;;  %v1968_v11 = vpop.permute.xlu0 %1967 }
 0x20e   : > { %1765 = vmatpush2.bf16.msra.mxu1 %v14737_v63  ;;  %11336 = vmatprep.mubr.msk.bf16.mxu1 %vm542_vm4, %v1700_v41  ;;  %vm11343_vm0 = vmpackc.low %vm1625_vm15, %vm1623_vm14  ;;  %v1710_v41 = vpack.c.bf16 %v11331_v39, %v11329_v54  ;;  %vm1640_vm14 = vcmp.eq.s32.totalorder %v1611_v40, %v14319_v48  ;;  %vm1642_vm15 = vcmp.eq.s32.totalorder %v1614_v58, %v14319_v48  ;;  %v14086_v54 = vmov 9  }
 0x20f   : > { %2124 = vmatprep.subr.bf16.mxu1 %v14074_v0  ;;  %v11333_v43 = vsel %vm1640_vm14, 1.0, %v14075_v1  ;;  %v11335_v2 = vsel %vm1642_vm15, 1.0, %v14075_v1  ;;  %vm2007_vm14 = vcmp.eq.s32.totalorder %v1968_v11, %v14316_v47  ;;  %13856 = vset.pattern.permute.xlu1 %v14086_v54 }
 0x210   : > { %v1712_v13 = vpack.c.bf16 %v11335_v2, %v11333_v43  ;;  %13855 = vset.pattern.permute.xlu0 %v14086_v54  ;;  %3917 = vperm.xlu1 %13856, %v14174_v10  }
 0x211   : > { %3914 = vperm.xlu0 %13855, %v14167_v7   ;;  %v1977_v58 = vpop.permute.xlu0 %1976 }
 0x214   : > { %3920 = vperm.xlu1 %13856, %v14165_v6  }
 0x215   : > { %11338 = vmatmul.mubr.msk.bf16.vlgmr.msra.gmra.mxu1 %vm11337_vm3, %v14078_v61  ;;  %vm1627_vm3 = vcmp.eq.s32.totalorder %v1593_v26, %v14316_v47  ;;  %v1971_v26 = vpop.permute.xlu1 %1970  ;;  %3923 = vperm.xlu0 %13855, %v14172_v9  }
 0x216   : > { %2125 = vmatpush1.bf16.msra.mxu1 %v14617_v3  ;;  %11339 = vmatprep.mubr.msk.bf16.mxu1 %vm542_vm4, %v1702_v5  ;;  %vm11346_vm8 = vmpackc.low %vm1629_vm5, %vm1627_vm3  ;;  %vm2008_vm3 = vcmp.eq.s32.totalorder %v1968_v11, %v14319_v48 }
 0x217   : > { %2126 = vmatprep.subr.bf16.mxu1 %v14074_v0  ;;  %v11370_v27 = vsel %vm2008_vm3, 1.0, %v14075_v1 }
 0x218   : > { %3926 = vperm.xlu1 %13856, %v14188_v15  }
 0x219   : > { %v1974_v45 = vpop.permute.xlu1 %1973  ;;  %3929 = vperm.xlu0 %13855, %v14186_v14  }
 0x21a   : > { %2127 = vmatpush1.bf16.msra.mxu1 %v14629_v8  ;;  %vm2011_vm3 = vcmp.eq.s32.totalorder %v1974_v45, %v14316_v47 }
 0x21b   : > { %2128 = vmatprep.subr.bf16.mxu1 %v14074_v0 }
 0x21c   : > { %3932 = vperm.xlu1 %13856, %v14203_v20  }
 0x21d   : > { %11341 = vmatmul.mubr.msk.bf16.gmra.mxu1 %vm11340_vm11, %v14078_v61  ;;  %vm1631_vm11 = vcmp.eq.s32.totalorder %v1599_v28, %v14316_v47  ;;  %3935 = vperm.xlu0 %13855, %v14201_v19  }
 0x21e   : > { %11342 = vmatprep.mubr.msk.bf16.mxu1 %vm542_vm4, %v1704_v22  ;;  %2129 = vmatpush1.bf16.msra.mxu1 %v14640_v17  ;;  %vm11349_vm13 = vmpackc.low %vm1633_vm12, %vm1631_vm11  ;;  %v11368_v22 = vsel %vm2006_vm2, 1.0, %v14075_v1  ;;  %vm2010_vm11 = vcmp.eq.s32.totalorder %v1971_v26, %v14319_v48  ;;  %vm2012_vm12 = vcmp.eq.s32.totalorder %v1974_v45, %v14319_v48  ;;  %vm2009_vm2 = vcmp.eq.s32.totalorder %v1971_v26, %v14316_v47 }
 0x21f   : > { %2130 = vmatprep.subr.bf16.mxu1 %v14074_v0 }
 0x220   : > { %3938 = vperm.xlu1 %13856, %v14216_v25  }
 0x221   : > { %3941 = vperm.xlu0 %13855, %v14214_v24  }
 0x222   : > { %2131 = vmatpush1.bf16.msra.mxu1 %v14651_v16 }
 0x223   : > { %2132 = vmatprep.subr.bf16.mxu1 %v14074_v0 }
 0x224   : > { %3944 = vperm.xlu1 %13856, %v14230_v31  }
 0x225   : > { %11344 = vmatmul.mubr.msk.bf16.gmra.mxu1 %vm11343_vm0, %v14078_v61  ;;  %vm1635_vm0 = vcmp.eq.s32.totalorder %v1605_v51, %v14316_v47  ;;  %v11374_v51 = vsel %vm2012_vm12, 1.0, %v14075_v1  ;;  %3947 = vperm.xlu0 %13855, %v14228_v30  }
 0x226   : > { %11345 = vmatprep.mubr.msk.bf16.mxu1 %vm542_vm4, %v1706_v23  ;;  %2133 = vmatpush1.bf16.msra.mxu1 %v14662_v29  ;;  %vm11352_vm5 = vmpackc.low %vm1637_vm1, %vm1635_vm0  ;;  %v2090_v23 = vpack.c.bf16 %v11370_v27, %v11368_v22  ;;  %vm2014_vm1 = vcmp.eq.s32.totalorder %v1977_v58, %v14319_v48 }
 0x227   : > { %2134 = vmatprep.subr.bf16.mxu1 %v14074_v0  ;;  %v11376_v43 = vsel %vm2014_vm1, 1.0, %v14075_v1 }
 0x228   : > { %3950 = vperm.xlu1 %13856, %v14242_v35  }
 0x229   : > { %3953 = vperm.xlu0 %13855, %v14240_v34  }
 0x22a   : > { %2135 = vmatpush1.bf16.msra.mxu1 %v14673_v44 }
 0x22b   : > { %2136 = vmatprep.subr.bf16.mxu1 %v14074_v0 }
 0x22d   : > { %v14796_v53 = vpop.f32.mrf.mxu1  ;;  %11347 = vmatmul.mubr.msk.bf16.gmra.mxu1 %vm11346_vm8, %v14078_v61  ;;  %vm1639_vm8 = vcmp.eq.s32.totalorder %v1611_v40, %v14316_v47  ;;  %v1980_v40 = vpop.permute.xlu1 %1979 }
 0x22e   : > { %11348 = vmatprep.mubr.msk.bf16.mxu1 %vm542_vm4, %v1708_v36  ;;  %2137 = vmatpush1.bf16.msra.mxu1 %v14684_v33  ;;  %vm11355_vm10 = vmpackc.low %vm1641_vm9, %vm1639_vm8  ;;  %v11372_v36 = vsel %vm2010_vm11, 1.0, %v14075_v1  ;;  %vm2016_vm0 = vcmp.eq.s32.totalorder %v1980_v40, %v14319_v48  ;;  %vm2013_vm11 = vcmp.eq.s32.totalorder %v1977_v58, %v14316_v47 }
 0x22f   : > { %v12974_v38 = vpop.f32.mrf.mxu1  ;;  %2138 = vmatprep.subr.bf16.mxu1 %v14074_v0  ;;  %v2092_v39 = vpack.c.bf16 %v11374_v51, %v11372_v36 }
 0x231   : > { %v14808_v56 = vpop.f32.mrf.mxu1 }
 0x232   : > { %2139 = vmatpush1.bf16.msra.mxu1 %v14693_v50 }
 0x233   : > { %v12975_v59 = vpop.f32.mrf.mxu1  ;;  %2146 = vmatprep.subr.bf16.mxu1 %v14074_v0 }
 0x235   : > { %v14812_v60 = vpop.f32.mrf.mxu1  ;;  %11350 = vmatmul.mubr.msk.bf16.gmra.mxu1 %vm11349_vm13, %v14078_v61  ;;  %vm2005_vm13 = vcmp.eq.s32.totalorder %v1965_v4, %v14316_v47 }
 0x236   : > { %11351 = vmatprep.mubr.msk.bf16.mxu1 %vm542_vm4, %v1710_v41  ;;  %2147 = vmatpush2.bf16.msra.mxu1 %v14702_v37  ;;  %vm11396_vm15 = vmpackc.low %vm2007_vm14, %vm2005_vm13 }
 0x237   : > { %v12978_v62 = vpop.f32.mrf.mxu1  ;;  %2148 = vmatprep.subr.bf16.mxu1 %v14074_v0 }
 0x238   : > { %v11378_v62 = vsel %vm2016_vm0, 1.0, %v14075_v1 }
 0x239   : > { %v14824_v5 = vpop.f32.mrf.mxu1  ;;  %v2094_v11 = vpack.c.bf16 %v11378_v62, %v11376_v43 }
 0x23a   : > { %2149 = vmatpush2.bf16.msra.mxu1 %v14711_v55 }
 0x23b   : > { %v12979_v12 = vpop.f32.mrf.mxu1  ;;  %2150 = vmatprep.subr.bf16.mxu1 %v14074_v0 }
 0x23c   : > { %v1986_v12 = vpop.permute.xlu1 %1985 }
 0x23d   : > { %v14830_v21 = vpop.f32.mrf.mxu1  ;;  %11353 = vmatmul.mubr.msk.bf16.gmra.mxu1 %vm11352_vm5, %v14078_v61  ;;  %vm11399_vm5 = vmpackc.low %vm2011_vm3, %vm2009_vm2  ;;  %vm2020_vm8 = vcmp.eq.s32.totalorder %v1986_v12, %v14319_v48 }
 0x23e   : > { %11354 = vmatprep.mubr.msk.bf16.mxu1 %vm542_vm4, %v1712_v13  ;;  %2151 = vmatpush2.bf16.msra.mxu1 %v14720_v57  ;;  %v1983_v13 = vpop.permute.xlu0 %1982  ;;  %v11382_v27 = vsel %vm2020_vm8, 1.0, %v14075_v1 }
 0x23f   : > { %v12982_v18 = vpop.f32.mrf.mxu1  ;;  %2152 = vmatprep.subr.bf16.mxu1 %v14074_v0  ;;  %vm2018_vm9 = vcmp.eq.s32.totalorder %v1983_v13, %v14319_v48  ;;  %vm2017_vm0 = vcmp.eq.s32.totalorder %v1983_v13, %v14316_v47 }
 0x240   : > { %v11380_v18 = vsel %vm2018_vm9, 1.0, %v14075_v1 }
 0x241   : > { %v14840_v32 = vpop.f32.mrf.mxu1  ;;  %v2096_v45 = vpack.c.bf16 %v11382_v27, %v11380_v18 }
 0x242   : > { %2153 = vmatpush2.bf16.msra.mxu1 %v14729_v42  ;;  %v1989_v36 = vpop.permute.xlu0 %1988 }
 0x243   : > { %v12983_v28 = vpop.f32.mrf.mxu1  ;;  %2154 = vmatprep.subr.bf16.mxu1 %v14074_v0  ;;  %vm2022_vm14 = vcmp.eq.s32.totalorder %v1989_v36, %v14319_v48  ;;  %vm2021_vm8 = vcmp.eq.s32.totalorder %v1989_v36, %v14316_v47 }
 0x245   : > { %v14844_v46 = vpop.f32.mrf.mxu1  ;;  %11356 = vmatmul.mubr.msk.bf16.gmra.mxu1 %vm11355_vm10, %v14078_v61  ;;  %vm2015_vm10 = vcmp.eq.s32.totalorder %v1980_v40, %v14316_v47 }
 0x246   : > { %2155 = vmatpush2.bf16.msra.mxu1 %v14737_v63  ;;  %11395 = vmatprep.mubr.msk.bf16.mxu1 %vm542_vm4, %v2090_v23  ;;  %vm11402_vm12 = vmpackc.low %vm2015_vm10, %vm2013_vm11  ;;  %v1995_v43 = vpop.permute.xlu0 %1994 }
 0x247   : > { %v12986_v49 = vpop.f32.mrf.mxu1  ;;  %2514 = vmatprep.subr.bf16.mxu1 %v14074_v0  ;;  %vm2026_vm3 = vcmp.eq.s32.totalorder %v1995_v43, %v14319_v48 }
 0x248   : > { %v1992_v49 = vpop.permute.xlu1 %1991  ;;  %v11388_v13 = vsel %vm2026_vm3, 1.0, %v14075_v1 }
 0x249   : > { %v14856_v52 = vpop.f32.mrf.mxu1  ;;  %vm2024_vm13 = vcmp.eq.s32.totalorder %v1992_v49, %v14319_v48 }
 0x24a   : > { %v11386_v54 = vsel %vm2024_vm13, 1.0, %v14075_v1  ;;  %vm2025_vm13 = vcmp.eq.s32.totalorder %v1995_v43, %v14316_v47 }
 0x24b   : > { %v12987_v38 = vpop.f32.mrf.mxu1 }
 0x24c   : > { %v1998_v62 = vpop.permute.xlu1 %1997 }
 0x24d   : > { %v14860_v59 = vpop.f32.mrf.mxu1  ;;  %11397 = vmatmul.mubr.msk.bf16.vlgmr.msra.gmra.mxu1 %vm11396_vm15, %v14078_v61  ;;  %vm2019_vm15 = vcmp.eq.s32.totalorder %v1986_v12, %v14316_v47  ;;  %vm2028_vm2 = vcmp.eq.s32.totalorder %v1998_v62, %v14319_v48 }
 0x24e   : > { %2515 = vmatpush1.bf16.msra.mxu1 %v14617_v3  ;;  %11398 = vmatprep.mubr.msk.bf16.mxu1 %vm542_vm4, %v2092_v39  ;;  %v11384_v39 = vsel %vm2022_vm14, 1.0, %v14075_v1  ;;  %vm11405_vm1 = vmpackc.low %vm2019_vm15, %vm2017_vm0  ;;  %v11390_v12 = vsel %vm2028_vm2, 1.0, %v14075_v1 }
 0x24f   : > { %v12990_v41 = vpop.f32.mrf.mxu1  ;;  %2516 = vmatprep.subr.bf16.mxu1 %v14074_v0 }
 0x250   : > { %v2098_v41 = vpack.c.bf16 %v11386_v54, %v11384_v39  ;;  %v2004_v27 = vpop.permute.xlu1 %2003 }
 0x251   : > { %v14874_v2 = vpop.f32.mrf.mxu1  ;;  %vm2032_vm10 = vcmp.eq.s32.totalorder %v2004_v27, %v14319_v48 }
 0x252   : > { %2517 = vmatpush1.bf16.msra.mxu1 %v14629_v8  ;;  %v11394_v39 = vsel %vm2032_vm10, 1.0, %v14075_v1 }
 0x253   : > { %v12991_v4 = vpop.f32.mrf.mxu1  ;;  %2518 = vmatprep.subr.bf16.mxu1 %v14074_v0 }
 0x255   : > { %v14880_v22 = vpop.f32.mrf.mxu1  ;;  %11400 = vmatmul.mubr.msk.bf16.gmra.mxu1 %vm11399_vm5, %v14078_v61  ;;  %vm2023_vm5 = vcmp.eq.s32.totalorder %v1992_v49, %v14316_v47  ;;  %v2100_v49 = vpack.c.bf16 %v11390_v12, %v11388_v13 }
 0x256   : > { %11401 = vmatprep.mubr.msk.bf16.mxu1 %vm542_vm4, %v2094_v11  ;;  %2519 = vmatpush1.bf16.msra.mxu1 %v14640_v17  ;;  %vm11408_vm9 = vmpackc.low %vm2023_vm5, %vm2021_vm8 }
 0x257   : > { %v12994_v26 = vpop.f32.mrf.mxu1  ;;  %2520 = vmatprep.subr.bf16.mxu1 %v14074_v0 }
 0x259   : > { %v14894_v23 = vpop.f32.mrf.mxu1 }
 0x25a   : > { %2521 = vmatpush1.bf16.msra.mxu1 %v14651_v16 }
 0x25b   : > { %v12995_v28 = vpop.f32.mrf.mxu1  ;;  %2522 = vmatprep.subr.bf16.mxu1 %v14074_v0 }
 0x25c   : > { %v2001_v28 = vpop.permute.xlu0 %2000 }
 0x25d   : > { %v14900_v51 = vpop.f32.mrf.mxu1  ;;  %11403 = vmatmul.mubr.msk.bf16.gmra.mxu1 %vm11402_vm12, %v14078_v61  ;;  %vm2030_vm11 = vcmp.eq.s32.totalorder %v2001_v28, %v14319_v48  ;;  %vm2027_vm12 = vcmp.eq.s32.totalorder %v1998_v62, %v14316_v47  ;;  %vm2029_vm2 = vcmp.eq.s32.totalorder %v2001_v28, %v14316_v47  ;;  %v14087_v28 = vmov 10  }
 0x25e   : > { %11404 = vmatprep.mubr.msk.bf16.mxu1 %vm542_vm4, %v2096_v45  ;;  %2523 = vmatpush1.bf16.msra.mxu1 %v14662_v29  ;;  %vm11411_vm14 = vmpackc.low %vm2027_vm12, %vm2025_vm13 }
 0x25f   : > { %v12998_v38 = vpop.f32.mrf.mxu1  ;;  %2524 = vmatprep.subr.bf16.mxu1 %v14074_v0  ;;  %13857 = vset.pattern.permute.xlu1 %v14087_v28 }
 0x260   : > { %v13906_v38 = vld [vmem:[%s19706_s3 + $0x10] sm:$0xff]   ;;  %v2355_v12 = vpop.permute.xlu0 %2354  ;;  %4304 = vperm.xlu1 %13857, %v14167_v7   ;;  %13858 = vset.pattern.permute.xlu0 %v14087_v28 }
 0x261   : > { %v14914_v40 = vpop.f32.mrf.mxu1  ;;  %vm2396_vm0 = vcmp.eq.s32.totalorder %v2355_v12, %v14319_v48  ;;  %vm2395_vm10 = vcmp.eq.s32.totalorder %v2355_v12, %v14316_v47  ;;  %4307 = vperm.xlu0 %13858, %v14174_v10  }
 0x262   : > { %2525 = vmatpush1.bf16.msra.mxu1 %v14673_v44 }
 0x263   : > { %v12999_v58 = vpop.f32.mrf.mxu1  ;;  %2526 = vmatprep.subr.bf16.mxu1 %v14074_v0 }
 0x264   : > { %v11392_v58 = vsel %vm2030_vm11, 1.0, %v14075_v1  ;;  %4310 = vperm.xlu1 %13857, %v14165_v6  }
 0x265   : > { %v988_v4 = vpop.f32.mrf.mxu1  ;;  %11406 = vmatmul.mubr.msk.bf16.gmra.mxu1 %vm11405_vm1, %v14078_v61  ;;  %vm2031_vm1 = vcmp.eq.s32.totalorder %v2004_v27, %v14316_v47  ;;  %4316 = vperm.xlu0 %13858, %v14188_v15  }
 0x266   : > { %11407 = vmatprep.mubr.msk.bf16.mxu1 %vm542_vm4, %v2098_v41  ;;  %2527 = vmatpush1.bf16.msra.mxu1 %v14684_v33  ;;  %vm11414_vm3 = vmpackc.low %vm2031_vm1, %vm2029_vm2 }
 0x267   : > { %v990_v11 = vpop.f32.mrf.mxu1  ;;  %2528 = vmatprep.subr.bf16.mxu1 %v14074_v0 }
 0x268   : > { %4313 = vperm.xlu1 %13857, %v14172_v9  }
 0x269   : > { %v991_v26 = vpop.f32.mrf.mxu1  ;;  %4322 = vperm.xlu0 %13858, %v14203_v20  }
 0x26a   : > { %v1043_v18 = vpack.c.bf16 %v991_v26, %v988_v4  ;;  %2529 = vmatpush1.bf16.msra.mxu1 %v14693_v50  ;;  %v2358_v4 = vpop.permute.xlu1 %2357  ;;  %v2102_v26 = vpack.c.bf16 %v11394_v39, %v11392_v58  ;;  %v2364_v58 = vpop.permute.xlu0 %2363 }
 0x26b   : > { %v993_v45 = vpop.f32.mrf.mxu1  ;;  %2536 = vmatprep.subr.bf16.mxu1 %v14074_v0  ;;  %vm2398_vm15 = vcmp.eq.s32.totalorder %v2358_v4, %v14319_v48  ;;  %vm2402_vm8 = vcmp.eq.s32.totalorder %v2364_v58, %v14319_v48 }
 0x26c   : > { %13003 = vmatmul.mubr.msk.bf16.vlgmr.msra.gmra.mxu0 %vm234_vm7, %v1043_v18  ;;  %v11429_v43 = vsel %vm2398_vm15, 1.0, %v14075_v1  ;;  %v11427_v18 = vsel %vm2396_vm0, 1.0, %v14075_v1  ;;  %vm2401_vm15 = vcmp.eq.s32.totalorder %v2364_v58, %v14316_v47  ;;  %4319 = vperm.xlu1 %13857, %v14186_v14  }
 0x26d   : > { %v996_v36 = vpop.f32.mrf.mxu1  ;;  %11409 = vmatmul.mubr.msk.bf16.gmra.mxu1 %vm11408_vm9, %v14078_v61  ;;  %13006 = vmatprep.mubr.msk.bf16.mxu0 %vm14079_vm6, %v14075_v1  ;;  %vm2397_vm9 = vcmp.eq.s32.totalorder %v2358_v4, %v14316_v47 }
 0x26e   : > { %11410 = vmatprep.mubr.msk.bf16.mxu1 %vm542_vm4, %v2100_v49  ;;  %2537 = vmatpush2.bf16.msra.mxu1 %v14702_v37  ;;  %v2480_v49 = vpack.c.bf16 %v11429_v43, %v11427_v18  ;;  %v2361_v39 = vpop.permute.xlu1 %2360  ;;  %vm11455_vm11 = vmpackc.low %vm2397_vm9, %vm2395_vm10 }
 0x26f   : > { %v998_v54 = vpop.f32.mrf.mxu1  ;;  %2538 = vmatprep.subr.bf16.mxu1 %v14074_v0  ;;  %13031 = vmatpush3.bf16.msra.mxu0 %v13906_v38  ;;  %vm2400_vm5 = vcmp.eq.s32.totalorder %v2361_v39, %v14319_v48 }
 0x270   : > { %13060 = vmatprep.subr.bf16.mxu0 %v14075_v1  ;;  %4328 = vperm.xlu0 %13858, %v14216_v25  }
 0x271   : > { %v999_v41 = vpop.f32.mrf.mxu1  ;;  %4325 = vperm.xlu1 %13857, %v14201_v19  }
 0x272   : > { %v1044_v11 = vpack.c.bf16 %v999_v41, %v996_v36  ;;  %2539 = vmatpush2.bf16.msra.mxu1 %v14711_v55 }
 0x273   : > { %v1001_v13 = vpop.f32.mrf.mxu1  ;;  %2540 = vmatprep.subr.bf16.mxu1 %v14074_v0 }
 0x274   : > { %13007 = vmatmul.mubr.msk.bf16.gmra.mxu0 %vm234_vm7, %v1044_v11  ;;  %v11431_v11 = vsel %vm2400_vm5, 1.0, %v14075_v1  ;;  %v11433_v13 = vsel %vm2402_vm8, 1.0, %v14075_v1  ;;  %4334 = vperm.xlu0 %13858, %v14230_v31  }
 0x275   : > { %v1004_v62 = vpop.f32.mrf.mxu1  ;;  %11412 = vmatmul.mubr.msk.bf16.gmra.mxu1 %vm11411_vm14, %v14078_v61  ;;  %13010 = vmatprep.mubr.msk.bf16.mxu0 %vm14079_vm6, %v14075_v1  ;;  %v2482_v18 = vpack.c.bf16 %v11433_v13, %v11431_v11  ;;  %vm2399_vm14 = vcmp.eq.s32.totalorder %v2361_v39, %v14316_v47 }
 0x276   : > { %11413 = vmatprep.mubr.msk.bf16.mxu1 %vm542_vm4, %v2102_v26  ;;  %2541 = vmatpush2.bf16.msra.mxu1 %v14720_v57  ;;  %vm11458_vm0 = vmpackc.low %vm2401_vm15, %vm2399_vm14 }
 0x277   : > { %v1006_v45 = vpop.f32.mrf.mxu1  ;;  %2542 = vmatprep.subr.bf16.mxu1 %v14074_v0  ;;  %4331 = vperm.xlu1 %13857, %v14214_v24  }
 0x278   : > { %v2367_v45 = vpop.permute.xlu1 %2366  ;;  %4340 = vperm.xlu0 %13858, %v14242_v35  }
 0x279   : > { %v1007_v38 = vpop.f32.mrf.mxu1  ;;  %vm2404_vm12 = vcmp.eq.s32.totalorder %v2367_v45, %v14319_v48 }
 0x27a   : > { %v1045_v36 = vpack.c.bf16 %v1007_v38, %v1004_v62  ;;  %2543 = vmatpush2.bf16.msra.mxu1 %v14729_v42  ;;  %v2370_v38 = vpop.permute.xlu0 %2369 }
 0x27b   : > { %v1009_v54 = vpop.f32.mrf.mxu1  ;;  %2544 = vmatprep.subr.bf16.mxu1 %v14074_v0  ;;  %vm2406_vm13 = vcmp.eq.s32.totalorder %v2370_v38, %v14319_v48  ;;  %vm2405_vm5 = vcmp.eq.s32.totalorder %v2370_v38, %v14316_v47  ;;  %4337 = vperm.xlu1 %13857, %v14228_v30  }
 0x27c   : > { %13011 = vmatmul.mubr.msk.bf16.gmra.mxu0 %vm234_vm7, %v1045_v36  ;;  %v11437_v36 = vsel %vm2406_vm13, 1.0, %v14075_v1  ;;  %v2373_v28 = vpop.permute.xlu1 %2372 }
 0x27d   : > { %v1012_v41 = vpop.f32.mrf.mxu1  ;;  %11415 = vmatmul.mubr.msk.bf16.gmra.mxu1 %vm11414_vm3, %v14078_v61  ;;  %13014 = vmatprep.mubr.msk.bf16.mxu0 %vm14079_vm6, %v14075_v1  ;;  %vm2408_vm1 = vcmp.eq.s32.totalorder %v2373_v28, %v14319_v48  ;;  %vm2403_vm3 = vcmp.eq.s32.totalorder %v2367_v45, %v14316_v47 }
 0x27e   : > { %2545 = vmatpush2.bf16.msra.mxu1 %v14737_v63  ;;  %11454 = vmatprep.mubr.msk.bf16.mxu1 %vm542_vm4, %v2480_v49  ;;  %v11435_v49 = vsel %vm2404_vm12, 1.0, %v14075_v1  ;;  %v2376_v39 = vpop.permute.xlu0 %2375  ;;  %v11439_v11 = vsel %vm2408_vm1, 1.0, %v14075_v1  ;;  %vm11461_vm8 = vmpackc.low %vm2405_vm5, %vm2403_vm3 }
 0x27f   : > { %v1014_v27 = vpop.f32.mrf.mxu1  ;;  %2904 = vmatprep.subr.bf16.mxu1 %v14074_v0  ;;  %vm2410_vm2 = vcmp.eq.s32.totalorder %v2376_v39, %v14319_v48  ;;  %vm2409_vm12 = vcmp.eq.s32.totalorder %v2376_v39, %v14316_v47  ;;  %4343 = vperm.xlu1 %13857, %v14240_v34  }
 0x280   : > { %v2484_v27 = vpack.c.bf16 %v11437_v36, %v11435_v49  ;;  %v11441_v13 = vsel %vm2410_vm2, 1.0, %v14075_v1 }
 0x281   : > { %v1015_v26 = vpop.f32.mrf.mxu1 }
 0x282   : > { %v1046_v62 = vpack.c.bf16 %v1015_v26, %v1012_v41  ;;  %v2382_v45 = vpop.permute.xlu0 %2381 }
 0x283   : > { %v1017_v43 = vpop.f32.mrf.mxu1  ;;  %vm2414_vm10 = vcmp.eq.s32.totalorder %v2382_v45, %v14319_v48  ;;  %vm2413_vm1 = vcmp.eq.s32.totalorder %v2382_v45, %v14316_v47 }
 0x284   : > { %13015 = vmatmul.mubr.msk.bf16.gmra.mxu0 %vm234_vm7, %v1046_v62  ;;  %v2486_v43 = vpack.c.bf16 %v11441_v13, %v11439_v11 }
 0x285   : > { %v1020_v4 = vpop.f32.mrf.mxu1  ;;  %11456 = vmatmul.mubr.msk.bf16.vlgmr.msra.gmra.mxu1 %vm11455_vm11, %v14078_v61  ;;  %13018 = vmatprep.mubr.msk.bf16.mxu0 %vm14079_vm6, %v14075_v1  ;;  %vm2407_vm11 = vcmp.eq.s32.totalorder %v2373_v28, %v14316_v47 }
 0x286   : > { %2905 = vmatpush1.bf16.msra.mxu1 %v14617_v3  ;;  %11457 = vmatprep.mubr.msk.bf16.mxu1 %vm542_vm4, %v2482_v18  ;;  %v2379_v18 = vpop.permute.xlu1 %2378  ;;  %vm11464_vm13 = vmpackc.low %vm2409_vm12, %vm2407_vm11 }
 0x287   : > { %v1022_v12 = vpop.f32.mrf.mxu1  ;;  %2906 = vmatprep.subr.bf16.mxu1 %v14074_v0  ;;  %vm2412_vm9 = vcmp.eq.s32.totalorder %v2379_v18, %v14319_v48 }
 0x288   : > { %v11445_v12 = vsel %vm2414_vm10, 1.0, %v14075_v1 }
 0x289   : > { %v1023_v54 = vpop.f32.mrf.mxu1 }
 0x28a   : > { %v1047_v41 = vpack.c.bf16 %v1023_v54, %v1020_v4  ;;  %2907 = vmatpush1.bf16.msra.mxu1 %v14629_v8  ;;  %v11443_v4 = vsel %vm2412_vm9, 1.0, %v14075_v1 }
 0x28b   : > { %v1025_v3 = vpop.f32.mrf.mxu1  ;;  %2908 = vmatprep.subr.bf16.mxu1 %v14074_v0  ;;  %v2488_v54 = vpack.c.bf16 %v11445_v12, %v11443_v4 }
 0x28c   : > { %13019 = vmatmul.mubr.msk.bf16.gmra.mxu0 %vm234_vm7, %v1047_v41  ;;  %v2385_v41 = vpop.permute.xlu1 %2384  ;;  %v2388_v3 = vpop.permute.xlu0 %2387 }
 0x28d   : > { %v1028_v58 = vpop.f32.mrf.mxu1  ;;  %11459 = vmatmul.mubr.msk.bf16.gmra.mxu1 %vm11458_vm0, %v14078_v61  ;;  %13022 = vmatprep.mubr.msk.bf16.mxu0 %vm14079_vm6, %v14075_v1  ;;  %vm2416_vm14 = vcmp.eq.s32.totalorder %v2385_v41, %v14319_v48  ;;  %vm2418_vm15 = vcmp.eq.s32.totalorder %v2388_v3, %v14319_v48  ;;  %vm2411_vm0 = vcmp.eq.s32.totalorder %v2379_v18, %v14316_v47 }
 0x28e   : > { %11460 = vmatprep.mubr.msk.bf16.mxu1 %vm542_vm4, %v2484_v27  ;;  %2909 = vmatpush1.bf16.msra.mxu1 %v14640_v17  ;;  %v11447_v28 = vsel %vm2416_vm14, 1.0, %v14075_v1  ;;  %v11449_v39 = vsel %vm2418_vm15, 1.0, %v14075_v1  ;;  %vm11467_vm2 = vmpackc.low %vm2413_vm1, %vm2411_vm0  ;;  %vm2417_vm9 = vcmp.eq.s32.totalorder %v2388_v3, %v14316_v47 }
 0x28f   : > { %v1030_v8 = vpop.f32.mrf.mxu1  ;;  %2910 = vmatprep.subr.bf16.mxu1 %v14074_v0 }
 0x290   : > { %v2391_v8 = vpop.permute.xlu1 %2390  ;;  %v2394_v13 = vpop.permute.xlu0 %2393 }
 0x291   : > { %v1031_v26 = vpop.f32.mrf.mxu1  ;;  %vm2420_vm3 = vcmp.eq.s32.totalorder %v2391_v8, %v14319_v48  ;;  %vm2422_vm5 = vcmp.eq.s32.totalorder %v2394_v13, %v14319_v48  ;;  %vm2421_vm14 = vcmp.eq.s32.totalorder %v2394_v13, %v14316_v47 }
 0x292   : > { %v1048_v62 = vpack.c.bf16 %v1031_v26, %v1028_v58  ;;  %2911 = vmatpush1.bf16.msra.mxu1 %v14651_v16  ;;  %v11453_v18 = vsel %vm2422_vm5, 1.0, %v14075_v1 }
 0x293   : > { %v1033_v17 = vpop.f32.mrf.mxu1  ;;  %2912 = vmatprep.subr.bf16.mxu1 %v14074_v0 }
 0x294   : > { %13023 = vmatmul.mubr.msk.bf16.gmra.mxu0 %vm234_vm7, %v1048_v62  ;;  %v2490_v62 = vpack.c.bf16 %v11449_v39, %v11447_v28  ;;  %v2745_v45 = vpop.permute.xlu1 %2744 }
 0x295   : > { %v1036_v38 = vpop.f32.mrf.mxu1  ;;  %11462 = vmatmul.mubr.msk.bf16.gmra.mxu1 %vm11461_vm8, %v14078_v61  ;;  %13026 = vmatprep.mubr.msk.bf16.mxu0 %vm14079_vm6, %v14075_v1  ;;  %vm2415_vm8 = vcmp.eq.s32.totalorder %v2385_v41, %v14316_v47  ;;  %vm2786_vm11 = vcmp.eq.s32.totalorder %v2745_v45, %v14319_v48 }
 0x296   : > { %11463 = vmatprep.mubr.msk.bf16.mxu1 %vm542_vm4, %v2486_v43  ;;  %2913 = vmatpush1.bf16.msra.mxu1 %v14662_v29  ;;  %v11451_v43 = vsel %vm2420_vm3, 1.0, %v14075_v1  ;;  %vm11470_vm10 = vmpackc.low %vm2417_vm9, %vm2415_vm8 }
 0x297   : > { %v1038_v16 = vpop.f32.mrf.mxu1  ;;  %2914 = vmatprep.subr.bf16.mxu1 %v14074_v0  ;;  %v2492_v12 = vpack.c.bf16 %v11453_v18, %v11451_v43 }
 0x299   : > { %v1039_v49 = vpop.f32.mrf.mxu1 }
 0x29a   : > { %v1049_v36 = vpack.c.bf16 %v1039_v49, %v1036_v38  ;;  %2915 = vmatpush1.bf16.msra.mxu1 %v14673_v44 }
 0x29b   : > { %v1041_v29 = vpop.f32.mrf.mxu1  ;;  %2916 = vmatprep.subr.bf16.mxu1 %v14074_v0 }
 0x29c   : > { %13027 = vmatmul.mubr.msk.bf16.gmra.mxu0 %vm234_vm7, %v1049_v36  ;;  %v15081_v36 = vpop.permute.xlu1 %2750 }
 0x29d   : > { %v1378_v27 = vpop.f32.mrf.mxu1  ;;  %11465 = vmatmul.mubr.msk.bf16.gmra.mxu1 %vm11464_vm13, %v14078_v61  ;;  %13032 = vmatprep.mubr.msk.bf16.mxu0 %vm14079_vm6, %v14075_v1  ;;  %vm2419_vm13 = vcmp.eq.s32.totalorder %v2391_v8, %v14316_v47  ;;  %vm2790_vm0 = vcmp.eq.s32.totalorder %v15081_v36, %v14319_v48 }
 0x29e   : > { %11466 = vmatprep.mubr.msk.bf16.mxu1 %vm542_vm4, %v2488_v54  ;;  %2917 = vmatpush1.bf16.msra.mxu1 %v14684_v33  ;;  %v13907_v33 = vld [vmem:[%s19706_s3 + $0x18] sm:$0xff]   ;;  %vm11473_vm15 = vmpackc.low %vm2421_vm14, %vm2419_vm13  ;;  %v11490_v39 = vsel %vm2790_vm0, 1.0, %v14075_v1 }
 0x29f   : > { %v1380_v44 = vpop.f32.mrf.mxu1  ;;  %2918 = vmatprep.subr.bf16.mxu1 %v14074_v0 }
 0x2a1   : > { %v1381_v58 = vpop.f32.mrf.mxu1 }
 0x2a2   : > { %v1433_v11 = vpack.c.bf16 %v1381_v58, %v1378_v27  ;;  %2919 = vmatpush1.bf16.msra.mxu1 %v14693_v50 }
 0x2a3   : > { %v1383_v26 = vpop.f32.mrf.mxu1  ;;  %2926 = vmatprep.subr.bf16.mxu1 %v14074_v0 }
 0x2a4   : > { %13033 = vmatmul.mubr.msk.bf16.vlgmr.msra.gmra.mxu0 %vm234_vm7, %v1433_v11  ;;  %v14088_v26 = vmov 11  }
 0x2a5   : > { %v1386_v17 = vpop.f32.mrf.mxu1  ;;  %11468 = vmatmul.mubr.msk.bf16.gmra.mxu1 %vm11467_vm2, %v14078_v61  ;;  %13036 = vmatprep.mubr.msk.bf16.mxu0 %vm14079_vm6, %v14075_v1  ;;  %vm2785_vm2 = vcmp.eq.s32.totalorder %v2745_v45, %v14316_v47 }
 0x2a6   : > { %11469 = vmatprep.mubr.msk.bf16.mxu1 %vm542_vm4, %v2490_v62  ;;  %2927 = vmatpush2.bf16.msra.mxu1 %v14702_v37  ;;  %v2748_v37 = vpop.permute.xlu0 %2747 }
 0x2a7   : > { %v1388_v50 = vpop.f32.mrf.mxu1  ;;  %2928 = vmatprep.subr.bf16.mxu1 %v14074_v0  ;;  %13061 = vmatpush3.bf16.msra.mxu0 %v13907_v33  ;;  %vm2788_vm12 = vcmp.eq.s32.totalorder %v2748_v37, %v14319_v48  ;;  %vm2787_vm3 = vcmp.eq.s32.totalorder %v2748_v37, %v14316_v47  ;;  %v15124_v37 = vld [vmem:[%s14182_s9 + $0x30] sm:$0xff]  }
 0x2a8   : > { %13090 = vmatprep.subr.bf16.mxu0 %v14075_v1  ;;  %v11488_v29 = vsel %vm2788_vm12, 1.0, %v14075_v1  ;;  %13860 = vset.pattern.permute.xlu1 %v14088_v26  ;;  %vm11514_vm5 = vmpackc.low %vm2787_vm3, %vm2785_vm2  ;;  %v15111_v50 = vld [vmem:[%s14182_s9 + $0x38] sm:$0xff]  }
 0x2a9   : > { %v1389_v38 = vpop.f32.mrf.mxu1  ;;  %13859 = vset.pattern.permute.xlu0 %v14088_v26  ;;  %4697 = vperm.xlu1 %13860, %v14174_v10  }
 0x2aa   : > { %v1434_v16 = vpack.c.bf16 %v1389_v38, %v1386_v17  ;;  %2929 = vmatpush2.bf16.msra.mxu1 %v14711_v55  ;;  %v11486_v55 = vsel %vm2786_vm11, 1.0, %v14075_v1  ;;  %v2757_v62 = vpop.permute.xlu0 %2756  ;;  %4694 = vperm.xlu0 %13859, %v14167_v7  }
 0x2ab   : > { %v1391_v4 = vpop.f32.mrf.mxu1  ;;  %2930 = vmatprep.subr.bf16.mxu1 %v14074_v0  ;;  %v2870_v3 = vpack.c.bf16 %v11488_v29, %v11486_v55  ;;  %vm2794_vm9 = vcmp.eq.s32.totalorder %v2757_v62, %v14319_v48  ;;  %v15138_v29 = vld [vmem:[%s14182_s9 + $0x28] sm:$0xff]   ;;  %vm2793_vm0 = vcmp.eq.s32.totalorder %v2757_v62, %v14316_v47 }
 0x2ac   : > { %13037 = vmatmul.mubr.msk.bf16.gmra.mxu0 %vm234_vm7, %v1434_v16  ;;  %v11494_v45 = vsel %vm2794_vm9, 1.0, %v14075_v1 }
 0x2ad   : > { %v1394_v49 = vpop.f32.mrf.mxu1  ;;  %11471 = vmatmul.mubr.msk.bf16.gmra.mxu1 %vm11470_vm10, %v14078_v61  ;;  %13040 = vmatprep.mubr.msk.bf16.mxu0 %vm14079_vm6, %v14075_v1  ;;  %vm2789_vm10 = vcmp.eq.s32.totalorder %v15081_v36, %v14316_v47 }
 0x2ae   : > { %11472 = vmatprep.mubr.msk.bf16.mxu1 %vm542_vm4, %v2492_v12  ;;  %2931 = vmatpush2.bf16.msra.mxu1 %v14720_v57  ;;  %v2754_v57 = vpop.permute.xlu1 %2753  ;;  %v2763_v55 = vpop.permute.xlu0 %2762 }
 0x2af   : > { %v1396_v54 = vpop.f32.mrf.mxu1  ;;  %2932 = vmatprep.subr.bf16.mxu1 %v14074_v0  ;;  %vm2792_vm1 = vcmp.eq.s32.totalorder %v2754_v57, %v14319_v48  ;;  %4700 = vperm.xlu1 %13860, %v14165_v6   ;;  %vm2791_vm11 = vcmp.eq.s32.totalorder %v2754_v57, %v14316_v47  ;;  %vm2798_vm14 = vcmp.eq.s32.totalorder %v2763_v55, %v14319_v48  ;;  %v15149_v57 = vld [vmem:[%s14182_s9 + $0x20] sm:$0xff]  }
 0x2b0   : > { %v11492_v58 = vsel %vm2792_vm1, 1.0, %v14075_v1  ;;  %4703 = vperm.xlu0 %13859, %v14172_v9   ;;  %vm11517_vm12 = vmpackc.low %vm2791_vm11, %vm2789_vm10 }
 0x2b1   : > { %v1397_v41 = vpop.f32.mrf.mxu1 }
 0x2b2   : > { %v1435_v27 = vpack.c.bf16 %v1397_v41, %v1394_v49  ;;  %2933 = vmatpush2.bf16.msra.mxu1 %v14729_v42  ;;  %v2760_v33 = vpop.permute.xlu1 %2759 }
 0x2b3   : > { %v1399_v44 = vpop.f32.mrf.mxu1  ;;  %2934 = vmatprep.subr.bf16.mxu1 %v14074_v0  ;;  %vm2796_vm8 = vcmp.eq.s32.totalorder %v2760_v33, %v14319_v48  ;;  %4706 = vperm.xlu1 %13860, %v14188_v15  }
 0x2b4   : > { %13041 = vmatmul.mubr.msk.bf16.gmra.mxu0 %vm234_vm7, %v1435_v27  ;;  %v11496_v18 = vsel %vm2796_vm8, 1.0, %v14075_v1  ;;  %4709 = vperm.xlu0 %13859, %v14186_v14   ;;  %vm2797_vm8 = vcmp.eq.s32.totalorder %v2763_v55, %v14316_v47 }
 0x2b5   : > { %v1402_v28 = vpop.f32.mrf.mxu1  ;;  %11474 = vmatmul.mubr.msk.bf16.gmra.mxu1 %vm11473_vm15, %v14078_v61  ;;  %13044 = vmatprep.mubr.msk.bf16.mxu0 %vm14079_vm6, %v14075_v1  ;;  %v2874_v12 = vpack.c.bf16 %v11496_v18, %v11494_v45  ;;  %vm2795_vm15 = vcmp.eq.s32.totalorder %v2760_v33, %v14316_v47 }
 0x2b6   : > { %2935 = vmatpush2.bf16.msra.mxu1 %v14737_v63  ;;  %11513 = vmatprep.mubr.msk.bf16.mxu1 %vm542_vm4, %v2870_v3  ;;  %v2872_v63 = vpack.c.bf16 %v11492_v58, %v11490_v39  ;;  %v2766_v49 = vpop.permute.xlu1 %2765  ;;  %v11498_v3 = vsel %vm2798_vm14, 1.0, %v14075_v1  ;;  %vm11520_vm1 = vmpackc.low %vm2795_vm15, %vm2793_vm0  ;;  %v2769_v58 = vpop.permute.xlu0 %2768 }
 0x2b7   : > { %v1404_v42 = vpop.f32.mrf.mxu1  ;;  %3294 = vmatprep.subr.bf16.mxu1 %v14074_v0  ;;  %vm2800_vm13 = vcmp.eq.s32.totalorder %v2766_v49, %v14319_v48  ;;  %4712 = vperm.xlu1 %13860, %v14203_v20   ;;  %vm2802_vm3 = vcmp.eq.s32.totalorder %v2769_v58, %v14319_v48 }
 0x2b8   : > { %v11500_v41 = vsel %vm2800_vm13, 1.0, %v14075_v1  ;;  %4715 = vperm.xlu0 %13859, %v14201_v19   ;;  %vm2801_vm13 = vcmp.eq.s32.totalorder %v2769_v58, %v14316_v47  ;;  %v15213_v58 = vld [vmem:[%s14182_s9 + $0x60] sm:$0xff]  }
 0x2b9   : > { %v1405_v8 = vpop.f32.mrf.mxu1  ;;  %v2876_v42 = vpack.c.bf16 %v11500_v41, %v11498_v3  ;;  %v15198_v3 = vld [vmem:[%s14182_s9] sm:$0xff]  }
 0x2ba   : > { %v1436_v11 = vpack.c.bf16 %v1405_v8, %v1402_v28  ;;  %v2772_v39 = vpop.permute.xlu1 %2771 }
 0x2bb   : > { %v1407_v13 = vpop.f32.mrf.mxu1  ;;  %4718 = vperm.xlu1 %13860, %v14216_v25   ;;  %vm2804_vm2 = vcmp.eq.s32.totalorder %v2772_v39, %v14319_v48 }
 0x2bc   : > { %13045 = vmatmul.mubr.msk.bf16.gmra.mxu0 %vm234_vm7, %v1436_v11  ;;  %v15163_v11 = vld [vmem:[%s14182_s9 + $0x18] sm:$0xff]   ;;  %4721 = vperm.xlu0 %13859, %v14214_v24   ;;  %v11504_v26 = vsel %vm2804_vm2, 1.0, %v14075_v1 }
 0x2bd   : > { %v1410_v17 = vpop.f32.mrf.mxu1  ;;  %11515 = vmatmul.mubr.msk.bf16.vlgmr.msra.gmra.mxu1 %vm11514_vm5, %v14078_v61  ;;  %13048 = vmatprep.mubr.msk.bf16.mxu0 %vm14079_vm6, %v14075_v1  ;;  %vm2799_vm5 = vcmp.eq.s32.totalorder %v2766_v49, %v14316_v47 }
 0x2be   : > { %3295 = vmatpush1.bf16.msra.mxu1 %v15111_v50  ;;  %11516 = vmatprep.mubr.msk.bf16.mxu1 %vm542_vm4, %v2872_v63  ;;  %v11502_v63 = vsel %vm2802_vm3, 1.0, %v14075_v1  ;;  %vm11523_vm9 = vmpackc.low %vm2799_vm5, %vm2797_vm8  ;;  %v2778_v45 = vpop.permute.xlu1 %2777 }
 0x2bf   : > { %v1412_v43 = vpop.f32.mrf.mxu1  ;;  %3296 = vmatprep.subr.bf16.mxu1 %v14074_v0  ;;  %4724 = vperm.xlu1 %13860, %v14230_v31   ;;  %v2878_v18 = vpack.c.bf16 %v11504_v26, %v11502_v63  ;;  %vm2808_vm10 = vcmp.eq.s32.totalorder %v2778_v45, %v14319_v48 }
 0x2c0   : > { %4727 = vperm.xlu0 %13859, %v14228_v30   ;;  %v11508_v49 = vsel %vm2808_vm10, 1.0, %v14075_v1 }
 0x2c1   : > { %v1413_v38 = vpop.f32.mrf.mxu1 }
 0x2c2   : > { %v1437_v16 = vpack.c.bf16 %v1413_v38, %v1410_v17  ;;  %3297 = vmatpush1.bf16.msra.mxu1 %v15124_v37  ;;  %v15174_v17 = vld [vmem:[%s14182_s9 + $0x10] sm:$0xff]   ;;  %v2775_v38 = vpop.permute.xlu0 %2774 }
 0x2c3   : > { %v1415_v4 = vpop.f32.mrf.mxu1  ;;  %3298 = vmatprep.subr.bf16.mxu1 %v14074_v0  ;;  %4730 = vperm.xlu1 %13860, %v14242_v35   ;;  %vm2806_vm11 = vcmp.eq.s32.totalorder %v2775_v38, %v14319_v48  ;;  %vm2805_vm2 = vcmp.eq.s32.totalorder %v2775_v38, %v14316_v47 }
 0x2c4   : > { %13049 = vmatmul.mubr.msk.bf16.gmra.mxu0 %vm234_vm7, %v1437_v16  ;;  %v15188_v4 = vld [vmem:[%s14182_s9 + $0x8] sm:$0xff]   ;;  %4733 = vperm.xlu0 %13859, %v14240_v34   ;;  %v11506_v55 = vsel %vm2806_vm11, 1.0, %v14075_v1 }
 0x2c5   : > { %v1418_v36 = vpop.f32.mrf.mxu1  ;;  %11518 = vmatmul.mubr.msk.bf16.gmra.mxu1 %vm11517_vm12, %v14078_v61  ;;  %13052 = vmatprep.mubr.msk.bf16.mxu0 %vm14079_vm6, %v14075_v1  ;;  %vm2803_vm12 = vcmp.eq.s32.totalorder %v2772_v39, %v14316_v47 }
 0x2c6   : > { %11519 = vmatprep.mubr.msk.bf16.mxu1 %vm542_vm4, %v2874_v12  ;;  %3299 = vmatpush1.bf16.msra.mxu1 %v15138_v29  ;;  %vm11526_vm14 = vmpackc.low %vm2803_vm12, %vm2801_vm13 }
 0x2c7   : > { %v1420_v54 = vpop.f32.mrf.mxu1  ;;  %3300 = vmatprep.subr.bf16.mxu1 %v14074_v0 }
 0x2c8   : > { %v2784_v54 = vpop.permute.xlu1 %2783 }
 0x2c9   : > { %v1421_v27 = vpop.f32.mrf.mxu1  ;;  %vm2812_vm15 = vcmp.eq.s32.totalorder %v2784_v54, %v14319_v48 }
 0x2ca   : > { %v1438_v44 = vpack.c.bf16 %v1421_v27, %v1418_v36  ;;  %3301 = vmatpush1.bf16.msra.mxu1 %v15149_v57  ;;  %v2781_v27 = vpop.permute.xlu0 %2780 }
 0x2cb   : > { %v1423_v28 = vpop.f32.mrf.mxu1  ;;  %3302 = vmatprep.subr.bf16.mxu1 %v14074_v0  ;;  %vm2810_vm0 = vcmp.eq.s32.totalorder %v2781_v27, %v14319_v48  ;;  %vm2809_vm10 = vcmp.eq.s32.totalorder %v2781_v27, %v14316_v47 }
 0x2cc   : > { %13053 = vmatmul.mubr.msk.bf16.gmra.mxu0 %vm234_vm7, %v1438_v44  ;;  %v13908_v28 = vld [vmem:[%s19706_s3 + $0x20] sm:$0xff]   ;;  %v11510_v26 = vsel %vm2810_vm0, 1.0, %v14075_v1 }
 0x2cd   : > { %v1426_v8 = vpop.f32.mrf.mxu1  ;;  %11521 = vmatmul.mubr.msk.bf16.gmra.mxu1 %vm11520_vm1, %v14078_v61  ;;  %13056 = vmatprep.mubr.msk.bf16.mxu0 %vm14079_vm6, %v14075_v1  ;;  %vm2807_vm1 = vcmp.eq.s32.totalorder %v2778_v45, %v14316_v47 }
 0x2ce   : > { %11522 = vmatprep.mubr.msk.bf16.mxu1 %vm542_vm4, %v2876_v42  ;;  %3303 = vmatpush1.bf16.msra.mxu1 %v15163_v11  ;;  %v2880_v42 = vpack.c.bf16 %v11508_v49, %v11506_v55  ;;  %vm11529_vm3 = vmpackc.low %vm2807_vm1, %vm2805_vm2 }
 0x2cf   : > { %v1428_v13 = vpop.f32.mrf.mxu1  ;;  %3304 = vmatprep.subr.bf16.mxu1 %v14074_v0 }
 0x2d0   : > { %v11512_v13 = vsel %vm2812_vm15, 1.0, %v14075_v1 }
 0x2d1   : > { %v1429_v33 = vpop.f32.mrf.mxu1  ;;  %v2882_v45 = vpack.c.bf16 %v11512_v13, %v11510_v26 }
 0x2d2   : > { %v1439_v62 = vpack.c.bf16 %v1429_v33, %v1426_v8  ;;  %3305 = vmatpush1.bf16.msra.mxu1 %v15174_v17  ;;  %v3138_v33 = vpop.permute.xlu1 %3137 }
 0x2d3   : > { %v1431_v43 = vpop.f32.mrf.mxu1  ;;  %3306 = vmatprep.subr.bf16.mxu1 %v14074_v0  ;;  %vm3178_vm5 = vcmp.eq.s32.totalorder %v3138_v33, %v14319_v48 }
 0x2d4   : > { %13057 = vmatmul.mubr.msk.bf16.gmra.mxu0 %vm234_vm7, %v1439_v62  ;;  %v15223_v43 = vld [vmem:[%s14182_s9 + $0x58] sm:$0xff]   ;;  %v11547_v49 = vsel %vm3178_vm5, 1.0, %v14075_v1 }
 0x2d5   : > { %v1768_v16 = vpop.f32.mrf.mxu1  ;;  %11524 = vmatmul.mubr.msk.bf16.gmra.mxu1 %vm11523_vm9, %v14078_v61  ;;  %13062 = vmatprep.mubr.msk.bf16.mxu0 %vm14079_vm6, %v14075_v1  ;;  %vm2811_vm9 = vcmp.eq.s32.totalorder %v2784_v54, %v14316_v47  ;;  %v15255_v54 = vld [vmem:[%s14182_s9 + $0x40] sm:$0xff]  }
 0x2d6   : > { %11525 = vmatprep.mubr.msk.bf16.mxu1 %vm542_vm4, %v2878_v18  ;;  %3307 = vmatpush1.bf16.msra.mxu1 %v15188_v4  ;;  %v3135_v18 = vpop.permute.xlu0 %3134  ;;  %vm11532_vm11 = vmpackc.low %vm2811_vm9, %vm2809_vm10 }
 0x2d7   : > { %v1770_v12 = vpop.f32.mrf.mxu1  ;;  %3308 = vmatprep.subr.bf16.mxu1 %v14074_v0  ;;  %vm3176_vm8 = vcmp.eq.s32.totalorder %v3135_v18, %v14319_v48  ;;  %vm3175_vm15 = vcmp.eq.s32.totalorder %v3135_v18, %v14316_v47 }
 0x2d8   : > { %v15235_v12 = vld [vmem:[%s14182_s9 + $0x50] sm:$0xff]   ;;  %v11545_v55 = vsel %vm3176_vm8, 1.0, %v14075_v1 }
 0x2d9   : > { %v1771_v36 = vpop.f32.mrf.mxu1 }
 0x2da   : > { %v1823_v41 = vpack.c.bf16 %v1771_v36, %v1768_v16  ;;  %3309 = vmatpush1.bf16.msra.mxu1 %v15198_v3  ;;  %v3144_v13 = vpop.permute.xlu0 %3143 }
 0x2db   : > { %v1773_v44 = vpop.f32.mrf.mxu1  ;;  %3316 = vmatprep.subr.bf16.mxu1 %v14074_v0  ;;  %vm3182_vm13 = vcmp.eq.s32.totalorder %v3144_v13, %v14319_v48  ;;  %vm3181_vm5 = vcmp.eq.s32.totalorder %v3144_v13, %v14316_v47 }
 0x2dc   : > { %13063 = vmatmul.mubr.msk.bf16.vlgmr.msra.gmra.mxu0 %vm234_vm7, %v1823_v41  ;;  %v3260_v44 = vpack.c.bf16 %v11547_v49, %v11545_v55 }
 0x2dd   : > { %v1776_v39 = vpop.f32.mrf.mxu1  ;;  %11527 = vmatmul.mubr.msk.bf16.gmra.mxu1 %vm11526_vm14, %v14078_v61  ;;  %13066 = vmatprep.mubr.msk.bf16.mxu0 %vm14079_vm6, %v14075_v1  ;;  %vm3177_vm14 = vcmp.eq.s32.totalorder %v3138_v33, %v14316_v47 }
 0x2de   : > { %11528 = vmatprep.mubr.msk.bf16.mxu1 %vm542_vm4, %v2880_v42  ;;  %3317 = vmatpush2.bf16.msra.mxu1 %v15213_v58  ;;  %v15244_v42 = vld [vmem:[%s14182_s9 + $0x48] sm:$0xff]   ;;  %vm11573_vm0 = vmpackc.low %vm3177_vm14, %vm3175_vm15 }
 0x2df   : > { %v1778_v8 = vpop.f32.mrf.mxu1  ;;  %3318 = vmatprep.subr.bf16.mxu1 %v14074_v0  ;;  %13091 = vmatpush3.bf16.msra.mxu0 %v13908_v28 }
 0x2e0   : > { %13120 = vmatprep.subr.bf16.mxu0 %v14075_v1  ;;  %v3141_v8 = vpop.permute.xlu1 %3140 }
 0x2e1   : > { %v1779_v63 = vpop.f32.mrf.mxu1  ;;  %vm3180_vm12 = vcmp.eq.s32.totalorder %v3141_v8, %v14319_v48 }
 0x2e2   : > { %v1824_v62 = vpack.c.bf16 %v1779_v63, %v1776_v39  ;;  %3319 = vmatpush2.bf16.msra.mxu1 %v15223_v43  ;;  %v14089_v63 = vmov 12  }
 0x2e3   : > { %v1781_v16 = vpop.f32.mrf.mxu1  ;;  %3320 = vmatprep.subr.bf16.mxu1 %v14074_v0  ;;  %13861 = vset.pattern.permute.xlu1 %v14089_v63 }
 0x2e4   : > { %13067 = vmatmul.mubr.msk.bf16.gmra.mxu0 %vm234_vm7, %v1824_v62  ;;  %5084 = vperm.xlu1 %13861, %v14167_v7   ;;  %v11549_v62 = vsel %vm3180_vm12, 1.0, %v14075_v1  ;;  %v11551_v16 = vsel %vm3182_vm13, 1.0, %v14075_v1 }
 0x2e5   : > { %v1784_v38 = vpop.f32.mrf.mxu1  ;;  %11530 = vmatmul.mubr.msk.bf16.gmra.mxu1 %vm11529_vm3, %v14078_v61  ;;  %13070 = vmatprep.mubr.msk.bf16.mxu0 %vm14079_vm6, %v14075_v1  ;;  %v3262_v55 = vpack.c.bf16 %v11551_v16, %v11549_v62  ;;  %vm3179_vm3 = vcmp.eq.s32.totalorder %v3141_v8, %v14316_v47 }
 0x2e6   : > { %11531 = vmatprep.mubr.msk.bf16.mxu1 %vm542_vm4, %v2882_v45  ;;  %3321 = vmatpush2.bf16.msra.mxu1 %v15235_v12  ;;  %vm11576_vm8 = vmpackc.low %vm3181_vm5, %vm3179_vm3 }
 0x2e7   : > { %v1786_v36 = vpop.f32.mrf.mxu1  ;;  %3322 = vmatprep.subr.bf16.mxu1 %v14074_v0  ;;  %13862 = vset.pattern.permute.xlu0 %v14089_v63 }
 0x2e8   : > { %5087 = vperm.xlu0 %13862, %v14174_v10   ;;  %v3147_v36 = vpop.permute.xlu1 %3146  ;;  %5090 = vperm.xlu1 %13861, %v14165_v6  }
 0x2e9   : > { %v1787_v41 = vpop.f32.mrf.mxu1  ;;  %vm3184_vm1 = vcmp.eq.s32.totalorder %v3147_v36, %v14319_v48 }
 0x2ea   : > { %v1825_v28 = vpack.c.bf16 %v1787_v41, %v1784_v38  ;;  %3323 = vmatpush2.bf16.msra.mxu1 %v15244_v42  ;;  %v3150_v41 = vpop.permute.xlu0 %3149 }
 0x2eb   : > { %v1789_v39 = vpop.f32.mrf.mxu1  ;;  %3324 = vmatprep.subr.bf16.mxu1 %v14074_v0  ;;  %vm3186_vm2 = vcmp.eq.s32.totalorder %v3150_v41, %v14319_v48  ;;  %vm3185_vm12 = vcmp.eq.s32.totalorder %v3150_v41, %v14316_v47 }
 0x2ec   : > { %13071 = vmatmul.mubr.msk.bf16.gmra.mxu0 %vm234_vm7, %v1825_v28  ;;  %5096 = vperm.xlu0 %13862, %v14188_v15   ;;  %v11555_v28 = vsel %vm3186_vm2, 1.0, %v14075_v1  ;;  %v3153_v62 = vpop.permute.xlu1 %3152 }
 0x2ed   : > { %v1792_v26 = vpop.f32.mrf.mxu1  ;;  %11533 = vmatmul.mubr.msk.bf16.gmra.mxu1 %vm11532_vm11, %v14078_v61  ;;  %13074 = vmatprep.mubr.msk.bf16.mxu0 %vm14079_vm6, %v14075_v1  ;;  %vm3188_vm9 = vcmp.eq.s32.totalorder %v3153_v62, %v14319_v48  ;;  %vm3183_vm11 = vcmp.eq.s32.totalorder %v3147_v36, %v14316_v47 }
 0x2ee   : > { %3325 = vmatpush2.bf16.msra.mxu1 %v15255_v54  ;;  %11572 = vmatprep.mubr.msk.bf16.mxu1 %vm542_vm4, %v3260_v44  ;;  %v11553_v44 = vsel %vm3184_vm1, 1.0, %v14075_v1  ;;  %v3156_v8 = vpop.permute.xlu0 %3155  ;;  %vm11579_vm13 = vmpackc.low %vm3185_vm12, %vm3183_vm11 }
 0x2ef   : > { %v1794_v27 = vpop.f32.mrf.mxu1  ;;  %3684 = vmatprep.subr.bf16.mxu1 %v14074_v0  ;;  %5093 = vperm.xlu1 %13861, %v14172_v9   ;;  %v3264_v63 = vpack.c.bf16 %v11555_v28, %v11553_v44  ;;  %vm3190_vm10 = vcmp.eq.s32.totalorder %v3156_v8, %v14319_v48  ;;  %vm3189_vm1 = vcmp.eq.s32.totalorder %v3156_v8, %v14316_v47 }
 0x2f0   : > { %5102 = vperm.xlu0 %13862, %v14203_v20   ;;  %v3159_v44 = vpop.permute.xlu1 %3158 }
 0x2f1   : > { %v1795_v45 = vpop.f32.mrf.mxu1  ;;  %vm3192_vm14 = vcmp.eq.s32.totalorder %v3159_v44, %v14319_v48 }
 0x2f2   : > { %v1826_v38 = vpack.c.bf16 %v1795_v45, %v1792_v26  ;;  %v11557_v45 = vsel %vm3188_vm9, 1.0, %v14075_v1  ;;  %v3162_v36 = vpop.permute.xlu0 %3161 }
 0x2f3   : > { %v1797_v49 = vpop.f32.mrf.mxu1  ;;  %5099 = vperm.xlu1 %13861, %v14186_v14   ;;  %vm3194_vm15 = vcmp.eq.s32.totalorder %v3162_v36, %v14319_v48  ;;  %vm3193_vm9 = vcmp.eq.s32.totalorder %v3162_v36, %v14316_v47 }
 0x2f4   : > { %13075 = vmatmul.mubr.msk.bf16.gmra.mxu0 %vm234_vm7, %v1826_v38  ;;  %5108 = vperm.xlu0 %13862, %v14216_v25   ;;  %v11559_v38 = vsel %vm3190_vm10, 1.0, %v14075_v1 }
 0x2f5   : > { %v1800_v33 = vpop.f32.mrf.mxu1  ;;  %11574 = vmatmul.mubr.msk.bf16.vlgmr.msra.gmra.mxu1 %vm11573_vm0, %v14078_v61  ;;  %13078 = vmatprep.mubr.msk.bf16.mxu0 %vm14079_vm6, %v14075_v1  ;;  %vm3187_vm0 = vcmp.eq.s32.totalorder %v3153_v62, %v14316_v47 }
 0x2f6   : > { %3685 = vmatpush1.bf16.msra.mxu1 %v15111_v50  ;;  %11575 = vmatprep.mubr.msk.bf16.mxu1 %vm542_vm4, %v3262_v55  ;;  %vm11582_vm2 = vmpackc.low %vm3189_vm1, %vm3187_vm0  ;;  %v3168_v62 = vpop.permute.xlu0 %3167 }
 0x2f7   : > { %v1802_v18 = vpop.f32.mrf.mxu1  ;;  %3686 = vmatprep.subr.bf16.mxu1 %v14074_v0  ;;  %5105 = vperm.xlu1 %13861, %v14201_v19   ;;  %vm3198_vm5 = vcmp.eq.s32.totalorder %v3168_v62, %v14319_v48 }
 0x2f8   : > { %5114 = vperm.xlu0 %13862, %v14230_v31   ;;  %v3266_v18 = vpack.c.bf16 %v11559_v38, %v11557_v45  ;;  %v3165_v45 = vpop.permute.xlu1 %3164 }
 0x2f9   : > { %v1803_v39 = vpop.f32.mrf.mxu1  ;;  %vm3196_vm3 = vcmp.eq.s32.totalorder %v3165_v45, %v14319_v48 }
 0x2fa   : > { %v1827_v26 = vpack.c.bf16 %v1803_v39, %v1800_v33  ;;  %3687 = vmatpush1.bf16.msra.mxu1 %v15124_v37  ;;  %v11561_v39 = vsel %vm3192_vm14, 1.0, %v14075_v1  ;;  %vm3197_vm14 = vcmp.eq.s32.totalorder %v3168_v62, %v14316_v47 }
 0x2fb   : > { %v1805_v27 = vpop.f32.mrf.mxu1  ;;  %3688 = vmatprep.subr.bf16.mxu1 %v14074_v0  ;;  %5111 = vperm.xlu1 %13861, %v14214_v24  }
 0x2fc   : > { %13079 = vmatmul.mubr.msk.bf16.gmra.mxu0 %vm234_vm7, %v1827_v26  ;;  %5120 = vperm.xlu0 %13862, %v14242_v35   ;;  %v11563_v26 = vsel %vm3194_vm15, 1.0, %v14075_v1 }
 0x2fd   : > { %v1808_v13 = vpop.f32.mrf.mxu1  ;;  %11577 = vmatmul.mubr.msk.bf16.gmra.mxu1 %vm11576_vm8, %v14078_v61  ;;  %13082 = vmatprep.mubr.msk.bf16.mxu0 %vm14079_vm6, %v14075_v1  ;;  %vm3191_vm8 = vcmp.eq.s32.totalorder %v3159_v44, %v14316_v47 }
 0x2fe   : > { %11578 = vmatprep.mubr.msk.bf16.mxu1 %vm542_vm4, %v3264_v63  ;;  %3689 = vmatpush1.bf16.msra.mxu1 %v15138_v29  ;;  %vm11585_vm10 = vmpackc.low %vm3193_vm9, %vm3191_vm8 }
 0x2ff   : > { %v1810_v16 = vpop.f32.mrf.mxu1  ;;  %3690 = vmatprep.subr.bf16.mxu1 %v14074_v0  ;;  %5117 = vperm.xlu1 %13861, %v14228_v30  }
 0x300   : > { %v3268_v16 = vpack.c.bf16 %v11563_v26, %v11561_v39  ;;  %v13909_v26 = vld [vmem:[%s19706_s3 + $0x28] sm:$0xff]  }
 0x301   : > { %v1811_v49 = vpop.f32.mrf.mxu1 }
 0x302   : > { %v1828_v55 = vpack.c.bf16 %v1811_v49, %v1808_v13  ;;  %3691 = vmatpush1.bf16.msra.mxu1 %v15149_v57  ;;  %v11565_v49 = vsel %vm3196_vm3, 1.0, %v14075_v1 }
 0x303   : > { %v1813_v33 = vpop.f32.mrf.mxu1  ;;  %3692 = vmatprep.subr.bf16.mxu1 %v14074_v0  ;;  %5123 = vperm.xlu1 %13861, %v14240_v34  }
 0x304   : > { %13083 = vmatmul.mubr.msk.bf16.gmra.mxu0 %vm234_vm7, %v1828_v55  ;;  %v11567_v55 = vsel %vm3198_vm5, 1.0, %v14075_v1 }
 0x305   : > { %v1816_v41 = vpop.f32.mrf.mxu1  ;;  %11580 = vmatmul.mubr.msk.bf16.gmra.mxu1 %vm11579_vm13, %v14078_v61  ;;  %13086 = vmatprep.mubr.msk.bf16.mxu0 %vm14079_vm6, %v14075_v1  ;;  %v3270_v44 = vpack.c.bf16 %v11567_v55, %v11565_v49  ;;  %vm3195_vm13 = vcmp.eq.s32.totalorder %v3165_v45, %v14316_v47 }
 0x306   : > { %11581 = vmatprep.mubr.msk.bf16.mxu1 %vm542_vm4, %v3266_v18  ;;  %3693 = vmatpush1.bf16.msra.mxu1 %v15163_v11  ;;  %v3171_v18 = vpop.permute.xlu1 %3170  ;;  %vm11588_vm15 = vmpackc.low %vm3197_vm14, %vm3195_vm13 }
 0x307   : > { %v1818_v28 = vpop.f32.mrf.mxu1  ;;  %3694 = vmatprep.subr.bf16.mxu1 %v14074_v0  ;;  %vm3200_vm11 = vcmp.eq.s32.totalorder %v3171_v18, %v14319_v48 }
 0x308   : > { %v3174_v28 = vpop.permute.xlu0 %3173 }
 0x309   : > { %v1819_v27 = vpop.f32.mrf.mxu1  ;;  %vm3202_vm12 = vcmp.eq.s32.totalorder %v3174_v28, %v14319_v48  ;;  %vm3201_vm3 = vcmp.eq.s32.totalorder %v3174_v28, %v14316_v47  ;;  %v310_v28 = vld [vmem:[#allocation2] sm:$0xff] }
 0x30a   : > { %v1829_v63 = vpack.c.bf16 %v1819_v27, %v1816_v41  ;;  %3695 = vmatpush1.bf16.msra.mxu1 %v15174_v17 }
 0x30b   : > { %v1821_v13 = vpop.f32.mrf.mxu1  ;;  %3696 = vmatprep.subr.bf16.mxu1 %v14074_v0 }
 0x30c   : > { %13087 = vmatmul.mubr.msk.bf16.gmra.mxu0 %vm234_vm7, %v1829_v63  ;;  %v11569_v63 = vsel %vm3200_vm11, 1.0, %v14075_v1  ;;  %v11571_v13 = vsel %vm3202_vm12, 1.0, %v14075_v1  ;;  %v3528_v49 = vpop.permute.xlu0 %3527 }
 0x30d   : > { %v2158_v8 = vpop.f32.mrf.mxu1  ;;  %11583 = vmatmul.mubr.msk.bf16.gmra.mxu1 %vm11582_vm2, %v14078_v61  ;;  %13092 = vmatprep.mubr.msk.bf16.mxu0 %vm14079_vm6, %v14075_v1  ;;  %vm3568_vm1 = vcmp.eq.s32.totalorder %v3528_v49, %v14319_v48  ;;  %vm3199_vm2 = vcmp.eq.s32.totalorder %v3171_v18, %v14316_v47  ;;  %vm3567_vm11 = vcmp.eq.s32.totalorder %v3528_v49, %v14316_v47 }
 0x30e   : > { %11584 = vmatprep.mubr.msk.bf16.mxu1 %vm542_vm4, %v3268_v16  ;;  %3697 = vmatpush1.bf16.msra.mxu1 %v15188_v4  ;;  %v3525_v16 = vpop.permute.xlu1 %3524  ;;  %vm11591_vm5 = vmpackc.low %vm3201_vm3, %vm3199_vm2 }
 0x30f   : > { %v2160_v38 = vpop.f32.mrf.mxu1  ;;  %3698 = vmatprep.subr.bf16.mxu1 %v14074_v0  ;;  %vm3566_vm0 = vcmp.eq.s32.totalorder %v3525_v16, %v14319_v48 }
 0x310   : > { %v11604_v62 = vsel %vm3566_vm0, 1.0, %v14075_v1 }
 0x311   : > { %v2161_v33 = vpop.f32.mrf.mxu1 }
 0x312   : > { %v2213_v41 = vpack.c.bf16 %v2161_v33, %v2158_v8  ;;  %3699 = vmatpush1.bf16.msra.mxu1 %v15198_v3  ;;  %v3272_v33 = vpack.c.bf16 %v11571_v13, %v11569_v63 }
 0x313   : > { %v2163_v39 = vpop.f32.mrf.mxu1  ;;  %3706 = vmatprep.subr.bf16.mxu1 %v14074_v0 }
 0x314   : > { %13093 = vmatmul.mubr.msk.bf16.vlgmr.msra.gmra.mxu0 %vm234_vm7, %v2213_v41  ;;  %v15366_v41 = vpop.permute.xlu1 %3530  ;;  %v11606_v39 = vsel %vm3568_vm1, 1.0, %v14075_v1 }
 0x315   : > { %v2166_v36 = vpop.f32.mrf.mxu1  ;;  %11586 = vmatmul.mubr.msk.bf16.gmra.mxu1 %vm11585_vm10, %v14078_v61  ;;  %13096 = vmatprep.mubr.msk.bf16.mxu0 %vm14079_vm6, %v14075_v1  ;;  %vm3570_vm8 = vcmp.eq.s32.totalorder %v15366_v41, %v14319_v48  ;;  %vm3565_vm10 = vcmp.eq.s32.totalorder %v3525_v16, %v14316_v47 }
 0x316   : > { %11587 = vmatprep.mubr.msk.bf16.mxu1 %vm542_vm4, %v3270_v44  ;;  %3707 = vmatpush2.bf16.msra.mxu1 %v15213_v58  ;;  %vm11632_vm12 = vmpackc.low %vm3567_vm11, %vm3565_vm10 }
 0x317   : > { %v2168_v27 = vpop.f32.mrf.mxu1  ;;  %3708 = vmatprep.subr.bf16.mxu1 %v14074_v0  ;;  %13121 = vmatpush3.bf16.msra.mxu0 %v13909_v26 }
 0x318   : > { %13150 = vmatprep.subr.bf16.mxu0 %v14075_v1  ;;  %v3534_v13 = vpop.permute.xlu1 %3533 }
 0x319   : > { %v2169_v8 = vpop.f32.mrf.mxu1  ;;  %vm3572_vm9 = vcmp.eq.s32.totalorder %v3534_v13, %v14319_v48  ;;  %vm3571_vm0 = vcmp.eq.s32.totalorder %v3534_v13, %v14316_v47 }
 0x31a   : > { %v2214_v38 = vpack.c.bf16 %v2169_v8, %v2166_v36  ;;  %3709 = vmatpush2.bf16.msra.mxu1 %v15223_v43  ;;  %v3650_v36 = vpack.c.bf16 %v11606_v39, %v11604_v62  ;;  %v779_v62 = vadd.f32 %v14796_v53, %v310_v28 }
 0x31b   : > { %v2171_v55 = vpop.f32.mrf.mxu1  ;;  %3710 = vmatprep.subr.bf16.mxu1 %v14074_v0 }
 0x31c   : > { %13097 = vmatmul.mubr.msk.bf16.gmra.mxu0 %vm234_vm7, %v2214_v38  ;;  %v11608_v38 = vsel %vm3570_vm8, 1.0, %v14075_v1  ;;  %v11610_v55 = vsel %vm3572_vm9, 1.0, %v14075_v1 }
 0x31d   : > { %v2174_v45 = vpop.f32.mrf.mxu1  ;;  %11589 = vmatmul.mubr.msk.bf16.gmra.mxu1 %vm11588_vm15, %v14078_v61  ;;  %13100 = vmatprep.mubr.msk.bf16.mxu0 %vm14079_vm6, %v14075_v1  ;;  %vm3569_vm15 = vcmp.eq.s32.totalorder %v15366_v41, %v14316_v47 }
 0x31e   : > { %11590 = vmatprep.mubr.msk.bf16.mxu1 %vm542_vm4, %v3272_v33  ;;  %3711 = vmatpush2.bf16.msra.mxu1 %v15235_v12  ;;  %vm11635_vm1 = vmpackc.low %vm3571_vm0, %vm3569_vm15 }
 0x31f   : > { %v2176_v26 = vpop.f32.mrf.mxu1  ;;  %3712 = vmatprep.subr.bf16.mxu1 %v14074_v0 }
 0x320   : > { %v14090_v26 = vmov 13  }
 0x321   : > { %v2177_v44 = vpop.f32.mrf.mxu1  ;;  %13864 = vset.pattern.permute.xlu1 %v14090_v26  ;;  %13863 = vset.pattern.permute.xlu0 %v14090_v26 }
 0x322   : > { %v2215_v27 = vpack.c.bf16 %v2177_v44, %v2174_v45  ;;  %3713 = vmatpush2.bf16.msra.mxu1 %v15244_v42  ;;  %v311_v44 = vld [vmem:[#allocation2 + $0x8] sm:$0xff]  ;;  %5477 = vperm.xlu1 %13864, %v14174_v10  }
 0x323   : > { %v2179_v63 = vpop.f32.mrf.mxu1  ;;  %3714 = vmatprep.subr.bf16.mxu1 %v14074_v0  ;;  %5474 = vperm.xlu0 %13863, %v14167_v7  }
 0x324   : > { %13101 = vmatmul.mubr.msk.bf16.gmra.mxu0 %vm234_vm7, %v2215_v27  ;;  %v15389_v27 = vpop.permute.xlu1 %3539  ;;  %v15393_v63 = vpop.permute.xlu0 %3536 }
 0x325   : > { %v2182_v8 = vpop.f32.mrf.mxu1  ;;  %11592 = vmatmul.mubr.msk.bf16.gmra.mxu1 %vm11591_vm5, %v14078_v61  ;;  %13104 = vmatprep.mubr.msk.bf16.mxu0 %vm14079_vm6, %v14075_v1  ;;  %vm3576_vm13 = vcmp.eq.s32.totalorder %v15389_v27, %v14319_v48  ;;  %vm3574_vm14 = vcmp.eq.s32.totalorder %v15393_v63, %v14319_v48  ;;  %vm3575_vm5 = vcmp.eq.s32.totalorder %v15389_v27, %v14316_v47 }
 0x326   : > { %3715 = vmatpush2.bf16.msra.mxu1 %v15255_v54  ;;  %11631 = vmatprep.mubr.msk.bf16.mxu1 %vm542_vm4, %v3650_v36  ;;  %v3652_v36 = vpack.c.bf16 %v11610_v55, %v11608_v38  ;;  %v312_v38 = vld [vmem:[#allocation2 + $0x10] sm:$0xff]  ;;  %vm3573_vm8 = vcmp.eq.s32.totalorder %v15393_v63, %v14316_v47 }
 0x327   : > { %v2184_v18 = vpop.f32.mrf.mxu1  ;;  %4074 = vmatprep.subr.bf16.mxu1 %v14074_v0  ;;  %5480 = vperm.xlu1 %13864, %v14165_v6   ;;  %v781_v26 = vadd.f32 %v14812_v60, %v312_v38  ;;  %v314_v38 = vld [vmem:[#allocation2 + $0x20] sm:$0xff]  ;;  %vm11638_vm9 = vmpackc.low %vm3575_vm5, %vm3573_vm8 }
 0x328   : > { %v780_v18 = vadd.f32 %v14808_v56, %v311_v44  ;;  %5483 = vperm.xlu0 %13863, %v14172_v9  }
 0x329   : > { %v2185_v33 = vpop.f32.mrf.mxu1 }
 0x32a   : > { %v2216_v45 = vpack.c.bf16 %v2185_v33, %v2182_v8  ;;  %v11612_v33 = vsel %vm3574_vm14, 1.0, %v14075_v1 }
 0x32b   : > { %v2187_v39 = vpop.f32.mrf.mxu1  ;;  %5486 = vperm.xlu1 %13864, %v14188_v15  }
 0x32c   : > { %v1114_v16 = vpop.f32.mrf.mxu0  ;;  %13105 = vmatmul.mubr.msk.bf16.gmra.mxu0 %vm234_vm7, %v2216_v45  ;;  %5489 = vperm.xlu0 %13863, %v14186_v14  }
 0x32d   : > { %v15395_v49 = vadd.f32 %v1114_v16, %v779_v62  ;;  %v2190_v8 = vpop.f32.mrf.mxu1  ;;  %11633 = vmatmul.mubr.msk.bf16.vlgmr.msra.gmra.mxu1 %vm11632_vm12, %v14078_v61  ;;  %13108 = vmatprep.mubr.msk.bf16.mxu0 %vm14079_vm6, %v14075_v1  ;;  %v15424_v16 = vpop.permute.xlu1 %3545 }
 0x32e   : > { %4075 = vmatpush1.bf16.msra.mxu1 %v15111_v50  ;;  %v13004_v53 = vpop.f32.mrf.mxu0  ;;  %11634 = vmatprep.mubr.msk.bf16.mxu1 %vm542_vm4, %v3652_v36  ;;  %v11614_v50 = vsel %vm3576_vm13, 1.0, %v14075_v1  ;;  %v313_v36 = vld [vmem:[#allocation2 + $0x18] sm:$0xff]  ;;  %vm3580_vm2 = vcmp.eq.s32.totalorder %v15424_v16, %v14319_v48  ;;  %vm3579_vm12 = vcmp.eq.s32.totalorder %v15424_v16, %v14316_v47 }
 0x32f   : > { %v2192_v28 = vpop.f32.mrf.mxu1  ;;  %4076 = vmatprep.subr.bf16.mxu1 %v14074_v0  ;;  %v3654_v13 = vpack.c.bf16 %v11614_v50, %v11612_v33  ;;  %5492 = vperm.xlu1 %13864, %v14203_v20   ;;  %v11618_v50 = vsel %vm3580_vm2, 1.0, %v14075_v1 }
 0x330   : > { %v1117_v55 = vpop.f32.mrf.mxu0  ;;  %5495 = vperm.xlu0 %13863, %v14201_v19  }
 0x331   : > { %v15415_v45 = vadd.f32 %v1117_v55, %v780_v18  ;;  %v2193_v56 = vpop.f32.mrf.mxu1  ;;  %v782_v18 = vadd.f32 %v14824_v5, %v313_v36  ;;  %v15460_v36 = vpop.permute.xlu1 %3551 }
 0x332   : > { %v2217_v62 = vpack.c.bf16 %v2193_v56, %v2190_v8  ;;  %v13005_v39 = vpop.f32.mrf.mxu0  ;;  %4077 = vmatpush1.bf16.msra.mxu1 %v15124_v37  ;;  %v15428_v37 = vpop.permute.xlu0 %3542  ;;  %vm3584_vm10 = vcmp.eq.s32.totalorder %v15460_v36, %v14319_v48 }
 0x333   : > { %v2195_v44 = vpop.f32.mrf.mxu1  ;;  %4078 = vmatprep.subr.bf16.mxu1 %v14074_v0  ;;  %vm3578_vm3 = vcmp.eq.s32.totalorder %v15428_v37, %v14319_v48  ;;  %v783_v39 = vadd.f32 %v14830_v21, %v314_v38  ;;  %5498 = vperm.xlu1 %13864, %v14216_v25   ;;  %vm3577_vm13 = vcmp.eq.s32.totalorder %v15428_v37, %v14316_v47  ;;  %v11622_v38 = vsel %vm3584_vm10, 1.0, %v14075_v1 }
 0x334   : > { %v1122_v53 = vpop.f32.mrf.mxu0  ;;  %13109 = vmatmul.mubr.msk.bf16.gmra.mxu0 %vm234_vm7, %v2217_v62  ;;  %v315_v44 = vld [vmem:[#allocation2 + $0x28] sm:$0xff]  ;;  %5501 = vperm.xlu0 %13863, %v14214_v24   ;;  %vm11641_vm14 = vmpackc.low %vm3579_vm12, %vm3577_vm13 }
 0x335   : > { %v15430_v60 = vadd.f32 %v1122_v53, %v781_v26  ;;  %v2198_v8 = vpop.f32.mrf.mxu1  ;;  %11636 = vmatmul.mubr.msk.bf16.gmra.mxu1 %vm11635_vm1, %v14078_v61  ;;  %13112 = vmatprep.mubr.msk.bf16.mxu0 %vm14079_vm6, %v14075_v1  ;;  %vm3583_vm1 = vcmp.eq.s32.totalorder %v15460_v36, %v14316_v47 }
 0x336   : > { %v13008_v41 = vpop.f32.mrf.mxu0  ;;  %11637 = vmatprep.mubr.msk.bf16.mxu1 %vm542_vm4, %v3654_v13  ;;  %4079 = vmatpush1.bf16.msra.mxu1 %v15138_v29  ;;  %v11616_v29 = vsel %vm3578_vm3, 1.0, %v14075_v1 }
 0x337   : > { %v2200_v28 = vpop.f32.mrf.mxu1  ;;  %4080 = vmatprep.subr.bf16.mxu1 %v14074_v0  ;;  %v3656_v63 = vpack.c.bf16 %v11618_v50, %v11616_v29  ;;  %5504 = vperm.xlu1 %13864, %v14230_v31  }
 0x338   : > { %v1125_v55 = vpop.f32.mrf.mxu0  ;;  %5507 = vperm.xlu0 %13863, %v14228_v30  }
 0x339   : > { %v15451_v5 = vadd.f32 %v1125_v55, %v782_v18  ;;  %v2201_v33 = vpop.f32.mrf.mxu1  ;;  %v316_v18 = vld [vmem:[#allocation2 + $0x30] sm:$0xff] }
 0x33a   : > { %v2218_v56 = vpack.c.bf16 %v2201_v33, %v2198_v8  ;;  %v13009_v62 = vpop.f32.mrf.mxu0  ;;  %4081 = vmatpush1.bf16.msra.mxu1 %v15149_v57  ;;  %v15464_v57 = vpop.permute.xlu0 %3548  ;;  %v784_v8 = vadd.f32 %v14840_v32, %v315_v44  ;;  %v785_v33 = vadd.f32 %v14844_v46, %v316_v18 }
 0x33b   : > { %v2203_v26 = vpop.f32.mrf.mxu1  ;;  %4082 = vmatprep.subr.bf16.mxu1 %v14074_v0  ;;  %vm3582_vm11 = vcmp.eq.s32.totalorder %v15464_v57, %v14319_v48  ;;  %v317_v62 = vld [vmem:[#allocation2 + $0x38] sm:$0xff]  ;;  %5510 = vperm.xlu1 %13864, %v14242_v35   ;;  %vm3581_vm2 = vcmp.eq.s32.totalorder %v15464_v57, %v14316_v47 }
 0x33c   : > { %v1130_v13 = vpop.f32.mrf.mxu0  ;;  %13113 = vmatmul.mubr.msk.bf16.gmra.mxu0 %vm234_vm7, %v2218_v56  ;;  %5513 = vperm.xlu0 %13863, %v14240_v34   ;;  %vm11644_vm3 = vmpackc.low %vm3583_vm1, %vm3581_vm2 }
 0x33d   : > { %v15466_v21 = vadd.f32 %v1130_v13, %v783_v39  ;;  %v2206_v53 = vpop.f32.mrf.mxu1  ;;  %11639 = vmatmul.mubr.msk.bf16.gmra.mxu1 %vm11638_vm9, %v14078_v61  ;;  %13116 = vmatprep.mubr.msk.bf16.mxu0 %vm14079_vm6, %v14075_v1  ;;  %v15496_v39 = vpop.permute.xlu1 %3557 }
 0x33e   : > { %v13012_v27 = vpop.f32.mrf.mxu0  ;;  %11640 = vmatprep.mubr.msk.bf16.mxu1 %vm542_vm4, %v3656_v63  ;;  %4083 = vmatpush1.bf16.msra.mxu1 %v15163_v11  ;;  %v11620_v11 = vsel %vm3582_vm11, 1.0, %v14075_v1  ;;  %vm3588_vm15 = vcmp.eq.s32.totalorder %v15496_v39, %v14319_v48  ;;  %v786_v63 = vadd.f32 %v14856_v52, %v317_v62  ;;  %vm3587_vm9 = vcmp.eq.s32.totalorder %v15496_v39, %v14316_v47 }
 0x33f   : > { %v2208_v41 = vpop.f32.mrf.mxu1  ;;  %4084 = vmatprep.subr.bf16.mxu1 %v14074_v0  ;;  %v3658_v37 = vpack.c.bf16 %v11622_v38, %v11620_v11 }
 0x340   : > { %v1133_v28 = vpop.f32.mrf.mxu0 }
 0x341   : > { %v15487_v32 = vadd.f32 %v1133_v28, %v784_v8  ;;  %v2209_v55 = vpop.f32.mrf.mxu1  ;;  %v11626_v8 = vsel %vm3588_vm15, 1.0, %v14075_v1  ;;  %v15524_v18 = vpop.permute.xlu1 %3563 }
 0x342   : > { %v2219_v50 = vpack.c.bf16 %v2209_v55, %v2206_v53  ;;  %v13013_v29 = vpop.f32.mrf.mxu0  ;;  %4085 = vmatpush1.bf16.msra.mxu1 %v15174_v17  ;;  %v15500_v17 = vpop.permute.xlu0 %3554  ;;  %v318_v53 = vld [vmem:[#allocation2 + $0x40] sm:$0xff]  ;;  %vm3592_vm5 = vcmp.eq.s32.totalorder %v15524_v18, %v14319_v48 }
 0x343   : > { %v2211_v56 = vpop.f32.mrf.mxu1  ;;  %4086 = vmatprep.subr.bf16.mxu1 %v14074_v0  ;;  %vm3586_vm0 = vcmp.eq.s32.totalorder %v15500_v17, %v14319_v48  ;;  %v787_v11 = vadd.f32 %v14860_v59, %v318_v53  ;;  %v13910_v29 = vld [vmem:[%s19706_s3 + $0x30] sm:$0xff]   ;;  %vm3585_vm10 = vcmp.eq.s32.totalorder %v15500_v17, %v14316_v47  ;;  %v321_v17 = vld [vmem:[#allocation2 + $0x58] sm:$0xff] }
 0x344   : > { %v1138_v26 = vpop.f32.mrf.mxu0  ;;  %13117 = vmatmul.mubr.msk.bf16.gmra.mxu0 %vm234_vm7, %v2219_v50  ;;  %v11624_v41 = vsel %vm3586_vm0, 1.0, %v14075_v1  ;;  %vm11647_vm11 = vmpackc.low %vm3587_vm9, %vm3585_vm10 }
 0x345   : > { %v15502_v46 = vadd.f32 %v1138_v26, %v785_v33  ;;  %v2548_v44 = vpop.f32.mrf.mxu1  ;;  %11642 = vmatmul.mubr.msk.bf16.gmra.mxu1 %vm11641_vm14, %v14078_v61  ;;  %13122 = vmatprep.mubr.msk.bf16.mxu0 %vm14079_vm6, %v14075_v1  ;;  %v319_v33 = vld [vmem:[#allocation2 + $0x48] sm:$0xff]  ;;  %v320_v26 = vld [vmem:[#allocation2 + $0x50] sm:$0xff]  ;;  %vm3591_vm14 = vcmp.eq.s32.totalorder %v15524_v18, %v14316_v47 }
 0x346   : > { %v13016_v16 = vpop.f32.mrf.mxu0  ;;  %11643 = vmatprep.mubr.msk.bf16.mxu1 %vm542_vm4, %v3658_v37  ;;  %4087 = vmatpush1.bf16.msra.mxu1 %v15188_v4  ;;  %v15528_v55 = vpop.permute.xlu0 %3560  ;;  %v788_v57 = vadd.f32 %v14874_v2, %v319_v33 }
 0x347   : > { %v2550_v13 = vpop.f32.mrf.mxu1  ;;  %4088 = vmatprep.subr.bf16.mxu1 %v14074_v0  ;;  %vm3590_vm8 = vcmp.eq.s32.totalorder %v15528_v55, %v14319_v48  ;;  %v11630_v16 = vsel %vm3592_vm5, 1.0, %v14075_v1  ;;  %vm3589_vm15 = vcmp.eq.s32.totalorder %v15528_v55, %v14316_v47 }
 0x348   : > { %v1141_v27 = vpop.f32.mrf.mxu0  ;;  %v15563_v13 = vpop.permute.xlu1 %3917  ;;  %vm11650_vm0 = vmpackc.low %vm3591_vm14, %vm3589_vm15 }
 0x349   : > { %v15522_v4 = vadd.f32 %v1141_v27, %v786_v63  ;;  %v2551_v52 = vpop.f32.mrf.mxu1  ;;  %vm3958_vm12 = vcmp.eq.s32.totalorder %v15563_v13, %v14319_v48 }
 0x34a   : > { %v2603_v28 = vpack.c.bf16 %v2551_v52, %v2548_v44  ;;  %v13017_v38 = vpop.f32.mrf.mxu0  ;;  %4089 = vmatpush1.bf16.msra.mxu1 %v15198_v3  ;;  %v3660_v3 = vpack.c.bf16 %v11626_v8, %v11624_v41  ;;  %v789_v8 = vadd.f32 %v14880_v22, %v320_v26  ;;  %v15567_v41 = vpop.permute.xlu0 %3914 }
 0x34b   : > { %v2553_v50 = vpop.f32.mrf.mxu1  ;;  %4096 = vmatprep.subr.bf16.mxu1 %v14074_v0  ;;  %vm3956_vm13 = vcmp.eq.s32.totalorder %v15567_v41, %v14319_v48  ;;  %vm3955_vm5 = vcmp.eq.s32.totalorder %v15567_v41, %v14316_v47 }
 0x34c   : > { %v1146_v56 = vpop.f32.mrf.mxu0  ;;  %13123 = vmatmul.mubr.msk.bf16.vlgmr.msra.gmra.mxu0 %vm234_vm7, %v2603_v28  ;;  %v11665_v50 = vsel %vm3958_vm12, 1.0, %v14075_v1 }
 0x34d   : > { %v15541_v59 = vadd.f32 %v1146_v56, %v787_v11  ;;  %v2556_v62 = vpop.f32.mrf.mxu1  ;;  %11645 = vmatmul.mubr.msk.bf16.gmra.mxu1 %vm11644_vm3, %v14078_v61  ;;  %13126 = vmatprep.mubr.msk.bf16.mxu0 %vm14079_vm6, %v14075_v1  ;;  %v790_v11 = vadd.f32 %v14894_v23, %v321_v17  ;;  %vm3957_vm3 = vcmp.eq.s32.totalorder %v15563_v13, %v14316_v47 }
 0x34e   : > { %v13020_v36 = vpop.f32.mrf.mxu0  ;;  %11646 = vmatprep.mubr.msk.bf16.mxu1 %vm542_vm4, %v3660_v3  ;;  %4097 = vmatpush2.bf16.msra.mxu1 %v15213_v58  ;;  %v11628_v58 = vsel %vm3590_vm8, 1.0, %v14075_v1  ;;  %v322_v3 = vld [vmem:[#allocation2 + $0x60] sm:$0xff]  ;;  %v15601_v55 = vpop.permute.xlu0 %3923  ;;  %vm11691_vm8 = vmpackc.low %vm3957_vm3, %vm3955_vm5 }
 0x34f   : > { %v2558_v37 = vpop.f32.mrf.mxu1  ;;  %4098 = vmatprep.subr.bf16.mxu1 %v14074_v0  ;;  %13151 = vmatpush3.bf16.msra.mxu0 %v13910_v29  ;;  %v3662_v28 = vpack.c.bf16 %v11630_v16, %v11628_v58  ;;  %v11663_v29 = vsel %vm3956_vm13, 1.0, %v14075_v1  ;;  %v15598_v16 = vpop.permute.xlu1 %3920  ;;  %vm3962_vm2 = vcmp.eq.s32.totalorder %v15601_v55, %v14319_v48  ;;  %vm3961_vm12 = vcmp.eq.s32.totalorder %v15601_v55, %v14316_v47 }
 0x350   : > { %v1149_v44 = vpop.f32.mrf.mxu0  ;;  %13180 = vmatprep.subr.bf16.mxu0 %v14075_v1  ;;  %v4040_v36 = vpack.c.bf16 %v11665_v50, %v11663_v29  ;;  %v791_v37 = vadd.f32 %v14900_v51, %v322_v3  ;;  %vm3960_vm1 = vcmp.eq.s32.totalorder %v15598_v16, %v14319_v48 }
 0x351   : > { %v15561_v63 = vadd.f32 %v1149_v44, %v788_v57  ;;  %v2559_v2 = vpop.f32.mrf.mxu1  ;;  %v323_v44 = vld [vmem:[#allocation2 + $0x68] sm:$0xff] }
 0x352   : > { %v2604_v53 = vpack.c.bf16 %v2559_v2, %v2556_v62  ;;  %v13021_v27 = vpop.f32.mrf.mxu0  ;;  %4099 = vmatpush2.bf16.msra.mxu1 %v15223_v43  ;;  %v15630_v41 = vpop.permute.xlu0 %3929 }
 0x353   : > { %v2561_v52 = vpop.f32.mrf.mxu1  ;;  %4100 = vmatprep.subr.bf16.mxu1 %v14074_v0  ;;  %v14091_v27 = vmov 14   ;;  %vm3966_vm10 = vcmp.eq.s32.totalorder %v15630_v41, %v14319_v48 }
 0x354   : > { %v1154_v43 = vpop.f32.mrf.mxu0  ;;  %13127 = vmatmul.mubr.msk.bf16.gmra.mxu0 %vm234_vm7, %v2604_v53  ;;  %13865 = vset.pattern.permute.xlu1 %v14091_v27  ;;  %v11669_v52 = vsel %vm3962_vm2, 1.0, %v14075_v1 }
 0x355   : > { %v15578_v22 = vadd.f32 %v1154_v43, %v789_v8  ;;  %v2564_v38 = vpop.f32.mrf.mxu1  ;;  %11648 = vmatmul.mubr.msk.bf16.gmra.mxu1 %vm11647_vm11, %v14078_v61  ;;  %13130 = vmatprep.mubr.msk.bf16.mxu0 %vm14079_vm6, %v14075_v1  ;;  %vm3959_vm11 = vcmp.eq.s32.totalorder %v15598_v16, %v14316_v47 }
 0x356   : > { %v13024_v39 = vpop.f32.mrf.mxu0  ;;  %11649 = vmatprep.mubr.msk.bf16.mxu1 %vm542_vm4, %v3662_v28  ;;  %4101 = vmatpush2.bf16.msra.mxu1 %v15235_v12  ;;  %vm11694_vm13 = vmpackc.low %vm3961_vm12, %vm3959_vm11 }
 0x357   : > { %v2566_v33 = vpop.f32.mrf.mxu1  ;;  %4102 = vmatprep.subr.bf16.mxu1 %v14074_v0  ;;  %5864 = vperm.xlu1 %13865, %v14167_v7   ;;  %v15626_v39 = vpop.permute.xlu1 %3926 }
 0x358   : > { %v1157_v56 = vpop.f32.mrf.mxu0  ;;  %13866 = vset.pattern.permute.xlu0 %v14091_v27  ;;  %vm3964_vm9 = vcmp.eq.s32.totalorder %v15626_v39, %v14319_v48  ;;  %v15643_v33 = vld [vmem:[%s14182_s9 + $0x38] sm:$0xff]   ;;  %v15686_v27 = vld [vmem:[%s14182_s9 + $0x28] sm:$0xff]  }
 0x359   : > { %v15593_v62 = vadd.f32 %v1157_v56, %v790_v11  ;;  %v2567_v12 = vpop.f32.mrf.mxu1  ;;  %5867 = vperm.xlu0 %13866, %v14174_v10  }
 0x35a   : > { %v2605_v23 = vpack.c.bf16 %v2567_v12, %v2564_v38  ;;  %v13025_v57 = vpop.f32.mrf.mxu0  ;;  %4103 = vmatpush2.bf16.msra.mxu1 %v15244_v42  ;;  %v792_v42 = vadd.f32 %v14914_v40, %v323_v44  ;;  %v11671_v12 = vsel %vm3964_vm9, 1.0, %v14075_v1  ;;  %v15660_v44 = vld [vmem:[%s14182_s9 + $0x30] sm:$0xff]  }
 0x35b   : > { %v2569_v26 = vpop.f32.mrf.mxu1  ;;  %4104 = vmatprep.subr.bf16.mxu1 %v14074_v0  ;;  %5870 = vperm.xlu1 %13865, %v14165_v6  }
 0x35c   : > { %v1162_v18 = vpop.f32.mrf.mxu0  ;;  %13131 = vmatmul.mubr.msk.bf16.gmra.mxu0 %vm234_vm7, %v2605_v23 }
 0x35d   : > { %v15603_v58 = vadd.f32 %v1162_v18, %v791_v37  ;;  %v2572_v2 = vpop.f32.mrf.mxu1  ;;  %11651 = vmatmul.mubr.msk.bf16.gmra.mxu1 %vm11650_vm0, %v14078_v61  ;;  %13134 = vmatprep.mubr.msk.bf16.mxu0 %vm14079_vm6, %v14075_v1  ;;  %vm3963_vm0 = vcmp.eq.s32.totalorder %v15626_v39, %v14316_v47 }
 0x35e   : > { %v13028_v51 = vpop.f32.mrf.mxu0  ;;  %4105 = vmatpush2.bf16.msra.mxu1 %v15255_v54  ;;  %11690 = vmatprep.mubr.msk.bf16.mxu1 %vm542_vm4, %v4040_v36  ;;  %v11667_v54 = vsel %vm3960_vm1, 1.0, %v14075_v1  ;;  %v11673_v36 = vsel %vm3966_vm10, 1.0, %v14075_v1  ;;  %vm3965_vm1 = vcmp.eq.s32.totalorder %v15630_v41, %v14316_v47 }
 0x35f   : > { %v2574_v53 = vpop.f32.mrf.mxu1  ;;  %4464 = vmatprep.subr.bf16.mxu1 %v14074_v0  ;;  %v4042_v38 = vpack.c.bf16 %v11669_v52, %v11667_v54  ;;  %5876 = vperm.xlu0 %13866, %v14188_v15   ;;  %v4044_v55 = vpack.c.bf16 %v11673_v36, %v11671_v12  ;;  %v15672_v51 = vpop.permute.xlu0 %3935  ;;  %vm11697_vm2 = vmpackc.low %vm3965_vm1, %vm3963_vm0  ;;  %v15728_v12 = vld [vmem:[%s14182_s9 + $0x18] sm:$0xff]  }
 0x360   : > { %v1165_v8 = vpop.f32.mrf.mxu0  ;;  %5873 = vperm.xlu1 %13865, %v14172_v9   ;;  %vm3970_vm15 = vcmp.eq.s32.totalorder %v15672_v51, %v14319_v48  ;;  %vm3969_vm9 = vcmp.eq.s32.totalorder %v15672_v51, %v14316_v47 }
 0x361   : > { %v15623_v40 = vadd.f32 %v1165_v8, %v792_v42  ;;  %v2575_v17 = vpop.f32.mrf.mxu1  ;;  %v11677_v52 = vsel %vm3970_vm15, 1.0, %v14075_v1 }
 0x362   : > { %v2606_v28 = vpack.c.bf16 %v2575_v17, %v2572_v2  ;;  %v13029_v43 = vpop.f32.mrf.mxu0 }
 0x363   : > { %v2577_v13 = vpop.f32.mrf.mxu1  ;;  %5882 = vperm.xlu0 %13866, %v14203_v20  }
 0x364   : > { %v1504_v11 = vpop.f32.mrf.mxu0  ;;  %13135 = vmatmul.mubr.msk.bf16.gmra.mxu0 %vm234_vm7, %v2606_v28  ;;  %5879 = vperm.xlu1 %13865, %v14186_v14  }
 0x365   : > { %v15633_v50 = vadd.f32 %v1504_v11, %v15395_v49  ;;  %v2580_v29 = vpop.f32.mrf.mxu1  ;;  %11692 = vmatmul.mubr.msk.bf16.vlgmr.msra.gmra.mxu1 %vm11691_vm8, %v14078_v61  ;;  %13138 = vmatprep.mubr.msk.bf16.mxu0 %vm14079_vm6, %v14075_v1 }
 0x366   : > { %4465 = vmatpush1.bf16.msra.mxu1 %v15643_v33  ;;  %v13034_v3 = vpop.f32.mrf.mxu0  ;;  %11693 = vmatprep.mubr.msk.bf16.mxu1 %vm542_vm4, %v4042_v38  ;;  %v15702_v38 = vld [vmem:[%s14182_s9 + $0x20] sm:$0xff]  }
 0x367   : > { %v2582_v49 = vpop.f32.mrf.mxu1  ;;  %4466 = vmatprep.subr.bf16.mxu1 %v14074_v0  ;;  %5888 = vperm.xlu0 %13866, %v14216_v25   ;;  %v15714_v3 = vpop.permute.xlu0 %3941 }
 0x368   : > { %v1507_v56 = vpop.f32.mrf.mxu0  ;;  %5885 = vperm.xlu1 %13865, %v14201_v19   ;;  %vm3974_vm5 = vcmp.eq.s32.totalorder %v15714_v3, %v14319_v48 }
 0x369   : > { %v15657_v23 = vadd.f32 %v1507_v56, %v15415_v45  ;;  %v2583_v57 = vpop.f32.mrf.mxu1  ;;  %v15668_v45 = vpop.permute.xlu1 %3932 }
 0x36a   : > { %v2607_v37 = vpack.c.bf16 %v2583_v57, %v2580_v29  ;;  %v13035_v26 = vpop.f32.mrf.mxu0  ;;  %4467 = vmatpush1.bf16.msra.mxu1 %v15660_v44  ;;  %vm3968_vm14 = vcmp.eq.s32.totalorder %v15668_v45, %v14319_v48  ;;  %vm3967_vm8 = vcmp.eq.s32.totalorder %v15668_v45, %v14316_v47 }
 0x36b   : > { %v2585_v18 = vpop.f32.mrf.mxu1  ;;  %4468 = vmatprep.subr.bf16.mxu1 %v14074_v0  ;;  %v11675_v54 = vsel %vm3968_vm14, 1.0, %v14075_v1  ;;  %5894 = vperm.xlu0 %13866, %v14230_v31   ;;  %vm11700_vm10 = vmpackc.low %vm3969_vm9, %vm3967_vm8  ;;  %vm3973_vm14 = vcmp.eq.s32.totalorder %v15714_v3, %v14316_v47 }
 0x36c   : > { %v1512_v2 = vpop.f32.mrf.mxu0  ;;  %13139 = vmatmul.mubr.msk.bf16.gmra.mxu0 %vm234_vm7, %v2607_v37  ;;  %v4046_v41 = vpack.c.bf16 %v11677_v52, %v11675_v54  ;;  %5891 = vperm.xlu1 %13865, %v14214_v24   ;;  %v11681_v37 = vsel %vm3974_vm5, 1.0, %v14075_v1 }
 0x36d   : > { %v15675_v42 = vadd.f32 %v1512_v2, %v15430_v60  ;;  %v2588_v53 = vpop.f32.mrf.mxu1  ;;  %11695 = vmatmul.mubr.msk.bf16.gmra.mxu1 %vm11694_vm13, %v14078_v61  ;;  %13142 = vmatprep.mubr.msk.bf16.mxu0 %vm14079_vm6, %v14075_v1 }
 0x36e   : > { %v13038_v16 = vpop.f32.mrf.mxu0  ;;  %11696 = vmatprep.mubr.msk.bf16.mxu1 %vm542_vm4, %v4044_v55  ;;  %4469 = vmatpush1.bf16.msra.mxu1 %v15686_v27 }
 0x36f   : > { %v2590_v60 = vpop.f32.mrf.mxu1  ;;  %4470 = vmatprep.subr.bf16.mxu1 %v14074_v0  ;;  %5900 = vperm.xlu0 %13866, %v14242_v35  }
 0x370   : > { %v1515_v8 = vpop.f32.mrf.mxu0  ;;  %5897 = vperm.xlu1 %13865, %v14228_v30  }
 0x371   : > { %v15699_v17 = vadd.f32 %v1515_v8, %v15451_v5  ;;  %v2591_v28 = vpop.f32.mrf.mxu1  ;;  %v15710_v5 = vpop.permute.xlu1 %3938 }
 0x372   : > { %v2608_v43 = vpack.c.bf16 %v2591_v28, %v2588_v53  ;;  %v13039_v13 = vpop.f32.mrf.mxu0  ;;  %4471 = vmatpush1.bf16.msra.mxu1 %v15702_v38  ;;  %vm3972_vm3 = vcmp.eq.s32.totalorder %v15710_v5, %v14319_v48  ;;  %v15744_v53 = vld [vmem:[%s14182_s9 + $0x10] sm:$0xff]   ;;  %v15763_v28 = vld [vmem:[%s14182_s9 + $0x8] sm:$0xff]   ;;  %vm3971_vm13 = vcmp.eq.s32.totalorder %v15710_v5, %v14316_v47 }
 0x373   : > { %v2593_v11 = vpop.f32.mrf.mxu1  ;;  %4472 = vmatprep.subr.bf16.mxu1 %v14074_v0  ;;  %v11679_v57 = vsel %vm3972_vm3, 1.0, %v14075_v1  ;;  %vm11703_vm15 = vmpackc.low %vm3973_vm14, %vm3971_vm13 }
 0x374   : > { %v1520_v29 = vpop.f32.mrf.mxu0  ;;  %13143 = vmatmul.mubr.msk.bf16.gmra.mxu0 %vm234_vm7, %v2608_v43  ;;  %v4048_v51 = vpack.c.bf16 %v11681_v37, %v11679_v57  ;;  %5903 = vperm.xlu1 %13865, %v14240_v34  }
 0x375   : > { %v15717_v49 = vadd.f32 %v1520_v29, %v15466_v21  ;;  %v2596_v56 = vpop.f32.mrf.mxu1  ;;  %11698 = vmatmul.mubr.msk.bf16.gmra.mxu1 %vm11697_vm2, %v14078_v61  ;;  %13146 = vmatprep.mubr.msk.bf16.mxu0 %vm14079_vm6, %v14075_v1  ;;  %v15748_v16 = vpop.permute.xlu1 %3944 }
 0x376   : > { %v13042_v39 = vpop.f32.mrf.mxu0  ;;  %11699 = vmatprep.mubr.msk.bf16.mxu1 %vm542_vm4, %v4046_v41  ;;  %4473 = vmatpush1.bf16.msra.mxu1 %v15728_v12  ;;  %vm3976_vm11 = vcmp.eq.s32.totalorder %v15748_v16, %v14319_v48  ;;  %vm3975_vm2 = vcmp.eq.s32.totalorder %v15748_v16, %v14316_v47 }
 0x377   : > { %v2598_v21 = vpop.f32.mrf.mxu1  ;;  %4474 = vmatprep.subr.bf16.mxu1 %v14074_v0  ;;  %v11683_v13 = vsel %vm3976_vm11, 1.0, %v14075_v1 }
 0x378   : > { %v1523_v36 = vpop.f32.mrf.mxu0 }
 0x379   : > { %v15741_v26 = vadd.f32 %v1523_v36, %v15487_v32  ;;  %v2599_v18 = vpop.f32.mrf.mxu1  ;;  %v3948_v32 = vpop.permute.xlu0 %3947  ;;  %v15779_v36 = vld [vmem:[%s14182_s9] sm:$0xff]  }
 0x37a   : > { %v2609_v55 = vpack.c.bf16 %v2599_v18, %v2596_v56  ;;  %v13043_v2 = vpop.f32.mrf.mxu0  ;;  %4475 = vmatpush1.bf16.msra.mxu1 %v15744_v53  ;;  %vm3978_vm12 = vcmp.eq.s32.totalorder %v3948_v32, %v14319_v48  ;;  %v15776_v56 = vpop.permute.xlu1 %3950  ;;  %vm3977_vm3 = vcmp.eq.s32.totalorder %v3948_v32, %v14316_v47 }
 0x37b   : > { %v2601_v45 = vpop.f32.mrf.mxu1  ;;  %4476 = vmatprep.subr.bf16.mxu1 %v14074_v0  ;;  %v11685_v11 = vsel %vm3978_vm12, 1.0, %v14075_v1  ;;  %vm3980_vm0 = vcmp.eq.s32.totalorder %v15776_v56, %v14319_v48  ;;  %vm11706_vm5 = vmpackc.low %vm3977_vm3, %vm3975_vm2 }
 0x37c   : > { %v1528_v60 = vpop.f32.mrf.mxu0  ;;  %13147 = vmatmul.mubr.msk.bf16.gmra.mxu0 %vm234_vm7, %v2609_v55  ;;  %v4050_v37 = vpack.c.bf16 %v11685_v11, %v11683_v13  ;;  %v15804_v45 = vld [vmem:[%s14182_s9 + $0x60] sm:$0xff]  }
 0x37d   : > { %v15753_v8 = vadd.f32 %v1528_v60, %v15502_v46  ;;  %v2938_v54 = vpop.f32.mrf.mxu1  ;;  %11701 = vmatmul.mubr.msk.bf16.gmra.mxu1 %vm11700_vm10, %v14078_v61  ;;  %13152 = vmatprep.mubr.msk.bf16.mxu0 %vm14079_vm6, %v14075_v1  ;;  %v15782_v57 = vpop.permute.xlu0 %3953  ;;  %v11687_v60 = vsel %vm3980_vm0, 1.0, %v14075_v1  ;;  %vm3979_vm10 = vcmp.eq.s32.totalorder %v15776_v56, %v14316_v47 }
 0x37e   : > { %v13046_v52 = vpop.f32.mrf.mxu0  ;;  %11702 = vmatprep.mubr.msk.bf16.mxu1 %vm542_vm4, %v4048_v51  ;;  %4477 = vmatpush1.bf16.msra.mxu1 %v15763_v28  ;;  %vm3982_vm1 = vcmp.eq.s32.totalorder %v15782_v57, %v14319_v48  ;;  %vm3981_vm11 = vcmp.eq.s32.totalorder %v15782_v57, %v14316_v47 }
 0x37f   : > { %v2940_v46 = vpop.f32.mrf.mxu1  ;;  %4478 = vmatprep.subr.bf16.mxu1 %v14074_v0  ;;  %v15814_v52 = vpop.permute.xlu1 %4304  ;;  %vm11709_vm12 = vmpackc.low %vm3981_vm11, %vm3979_vm10 }
 0x380   : > { %v1531_v43 = vpop.f32.mrf.mxu0  ;;  %vm4346_vm8 = vcmp.eq.s32.totalorder %v15814_v52, %v14319_v48 }
 0x381   : > { %v15774_v41 = vadd.f32 %v1531_v43, %v15522_v4  ;;  %v2941_v29 = vpop.f32.mrf.mxu1  ;;  %v13911_v4 = vld [vmem:[%s19706_s3 + $0x38] sm:$0xff]  }
 0x382   : > { %v2993_v39 = vpack.c.bf16 %v2941_v29, %v2938_v54  ;;  %v13047_v21 = vpop.f32.mrf.mxu0  ;;  %4479 = vmatpush1.bf16.msra.mxu1 %v15779_v36  ;;  %v11689_v54 = vsel %vm3982_vm1, 1.0, %v14075_v1  ;;  %v15820_v29 = vld [vmem:[%s14182_s9 + $0x58] sm:$0xff]  }
 0x383   : > { %v2943_v3 = vpop.f32.mrf.mxu1  ;;  %4486 = vmatprep.subr.bf16.mxu1 %v14074_v0  ;;  %v4052_v21 = vpack.c.bf16 %v11689_v54, %v11687_v60 }
 0x384   : > { %v1536_v18 = vpop.f32.mrf.mxu0  ;;  %13153 = vmatmul.mubr.msk.bf16.vlgmr.msra.gmra.mxu0 %vm234_vm7, %v2993_v39  ;;  %v15823_v39 = vpop.permute.xlu0 %4307 }
 0x385   : > { %v15793_v55 = vadd.f32 %v1536_v18, %v15541_v59  ;;  %v2946_v2 = vpop.f32.mrf.mxu1  ;;  %11704 = vmatmul.mubr.msk.bf16.gmra.mxu1 %vm11703_vm15, %v14078_v61  ;;  %13156 = vmatprep.mubr.msk.bf16.mxu0 %vm14079_vm6, %v14075_v1  ;;  %vm4348_vm9 = vcmp.eq.s32.totalorder %v15823_v39, %v14319_v48  ;;  %v11722_v18 = vsel %vm4346_vm8, 1.0, %v14075_v1  ;;  %vm4345_vm15 = vcmp.eq.s32.totalorder %v15814_v52, %v14316_v47 }
 0x386   : > { %v13050_v5 = vpop.f32.mrf.mxu0  ;;  %11705 = vmatprep.mubr.msk.bf16.mxu1 %vm542_vm4, %v4050_v37  ;;  %4487 = vmatpush2.bf16.msra.mxu1 %v15804_v45  ;;  %v15842_v37 = vld [vmem:[%s14182_s9 + $0x50] sm:$0xff]   ;;  %vm4347_vm0 = vcmp.eq.s32.totalorder %v15823_v39, %v14316_v47 }
 0x387   : > { %v2948_v59 = vpop.f32.mrf.mxu1  ;;  %4488 = vmatprep.subr.bf16.mxu1 %v14074_v0  ;;  %13181 = vmatpush3.bf16.msra.mxu0 %v13911_v4  ;;  %vm11750_vm1 = vmpackc.low %vm4347_vm0, %vm4345_vm15 }
 0x388   : > { %v1539_v51 = vpop.f32.mrf.mxu0  ;;  %13210 = vmatprep.subr.bf16.mxu0 %v14075_v1  ;;  %v4317_v39 = vpop.permute.xlu0 %4316 }
 0x389   : > { %v15817_v46 = vadd.f32 %v1539_v51, %v15561_v63  ;;  %v2949_v43 = vpop.f32.mrf.mxu1  ;;  %vm4354_vm3 = vcmp.eq.s32.totalorder %v4317_v39, %v14319_v48 }
 0x38a   : > { %v2994_v13 = vpack.c.bf16 %v2949_v43, %v2946_v2  ;;  %v13051_v11 = vpop.f32.mrf.mxu0  ;;  %4489 = vmatpush2.bf16.msra.mxu1 %v15820_v29  ;;  %v15846_v2 = vpop.permute.xlu1 %4310 }
 0x38b   : > { %v2951_v32 = vpop.f32.mrf.mxu1  ;;  %4490 = vmatprep.subr.bf16.mxu1 %v14074_v0  ;;  %v15858_v11 = vld [vmem:[%s14182_s9 + $0x48] sm:$0xff]   ;;  %vm4350_vm13 = vcmp.eq.s32.totalorder %v15846_v2, %v14319_v48 }
 0x38c   : > { %v1544_v63 = vpop.f32.mrf.mxu0  ;;  %13157 = vmatmul.mubr.msk.bf16.gmra.mxu0 %vm234_vm7, %v2994_v13 }
 0x38d   : > { %v15835_v3 = vadd.f32 %v1544_v63, %v15578_v22  ;;  %v2954_v4 = vpop.f32.mrf.mxu1  ;;  %11707 = vmatmul.mubr.msk.bf16.gmra.mxu1 %vm11706_vm5, %v14078_v61  ;;  %13160 = vmatprep.mubr.msk.bf16.mxu0 %vm14079_vm6, %v14075_v1  ;;  %v11724_v22 = vsel %vm4348_vm9, 1.0, %v14075_v1  ;;  %vm4349_vm5 = vcmp.eq.s32.totalorder %v15846_v2, %v14316_v47 }
 0x38e   : > { %v13054_v16 = vpop.f32.mrf.mxu0  ;;  %11708 = vmatprep.mubr.msk.bf16.mxu1 %vm542_vm4, %v4052_v21  ;;  %4491 = vmatpush2.bf16.msra.mxu1 %v15842_v37  ;;  %v4430_v54 = vpack.c.bf16 %v11724_v22, %v11722_v18  ;;  %v4314_v57 = vpop.permute.xlu1 %4313  ;;  %v11726_v18 = vsel %vm4350_vm13, 1.0, %v14075_v1  ;;  %vm4353_vm13 = vcmp.eq.s32.totalorder %v4317_v39, %v14316_v47 }
 0x38f   : > { %v2956_v5 = vpop.f32.mrf.mxu1  ;;  %4492 = vmatprep.subr.bf16.mxu1 %v14074_v0  ;;  %vm4352_vm14 = vcmp.eq.s32.totalorder %v4314_v57, %v14319_v48  ;;  %vm4351_vm8 = vcmp.eq.s32.totalorder %v4314_v57, %v14316_v47 }
 0x390   : > { %v1547_v59 = vpop.f32.mrf.mxu0  ;;  %v11728_v22 = vsel %vm4352_vm14, 1.0, %v14075_v1  ;;  %vm11753_vm9 = vmpackc.low %vm4351_vm8, %vm4349_vm5 }
 0x391   : > { %v15855_v51 = vadd.f32 %v1547_v59, %v15593_v62  ;;  %v2957_v60 = vpop.f32.mrf.mxu1 }
 0x392   : > { %v2995_v43 = vpack.c.bf16 %v2957_v60, %v2954_v4  ;;  %v13055_v13 = vpop.f32.mrf.mxu0  ;;  %4493 = vmatpush2.bf16.msra.mxu1 %v15858_v11  ;;  %v15873_v4 = vld [vmem:[%s14182_s9 + $0x40] sm:$0xff]   ;;  %v15887_v52 = vpop.permute.xlu1 %4319 }
 0x393   : > { %v2959_v32 = vpop.f32.mrf.mxu1  ;;  %4494 = vmatprep.subr.bf16.mxu1 %v14074_v0  ;;  %v14092_v13 = vmov 15   ;;  %vm4356_vm2 = vcmp.eq.s32.totalorder %v15887_v52, %v14319_v48 }
 0x394   : > { %v1552_v56 = vpop.f32.mrf.mxu0  ;;  %13161 = vmatmul.mubr.msk.bf16.gmra.mxu0 %vm234_vm7, %v2995_v43  ;;  %13868 = vset.pattern.permute.xlu1 %v14092_v13  ;;  %v4432_v32 = vpack.c.bf16 %v11728_v22, %v11726_v18  ;;  %v11730_v18 = vsel %vm4354_vm3, 1.0, %v14075_v1 }
 0x395   : > { %v15864_v62 = vadd.f32 %v1552_v56, %v15603_v58  ;;  %v2962_v21 = vpop.f32.mrf.mxu1  ;;  %11710 = vmatmul.mubr.msk.bf16.gmra.mxu1 %vm11709_vm12, %v14078_v61  ;;  %13164 = vmatprep.mubr.msk.bf16.mxu0 %vm14079_vm6, %v14075_v1  ;;  %vm4355_vm12 = vcmp.eq.s32.totalorder %v15887_v52, %v14316_v47 }
 0x396   : > { %v13058_v63 = vpop.f32.mrf.mxu0  ;;  %4495 = vmatpush2.bf16.msra.mxu1 %v15873_v4  ;;  %11749 = vmatprep.mubr.msk.bf16.mxu1 %vm542_vm4, %v4430_v54  ;;  %v15916_v57 = vpop.permute.xlu1 %4325  ;;  %vm11756_vm14 = vmpackc.low %vm4355_vm12, %vm4353_vm13 }
 0x397   : > { %v2964_v58 = vpop.f32.mrf.mxu1  ;;  %4854 = vmatprep.subr.bf16.mxu1 %v14074_v0  ;;  %13867 = vset.pattern.permute.xlu0 %v14092_v13  ;;  %vm4360_vm10 = vcmp.eq.s32.totalorder %v15916_v57, %v14319_v48 }
 0x398   : > { %v1555_v16 = vpop.f32.mrf.mxu0  ;;  %6257 = vperm.xlu1 %13868, %v14174_v10   ;;  %6254 = vperm.xlu0 %13867, %v14167_v7  }
 0x399   : > { %v15885_v5 = vadd.f32 %v1555_v16, %v15623_v40  ;;  %v2965_v59 = vpop.f32.mrf.mxu1  ;;  %v11732_v16 = vsel %vm4356_vm2, 1.0, %v14075_v1 }
 0x39a   : > { %v2996_v60 = vpack.c.bf16 %v2965_v59, %v2962_v21  ;;  %v13059_v54 = vpop.f32.mrf.mxu0  ;;  %v4434_v2 = vpack.c.bf16 %v11732_v16, %v11730_v18  ;;  %v15945_v39 = vpop.permute.xlu1 %4331 }
 0x39b   : > { %v2967_v43 = vpop.f32.mrf.mxu1  ;;  %vm4364_vm15 = vcmp.eq.s32.totalorder %v15945_v39, %v14319_v48 }
 0x39c   : > { %v1894_v56 = vpop.f32.mrf.mxu0  ;;  %13165 = vmatmul.mubr.msk.bf16.gmra.mxu0 %vm234_vm7, %v2996_v60  ;;  %6260 = vperm.xlu1 %13868, %v14165_v6  }
 0x39d   : > { %v15892_v40 = vadd.f32 %v1894_v56, %v15633_v50  ;;  %v2970_v63 = vpop.f32.mrf.mxu1  ;;  %11751 = vmatmul.mubr.msk.bf16.vlgmr.msra.gmra.mxu1 %vm11750_vm1, %v14078_v61  ;;  %13168 = vmatprep.mubr.msk.bf16.mxu0 %vm14079_vm6, %v14075_v1  ;;  %vm4359_vm1 = vcmp.eq.s32.totalorder %v15916_v57, %v14316_v47 }
 0x39e   : > { %4855 = vmatpush1.bf16.msra.mxu1 %v15643_v33  ;;  %v13064_v21 = vpop.f32.mrf.mxu0  ;;  %11752 = vmatprep.mubr.msk.bf16.mxu1 %vm542_vm4, %v4432_v32 }
 0x39f   : > { %v2972_v58 = vpop.f32.mrf.mxu1  ;;  %4856 = vmatprep.subr.bf16.mxu1 %v14074_v0  ;;  %6263 = vperm.xlu0 %13867, %v14172_v9  }
 0x3a0   : > { %v1897_v50 = vpop.f32.mrf.mxu0  ;;  %6266 = vperm.xlu1 %13868, %v14188_v15   ;;  %v11736_v58 = vsel %vm4360_vm10, 1.0, %v14075_v1 }
 0x3a1   : > { %v15911_v22 = vadd.f32 %v1897_v50, %v15657_v23  ;;  %v2973_v59 = vpop.f32.mrf.mxu1  ;;  %v4323_v23 = vpop.permute.xlu0 %4322 }
 0x3a2   : > { %v2997_v60 = vpack.c.bf16 %v2973_v59, %v2970_v63  ;;  %v13065_v54 = vpop.f32.mrf.mxu0  ;;  %4857 = vmatpush1.bf16.msra.mxu1 %v15660_v44  ;;  %vm4358_vm11 = vcmp.eq.s32.totalorder %v4323_v23, %v14319_v48  ;;  %vm4357_vm2 = vcmp.eq.s32.totalorder %v4323_v23, %v14316_v47  ;;  %v15974_v23 = vpop.permute.xlu1 %4337 }
 0x3a3   : > { %v2975_v43 = vpop.f32.mrf.mxu1  ;;  %4858 = vmatprep.subr.bf16.mxu1 %v14074_v0  ;;  %6269 = vperm.xlu0 %13867, %v14186_v14   ;;  %v11734_v50 = vsel %vm4358_vm11, 1.0, %v14075_v1  ;;  %vm11759_vm3 = vmpackc.low %vm4359_vm1, %vm4357_vm2  ;;  %vm4368_vm5 = vcmp.eq.s32.totalorder %v15974_v23, %v14319_v48 }
 0x3a4   : > { %v1902_v13 = vpop.f32.mrf.mxu0  ;;  %13169 = vmatmul.mubr.msk.bf16.gmra.mxu0 %vm234_vm7, %v2997_v60  ;;  %6272 = vperm.xlu1 %13868, %v14203_v20   ;;  %v4436_v52 = vpack.c.bf16 %v11736_v58, %v11734_v50 }
 0x3a5   : > { %v15921_v32 = vadd.f32 %v1902_v13, %v15675_v42  ;;  %v2978_v56 = vpop.f32.mrf.mxu1  ;;  %11754 = vmatmul.mubr.msk.bf16.gmra.mxu1 %vm11753_vm9, %v14078_v61  ;;  %13172 = vmatprep.mubr.msk.bf16.mxu0 %vm14079_vm6, %v14075_v1  ;;  %vm4363_vm9 = vcmp.eq.s32.totalorder %v15945_v39, %v14316_v47 }
 0x3a6   : > { %v13068_v63 = vpop.f32.mrf.mxu0  ;;  %11755 = vmatprep.mubr.msk.bf16.mxu1 %vm542_vm4, %v4434_v2  ;;  %4859 = vmatpush1.bf16.msra.mxu1 %v15686_v27 }
 0x3a7   : > { %v2980_v21 = vpop.f32.mrf.mxu1  ;;  %4860 = vmatprep.subr.bf16.mxu1 %v14074_v0  ;;  %6275 = vperm.xlu0 %13867, %v14201_v19  }
 0x3a8   : > { %v1905_v42 = vpop.f32.mrf.mxu0  ;;  %6278 = vperm.xlu1 %13868, %v14216_v25   ;;  %v11740_v21 = vsel %vm4364_vm15, 1.0, %v14075_v1 }
 0x3a9   : > { %v15940_v16 = vadd.f32 %v1905_v42, %v15699_v17  ;;  %v2981_v18 = vpop.f32.mrf.mxu1  ;;  %v4329_v17 = vpop.permute.xlu0 %4328 }
 0x3aa   : > { %v2998_v59 = vpack.c.bf16 %v2981_v18, %v2978_v56  ;;  %v13069_v60 = vpop.f32.mrf.mxu0  ;;  %4861 = vmatpush1.bf16.msra.mxu1 %v15702_v38  ;;  %vm4362_vm0 = vcmp.eq.s32.totalorder %v4329_v17, %v14319_v48  ;;  %vm4361_vm10 = vcmp.eq.s32.totalorder %v4329_v17, %v14316_v47  ;;  %v13912_v17 = vld [vmem:[%s19706_s3 + $0x40] sm:$0xff]  }
 0x3ab   : > { %v2983_v54 = vpop.f32.mrf.mxu1  ;;  %4862 = vmatprep.subr.bf16.mxu1 %v14074_v0  ;;  %6281 = vperm.xlu0 %13867, %v14214_v24   ;;  %v11738_v42 = vsel %vm4362_vm0, 1.0, %v14075_v1  ;;  %vm11762_vm11 = vmpackc.low %vm4363_vm9, %vm4361_vm10 }
 0x3ac   : > { %v1910_v43 = vpop.f32.mrf.mxu0  ;;  %13173 = vmatmul.mubr.msk.bf16.gmra.mxu0 %vm234_vm7, %v2998_v59  ;;  %6284 = vperm.xlu1 %13868, %v14230_v31   ;;  %v4438_v57 = vpack.c.bf16 %v11740_v21, %v11738_v42 }
 0x3ad   : > { %v15950_v2 = vadd.f32 %v1910_v43, %v15717_v49  ;;  %v2986_v13 = vpop.f32.mrf.mxu1  ;;  %11757 = vmatmul.mubr.msk.bf16.gmra.mxu1 %vm11756_vm14, %v14078_v61  ;;  %13176 = vmatprep.mubr.msk.bf16.mxu0 %vm14079_vm6, %v14075_v1  ;;  %vm4367_vm14 = vcmp.eq.s32.totalorder %v15974_v23, %v14316_v47 }
 0x3ae   : > { %v13072_v56 = vpop.f32.mrf.mxu0  ;;  %11758 = vmatprep.mubr.msk.bf16.mxu1 %vm542_vm4, %v4436_v52  ;;  %4863 = vmatpush1.bf16.msra.mxu1 %v15728_v12 }
 0x3af   : > { %v2988_v63 = vpop.f32.mrf.mxu1  ;;  %4864 = vmatprep.subr.bf16.mxu1 %v14074_v0  ;;  %6287 = vperm.xlu0 %13867, %v14228_v30  }
 0x3b0   : > { %v1913_v49 = vpop.f32.mrf.mxu0  ;;  %6290 = vperm.xlu1 %13868, %v14242_v35   ;;  %v11744_v63 = vsel %vm4368_vm5, 1.0, %v14075_v1 }
 0x3b1   : > { %v15969_v58 = vadd.f32 %v1913_v49, %v15741_v26  ;;  %v2989_v50 = vpop.f32.mrf.mxu1  ;;  %v4335_v26 = vpop.permute.xlu0 %4334 }
 0x3b2   : > { %v2999_v18 = vpack.c.bf16 %v2989_v50, %v2986_v13  ;;  %v13073_v59 = vpop.f32.mrf.mxu0  ;;  %4865 = vmatpush1.bf16.msra.mxu1 %v15744_v53  ;;  %vm4366_vm8 = vcmp.eq.s32.totalorder %v4335_v26, %v14319_v48  ;;  %v15999_v50 = vpop.permute.xlu1 %4343  ;;  %vm4365_vm15 = vcmp.eq.s32.totalorder %v4335_v26, %v14316_v47 }
 0x3b3   : > { %v2991_v60 = vpop.f32.mrf.mxu1  ;;  %4866 = vmatprep.subr.bf16.mxu1 %v14074_v0  ;;  %6293 = vperm.xlu0 %13867, %v14240_v34   ;;  %v11742_v49 = vsel %vm4366_vm8, 1.0, %v14075_v1  ;;  %vm4372_vm12 = vcmp.eq.s32.totalorder %v15999_v50, %v14319_v48  ;;  %vm11765_vm0 = vmpackc.low %vm4367_vm14, %vm4365_vm15 }
 0x3b4   : > { %v1918_v54 = vpop.f32.mrf.mxu0  ;;  %13177 = vmatmul.mubr.msk.bf16.gmra.mxu0 %vm234_vm7, %v2999_v18 }
 0x3b5   : > { %v15979_v52 = vadd.f32 %v1918_v54, %v15753_v8  ;;  %v3328_v43 = vpop.f32.mrf.mxu1  ;;  %11760 = vmatmul.mubr.msk.bf16.gmra.mxu1 %vm11759_vm3, %v14078_v61  ;;  %13182 = vmatprep.mubr.msk.bf16.mxu0 %vm14079_vm6, %v14075_v1  ;;  %v16002_v60 = vpop.permute.xlu0 %4340  ;;  %vm4371_vm3 = vcmp.eq.s32.totalorder %v15999_v50, %v14316_v47 }
 0x3b6   : > { %v13076_v13 = vpop.f32.mrf.mxu0  ;;  %11761 = vmatprep.mubr.msk.bf16.mxu1 %vm542_vm4, %v4438_v57  ;;  %4867 = vmatpush1.bf16.msra.mxu1 %v15763_v28  ;;  %vm4370_vm13 = vcmp.eq.s32.totalorder %v16002_v60, %v14319_v48  ;;  %vm4369_vm5 = vcmp.eq.s32.totalorder %v16002_v60, %v14316_v47 }
 0x3b7   : > { %v3330_v56 = vpop.f32.mrf.mxu1  ;;  %4868 = vmatprep.subr.bf16.mxu1 %v14074_v0  ;;  %vm11768_vm8 = vmpackc.low %vm4371_vm3, %vm4369_vm5 }
 0x3b8   : > { %v1921_v8 = vpop.f32.mrf.mxu0 }
 0x3b9   : > { %v15997_v21 = vadd.f32 %v1921_v8, %v15774_v41  ;;  %v3331_v42 = vpop.f32.mrf.mxu1  ;;  %v4440_v41 = vpack.c.bf16 %v11744_v63, %v11742_v49  ;;  %v11748_v8 = vsel %vm4372_vm12, 1.0, %v14075_v1  ;;  %v11746_v63 = vsel %vm4370_vm13, 1.0, %v14075_v1 }
 0x3ba   : > { %v3383_v18 = vpack.c.bf16 %v3331_v42, %v3328_v43  ;;  %v13077_v59 = vpop.f32.mrf.mxu0  ;;  %4869 = vmatpush1.bf16.msra.mxu1 %v15779_v36  ;;  %v4442_v26 = vpack.c.bf16 %v11748_v8, %v11746_v63 }
 0x3bb   : > { %v3333_v57 = vpop.f32.mrf.mxu1  ;;  %4876 = vmatprep.subr.bf16.mxu1 %v14074_v0 }
 0x3bc   : > { %v1926_v54 = vpop.f32.mrf.mxu0  ;;  %13183 = vmatmul.mubr.msk.bf16.vlgmr.msra.gmra.mxu0 %vm234_vm7, %v3383_v18  ;;  %v16034_v18 = vpop.permute.xlu1 %4697 }
 0x3bd   : > { %v16013_v43 = vadd.f32 %v1926_v54, %v15793_v55  ;;  %v3336_v13 = vpop.f32.mrf.mxu1  ;;  %11763 = vmatmul.mubr.msk.bf16.gmra.mxu1 %vm11762_vm11, %v14078_v61  ;;  %13186 = vmatprep.mubr.msk.bf16.mxu0 %vm14079_vm6, %v14075_v1  ;;  %vm4738_vm1 = vcmp.eq.s32.totalorder %v16034_v18, %v14319_v48  ;;  %vm4737_vm11 = vcmp.eq.s32.totalorder %v16034_v18, %v14316_v47 }
 0x3be   : > { %v13080_v39 = vpop.f32.mrf.mxu0  ;;  %11764 = vmatprep.mubr.msk.bf16.mxu1 %vm542_vm4, %v4440_v41  ;;  %4877 = vmatpush2.bf16.msra.mxu1 %v15804_v45 }
 0x3bf   : > { %v3338_v56 = vpop.f32.mrf.mxu1  ;;  %4878 = vmatprep.subr.bf16.mxu1 %v14074_v0  ;;  %13211 = vmatpush3.bf16.msra.mxu0 %v13912_v17  ;;  %v4695_v17 = vpop.permute.xlu0 %4694  ;;  %v11783_v39 = vsel %vm4738_vm1, 1.0, %v14075_v1 }
 0x3c0   : > { %v1929_v55 = vpop.f32.mrf.mxu0  ;;  %13240 = vmatprep.subr.bf16.mxu0 %v14075_v1  ;;  %vm4736_vm2 = vcmp.eq.s32.totalorder %v4695_v17, %v14319_v48  ;;  %vm4735_vm12 = vcmp.eq.s32.totalorder %v4695_v17, %v14316_v47 }
 0x3c1   : > { %v16032_v49 = vadd.f32 %v1929_v55, %v15817_v46  ;;  %v3339_v42 = vpop.f32.mrf.mxu1  ;;  %v11781_v56 = vsel %vm4736_vm2, 1.0, %v14075_v1  ;;  %vm11809_vm13 = vmpackc.low %vm4737_vm11, %vm4735_vm12 }
 0x3c2   : > { %v3384_v59 = vpack.c.bf16 %v3339_v42, %v3336_v13  ;;  %v13081_v57 = vpop.f32.mrf.mxu0  ;;  %4879 = vmatpush2.bf16.msra.mxu1 %v15820_v29  ;;  %v4820_v42 = vpack.c.bf16 %v11783_v39, %v11781_v56 }
 0x3c3   : > { %v3341_v41 = vpop.f32.mrf.mxu1  ;;  %4880 = vmatprep.subr.bf16.mxu1 %v14074_v0  ;;  %v4704_v50 = vpop.permute.xlu0 %4703 }
 0x3c4   : > { %v1934_v46 = vpop.f32.mrf.mxu0  ;;  %13187 = vmatmul.mubr.msk.bf16.gmra.mxu0 %vm234_vm7, %v3384_v59  ;;  %vm4742_vm10 = vcmp.eq.s32.totalorder %v4704_v50, %v14319_v48  ;;  %vm4741_vm1 = vcmp.eq.s32.totalorder %v4704_v50, %v14316_v47 }
 0x3c5   : > { %v16046_v54 = vadd.f32 %v1934_v46, %v15835_v3  ;;  %v3344_v13 = vpop.f32.mrf.mxu1  ;;  %11766 = vmatmul.mubr.msk.bf16.gmra.mxu1 %vm11765_vm0, %v14078_v61  ;;  %13190 = vmatprep.mubr.msk.bf16.mxu0 %vm14079_vm6, %v14075_v1 }
 0x3c6   : > { %v13084_v23 = vpop.f32.mrf.mxu0  ;;  %11767 = vmatprep.mubr.msk.bf16.mxu1 %vm542_vm4, %v4442_v26  ;;  %4881 = vmatpush2.bf16.msra.mxu1 %v15842_v37  ;;  %v16065_v26 = vpop.permute.xlu1 %4700 }
 0x3c7   : > { %v3346_v55 = vpop.f32.mrf.mxu1  ;;  %4882 = vmatprep.subr.bf16.mxu1 %v14074_v0  ;;  %vm4740_vm9 = vcmp.eq.s32.totalorder %v16065_v26, %v14319_v48  ;;  %v4710_v17 = vpop.permute.xlu0 %4709  ;;  %vm4739_vm0 = vcmp.eq.s32.totalorder %v16065_v26, %v14316_v47 }
 0x3c8   : > { %v1937_v3 = vpop.f32.mrf.mxu0  ;;  %v11785_v56 = vsel %vm4740_vm9, 1.0, %v14075_v1  ;;  %v11787_v55 = vsel %vm4742_vm10, 1.0, %v14075_v1  ;;  %vm4746_vm15 = vcmp.eq.s32.totalorder %v4710_v17, %v14319_v48  ;;  %vm11812_vm2 = vmpackc.low %vm4741_vm1, %vm4739_vm0  ;;  %vm4745_vm9 = vcmp.eq.s32.totalorder %v4710_v17, %v14316_v47 }
 0x3c9   : > { %v16061_v8 = vadd.f32 %v1937_v3, %v15855_v51  ;;  %v3347_v63 = vpop.f32.mrf.mxu1  ;;  %v4822_v18 = vpack.c.bf16 %v11787_v55, %v11785_v56 }
 0x3ca   : > { %v3385_v59 = vpack.c.bf16 %v3347_v63, %v3344_v13  ;;  %v13085_v57 = vpop.f32.mrf.mxu0  ;;  %4883 = vmatpush2.bf16.msra.mxu1 %v15858_v11 }
 0x3cb   : > { %v3349_v41 = vpop.f32.mrf.mxu1  ;;  %4884 = vmatprep.subr.bf16.mxu1 %v14074_v0 }
 0x3cc   : > { %v1942_v46 = vpop.f32.mrf.mxu0  ;;  %13191 = vmatmul.mubr.msk.bf16.gmra.mxu0 %vm234_vm7, %v3385_v59  ;;  %v16090_v41 = vpop.permute.xlu1 %4706 }
 0x3cd   : > { %v16069_v60 = vadd.f32 %v1942_v46, %v15864_v62  ;;  %v3352_v51 = vpop.f32.mrf.mxu1  ;;  %11769 = vmatmul.mubr.msk.bf16.gmra.mxu1 %vm11768_vm8, %v14078_v61  ;;  %13194 = vmatprep.mubr.msk.bf16.mxu0 %vm14079_vm6, %v14075_v1  ;;  %v14093_v62 = vmov 16   ;;  %vm4744_vm14 = vcmp.eq.s32.totalorder %v16090_v41, %v14319_v48  ;;  %vm4743_vm8 = vcmp.eq.s32.totalorder %v16090_v41, %v14316_v47 }
 0x3ce   : > { %v13088_v13 = vpop.f32.mrf.mxu0  ;;  %4885 = vmatpush2.bf16.msra.mxu1 %v15873_v4  ;;  %11808 = vmatprep.mubr.msk.bf16.mxu1 %vm542_vm4, %v4820_v42  ;;  %vm11815_vm10 = vmpackc.low %vm4745_vm9, %vm4743_vm8 }
 0x3cf   : > { %v3354_v23 = vpop.f32.mrf.mxu1  ;;  %5244 = vmatprep.subr.bf16.mxu1 %v14074_v0  ;;  %13869 = vset.pattern.permute.xlu1 %v14093_v62 }
 0x3d0   : > { %v1945_v39 = vpop.f32.mrf.mxu0  ;;  %6644 = vperm.xlu1 %13869, %v14167_v7   ;;  %13870 = vset.pattern.permute.xlu0 %v14093_v62  ;;  %v11789_v62 = vsel %vm4744_vm14, 1.0, %v14075_v1  ;;  %v16119_v50 = vpop.permute.xlu1 %4712 }
 0x3d1   : > { %v16087_v3 = vadd.f32 %v1945_v39, %v15885_v5  ;;  %v3355_v63 = vpop.f32.mrf.mxu1  ;;  %6647 = vperm.xlu0 %13870, %v14174_v10   ;;  %vm4748_vm3 = vcmp.eq.s32.totalorder %v16119_v50, %v14319_v48 }
 0x3d2   : > { %v3386_v42 = vpack.c.bf16 %v3355_v63, %v3352_v51  ;;  %v13089_v59 = vpop.f32.mrf.mxu0 }
 0x3d3   : > { %v3357_v57 = vpop.f32.mrf.mxu1 }
 0x3d4   : > { %v2284_v46 = vpop.f32.mrf.mxu0  ;;  %13195 = vmatmul.mubr.msk.bf16.gmra.mxu0 %vm234_vm7, %v3386_v42  ;;  %6650 = vperm.xlu1 %13869, %v14165_v6   ;;  %v16148_v17 = vpop.permute.xlu1 %4718 }
 0x3d5   : > { %v16095_v13 = vadd.f32 %v2284_v46, %v15892_v40  ;;  %v3360_v5 = vpop.f32.mrf.mxu1  ;;  %11810 = vmatmul.mubr.msk.bf16.vlgmr.msra.gmra.mxu1 %vm11809_vm13, %v14078_v61  ;;  %13198 = vmatprep.mubr.msk.bf16.mxu0 %vm14079_vm6, %v14075_v1  ;;  %vm4752_vm11 = vcmp.eq.s32.totalorder %v16148_v17, %v14319_v48  ;;  %vm4747_vm13 = vcmp.eq.s32.totalorder %v16119_v50, %v14316_v47 }
 0x3d6   : > { %5245 = vmatpush1.bf16.msra.mxu1 %v15643_v33  ;;  %v13094_v51 = vpop.f32.mrf.mxu0  ;;  %11811 = vmatprep.mubr.msk.bf16.mxu1 %vm542_vm4, %v4822_v18  ;;  %v11791_v33 = vsel %vm4746_vm15, 1.0, %v14075_v1 }
 0x3d7   : > { %v3362_v23 = vpop.f32.mrf.mxu1  ;;  %5246 = vmatprep.subr.bf16.mxu1 %v14074_v0  ;;  %6656 = vperm.xlu0 %13870, %v14188_v15   ;;  %v4824_v26 = vpack.c.bf16 %v11791_v33, %v11789_v62 }
 0x3d8   : > { %v2287_v40 = vpop.f32.mrf.mxu0  ;;  %6653 = vperm.xlu1 %13869, %v14172_v9  }
 0x3d9   : > { %v16114_v39 = vadd.f32 %v2287_v40, %v15911_v22  ;;  %v3363_v56 = vpop.f32.mrf.mxu1  ;;  %v4716_v22 = vpop.permute.xlu0 %4715 }
 0x3da   : > { %v3387_v55 = vpack.c.bf16 %v3363_v56, %v3360_v5  ;;  %v13095_v63 = vpop.f32.mrf.mxu0  ;;  %5247 = vmatpush1.bf16.msra.mxu1 %v15660_v44  ;;  %vm4750_vm5 = vcmp.eq.s32.totalorder %v4716_v22, %v14319_v48  ;;  %v11793_v5 = vsel %vm4748_vm3, 1.0, %v14075_v1  ;;  %vm4749_vm14 = vcmp.eq.s32.totalorder %v4716_v22, %v14316_v47 }
 0x3db   : > { %v3365_v42 = vpop.f32.mrf.mxu1  ;;  %5248 = vmatprep.subr.bf16.mxu1 %v14074_v0  ;;  %6662 = vperm.xlu0 %13870, %v14203_v20   ;;  %v11795_v51 = vsel %vm4750_vm5, 1.0, %v14075_v1  ;;  %vm11818_vm15 = vmpackc.low %vm4749_vm14, %vm4747_vm13 }
 0x3dc   : > { %v2292_v59 = vpop.f32.mrf.mxu0  ;;  %13199 = vmatmul.mubr.msk.bf16.gmra.mxu0 %vm234_vm7, %v3387_v55  ;;  %6659 = vperm.xlu1 %13869, %v14186_v14   ;;  %v4826_v41 = vpack.c.bf16 %v11795_v51, %v11793_v5  ;;  %v4725_v5 = vpop.permute.xlu1 %4724 }
 0x3dd   : > { %v16124_v57 = vadd.f32 %v2292_v59, %v15921_v32  ;;  %v3368_v18 = vpop.f32.mrf.mxu1  ;;  %11813 = vmatmul.mubr.msk.bf16.gmra.mxu1 %vm11812_vm2, %v14078_v61  ;;  %13202 = vmatprep.mubr.msk.bf16.mxu0 %vm14079_vm6, %v14075_v1  ;;  %vm4756_vm0 = vcmp.eq.s32.totalorder %v4725_v5, %v14319_v48  ;;  %vm4751_vm2 = vcmp.eq.s32.totalorder %v16148_v17, %v14316_v47 }
 0x3de   : > { %v13098_v44 = vpop.f32.mrf.mxu0  ;;  %11814 = vmatprep.mubr.msk.bf16.mxu1 %vm542_vm4, %v4824_v26  ;;  %5249 = vmatpush1.bf16.msra.mxu1 %v15686_v27  ;;  %v11797_v26 = vsel %vm4752_vm11, 1.0, %v14075_v1 }
 0x3df   : > { %v3370_v46 = vpop.f32.mrf.mxu1  ;;  %5250 = vmatprep.subr.bf16.mxu1 %v14074_v0  ;;  %6668 = vperm.xlu0 %13870, %v14216_v25  }
 0x3e0   : > { %v2295_v32 = vpop.f32.mrf.mxu0  ;;  %6665 = vperm.xlu1 %13869, %v14201_v19  }
 0x3e1   : > { %v16143_v23 = vadd.f32 %v2295_v32, %v15940_v16  ;;  %v3371_v27 = vpop.f32.mrf.mxu1  ;;  %v4722_v16 = vpop.permute.xlu0 %4721 }
 0x3e2   : > { %v3388_v40 = vpack.c.bf16 %v3371_v27, %v3368_v18  ;;  %v13099_v62 = vpop.f32.mrf.mxu0  ;;  %5251 = vmatpush1.bf16.msra.mxu1 %v15702_v38  ;;  %vm4754_vm12 = vcmp.eq.s32.totalorder %v4722_v16, %v14319_v48  ;;  %vm4753_vm3 = vcmp.eq.s32.totalorder %v4722_v16, %v14316_v47  ;;  %v13913_v16 = vld [vmem:[%s19706_s3 + $0x48] sm:$0xff]  }
 0x3e3   : > { %v3373_v33 = vpop.f32.mrf.mxu1  ;;  %5252 = vmatprep.subr.bf16.mxu1 %v14074_v0  ;;  %6674 = vperm.xlu0 %13870, %v14230_v31   ;;  %v11799_v59 = vsel %vm4754_vm12, 1.0, %v14075_v1  ;;  %v11801_v62 = vsel %vm4756_vm0, 1.0, %v14075_v1  ;;  %vm11821_vm5 = vmpackc.low %vm4753_vm3, %vm4751_vm2 }
 0x3e4   : > { %v2300_v56 = vpop.f32.mrf.mxu0  ;;  %13203 = vmatmul.mubr.msk.bf16.gmra.mxu0 %vm234_vm7, %v3388_v40  ;;  %6671 = vperm.xlu1 %13869, %v14214_v24   ;;  %v4828_v50 = vpack.c.bf16 %v11799_v59, %v11797_v26 }
 0x3e5   : > { %v16153_v55 = vadd.f32 %v2300_v56, %v15950_v2  ;;  %v3376_v63 = vpop.f32.mrf.mxu1  ;;  %11816 = vmatmul.mubr.msk.bf16.gmra.mxu1 %vm11815_vm10, %v14078_v61  ;;  %13206 = vmatprep.mubr.msk.bf16.mxu0 %vm14079_vm6, %v14075_v1  ;;  %v4728_v22 = vpop.permute.xlu0 %4727  ;;  %vm4755_vm10 = vcmp.eq.s32.totalorder %v4725_v5, %v14316_v47 }
 0x3e6   : > { %v13102_v38 = vpop.f32.mrf.mxu0  ;;  %11817 = vmatprep.mubr.msk.bf16.mxu1 %vm542_vm4, %v4826_v41  ;;  %5253 = vmatpush1.bf16.msra.mxu1 %v15728_v12  ;;  %vm4758_vm1 = vcmp.eq.s32.totalorder %v4728_v22, %v14319_v48  ;;  %vm4757_vm11 = vcmp.eq.s32.totalorder %v4728_v22, %v14316_v47 }
 0x3e7   : > { %v3378_v42 = vpop.f32.mrf.mxu1  ;;  %5254 = vmatprep.subr.bf16.mxu1 %v14074_v0  ;;  %6680 = vperm.xlu0 %13870, %v14242_v35   ;;  %v11803_v33 = vsel %vm4758_vm1, 1.0, %v14075_v1  ;;  %vm11824_vm12 = vmpackc.low %vm4757_vm11, %vm4755_vm10 }
 0x3e8   : > { %v2303_v2 = vpop.f32.mrf.mxu0  ;;  %6677 = vperm.xlu1 %13869, %v14228_v30  }
 0x3e9   : > { %v16172_v18 = vadd.f32 %v2303_v2, %v15969_v58  ;;  %v3379_v12 = vpop.f32.mrf.mxu1  ;;  %v16200_v42 = vpop.permute.xlu0 %4733 }
 0x3ea   : > { %v3389_v44 = vpack.c.bf16 %v3379_v12, %v3376_v63  ;;  %v13103_v46 = vpop.f32.mrf.mxu0  ;;  %5255 = vmatpush1.bf16.msra.mxu1 %v15744_v53  ;;  %v16197_v63 = vpop.permute.xlu1 %4730  ;;  %vm4762_vm9 = vcmp.eq.s32.totalorder %v16200_v42, %v14319_v48  ;;  %vm4761_vm0 = vcmp.eq.s32.totalorder %v16200_v42, %v14316_v47 }
 0x3eb   : > { %v3381_v32 = vpop.f32.mrf.mxu1  ;;  %5256 = vmatprep.subr.bf16.mxu1 %v14074_v0  ;;  %vm4760_vm8 = vcmp.eq.s32.totalorder %v16197_v63, %v14319_v48  ;;  %v11807_v46 = vsel %vm4762_vm9, 1.0, %v14075_v1 }
 0x3ec   : > { %v2308_v51 = vpop.f32.mrf.mxu0  ;;  %13207 = vmatmul.mubr.msk.bf16.gmra.mxu0 %vm234_vm7, %v3389_v44  ;;  %6683 = vperm.xlu1 %13869, %v14240_v34   ;;  %v11805_v44 = vsel %vm4760_vm8, 1.0, %v14075_v1 }
 0x3ed   : > { %v16179_v58 = vadd.f32 %v2308_v51, %v15979_v52  ;;  %v3718_v27 = vpop.f32.mrf.mxu1  ;;  %11819 = vmatmul.mubr.msk.bf16.gmra.mxu1 %vm11818_vm15, %v14078_v61  ;;  %13212 = vmatprep.mubr.msk.bf16.mxu0 %vm14079_vm6, %v14075_v1  ;;  %v4832_v22 = vpack.c.bf16 %v11807_v46, %v11805_v44  ;;  %vm4759_vm15 = vcmp.eq.s32.totalorder %v16197_v63, %v14316_v47 }
 0x3ee   : > { %v13106_v53 = vpop.f32.mrf.mxu0  ;;  %11820 = vmatprep.mubr.msk.bf16.mxu1 %vm542_vm4, %v4828_v50  ;;  %5257 = vmatpush1.bf16.msra.mxu1 %v15763_v28  ;;  %v16228_v32 = vpop.permute.xlu1 %5084  ;;  %vm11827_vm1 = vmpackc.low %vm4761_vm0, %vm4759_vm15 }
 0x3ef   : > { %v3720_v40 = vpop.f32.mrf.mxu1  ;;  %5258 = vmatprep.subr.bf16.mxu1 %v14074_v0  ;;  %v5088_v53 = vpop.permute.xlu0 %5087  ;;  %vm5126_vm13 = vcmp.eq.s32.totalorder %v16228_v32, %v14319_v48 }
 0x3f0   : > { %v2311_v52 = vpop.f32.mrf.mxu0  ;;  %vm5128_vm14 = vcmp.eq.s32.totalorder %v5088_v53, %v14319_v48  ;;  %vm5127_vm8 = vcmp.eq.s32.totalorder %v5088_v53, %v14316_v47 }
 0x3f1   : > { %v16195_v41 = vadd.f32 %v2311_v52, %v15997_v21  ;;  %v3721_v56 = vpop.f32.mrf.mxu1  ;;  %v4830_v21 = vpack.c.bf16 %v11803_v33, %v11801_v62  ;;  %v11840_v62 = vsel %vm5126_vm13, 1.0, %v14075_v1 }
 0x3f2   : > { %v3773_v28 = vpack.c.bf16 %v3721_v56, %v3718_v27  ;;  %v13107_v38 = vpop.f32.mrf.mxu0  ;;  %5259 = vmatpush1.bf16.msra.mxu1 %v15779_v36  ;;  %v16250_v33 = vpop.permute.xlu1 %5090  ;;  %v11842_v56 = vsel %vm5128_vm14, 1.0, %v14075_v1 }
 0x3f3   : > { %v3723_v2 = vpop.f32.mrf.mxu1  ;;  %5266 = vmatprep.subr.bf16.mxu1 %v14074_v0  ;;  %vm5130_vm2 = vcmp.eq.s32.totalorder %v16250_v33, %v14319_v48  ;;  %v16288_v53 = vpop.permute.xlu0 %5096 }
 0x3f4   : > { %v2316_v26 = vpop.f32.mrf.mxu0  ;;  %13213 = vmatmul.mubr.msk.bf16.vlgmr.msra.gmra.mxu0 %vm234_vm7, %v3773_v28  ;;  %v5210_v2 = vpack.c.bf16 %v11842_v56, %v11840_v62  ;;  %vm5134_vm11 = vcmp.eq.s32.totalorder %v16288_v53, %v14319_v48 }
 0x3f5   : > { %v16211_v59 = vadd.f32 %v2316_v26, %v16013_v43  ;;  %v3726_v36 = vpop.f32.mrf.mxu1  ;;  %11822 = vmatmul.mubr.msk.bf16.gmra.mxu1 %vm11821_vm5, %v14078_v61  ;;  %13216 = vmatprep.mubr.msk.bf16.mxu0 %vm14079_vm6, %v14075_v1  ;;  %vm5125_vm5 = vcmp.eq.s32.totalorder %v16228_v32, %v14316_v47 }
 0x3f6   : > { %v13110_v17 = vpop.f32.mrf.mxu0  ;;  %11823 = vmatprep.mubr.msk.bf16.mxu1 %vm542_vm4, %v4830_v21  ;;  %5267 = vmatpush2.bf16.msra.mxu1 %v15804_v45  ;;  %v5094_v63 = vpop.permute.xlu1 %5093  ;;  %vm11868_vm9 = vmpackc.low %vm5127_vm8, %vm5125_vm5 }
 0x3f7   : > { %v3728_v12 = vpop.f32.mrf.mxu1  ;;  %5268 = vmatprep.subr.bf16.mxu1 %v14074_v0  ;;  %13241 = vmatpush3.bf16.msra.mxu0 %v13913_v16  ;;  %vm5132_vm3 = vcmp.eq.s32.totalorder %v5094_v63, %v14319_v48  ;;  %vm5131_vm13 = vcmp.eq.s32.totalorder %v5094_v63, %v14316_v47 }
 0x3f8   : > { %v2319_v43 = vpop.f32.mrf.mxu0  ;;  %13270 = vmatprep.subr.bf16.mxu0 %v14075_v1  ;;  %v11844_v12 = vsel %vm5130_vm2, 1.0, %v14075_v1  ;;  %vm5133_vm2 = vcmp.eq.s32.totalorder %v16288_v53, %v14316_v47 }
 0x3f9   : > { %v16231_v50 = vadd.f32 %v2319_v43, %v16032_v49  ;;  %v3729_v45 = vpop.f32.mrf.mxu1  ;;  %v11846_v43 = vsel %vm5132_vm3, 1.0, %v14075_v1 }
 0x3fa   : > { %v3774_v51 = vpack.c.bf16 %v3729_v45, %v3726_v36  ;;  %v13111_v27 = vpop.f32.mrf.mxu0  ;;  %5269 = vmatpush2.bf16.msra.mxu1 %v15820_v29  ;;  %v16284_v32 = vpop.permute.xlu1 %5099 }
 0x3fb   : > { %v3731_v40 = vpop.f32.mrf.mxu1  ;;  %5270 = vmatprep.subr.bf16.mxu1 %v14074_v0  ;;  %v14094_v27 = vmov 17   ;;  %vm5136_vm10 = vcmp.eq.s32.totalorder %v16284_v32, %v14319_v48 }
 0x3fc   : > { %v2324_v49 = vpop.f32.mrf.mxu0  ;;  %13217 = vmatmul.mubr.msk.bf16.gmra.mxu0 %vm234_vm7, %v3774_v51  ;;  %13872 = vset.pattern.permute.xlu1 %v14094_v27  ;;  %v5212_v40 = vpack.c.bf16 %v11846_v43, %v11844_v12  ;;  %v11850_v56 = vsel %vm5136_vm10, 1.0, %v14075_v1 }
 0x3fd   : > { %v16242_v52 = vadd.f32 %v2324_v49, %v16046_v54  ;;  %v3734_v29 = vpop.f32.mrf.mxu1  ;;  %11825 = vmatmul.mubr.msk.bf16.gmra.mxu1 %vm11824_vm12, %v14078_v61  ;;  %13220 = vmatprep.mubr.msk.bf16.mxu0 %vm14079_vm6, %v14075_v1  ;;  %vm5129_vm12 = vcmp.eq.s32.totalorder %v16250_v33, %v14316_v47 }
 0x3fe   : > { %v13114_v5 = vpop.f32.mrf.mxu0  ;;  %11826 = vmatprep.mubr.msk.bf16.mxu1 %vm542_vm4, %v4832_v22  ;;  %5271 = vmatpush2.bf16.msra.mxu1 %v15842_v37  ;;  %vm11871_vm14 = vmpackc.low %vm5131_vm13, %vm5129_vm12 }
 0x3ff   : > { %v3736_v28 = vpop.f32.mrf.mxu1  ;;  %5272 = vmatprep.subr.bf16.mxu1 %v14074_v0  ;;  %13871 = vset.pattern.permute.xlu0 %v14094_v27 }
 0x400   : > { %v2327_v54 = vpop.f32.mrf.mxu0  ;;  %7037 = vperm.xlu1 %13872, %v14174_v10   ;;  %7034 = vperm.xlu0 %13871, %v14167_v7   ;;  %v11848_v28 = vsel %vm5134_vm11, 1.0, %v14075_v1 }
 0x401   : > { %v16259_v38 = vadd.f32 %v2327_v54, %v16061_v8  ;;  %v3737_v37 = vpop.f32.mrf.mxu1 }
 0x402   : > { %v3775_v16 = vpack.c.bf16 %v3737_v37, %v3734_v29  ;;  %v13115_v21 = vpop.f32.mrf.mxu0  ;;  %5273 = vmatpush2.bf16.msra.mxu1 %v15858_v11  ;;  %v16301_v29 = vld [vmem:[%s14182_s9 + $0x38] sm:$0xff]  }
 0x403   : > { %v3739_v26 = vpop.f32.mrf.mxu1  ;;  %5274 = vmatprep.subr.bf16.mxu1 %v14074_v0  ;;  %v16317_v21 = vld [vmem:[%s14182_s9 + $0x30] sm:$0xff]  }
 0x404   : > { %v2332_v36 = vpop.f32.mrf.mxu0  ;;  %13221 = vmatmul.mubr.msk.bf16.gmra.mxu0 %vm234_vm7, %v3775_v16  ;;  %7040 = vperm.xlu1 %13872, %v14165_v6  }
 0x405   : > { %v16265_v17 = vadd.f32 %v2332_v36, %v16069_v60  ;;  %v3742_v42 = vpop.f32.mrf.mxu1  ;;  %11828 = vmatmul.mubr.msk.bf16.gmra.mxu1 %vm11827_vm1, %v14078_v61  ;;  %13224 = vmatprep.mubr.msk.bf16.mxu0 %vm14079_vm6, %v14075_v1  ;;  %v5214_v36 = vpack.c.bf16 %v11850_v56, %v11848_v28  ;;  %vm5135_vm1 = vcmp.eq.s32.totalorder %v16284_v32, %v14316_v47  ;;  %v16385_v56 = vld [vmem:[%s14182_s9 + $0x18] sm:$0xff]  }
 0x406   : > { %v13118_v11 = vpop.f32.mrf.mxu0  ;;  %5275 = vmatpush2.bf16.msra.mxu1 %v15873_v4  ;;  %11867 = vmatprep.mubr.msk.bf16.mxu1 %vm542_vm4, %v5210_v2  ;;  %vm11874_vm3 = vmpackc.low %vm5135_vm1, %vm5133_vm2 }
 0x407   : > { %v3744_v8 = vpop.f32.mrf.mxu1  ;;  %5634 = vmatprep.subr.bf16.mxu1 %v14074_v0  ;;  %7043 = vperm.xlu0 %13871, %v14172_v9  }
 0x408   : > { %v2335_v60 = vpop.f32.mrf.mxu0  ;;  %7046 = vperm.xlu1 %13872, %v14188_v15  }
 0x409   : > { %v16282_v44 = vadd.f32 %v2335_v60, %v16087_v3  ;;  %v3745_v46 = vpop.f32.mrf.mxu1  ;;  %v16343_v60 = vld [vmem:[%s14182_s9 + $0x28] sm:$0xff]  }
 0x40a   : > { %v3776_v4 = vpack.c.bf16 %v3745_v46, %v3742_v42  ;;  %v13119_v45 = vpop.f32.mrf.mxu0  ;;  %v16329_v42 = vpop.permute.xlu0 %5102 }
 0x40b   : > { %v3747_v51 = vpop.f32.mrf.mxu1  ;;  %vm5138_vm0 = vcmp.eq.s32.totalorder %v16329_v42, %v14319_v48  ;;  %7049 = vperm.xlu0 %13871, %v14186_v14   ;;  %vm5137_vm10 = vcmp.eq.s32.totalorder %v16329_v42, %v14316_v47 }
 0x40c   : > { %v2674_v22 = vpop.f32.mrf.mxu0  ;;  %13225 = vmatmul.mubr.msk.bf16.gmra.mxu0 %vm234_vm7, %v3776_v4  ;;  %7052 = vperm.xlu1 %13872, %v14203_v20   ;;  %v11852_v46 = vsel %vm5138_vm0, 1.0, %v14075_v1 }
 0x40d   : > { %v16291_v3 = vadd.f32 %v2674_v22, %v16095_v13  ;;  %v3750_v49 = vpop.f32.mrf.mxu1  ;;  %11869 = vmatmul.mubr.msk.bf16.vlgmr.msra.gmra.mxu1 %vm11868_vm9, %v14078_v61  ;;  %13228 = vmatprep.mubr.msk.bf16.mxu0 %vm14079_vm6, %v14075_v1 }
 0x40e   : > { %5635 = vmatpush1.bf16.msra.mxu1 %v16301_v29  ;;  %v13124_v5 = vpop.f32.mrf.mxu0  ;;  %11870 = vmatprep.mubr.msk.bf16.mxu1 %vm542_vm4, %v5212_v40  ;;  %v16359_v40 = vld [vmem:[%s14182_s9 + $0x20] sm:$0xff]  }
 0x40f   : > { %v3752_v13 = vpop.f32.mrf.mxu1  ;;  %5636 = vmatprep.subr.bf16.mxu1 %v14074_v0  ;;  %7055 = vperm.xlu0 %13871, %v14201_v19   ;;  %v16371_v5 = vpop.permute.xlu0 %5108 }
 0x410   : > { %v2677_v62 = vpop.f32.mrf.mxu0  ;;  %7058 = vperm.xlu1 %13872, %v14216_v25   ;;  %vm5142_vm8 = vcmp.eq.s32.totalorder %v16371_v5, %v14319_v48 }
 0x411   : > { %v16314_v54 = vadd.f32 %v2677_v62, %v16114_v39  ;;  %v3753_v37 = vpop.f32.mrf.mxu1  ;;  %v16325_v39 = vpop.permute.xlu1 %5105 }
 0x412   : > { %v3777_v2 = vpack.c.bf16 %v3753_v37, %v3750_v49  ;;  %v13125_v16 = vpop.f32.mrf.mxu0  ;;  %5637 = vmatpush1.bf16.msra.mxu1 %v16317_v21  ;;  %vm5140_vm15 = vcmp.eq.s32.totalorder %v16325_v39, %v14319_v48  ;;  %vm5139_vm9 = vcmp.eq.s32.totalorder %v16325_v39, %v14316_v47 }
 0x413   : > { %v3755_v26 = vpop.f32.mrf.mxu1  ;;  %5638 = vmatprep.subr.bf16.mxu1 %v14074_v0  ;;  %v11854_v43 = vsel %vm5140_vm15, 1.0, %v14075_v1  ;;  %7061 = vperm.xlu0 %13871, %v14214_v24   ;;  %vm11877_vm11 = vmpackc.low %vm5139_vm9, %vm5137_vm10  ;;  %vm5141_vm15 = vcmp.eq.s32.totalorder %v16371_v5, %v14316_v47 }
 0x414   : > { %v2682_v63 = vpop.f32.mrf.mxu0  ;;  %13229 = vmatmul.mubr.msk.bf16.gmra.mxu0 %vm234_vm7, %v3777_v2  ;;  %v5216_v53 = vpack.c.bf16 %v11854_v43, %v11852_v46  ;;  %7064 = vperm.xlu1 %13872, %v14230_v31   ;;  %v11856_v2 = vsel %vm5142_vm8, 1.0, %v14075_v1 }
 0x415   : > { %v16332_v11 = vadd.f32 %v2682_v63, %v16124_v57  ;;  %v3758_v8 = vpop.f32.mrf.mxu1  ;;  %11872 = vmatmul.mubr.msk.bf16.gmra.mxu1 %vm11871_vm14, %v14078_v61  ;;  %13232 = vmatprep.mubr.msk.bf16.mxu0 %vm14079_vm6, %v14075_v1 }
 0x416   : > { %v13128_v33 = vpop.f32.mrf.mxu0  ;;  %11873 = vmatprep.mubr.msk.bf16.mxu1 %vm542_vm4, %v5214_v36  ;;  %5639 = vmatpush1.bf16.msra.mxu1 %v16343_v60 }
 0x417   : > { %v3760_v57 = vpop.f32.mrf.mxu1  ;;  %5640 = vmatprep.subr.bf16.mxu1 %v14074_v0  ;;  %7067 = vperm.xlu0 %13871, %v14228_v30  }
 0x418   : > { %v2685_v12 = vpop.f32.mrf.mxu0  ;;  %7070 = vperm.xlu1 %13872, %v14242_v35  }
 0x419   : > { %v16356_v4 = vadd.f32 %v2685_v12, %v16143_v23  ;;  %v3761_v45 = vpop.f32.mrf.mxu1  ;;  %v16367_v23 = vpop.permute.xlu1 %5111 }
 0x41a   : > { %v3778_v51 = vpack.c.bf16 %v3761_v45, %v3758_v8  ;;  %v13129_v27 = vpop.f32.mrf.mxu0  ;;  %5641 = vmatpush1.bf16.msra.mxu1 %v16359_v40  ;;  %vm5144_vm5 = vcmp.eq.s32.totalorder %v16367_v23, %v14319_v48  ;;  %v16401_v8 = vld [vmem:[%s14182_s9 + $0x10] sm:$0xff]   ;;  %v16413_v12 = vpop.permute.xlu0 %5114  ;;  %v16427_v45 = vld [vmem:[%s14182_s9 + $0x8] sm:$0xff]   ;;  %vm5143_vm14 = vcmp.eq.s32.totalorder %v16367_v23, %v14316_v47 }
 0x41b   : > { %v3763_v22 = vpop.f32.mrf.mxu1  ;;  %5642 = vmatprep.subr.bf16.mxu1 %v14074_v0  ;;  %v11858_v37 = vsel %vm5144_vm5, 1.0, %v14075_v1  ;;  %vm5146_vm13 = vcmp.eq.s32.totalorder %v16413_v12, %v14319_v48  ;;  %7073 = vperm.xlu0 %13871, %v14240_v34   ;;  %vm11880_vm0 = vmpackc.low %vm5143_vm14, %vm5141_vm15  ;;  %vm5145_vm5 = vcmp.eq.s32.totalorder %v16413_v12, %v14316_v47 }
 0x41c   : > { %v2690_v49 = vpop.f32.mrf.mxu0  ;;  %13233 = vmatmul.mubr.msk.bf16.gmra.mxu0 %vm234_vm7, %v3778_v51  ;;  %v5218_v42 = vpack.c.bf16 %v11858_v37, %v11856_v2  ;;  %v11860_v22 = vsel %vm5146_vm13, 1.0, %v14075_v1 }
 0x41d   : > { %v16374_v13 = vadd.f32 %v2690_v49, %v16153_v55  ;;  %v3766_v62 = vpop.f32.mrf.mxu1  ;;  %11875 = vmatmul.mubr.msk.bf16.gmra.mxu1 %vm11874_vm3, %v14078_v61  ;;  %13236 = vmatprep.mubr.msk.bf16.mxu0 %vm14079_vm6, %v14075_v1 }
 0x41e   : > { %v13132_v32 = vpop.f32.mrf.mxu0  ;;  %11876 = vmatprep.mubr.msk.bf16.mxu1 %vm542_vm4, %v5216_v53  ;;  %5643 = vmatpush1.bf16.msra.mxu1 %v16385_v56  ;;  %v16447_v37 = vpop.permute.xlu0 %5120 }
 0x41f   : > { %v3768_v55 = vpop.f32.mrf.mxu1  ;;  %5644 = vmatprep.subr.bf16.mxu1 %v14074_v0  ;;  %vm5150_vm2 = vcmp.eq.s32.totalorder %v16447_v37, %v14319_v48 }
 0x420   : > { %v2693_v28 = vpop.f32.mrf.mxu0 }
 0x421   : > { %v16398_v16 = vadd.f32 %v2693_v28, %v16172_v18  ;;  %v3769_v26 = vpop.f32.mrf.mxu1  ;;  %v16409_v18 = vpop.permute.xlu1 %5117  ;;  %v16444_v28 = vld [vmem:[%s14182_s9] sm:$0xff]  }
 0x422   : > { %v3779_v36 = vpack.c.bf16 %v3769_v26, %v3766_v62  ;;  %v13133_v63 = vpop.f32.mrf.mxu0  ;;  %5645 = vmatpush1.bf16.msra.mxu1 %v16401_v8  ;;  %vm5148_vm12 = vcmp.eq.s32.totalorder %v16409_v18, %v14319_v48  ;;  %vm5147_vm3 = vcmp.eq.s32.totalorder %v16409_v18, %v14316_v47 }
 0x423   : > { %v3771_v33 = vpop.f32.mrf.mxu1  ;;  %5646 = vmatprep.subr.bf16.mxu1 %v14074_v0  ;;  %v11862_v27 = vsel %vm5148_vm12, 1.0, %v14075_v1  ;;  %vm11883_vm8 = vmpackc.low %vm5147_vm3, %vm5145_vm5  ;;  %vm5149_vm12 = vcmp.eq.s32.totalorder %v16447_v37, %v14316_v47 }
 0x424   : > { %v2698_v57 = vpop.f32.mrf.mxu0  ;;  %13237 = vmatmul.mubr.msk.bf16.gmra.mxu0 %vm234_vm7, %v3779_v36  ;;  %v5220_v2 = vpack.c.bf16 %v11862_v27, %v11860_v22  ;;  %v16469_v33 = vld [vmem:[%s14182_s9 + $0x60] sm:$0xff]  }
 0x425   : > { %v16416_v43 = vadd.f32 %v2698_v57, %v16179_v58  ;;  %v4108_v46 = vpop.f32.mrf.mxu1  ;;  %11878 = vmatmul.mubr.msk.bf16.gmra.mxu1 %vm11877_vm11, %v14078_v61  ;;  %13242 = vmatprep.mubr.msk.bf16.mxu0 %vm14079_vm6, %v14075_v1  ;;  %v16441_v62 = vpop.permute.xlu1 %5123 }
 0x426   : > { %v13136_v39 = vpop.f32.mrf.mxu0  ;;  %11879 = vmatprep.mubr.msk.bf16.mxu1 %vm542_vm4, %v5218_v42  ;;  %5647 = vmatpush1.bf16.msra.mxu1 %v16427_v45  ;;  %vm5152_vm1 = vcmp.eq.s32.totalorder %v16441_v62, %v14319_v48  ;;  %vm5151_vm11 = vcmp.eq.s32.totalorder %v16441_v62, %v14316_v47 }
 0x427   : > { %v4110_v58 = vpop.f32.mrf.mxu1  ;;  %5648 = vmatprep.subr.bf16.mxu1 %v14074_v0  ;;  %v11866_v57 = vsel %vm5152_vm1, 1.0, %v14075_v1  ;;  %vm11886_vm13 = vmpackc.low %vm5151_vm11, %vm5149_vm12 }
 0x428   : > { %v2701_v51 = vpop.f32.mrf.mxu0 }
 0x429   : > { %v16439_v53 = vadd.f32 %v2701_v51, %v16195_v41  ;;  %v4111_v49 = vpop.f32.mrf.mxu1  ;;  %v13914_v41 = vld [vmem:[%s19706_s3 + $0x50] sm:$0xff]   ;;  %v16483_v51 = vpop.permute.xlu1 %5477 }
 0x42a   : > { %v4163_v32 = vpack.c.bf16 %v4111_v49, %v4108_v46  ;;  %v13137_v55 = vpop.f32.mrf.mxu0  ;;  %5649 = vmatpush1.bf16.msra.mxu1 %v16444_v28  ;;  %v11864_v46 = vsel %vm5150_vm2, 1.0, %v14075_v1  ;;  %v16486_v49 = vld [vmem:[%s14182_s9 + $0x58] sm:$0xff]   ;;  %vm5518_vm9 = vcmp.eq.s32.totalorder %v16483_v51, %v14319_v48 }
 0x42b   : > { %v4113_v5 = vpop.f32.mrf.mxu1  ;;  %5656 = vmatprep.subr.bf16.mxu1 %v14074_v0 }
 0x42c   : > { %v2706_v26 = vpop.f32.mrf.mxu0  ;;  %13243 = vmatmul.mubr.msk.bf16.vlgmr.msra.gmra.mxu0 %vm234_vm7, %v4163_v32  ;;  %v16489_v32 = vpop.permute.xlu0 %5474 }
 0x42d   : > { %v16458_v36 = vadd.f32 %v2706_v26, %v16211_v59  ;;  %v4116_v63 = vpop.f32.mrf.mxu1  ;;  %11881 = vmatmul.mubr.msk.bf16.gmra.mxu1 %vm11880_vm0, %v14078_v61  ;;  %13246 = vmatprep.mubr.msk.bf16.mxu0 %vm14079_vm6, %v14075_v1  ;;  %vm5516_vm10 = vcmp.eq.s32.totalorder %v16489_v32, %v14319_v48  ;;  %v11901_v26 = vsel %vm5518_vm9, 1.0, %v14075_v1  ;;  %v16526_v62 = vpop.permute.xlu1 %5480  ;;  %vm5517_vm0 = vcmp.eq.s32.totalorder %v16483_v51, %v14316_v47 }
 0x42e   : > { %v13140_v23 = vpop.f32.mrf.mxu0  ;;  %11882 = vmatprep.mubr.msk.bf16.mxu1 %vm542_vm4, %v5220_v2  ;;  %5657 = vmatpush2.bf16.msra.mxu1 %v16469_v33  ;;  %v16508_v2 = vld [vmem:[%s14182_s9 + $0x50] sm:$0xff]   ;;  %vm5520_vm14 = vcmp.eq.s32.totalorder %v16526_v62, %v14319_v48  ;;  %vm5515_vm1 = vcmp.eq.s32.totalorder %v16489_v32, %v14316_v47 }
 0x42f   : > { %v4118_v59 = vpop.f32.mrf.mxu1  ;;  %5658 = vmatprep.subr.bf16.mxu1 %v14074_v0  ;;  %13271 = vmatpush3.bf16.msra.mxu0 %v13914_v41  ;;  %vm11927_vm2 = vmpackc.low %vm5517_vm0, %vm5515_vm1 }
 0x430   : > { %v2709_v42 = vpop.f32.mrf.mxu0  ;;  %13300 = vmatprep.subr.bf16.mxu0 %v14075_v1 }
 0x431   : > { %v16481_v39 = vadd.f32 %v2709_v42, %v16231_v50  ;;  %v4119_v58 = vpop.f32.mrf.mxu1  ;;  %v5222_v50 = vpack.c.bf16 %v11866_v57, %v11864_v46 }
 0x432   : > { %v4164_v27 = vpack.c.bf16 %v4119_v58, %v4116_v63  ;;  %v13141_v22 = vpop.f32.mrf.mxu0  ;;  %5659 = vmatpush2.bf16.msra.mxu1 %v16486_v49  ;;  %v11899_v63 = vsel %vm5516_vm10, 1.0, %v14075_v1 }
 0x433   : > { %v4121_v12 = vpop.f32.mrf.mxu1  ;;  %5660 = vmatprep.subr.bf16.mxu1 %v14074_v0  ;;  %v5600_v57 = vpack.c.bf16 %v11901_v26, %v11899_v63  ;;  %v11903_v63 = vsel %vm5520_vm14, 1.0, %v14075_v1 }
 0x434   : > { %v2714_v55 = vpop.f32.mrf.mxu0  ;;  %13247 = vmatmul.mubr.msk.bf16.gmra.mxu0 %vm234_vm7, %v4164_v27  ;;  %v16522_v27 = vld [vmem:[%s14182_s9 + $0x48] sm:$0xff]  }
 0x435   : > { %v16501_v5 = vadd.f32 %v2714_v55, %v16242_v52  ;;  %v4124_v41 = vpop.f32.mrf.mxu1  ;;  %11884 = vmatmul.mubr.msk.bf16.gmra.mxu1 %vm11883_vm8, %v14078_v61  ;;  %13250 = vmatprep.mubr.msk.bf16.mxu0 %vm14079_vm6, %v14075_v1  ;;  %vm5519_vm8 = vcmp.eq.s32.totalorder %v16526_v62, %v14316_v47 }
 0x436   : > { %v13144_v18 = vpop.f32.mrf.mxu0  ;;  %11885 = vmatprep.mubr.msk.bf16.mxu1 %vm542_vm4, %v5222_v50  ;;  %5661 = vmatpush2.bf16.msra.mxu1 %v16508_v2 }
 0x437   : > { %v4126_v52 = vpop.f32.mrf.mxu1  ;;  %5662 = vmatprep.subr.bf16.mxu1 %v14074_v0  ;;  %v14095_v18 = vmov 18  }
 0x438   : > { %v2717_v23 = vpop.f32.mrf.mxu0  ;;  %13873 = vset.pattern.permute.xlu1 %v14095_v18  ;;  %13874 = vset.pattern.permute.xlu0 %v14095_v18 }
 0x439   : > { %v16519_v59 = vadd.f32 %v2717_v23, %v16259_v38  ;;  %v4127_v42 = vpop.f32.mrf.mxu1  ;;  %v5484_v38 = vpop.permute.xlu0 %5483  ;;  %7424 = vperm.xlu1 %13873, %v14167_v7   ;;  %7427 = vperm.xlu0 %13874, %v14174_v10  }
 0x43a   : > { %v4165_v46 = vpack.c.bf16 %v4127_v42, %v4124_v41  ;;  %v13145_v58 = vpop.f32.mrf.mxu0  ;;  %5663 = vmatpush2.bf16.msra.mxu1 %v16522_v27  ;;  %vm5522_vm15 = vcmp.eq.s32.totalorder %v5484_v38, %v14319_v48  ;;  %v16539_v41 = vld [vmem:[%s14182_s9 + $0x40] sm:$0xff]   ;;  %vm5521_vm9 = vcmp.eq.s32.totalorder %v5484_v38, %v14316_v47 }
 0x43b   : > { %v4129_v22 = vpop.f32.mrf.mxu1  ;;  %5664 = vmatprep.subr.bf16.mxu1 %v14074_v0  ;;  %v11905_v52 = vsel %vm5522_vm15, 1.0, %v14075_v1  ;;  %vm11930_vm10 = vmpackc.low %vm5521_vm9, %vm5519_vm8 }
 0x43c   : > { %v2722_v12 = vpop.f32.mrf.mxu0  ;;  %13251 = vmatmul.mubr.msk.bf16.gmra.mxu0 %vm234_vm7, %v4165_v46  ;;  %v5602_v58 = vpack.c.bf16 %v11905_v52, %v11903_v63  ;;  %v16555_v22 = vpop.permute.xlu1 %5486 }
 0x43d   : > { %v16530_v37 = vadd.f32 %v2722_v12, %v16265_v17  ;;  %v4132_v50 = vpop.f32.mrf.mxu1  ;;  %11887 = vmatmul.mubr.msk.bf16.gmra.mxu1 %vm11886_vm13, %v14078_v61  ;;  %13254 = vmatprep.mubr.msk.bf16.mxu0 %vm14079_vm6, %v14075_v1  ;;  %v5490_v32 = vpop.permute.xlu0 %5489  ;;  %vm5524_vm3 = vcmp.eq.s32.totalorder %v16555_v22, %v14319_v48  ;;  %vm5523_vm13 = vcmp.eq.s32.totalorder %v16555_v22, %v14316_v47 }
 0x43e   : > { %v13148_v55 = vpop.f32.mrf.mxu0  ;;  %5665 = vmatpush2.bf16.msra.mxu1 %v16539_v41  ;;  %11926 = vmatprep.mubr.msk.bf16.mxu1 %vm542_vm4, %v5600_v57  ;;  %vm5526_vm5 = vcmp.eq.s32.totalorder %v5490_v32, %v14319_v48  ;;  %v11907_v18 = vsel %vm5524_vm3, 1.0, %v14075_v1  ;;  %vm5525_vm14 = vcmp.eq.s32.totalorder %v5490_v32, %v14316_v47 }
 0x43f   : > { %v4134_v17 = vpop.f32.mrf.mxu1  ;;  %6024 = vmatprep.subr.bf16.mxu1 %v14074_v0  ;;  %7430 = vperm.xlu1 %13873, %v14165_v6   ;;  %vm11933_vm15 = vmpackc.low %vm5525_vm14, %vm5523_vm13 }
 0x440   : > { %v2725_v26 = vpop.f32.mrf.mxu0  ;;  %7436 = vperm.xlu0 %13874, %v14188_v15   ;;  %v16584_v38 = vpop.permute.xlu1 %5492 }
 0x441   : > { %v16552_v23 = vadd.f32 %v2725_v26, %v16282_v44  ;;  %v4135_v42 = vpop.f32.mrf.mxu1  ;;  %v11909_v26 = vsel %vm5526_vm5, 1.0, %v14075_v1  ;;  %vm5528_vm11 = vcmp.eq.s32.totalorder %v16584_v38, %v14319_v48 }
 0x442   : > { %v4166_v57 = vpack.c.bf16 %v4135_v42, %v4132_v50  ;;  %v13149_v46 = vpop.f32.mrf.mxu0  ;;  %v5604_v62 = vpack.c.bf16 %v11909_v26, %v11907_v18 }
 0x443   : > { %v4137_v51 = vpop.f32.mrf.mxu1  ;;  %7433 = vperm.xlu1 %13873, %v14172_v9  }
 0x444   : > { %v3064_v12 = vpop.f32.mrf.mxu0  ;;  %13255 = vmatmul.mubr.msk.bf16.gmra.mxu0 %vm234_vm7, %v4166_v57  ;;  %7442 = vperm.xlu0 %13874, %v14203_v20   ;;  %v16613_v32 = vpop.permute.xlu1 %5498 }
 0x445   : > { %v16560_v55 = vadd.f32 %v3064_v12, %v16291_v3  ;;  %v4140_v44 = vpop.f32.mrf.mxu1  ;;  %11928 = vmatmul.mubr.msk.bf16.vlgmr.msra.gmra.mxu1 %vm11927_vm2, %v14078_v61  ;;  %13258 = vmatprep.mubr.msk.bf16.mxu0 %vm14079_vm6, %v14075_v1  ;;  %vm5532_vm0 = vcmp.eq.s32.totalorder %v16613_v32, %v14319_v48  ;;  %vm5527_vm2 = vcmp.eq.s32.totalorder %v16584_v38, %v14316_v47 }
 0x446   : > { %6025 = vmatpush1.bf16.msra.mxu1 %v16301_v29  ;;  %v13154_v50 = vpop.f32.mrf.mxu0  ;;  %11929 = vmatprep.mubr.msk.bf16.mxu1 %vm542_vm4, %v5602_v58 }
 0x447   : > { %v4142_v17 = vpop.f32.mrf.mxu1  ;;  %6026 = vmatprep.subr.bf16.mxu1 %v14074_v0  ;;  %7439 = vperm.xlu1 %13873, %v14186_v14  }
 0x448   : > { %v3067_v3 = vpop.f32.mrf.mxu0  ;;  %7448 = vperm.xlu0 %13874, %v14216_v25   ;;  %v11911_v17 = vsel %vm5528_vm11, 1.0, %v14075_v1 }
 0x449   : > { %v16579_v63 = vadd.f32 %v3067_v3, %v16314_v54  ;;  %v4143_v52 = vpop.f32.mrf.mxu1  ;;  %v5496_v54 = vpop.permute.xlu0 %5495 }
 0x44a   : > { %v4167_v42 = vpack.c.bf16 %v4143_v52, %v4140_v44  ;;  %v13155_v57 = vpop.f32.mrf.mxu0  ;;  %6027 = vmatpush1.bf16.msra.mxu1 %v16317_v21  ;;  %vm5530_vm12 = vcmp.eq.s32.totalorder %v5496_v54, %v14319_v48  ;;  %vm5529_vm3 = vcmp.eq.s32.totalorder %v5496_v54, %v14316_v47 }
 0x44b   : > { %v4145_v46 = vpop.f32.mrf.mxu1  ;;  %6028 = vmatprep.subr.bf16.mxu1 %v14074_v0  ;;  %7445 = vperm.xlu1 %13873, %v14201_v19   ;;  %v11913_v3 = vsel %vm5530_vm12, 1.0, %v14075_v1  ;;  %vm11936_vm5 = vmpackc.low %vm5529_vm3, %vm5527_vm2 }
 0x44c   : > { %v3072_v51 = vpop.f32.mrf.mxu0  ;;  %13259 = vmatmul.mubr.msk.bf16.gmra.mxu0 %vm234_vm7, %v4167_v42  ;;  %7454 = vperm.xlu0 %13874, %v14230_v31   ;;  %v5606_v22 = vpack.c.bf16 %v11913_v3, %v11911_v17 }
 0x44d   : > { %v16589_v58 = vadd.f32 %v3072_v51, %v16332_v11  ;;  %v4148_v12 = vpop.f32.mrf.mxu1  ;;  %11931 = vmatmul.mubr.msk.bf16.gmra.mxu1 %vm11930_vm10, %v14078_v61  ;;  %13262 = vmatprep.mubr.msk.bf16.mxu0 %vm14079_vm6, %v14075_v1  ;;  %vm5531_vm10 = vcmp.eq.s32.totalorder %v16613_v32, %v14316_v47 }
 0x44e   : > { %v13158_v44 = vpop.f32.mrf.mxu0  ;;  %11932 = vmatprep.mubr.msk.bf16.mxu1 %vm542_vm4, %v5604_v62  ;;  %6029 = vmatpush1.bf16.msra.mxu1 %v16343_v60 }
 0x44f   : > { %v4150_v50 = vpop.f32.mrf.mxu1  ;;  %6030 = vmatprep.subr.bf16.mxu1 %v14074_v0  ;;  %7451 = vperm.xlu1 %13873, %v14214_v24  }
 0x450   : > { %v3075_v11 = vpop.f32.mrf.mxu0  ;;  %7460 = vperm.xlu0 %13874, %v14242_v35   ;;  %v11915_v50 = vsel %vm5532_vm0, 1.0, %v14075_v1 }
 0x451   : > { %v16608_v18 = vadd.f32 %v3075_v11, %v16356_v4  ;;  %v4151_v26 = vpop.f32.mrf.mxu1  ;;  %v5502_v4 = vpop.permute.xlu0 %5501 }
 0x452   : > { %v4168_v52 = vpack.c.bf16 %v4151_v26, %v4148_v12  ;;  %v13159_v42 = vpop.f32.mrf.mxu0  ;;  %6031 = vmatpush1.bf16.msra.mxu1 %v16359_v40  ;;  %vm5534_vm1 = vcmp.eq.s32.totalorder %v5502_v4, %v14319_v48  ;;  %vm5533_vm11 = vcmp.eq.s32.totalorder %v5502_v4, %v14316_v47  ;;  %v13915_v4 = vld [vmem:[%s19706_s3 + $0x58] sm:$0xff]  }
 0x453   : > { %v4153_v57 = vpop.f32.mrf.mxu1  ;;  %6032 = vmatprep.subr.bf16.mxu1 %v14074_v0  ;;  %7457 = vperm.xlu1 %13873, %v14228_v30   ;;  %v11917_v11 = vsel %vm5534_vm1, 1.0, %v14075_v1  ;;  %vm11939_vm12 = vmpackc.low %vm5533_vm11, %vm5531_vm10 }
 0x454   : > { %v3080_v46 = vpop.f32.mrf.mxu0  ;;  %13263 = vmatmul.mubr.msk.bf16.gmra.mxu0 %vm234_vm7, %v4168_v52  ;;  %v5608_v38 = vpack.c.bf16 %v11917_v11, %v11915_v50  ;;  %v5505_v57 = vpop.permute.xlu1 %5504 }
 0x455   : > { %v16618_v62 = vadd.f32 %v3080_v46, %v16374_v13  ;;  %v4156_v51 = vpop.f32.mrf.mxu1  ;;  %11934 = vmatmul.mubr.msk.bf16.gmra.mxu1 %vm11933_vm15, %v14078_v61  ;;  %13266 = vmatprep.mubr.msk.bf16.mxu0 %vm14079_vm6, %v14075_v1  ;;  %v5508_v54 = vpop.permute.xlu0 %5507  ;;  %vm5536_vm8 = vcmp.eq.s32.totalorder %v5505_v57, %v14319_v48  ;;  %vm5535_vm15 = vcmp.eq.s32.totalorder %v5505_v57, %v14316_v47 }
 0x456   : > { %v13162_v12 = vpop.f32.mrf.mxu0  ;;  %11935 = vmatprep.mubr.msk.bf16.mxu1 %vm542_vm4, %v5606_v22  ;;  %6033 = vmatpush1.bf16.msra.mxu1 %v16385_v56  ;;  %vm5538_vm9 = vcmp.eq.s32.totalorder %v5508_v54, %v14319_v48  ;;  %vm5537_vm0 = vcmp.eq.s32.totalorder %v5508_v54, %v14316_v47 }
 0x457   : > { %v4158_v44 = vpop.f32.mrf.mxu1  ;;  %6034 = vmatprep.subr.bf16.mxu1 %v14074_v0  ;;  %7463 = vperm.xlu1 %13873, %v14240_v34   ;;  %vm11942_vm1 = vmpackc.low %vm5537_vm0, %vm5535_vm15 }
 0x458   : > { %v3083_v13 = vpop.f32.mrf.mxu0  ;;  %v11919_v44 = vsel %vm5536_vm8, 1.0, %v14075_v1 }
 0x459   : > { %v16637_v17 = vadd.f32 %v3083_v13, %v16398_v16  ;;  %v4159_v3 = vpop.f32.mrf.mxu1  ;;  %v11921_v13 = vsel %vm5538_vm9, 1.0, %v14075_v1 }
 0x45a   : > { %v4169_v26 = vpack.c.bf16 %v4159_v3, %v4156_v51  ;;  %v13163_v52 = vpop.f32.mrf.mxu0  ;;  %6035 = vmatpush1.bf16.msra.mxu1 %v16401_v8  ;;  %v16662_v3 = vpop.permute.xlu1 %5510 }
 0x45b   : > { %v4161_v42 = vpop.f32.mrf.mxu1  ;;  %6036 = vmatprep.subr.bf16.mxu1 %v14074_v0  ;;  %vm5540_vm13 = vcmp.eq.s32.totalorder %v16662_v3, %v14319_v48 }
 0x45c   : > { %v3088_v22 = vpop.f32.mrf.mxu0  ;;  %13267 = vmatmul.mubr.msk.bf16.gmra.mxu0 %vm234_vm7, %v4169_v26  ;;  %v16665_v42 = vpop.permute.xlu0 %5513 }
 0x45d   : > { %v16644_v16 = vadd.f32 %v3088_v22, %v16416_v43  ;;  %v4498_v46 = vpop.f32.mrf.mxu1  ;;  %11937 = vmatmul.mubr.msk.bf16.gmra.mxu1 %vm11936_vm5, %v14078_v61  ;;  %13272 = vmatprep.mubr.msk.bf16.mxu0 %vm14079_vm6, %v14075_v1  ;;  %vm5542_vm14 = vcmp.eq.s32.totalorder %v16665_v42, %v14319_v48  ;;  %vm5539_vm5 = vcmp.eq.s32.totalorder %v16662_v3, %v14316_v47 }
 0x45e   : > { %v13166_v51 = vpop.f32.mrf.mxu0  ;;  %11938 = vmatprep.mubr.msk.bf16.mxu1 %vm542_vm4, %v5608_v38  ;;  %6037 = vmatpush1.bf16.msra.mxu1 %v16427_v45  ;;  %vm5541_vm8 = vcmp.eq.s32.totalorder %v16665_v42, %v14316_v47 }
 0x45f   : > { %v4500_v12 = vpop.f32.mrf.mxu1  ;;  %6038 = vmatprep.subr.bf16.mxu1 %v14074_v0  ;;  %vm11945_vm9 = vmpackc.low %vm5541_vm8, %vm5539_vm5 }
 0x460   : > { %v3091_v43 = vpop.f32.mrf.mxu0 }
 0x461   : > { %v16660_v50 = vadd.f32 %v3091_v43, %v16439_v53  ;;  %v4501_v11 = vpop.f32.mrf.mxu1  ;;  %v5610_v53 = vpack.c.bf16 %v11921_v13, %v11919_v44  ;;  %v11923_v43 = vsel %vm5540_vm13, 1.0, %v14075_v1  ;;  %v11925_v44 = vsel %vm5542_vm14, 1.0, %v14075_v1  ;;  %v16693_v13 = vpop.permute.xlu1 %5864 }
 0x462   : > { %v4553_v26 = vpack.c.bf16 %v4501_v11, %v4498_v46  ;;  %v13167_v52 = vpop.f32.mrf.mxu0  ;;  %6039 = vmatpush1.bf16.msra.mxu1 %v16444_v28  ;;  %v5612_v54 = vpack.c.bf16 %v11925_v44, %v11923_v43  ;;  %vm5906_vm2 = vcmp.eq.s32.totalorder %v16693_v13, %v14319_v48 }
 0x463   : > { %v4503_v38 = vpop.f32.mrf.mxu1  ;;  %6046 = vmatprep.subr.bf16.mxu1 %v14074_v0 }
 0x464   : > { %v3096_v22 = vpop.f32.mrf.mxu0  ;;  %13273 = vmatmul.mubr.msk.bf16.vlgmr.msra.gmra.mxu0 %vm234_vm7, %v4553_v26 }
 0x465   : > { %v16676_v46 = vadd.f32 %v3096_v22, %v16458_v36  ;;  %v4506_v51 = vpop.f32.mrf.mxu1  ;;  %11940 = vmatmul.mubr.msk.bf16.gmra.mxu1 %vm11939_vm12, %v14078_v61  ;;  %13276 = vmatprep.mubr.msk.bf16.mxu0 %vm14079_vm6, %v14075_v1  ;;  %vm5905_vm12 = vcmp.eq.s32.totalorder %v16693_v13, %v14316_v47 }
 0x466   : > { %v13170_v32 = vpop.f32.mrf.mxu0  ;;  %11941 = vmatprep.mubr.msk.bf16.mxu1 %vm542_vm4, %v5610_v53  ;;  %6047 = vmatpush2.bf16.msra.mxu1 %v16469_v33 }
 0x467   : > { %v4508_v12 = vpop.f32.mrf.mxu1  ;;  %6048 = vmatprep.subr.bf16.mxu1 %v14074_v0  ;;  %13301 = vmatpush3.bf16.msra.mxu0 %v13915_v4  ;;  %v5868_v4 = vpop.permute.xlu0 %5867  ;;  %v11958_v32 = vsel %vm5906_vm2, 1.0, %v14075_v1 }
 0x468   : > { %v3099_v36 = vpop.f32.mrf.mxu0  ;;  %13330 = vmatprep.subr.bf16.mxu0 %v14075_v1  ;;  %vm5908_vm3 = vcmp.eq.s32.totalorder %v5868_v4, %v14319_v48  ;;  %v16715_v12 = vpop.permute.xlu1 %5870  ;;  %vm5907_vm13 = vcmp.eq.s32.totalorder %v5868_v4, %v14316_v47 }
 0x469   : > { %v16696_v11 = vadd.f32 %v3099_v36, %v16481_v39  ;;  %v4509_v26 = vpop.f32.mrf.mxu1  ;;  %v11960_v36 = vsel %vm5908_vm3, 1.0, %v14075_v1  ;;  %vm5910_vm10 = vcmp.eq.s32.totalorder %v16715_v12, %v14319_v48  ;;  %vm11986_vm14 = vmpackc.low %vm5907_vm13, %vm5905_vm12 }
 0x46a   : > { %v4554_v52 = vpack.c.bf16 %v4509_v26, %v4506_v51  ;;  %v13171_v38 = vpop.f32.mrf.mxu0  ;;  %6049 = vmatpush2.bf16.msra.mxu1 %v16486_v49 }
 0x46b   : > { %v4511_v53 = vpop.f32.mrf.mxu1  ;;  %6050 = vmatprep.subr.bf16.mxu1 %v14074_v0  ;;  %v5877_v4 = vpop.permute.xlu0 %5876 }
 0x46c   : > { %v3104_v39 = vpop.f32.mrf.mxu0  ;;  %13277 = vmatmul.mubr.msk.bf16.gmra.mxu0 %vm234_vm7, %v4554_v52  ;;  %v5990_v52 = vpack.c.bf16 %v11960_v36, %v11958_v32  ;;  %v5874_v3 = vpop.permute.xlu1 %5873  ;;  %v11962_v32 = vsel %vm5910_vm10, 1.0, %v14075_v1  ;;  %vm5914_vm0 = vcmp.eq.s32.totalorder %v5877_v4, %v14319_v48  ;;  %vm5913_vm10 = vcmp.eq.s32.totalorder %v5877_v4, %v14316_v47 }
 0x46d   : > { %v16707_v22 = vadd.f32 %v3104_v39, %v16501_v5  ;;  %v4514_v51 = vpop.f32.mrf.mxu1  ;;  %11943 = vmatmul.mubr.msk.bf16.gmra.mxu1 %vm11942_vm1, %v14078_v61  ;;  %13280 = vmatprep.mubr.msk.bf16.mxu0 %vm14079_vm6, %v14075_v1  ;;  %vm5912_vm11 = vcmp.eq.s32.totalorder %v5874_v3, %v14319_v48  ;;  %vm5909_vm1 = vcmp.eq.s32.totalorder %v16715_v12, %v14316_v47 }
 0x46e   : > { %v13174_v57 = vpop.f32.mrf.mxu0  ;;  %11944 = vmatprep.mubr.msk.bf16.mxu1 %vm542_vm4, %v5612_v54  ;;  %6051 = vmatpush2.bf16.msra.mxu1 %v16508_v2  ;;  %v11964_v36 = vsel %vm5912_vm11, 1.0, %v14075_v1  ;;  %vm5911_vm2 = vcmp.eq.s32.totalorder %v5874_v3, %v14316_v47 }
 0x46f   : > { %v4516_v43 = vpop.f32.mrf.mxu1  ;;  %6052 = vmatprep.subr.bf16.mxu1 %v14074_v0  ;;  %vm11989_vm3 = vmpackc.low %vm5911_vm2, %vm5909_vm1 }
 0x470   : > { %v3107_v5 = vpop.f32.mrf.mxu0  ;;  %v16749_v13 = vpop.permute.xlu1 %5879 }
 0x471   : > { %v16724_v44 = vadd.f32 %v3107_v5, %v16519_v59  ;;  %v4517_v26 = vpop.f32.mrf.mxu1  ;;  %vm5916_vm15 = vcmp.eq.s32.totalorder %v16749_v13, %v14319_v48 }
 0x472   : > { %v4555_v38 = vpack.c.bf16 %v4517_v26, %v4514_v51  ;;  %v13175_v53 = vpop.f32.mrf.mxu0  ;;  %6053 = vmatpush2.bf16.msra.mxu1 %v16522_v27 }
 0x473   : > { %v4519_v54 = vpop.f32.mrf.mxu1  ;;  %6054 = vmatprep.subr.bf16.mxu1 %v14074_v0  ;;  %v14096_v53 = vmov 19  }
 0x474   : > { %v3112_v39 = vpop.f32.mrf.mxu0  ;;  %13281 = vmatmul.mubr.msk.bf16.gmra.mxu0 %vm234_vm7, %v4555_v38  ;;  %13876 = vset.pattern.permute.xlu1 %v14096_v53  ;;  %v5992_v54 = vpack.c.bf16 %v11964_v36, %v11962_v32  ;;  %v16778_v3 = vpop.permute.xlu1 %5885 }
 0x475   : > { %v16730_v57 = vadd.f32 %v3112_v39, %v16530_v37  ;;  %v4522_v42 = vpop.f32.mrf.mxu1  ;;  %11946 = vmatmul.mubr.msk.bf16.gmra.mxu1 %vm11945_vm9, %v14078_v61  ;;  %13284 = vmatprep.mubr.msk.bf16.mxu0 %vm14079_vm6, %v14075_v1  ;;  %vm5920_vm5 = vcmp.eq.s32.totalorder %v16778_v3, %v14319_v48  ;;  %vm5915_vm9 = vcmp.eq.s32.totalorder %v16749_v13, %v14316_v47 }
 0x476   : > { %v13178_v59 = vpop.f32.mrf.mxu0  ;;  %6055 = vmatpush2.bf16.msra.mxu1 %v16539_v41  ;;  %11985 = vmatprep.mubr.msk.bf16.mxu1 %vm542_vm4, %v5990_v52  ;;  %vm11992_vm11 = vmpackc.low %vm5915_vm9, %vm5913_vm10 }
 0x477   : > { %v4524_v51 = vpop.f32.mrf.mxu1  ;;  %6414 = vmatprep.subr.bf16.mxu1 %v14074_v0  ;;  %13875 = vset.pattern.permute.xlu0 %v14096_v53 }
 0x478   : > { %v3115_v37 = vpop.f32.mrf.mxu0  ;;  %7817 = vperm.xlu1 %13876, %v14174_v10   ;;  %7814 = vperm.xlu0 %13875, %v14167_v7   ;;  %v16807_v4 = vpop.permute.xlu1 %5891 }
 0x479   : > { %v16747_v43 = vadd.f32 %v3115_v37, %v16552_v23  ;;  %v4525_v5 = vpop.f32.mrf.mxu1  ;;  %v11968_v37 = vsel %vm5916_vm15, 1.0, %v14075_v1  ;;  %vm5924_vm12 = vcmp.eq.s32.totalorder %v16807_v4, %v14319_v48 }
 0x47a   : > { %v4556_v26 = vpack.c.bf16 %v4525_v5, %v4522_v42  ;;  %v13179_v38 = vpop.f32.mrf.mxu0 }
 0x47b   : > { %v4527_v52 = vpop.f32.mrf.mxu1 }
 0x47c   : > { %v3454_v39 = vpop.f32.mrf.mxu0  ;;  %13285 = vmatmul.mubr.msk.bf16.gmra.mxu0 %vm234_vm7, %v4556_v26  ;;  %7820 = vperm.xlu1 %13876, %v14165_v6  }
 0x47d   : > { %v16754_v23 = vadd.f32 %v3454_v39, %v16560_v55  ;;  %v4530_v59 = vpop.f32.mrf.mxu1  ;;  %11987 = vmatmul.mubr.msk.bf16.vlgmr.msra.gmra.mxu1 %vm11986_vm14, %v14078_v61  ;;  %13288 = vmatprep.mubr.msk.bf16.mxu0 %vm14079_vm6, %v14075_v1  ;;  %vm5919_vm14 = vcmp.eq.s32.totalorder %v16778_v3, %v14316_v47 }
 0x47e   : > { %6415 = vmatpush1.bf16.msra.mxu1 %v16301_v29  ;;  %v13184_v42 = vpop.f32.mrf.mxu0  ;;  %11988 = vmatprep.mubr.msk.bf16.mxu1 %vm542_vm4, %v5992_v54  ;;  %v11966_v29 = vsel %vm5914_vm0, 1.0, %v14075_v1 }
 0x47f   : > { %v4532_v51 = vpop.f32.mrf.mxu1  ;;  %6416 = vmatprep.subr.bf16.mxu1 %v14074_v0  ;;  %7823 = vperm.xlu0 %13875, %v14172_v9   ;;  %v5994_v12 = vpack.c.bf16 %v11968_v37, %v11966_v29 }
 0x480   : > { %v3457_v55 = vpop.f32.mrf.mxu0  ;;  %7826 = vperm.xlu1 %13876, %v14188_v15  }
 0x481   : > { %v16773_v32 = vadd.f32 %v3457_v55, %v16579_v63  ;;  %v4533_v36 = vpop.f32.mrf.mxu1  ;;  %v5883_v63 = vpop.permute.xlu0 %5882 }
 0x482   : > { %v4557_v5 = vpack.c.bf16 %v4533_v36, %v4530_v59  ;;  %v13185_v26 = vpop.f32.mrf.mxu0  ;;  %6417 = vmatpush1.bf16.msra.mxu1 %v16317_v21  ;;  %vm5918_vm8 = vcmp.eq.s32.totalorder %v5883_v63, %v14319_v48  ;;  %v11972_v59 = vsel %vm5920_vm5, 1.0, %v14075_v1  ;;  %vm5917_vm15 = vcmp.eq.s32.totalorder %v5883_v63, %v14316_v47  ;;  %v16836_v63 = vpop.permute.xlu1 %5897 }
 0x483   : > { %v4535_v38 = vpop.f32.mrf.mxu1  ;;  %6418 = vmatprep.subr.bf16.mxu1 %v14074_v0  ;;  %7829 = vperm.xlu0 %13875, %v14186_v14   ;;  %v11970_v42 = vsel %vm5918_vm8, 1.0, %v14075_v1  ;;  %vm11995_vm0 = vmpackc.low %vm5919_vm14, %vm5917_vm15  ;;  %vm5928_vm1 = vcmp.eq.s32.totalorder %v16836_v63, %v14319_v48 }
 0x484   : > { %v3462_v52 = vpop.f32.mrf.mxu0  ;;  %13289 = vmatmul.mubr.msk.bf16.gmra.mxu0 %vm234_vm7, %v4557_v5  ;;  %7832 = vperm.xlu1 %13876, %v14203_v20   ;;  %v5996_v13 = vpack.c.bf16 %v11972_v59, %v11970_v42 }
 0x485   : > { %v16783_v53 = vadd.f32 %v3462_v52, %v16589_v58  ;;  %v4538_v54 = vpop.f32.mrf.mxu1  ;;  %11990 = vmatmul.mubr.msk.bf16.gmra.mxu1 %vm11989_vm3, %v14078_v61  ;;  %13292 = vmatprep.mubr.msk.bf16.mxu0 %vm14079_vm6, %v14075_v1  ;;  %vm5923_vm3 = vcmp.eq.s32.totalorder %v16807_v4, %v14316_v47 }
 0x486   : > { %v13188_v21 = vpop.f32.mrf.mxu0  ;;  %11991 = vmatprep.mubr.msk.bf16.mxu1 %vm542_vm4, %v5994_v12  ;;  %6419 = vmatpush1.bf16.msra.mxu1 %v16343_v60  ;;  %v11976_v12 = vsel %vm5924_vm12, 1.0, %v14075_v1 }
 0x487   : > { %v4540_v39 = vpop.f32.mrf.mxu1  ;;  %6420 = vmatprep.subr.bf16.mxu1 %v14074_v0  ;;  %7835 = vperm.xlu0 %13875, %v14201_v19  }
 0x488   : > { %v3465_v58 = vpop.f32.mrf.mxu0  ;;  %7838 = vperm.xlu1 %13876, %v14216_v25  }
 0x489   : > { %v16802_v51 = vadd.f32 %v3465_v58, %v16608_v18  ;;  %v4541_v60 = vpop.f32.mrf.mxu1  ;;  %v5889_v18 = vpop.permute.xlu0 %5888 }
 0x48a   : > { %v4558_v55 = vpack.c.bf16 %v4541_v60, %v4538_v54  ;;  %v13189_v37 = vpop.f32.mrf.mxu0  ;;  %6421 = vmatpush1.bf16.msra.mxu1 %v16359_v40  ;;  %vm5922_vm13 = vcmp.eq.s32.totalorder %v5889_v18, %v14319_v48  ;;  %vm5921_vm5 = vcmp.eq.s32.totalorder %v5889_v18, %v14316_v47  ;;  %v13916_v18 = vld [vmem:[%s19706_s3 + $0x60] sm:$0xff]  }
 0x48b   : > { %v4543_v29 = vpop.f32.mrf.mxu1  ;;  %6422 = vmatprep.subr.bf16.mxu1 %v14074_v0  ;;  %7841 = vperm.xlu0 %13875, %v14214_v24   ;;  %v11974_v52 = vsel %vm5922_vm13, 1.0, %v14075_v1  ;;  %v11980_v37 = vsel %vm5928_vm1, 1.0, %v14075_v1  ;;  %vm11998_vm8 = vmpackc.low %vm5923_vm3, %vm5921_vm5 }
 0x48c   : > { %v3470_v36 = vpop.f32.mrf.mxu0  ;;  %13293 = vmatmul.mubr.msk.bf16.gmra.mxu0 %vm234_vm7, %v4558_v55  ;;  %7844 = vperm.xlu1 %13876, %v14230_v31   ;;  %v5998_v3 = vpack.c.bf16 %v11976_v12, %v11974_v52 }
 0x48d   : > { %v16812_v5 = vadd.f32 %v3470_v36, %v16618_v62  ;;  %v4546_v26 = vpop.f32.mrf.mxu1  ;;  %11993 = vmatmul.mubr.msk.bf16.gmra.mxu1 %vm11992_vm11, %v14078_v61  ;;  %13296 = vmatprep.mubr.msk.bf16.mxu0 %vm14079_vm6, %v14075_v1  ;;  %vm5927_vm11 = vcmp.eq.s32.totalorder %v16836_v63, %v14316_v47 }
 0x48e   : > { %v13192_v40 = vpop.f32.mrf.mxu0  ;;  %11994 = vmatprep.mubr.msk.bf16.mxu1 %vm542_vm4, %v5996_v13  ;;  %6423 = vmatpush1.bf16.msra.mxu1 %v16385_v56 }
 0x48f   : > { %v4548_v38 = vpop.f32.mrf.mxu1  ;;  %6424 = vmatprep.subr.bf16.mxu1 %v14074_v0  ;;  %7847 = vperm.xlu0 %13875, %v14228_v30  }
 0x490   : > { %v3473_v62 = vpop.f32.mrf.mxu0  ;;  %7850 = vperm.xlu1 %13876, %v14242_v35  }
 0x491   : > { %v16831_v54 = vadd.f32 %v3473_v62, %v16637_v17  ;;  %v4549_v56 = vpop.f32.mrf.mxu1  ;;  %v5895_v17 = vpop.permute.xlu0 %5894 }
 0x492   : > { %v4559_v21 = vpack.c.bf16 %v4549_v56, %v4546_v26  ;;  %v13193_v39 = vpop.f32.mrf.mxu0  ;;  %6425 = vmatpush1.bf16.msra.mxu1 %v16401_v8  ;;  %vm5926_vm2 = vcmp.eq.s32.totalorder %v5895_v17, %v14319_v48  ;;  %vm5925_vm12 = vcmp.eq.s32.totalorder %v5895_v17, %v14316_v47 }
 0x493   : > { %v4551_v58 = vpop.f32.mrf.mxu1  ;;  %6426 = vmatprep.subr.bf16.mxu1 %v14074_v0  ;;  %7853 = vperm.xlu0 %13875, %v14240_v34   ;;  %v11978_v29 = vsel %vm5926_vm2, 1.0, %v14075_v1  ;;  %vm12001_vm13 = vmpackc.low %vm5927_vm11, %vm5925_vm12 }
 0x494   : > { %v3478_v59 = vpop.f32.mrf.mxu0  ;;  %13297 = vmatmul.mubr.msk.bf16.gmra.mxu0 %vm234_vm7, %v4559_v21 }
 0x495   : > { %v16841_v42 = vadd.f32 %v3478_v59, %v16644_v16  ;;  %v4888_v60 = vpop.f32.mrf.mxu1  ;;  %11996 = vmatmul.mubr.msk.bf16.gmra.mxu1 %vm11995_vm0, %v14078_v61  ;;  %13302 = vmatprep.mubr.msk.bf16.mxu0 %vm14079_vm6, %v14075_v1  ;;  %v16864_v38 = vpop.permute.xlu0 %5900 }
 0x496   : > { %v13196_v8 = vpop.f32.mrf.mxu0  ;;  %11997 = vmatprep.mubr.msk.bf16.mxu1 %vm542_vm4, %v5998_v3  ;;  %6427 = vmatpush1.bf16.msra.mxu1 %v16427_v45  ;;  %v16861_v45 = vpop.permute.xlu1 %5903  ;;  %vm5930_vm10 = vcmp.eq.s32.totalorder %v16864_v38, %v14319_v48  ;;  %vm5929_vm1 = vcmp.eq.s32.totalorder %v16864_v38, %v14316_v47 }
 0x497   : > { %v4890_v55 = vpop.f32.mrf.mxu1  ;;  %6428 = vmatprep.subr.bf16.mxu1 %v14074_v0  ;;  %vm5932_vm9 = vcmp.eq.s32.totalorder %v16861_v45, %v14319_v48  ;;  %v11982_v39 = vsel %vm5930_vm10, 1.0, %v14075_v1  ;;  %vm5931_vm0 = vcmp.eq.s32.totalorder %v16861_v45, %v14316_v47 }
 0x498   : > { %v3481_v16 = vpop.f32.mrf.mxu0  ;;  %v11984_v21 = vsel %vm5932_vm9, 1.0, %v14075_v1  ;;  %vm12004_vm2 = vmpackc.low %vm5931_vm0, %vm5929_vm1 }
 0x499   : > { %v16859_v13 = vadd.f32 %v3481_v16, %v16660_v50  ;;  %v4891_v36 = vpop.f32.mrf.mxu1  ;;  %v6000_v50 = vpack.c.bf16 %v11980_v37, %v11978_v29  ;;  %v6255_v8 = vpop.permute.xlu0 %6254  ;;  %v6002_v17 = vpack.c.bf16 %v11984_v21, %v11982_v39 }
 0x49a   : > { %v4943_v26 = vpack.c.bf16 %v4891_v36, %v4888_v60  ;;  %v13197_v40 = vpop.f32.mrf.mxu0  ;;  %6429 = vmatpush1.bf16.msra.mxu1 %v16444_v28  ;;  %v16896_v3 = vpop.permute.xlu1 %6257  ;;  %vm6296_vm15 = vcmp.eq.s32.totalorder %v6255_v8, %v14319_v48  ;;  %vm6295_vm9 = vcmp.eq.s32.totalorder %v6255_v8, %v14316_v47 }
 0x49b   : > { %v4893_v62 = vpop.f32.mrf.mxu1  ;;  %6436 = vmatprep.subr.bf16.mxu1 %v14074_v0  ;;  %vm6298_vm14 = vcmp.eq.s32.totalorder %v16896_v3, %v14319_v48  ;;  %v12017_v29 = vsel %vm6296_vm15, 1.0, %v14075_v1 }
 0x49c   : > { %v3486_v12 = vpop.f32.mrf.mxu0  ;;  %13303 = vmatmul.mubr.msk.bf16.vlgmr.msra.gmra.mxu0 %vm234_vm7, %v4943_v26  ;;  %v12019_v37 = vsel %vm6298_vm14, 1.0, %v14075_v1 }
 0x49d   : > { %v16875_v52 = vadd.f32 %v3486_v12, %v16676_v46  ;;  %v4896_v28 = vpop.f32.mrf.mxu1  ;;  %11999 = vmatmul.mubr.msk.bf16.gmra.mxu1 %vm11998_vm8, %v14078_v61  ;;  %13306 = vmatprep.mubr.msk.bf16.mxu0 %vm14079_vm6, %v14075_v1  ;;  %v6380_v62 = vpack.c.bf16 %v12019_v37, %v12017_v29  ;;  %v6264_v45 = vpop.permute.xlu0 %6263  ;;  %vm6297_vm8 = vcmp.eq.s32.totalorder %v16896_v3, %v14316_v47 }
 0x49e   : > { %v13200_v4 = vpop.f32.mrf.mxu0  ;;  %12000 = vmatprep.mubr.msk.bf16.mxu1 %vm542_vm4, %v6000_v50  ;;  %6437 = vmatpush2.bf16.msra.mxu1 %v16469_v33  ;;  %v16927_v12 = vpop.permute.xlu1 %6260  ;;  %vm6302_vm5 = vcmp.eq.s32.totalorder %v6264_v45, %v14319_v48  ;;  %vm12045_vm10 = vmpackc.low %vm6297_vm8, %vm6295_vm9  ;;  %vm6301_vm14 = vcmp.eq.s32.totalorder %v6264_v45, %v14316_v47 }
 0x49f   : > { %v4898_v56 = vpop.f32.mrf.mxu1  ;;  %6438 = vmatprep.subr.bf16.mxu1 %v14074_v0  ;;  %13331 = vmatpush3.bf16.msra.mxu0 %v13916_v18  ;;  %vm6300_vm3 = vcmp.eq.s32.totalorder %v16927_v12, %v14319_v48 }
 0x4a0   : > { %v3489_v46 = vpop.f32.mrf.mxu0  ;;  %13360 = vmatprep.subr.bf16.mxu0 %v14075_v1 }
 0x4a1   : > { %v16894_v58 = vadd.f32 %v3489_v46, %v16696_v11  ;;  %v4899_v33 = vpop.f32.mrf.mxu1  ;;  %v12021_v46 = vsel %vm6300_vm3, 1.0, %v14075_v1  ;;  %v16956_v8 = vpop.permute.xlu0 %6269 }
 0x4a2   : > { %v4944_v59 = vpack.c.bf16 %v4899_v33, %v4896_v28  ;;  %v13201_v60 = vpop.f32.mrf.mxu0  ;;  %6439 = vmatpush2.bf16.msra.mxu1 %v16486_v49  ;;  %vm6306_vm12 = vcmp.eq.s32.totalorder %v16956_v8, %v14319_v48  ;;  %vm6305_vm3 = vcmp.eq.s32.totalorder %v16956_v8, %v14316_v47 }
 0x4a3   : > { %v4901_v55 = vpop.f32.mrf.mxu1  ;;  %6440 = vmatprep.subr.bf16.mxu1 %v14074_v0 }
 0x4a4   : > { %v3494_v11 = vpop.f32.mrf.mxu0  ;;  %13307 = vmatmul.mubr.msk.bf16.gmra.mxu0 %vm234_vm7, %v4944_v59  ;;  %v16952_v55 = vpop.permute.xlu1 %6266 }
 0x4a5   : > { %v16908_v16 = vadd.f32 %v3494_v11, %v16707_v22  ;;  %v4904_v49 = vpop.f32.mrf.mxu1  ;;  %12002 = vmatmul.mubr.msk.bf16.gmra.mxu1 %vm12001_vm13, %v14078_v61  ;;  %13310 = vmatprep.mubr.msk.bf16.mxu0 %vm14079_vm6, %v14075_v1  ;;  %vm6304_vm11 = vcmp.eq.s32.totalorder %v16952_v55, %v14319_v48  ;;  %vm6299_vm13 = vcmp.eq.s32.totalorder %v16927_v12, %v14316_v47 }
 0x4a6   : > { %v13204_v63 = vpop.f32.mrf.mxu0  ;;  %12003 = vmatprep.mubr.msk.bf16.mxu1 %vm542_vm4, %v6002_v17  ;;  %6441 = vmatpush2.bf16.msra.mxu1 %v16508_v2  ;;  %v12025_v29 = vsel %vm6304_vm11, 1.0, %v14075_v1  ;;  %vm12048_vm15 = vmpackc.low %vm6301_vm14, %vm6299_vm13 }
 0x4a7   : > { %v4906_v36 = vpop.f32.mrf.mxu1  ;;  %6442 = vmatprep.subr.bf16.mxu1 %v14074_v0 }
 0x4a8   : > { %v3497_v22 = vpop.f32.mrf.mxu0  ;;  %v12027_v36 = vsel %vm6306_vm12, 1.0, %v14075_v1 }
 0x4a9   : > { %v16923_v26 = vadd.f32 %v3497_v22, %v16724_v44  ;;  %v4907_v40 = vpop.f32.mrf.mxu1 }
 0x4aa   : > { %v4945_v2 = vpack.c.bf16 %v4907_v40, %v4904_v49  ;;  %v13205_v18 = vpop.f32.mrf.mxu0  ;;  %6443 = vmatpush2.bf16.msra.mxu1 %v16522_v27  ;;  %v16969_v49 = vld [vmem:[%s14182_s9 + $0x38] sm:$0xff]  }
 0x4ab   : > { %v4909_v50 = vpop.f32.mrf.mxu1  ;;  %6444 = vmatprep.subr.bf16.mxu1 %v14074_v0  ;;  %v16985_v18 = vld [vmem:[%s14182_s9 + $0x30] sm:$0xff]  }
 0x4ac   : > { %v3502_v28 = vpop.f32.mrf.mxu0  ;;  %13311 = vmatmul.mubr.msk.bf16.gmra.mxu0 %vm234_vm7, %v4945_v2 }
 0x4ad   : > { %v16931_v38 = vadd.f32 %v3502_v28, %v16730_v57  ;;  %v4912_v44 = vpop.f32.mrf.mxu1  ;;  %12005 = vmatmul.mubr.msk.bf16.gmra.mxu1 %vm12004_vm2, %v14078_v61  ;;  %13314 = vmatprep.mubr.msk.bf16.mxu0 %vm14079_vm6, %v14075_v1  ;;  %v14097_v57 = vmov 20   ;;  %v6384_v28 = vpack.c.bf16 %v12027_v36, %v12025_v29  ;;  %vm6303_vm2 = vcmp.eq.s32.totalorder %v16952_v55, %v14316_v47  ;;  %v17053_v29 = vld [vmem:[%s14182_s9 + $0x18] sm:$0xff]  }
 0x4ae   : > { %v13208_v27 = vpop.f32.mrf.mxu0  ;;  %6445 = vmatpush2.bf16.msra.mxu1 %v16539_v41  ;;  %12044 = vmatprep.mubr.msk.bf16.mxu1 %vm542_vm4, %v6380_v62  ;;  %v12023_v41 = vsel %vm6302_vm5, 1.0, %v14075_v1  ;;  %vm12051_vm5 = vmpackc.low %vm6305_vm3, %vm6303_vm2 }
 0x4af   : > { %v4914_v4 = vpop.f32.mrf.mxu1  ;;  %6804 = vmatprep.subr.bf16.mxu1 %v14074_v0  ;;  %13877 = vset.pattern.permute.xlu1 %v14097_v57  ;;  %v6382_v60 = vpack.c.bf16 %v12023_v41, %v12021_v46 }
 0x4b0   : > { %v3505_v56 = vpop.f32.mrf.mxu0  ;;  %8204 = vperm.xlu1 %13877, %v14167_v7   ;;  %13878 = vset.pattern.permute.xlu0 %v14097_v57  ;;  %v17011_v57 = vld [vmem:[%s14182_s9 + $0x28] sm:$0xff]  }
 0x4b1   : > { %v16949_v21 = vadd.f32 %v3505_v56, %v16747_v43  ;;  %v4915_v39 = vpop.f32.mrf.mxu1  ;;  %8207 = vperm.xlu0 %13878, %v14174_v10  }
 0x4b2   : > { %v4946_v33 = vpack.c.bf16 %v4915_v39, %v4912_v44  ;;  %v13209_v59 = vpop.f32.mrf.mxu0  ;;  %v16997_v44 = vpop.permute.xlu0 %6275 }
 0x4b3   : > { %v4917_v3 = vpop.f32.mrf.mxu1  ;;  %vm6310_vm1 = vcmp.eq.s32.totalorder %v16997_v44, %v14319_v48  ;;  %vm6309_vm11 = vcmp.eq.s32.totalorder %v16997_v44, %v14316_v47 }
 0x4b4   : > { %v3844_v17 = vpop.f32.mrf.mxu0  ;;  %13315 = vmatmul.mubr.msk.bf16.gmra.mxu0 %vm234_vm7, %v4946_v33  ;;  %8210 = vperm.xlu1 %13877, %v14165_v6   ;;  %v12031_v41 = vsel %vm6310_vm1, 1.0, %v14075_v1 }
 0x4b5   : > { %v16959_v43 = vadd.f32 %v3844_v17, %v16754_v23  ;;  %v4920_v11 = vpop.f32.mrf.mxu1  ;;  %12046 = vmatmul.mubr.msk.bf16.vlgmr.msra.gmra.mxu1 %vm12045_vm10, %v14078_v61  ;;  %13318 = vmatprep.mubr.msk.bf16.mxu0 %vm14079_vm6, %v14075_v1 }
 0x4b6   : > { %6805 = vmatpush1.bf16.msra.mxu1 %v16969_v49  ;;  %v13214_v63 = vpop.f32.mrf.mxu0  ;;  %12047 = vmatprep.mubr.msk.bf16.mxu1 %vm542_vm4, %v6382_v60  ;;  %v17027_v60 = vld [vmem:[%s14182_s9 + $0x20] sm:$0xff]  }
 0x4b7   : > { %v4922_v23 = vpop.f32.mrf.mxu1  ;;  %6806 = vmatprep.subr.bf16.mxu1 %v14074_v0  ;;  %8216 = vperm.xlu0 %13878, %v14188_v15   ;;  %v17039_v63 = vpop.permute.xlu0 %6281 }
 0x4b8   : > { %v3847_v37 = vpop.f32.mrf.mxu0  ;;  %8213 = vperm.xlu1 %13877, %v14172_v9   ;;  %vm6314_vm9 = vcmp.eq.s32.totalorder %v17039_v63, %v14319_v48 }
 0x4b9   : > { %v16982_v22 = vadd.f32 %v3847_v37, %v16773_v32  ;;  %v4923_v40 = vpop.f32.mrf.mxu1  ;;  %v16993_v32 = vpop.permute.xlu1 %6272 }
 0x4ba   : > { %v4947_v62 = vpack.c.bf16 %v4923_v40, %v4920_v11  ;;  %v13215_v2 = vpop.f32.mrf.mxu0  ;;  %6807 = vmatpush1.bf16.msra.mxu1 %v16985_v18  ;;  %vm6308_vm0 = vcmp.eq.s32.totalorder %v16993_v32, %v14319_v48  ;;  %vm6307_vm10 = vcmp.eq.s32.totalorder %v16993_v32, %v14316_v47 }
 0x4bb   : > { %v4925_v50 = vpop.f32.mrf.mxu1  ;;  %6808 = vmatprep.subr.bf16.mxu1 %v14074_v0  ;;  %8222 = vperm.xlu0 %13878, %v14203_v20   ;;  %v12029_v46 = vsel %vm6308_vm0, 1.0, %v14075_v1  ;;  %vm12054_vm12 = vmpackc.low %vm6309_vm11, %vm6307_vm10  ;;  %vm6313_vm0 = vcmp.eq.s32.totalorder %v17039_v63, %v14316_v47 }
 0x4bc   : > { %v3852_v45 = vpop.f32.mrf.mxu0  ;;  %13319 = vmatmul.mubr.msk.bf16.gmra.mxu0 %vm234_vm7, %v4947_v62  ;;  %8219 = vperm.xlu1 %13877, %v14186_v14   ;;  %v6386_v8 = vpack.c.bf16 %v12031_v41, %v12029_v46  ;;  %v12035_v62 = vsel %vm6314_vm9, 1.0, %v14075_v1 }
 0x4bd   : > { %v17000_v27 = vadd.f32 %v3852_v45, %v16783_v53  ;;  %v4928_v4 = vpop.f32.mrf.mxu1  ;;  %12049 = vmatmul.mubr.msk.bf16.gmra.mxu1 %vm12048_vm15, %v14078_v61  ;;  %13322 = vmatprep.mubr.msk.bf16.mxu0 %vm14079_vm6, %v14075_v1 }
 0x4be   : > { %v13218_v12 = vpop.f32.mrf.mxu0  ;;  %12050 = vmatprep.mubr.msk.bf16.mxu1 %vm542_vm4, %v6384_v28  ;;  %6809 = vmatpush1.bf16.msra.mxu1 %v17011_v57 }
 0x4bf   : > { %v4930_v53 = vpop.f32.mrf.mxu1  ;;  %6810 = vmatprep.subr.bf16.mxu1 %v14074_v0  ;;  %8228 = vperm.xlu0 %13878, %v14216_v25  }
 0x4c0   : > { %v3855_v56 = vpop.f32.mrf.mxu0  ;;  %8225 = vperm.xlu1 %13877, %v14201_v19  }
 0x4c1   : > { %v17024_v39 = vadd.f32 %v3855_v56, %v16802_v51  ;;  %v4931_v33 = vpop.f32.mrf.mxu1  ;;  %v17035_v51 = vpop.permute.xlu1 %6278 }
 0x4c2   : > { %v4948_v59 = vpack.c.bf16 %v4931_v33, %v4928_v4  ;;  %v13219_v3 = vpop.f32.mrf.mxu0  ;;  %6811 = vmatpush1.bf16.msra.mxu1 %v17027_v60  ;;  %vm6312_vm8 = vcmp.eq.s32.totalorder %v17035_v51, %v14319_v48  ;;  %v17069_v4 = vld [vmem:[%s14182_s9 + $0x10] sm:$0xff]   ;;  %v17088_v33 = vld [vmem:[%s14182_s9 + $0x8] sm:$0xff]   ;;  %vm6311_vm15 = vcmp.eq.s32.totalorder %v17035_v51, %v14316_v47 }
 0x4c3   : > { %v4933_v17 = vpop.f32.mrf.mxu1  ;;  %6812 = vmatprep.subr.bf16.mxu1 %v14074_v0  ;;  %8234 = vperm.xlu0 %13878, %v14230_v31   ;;  %v12033_v40 = vsel %vm6312_vm8, 1.0, %v14075_v1  ;;  %vm12057_vm1 = vmpackc.low %vm6313_vm0, %vm6311_vm15 }
 0x4c4   : > { %v3860_v11 = vpop.f32.mrf.mxu0  ;;  %13323 = vmatmul.mubr.msk.bf16.gmra.mxu0 %vm234_vm7, %v4948_v59  ;;  %8231 = vperm.xlu1 %13877, %v14214_v24   ;;  %v6388_v44 = vpack.c.bf16 %v12035_v62, %v12033_v40 }
 0x4c5   : > { %v17042_v23 = vadd.f32 %v3860_v11, %v16812_v5  ;;  %v4936_v37 = vpop.f32.mrf.mxu1  ;;  %12052 = vmatmul.mubr.msk.bf16.gmra.mxu1 %vm12051_vm5, %v14078_v61  ;;  %13326 = vmatprep.mubr.msk.bf16.mxu0 %vm14079_vm6, %v14075_v1  ;;  %v17073_v12 = vpop.permute.xlu1 %6284 }
 0x4c6   : > { %v13222_v55 = vpop.f32.mrf.mxu0  ;;  %12053 = vmatprep.mubr.msk.bf16.mxu1 %vm542_vm4, %v6386_v8  ;;  %6813 = vmatpush1.bf16.msra.mxu1 %v17053_v29  ;;  %vm6316_vm13 = vcmp.eq.s32.totalorder %v17073_v12, %v14319_v48  ;;  %vm6315_vm5 = vcmp.eq.s32.totalorder %v17073_v12, %v14316_v47 }
 0x4c7   : > { %v4938_v5 = vpop.f32.mrf.mxu1  ;;  %6814 = vmatprep.subr.bf16.mxu1 %v14074_v0  ;;  %8240 = vperm.xlu0 %13878, %v14242_v35   ;;  %v12037_v3 = vsel %vm6316_vm13, 1.0, %v14075_v1 }
 0x4c8   : > { %v3863_v36 = vpop.f32.mrf.mxu0  ;;  %8237 = vperm.xlu1 %13877, %v14228_v30  }
 0x4c9   : > { %v17066_v2 = vadd.f32 %v3863_v36, %v16831_v54  ;;  %v4939_v50 = vpop.f32.mrf.mxu1  ;;  %v6288_v54 = vpop.permute.xlu0 %6287  ;;  %v17104_v36 = vld [vmem:[%s14182_s9] sm:$0xff]  }
 0x4ca   : > { %v4949_v28 = vpack.c.bf16 %v4939_v50, %v4936_v37  ;;  %v13223_v45 = vpop.f32.mrf.mxu0  ;;  %6815 = vmatpush1.bf16.msra.mxu1 %v17069_v4  ;;  %vm6318_vm14 = vcmp.eq.s32.totalorder %v6288_v54, %v14319_v48  ;;  %v17101_v37 = vpop.permute.xlu1 %6290  ;;  %vm6317_vm8 = vcmp.eq.s32.totalorder %v6288_v54, %v14316_v47 }
 0x4cb   : > { %v4941_v32 = vpop.f32.mrf.mxu1  ;;  %6816 = vmatprep.subr.bf16.mxu1 %v14074_v0  ;;  %v12039_v17 = vsel %vm6318_vm14, 1.0, %v14075_v1  ;;  %vm6320_vm2 = vcmp.eq.s32.totalorder %v17101_v37, %v14319_v48  ;;  %vm12060_vm9 = vmpackc.low %vm6317_vm8, %vm6315_vm5 }
 0x4cc   : > { %v3868_v53 = vpop.f32.mrf.mxu0  ;;  %13327 = vmatmul.mubr.msk.bf16.gmra.mxu0 %vm234_vm7, %v4949_v28  ;;  %8243 = vperm.xlu1 %13877, %v14240_v34   ;;  %v6390_v62 = vpack.c.bf16 %v12039_v17, %v12037_v3  ;;  %v17129_v32 = vld [vmem:[%s14182_s9 + $0x60] sm:$0xff]  }
 0x4cd   : > { %v17078_v56 = vadd.f32 %v3868_v53, %v16841_v42  ;;  %v5278_v46 = vpop.f32.mrf.mxu1  ;;  %12055 = vmatmul.mubr.msk.bf16.gmra.mxu1 %vm12054_vm12, %v14078_v61  ;;  %13332 = vmatprep.mubr.msk.bf16.mxu0 %vm14079_vm6, %v14075_v1  ;;  %v17107_v40 = vpop.permute.xlu0 %6293  ;;  %v12041_v53 = vsel %vm6320_vm2, 1.0, %v14075_v1  ;;  %vm6319_vm12 = vcmp.eq.s32.totalorder %v17101_v37, %v14316_v47 }
 0x4ce   : > { %v13226_v41 = vpop.f32.mrf.mxu0  ;;  %12056 = vmatprep.mubr.msk.bf16.mxu1 %vm542_vm4, %v6388_v44  ;;  %6817 = vmatpush1.bf16.msra.mxu1 %v17088_v33  ;;  %vm6322_vm3 = vcmp.eq.s32.totalorder %v17107_v40, %v14319_v48  ;;  %vm6321_vm13 = vcmp.eq.s32.totalorder %v17107_v40, %v14316_v47 }
 0x4cf   : > { %v5280_v42 = vpop.f32.mrf.mxu1  ;;  %6818 = vmatprep.subr.bf16.mxu1 %v14074_v0  ;;  %v17139_v41 = vpop.permute.xlu1 %6644  ;;  %vm12063_vm14 = vmpackc.low %vm6321_vm13, %vm6319_vm12 }
 0x4d0   : > { %v3871_v59 = vpop.f32.mrf.mxu0  ;;  %vm6686_vm10 = vcmp.eq.s32.totalorder %v17139_v41, %v14319_v48 }
 0x4d1   : > { %v17099_v8 = vadd.f32 %v3871_v59, %v16859_v13  ;;  %v5281_v11 = vpop.f32.mrf.mxu1  ;;  %v13917_v13 = vld [vmem:[%s19706_s3 + $0x68] sm:$0xff]  }
 0x4d2   : > { %v5333_v55 = vpack.c.bf16 %v5281_v11, %v5278_v46  ;;  %v13227_v5 = vpop.f32.mrf.mxu0  ;;  %6819 = vmatpush1.bf16.msra.mxu1 %v17104_v36  ;;  %v12043_v46 = vsel %vm6322_vm3, 1.0, %v14075_v1  ;;  %v17145_v11 = vld [vmem:[%s14182_s9 + $0x58] sm:$0xff]  }
 0x4d3   : > { %v5283_v63 = vpop.f32.mrf.mxu1  ;;  %6826 = vmatprep.subr.bf16.mxu1 %v14074_v0  ;;  %v6392_v5 = vpack.c.bf16 %v12043_v46, %v12041_v53 }
 0x4d4   : > { %v3876_v50 = vpop.f32.mrf.mxu0  ;;  %13333 = vmatmul.mubr.msk.bf16.vlgmr.msra.gmra.mxu0 %vm234_vm7, %v5333_v55  ;;  %v17148_v55 = vpop.permute.xlu0 %6647 }
 0x4d5   : > { %v17118_v28 = vadd.f32 %v3876_v50, %v16875_v52  ;;  %v5286_v45 = vpop.f32.mrf.mxu1  ;;  %12058 = vmatmul.mubr.msk.bf16.gmra.mxu1 %vm12057_vm1, %v14078_v61  ;;  %13336 = vmatprep.mubr.msk.bf16.mxu0 %vm14079_vm6, %v14075_v1  ;;  %vm6688_vm11 = vcmp.eq.s32.totalorder %v17148_v55, %v14319_v48  ;;  %v12076_v50 = vsel %vm6686_vm10, 1.0, %v14075_v1  ;;  %vm6685_vm1 = vcmp.eq.s32.totalorder %v17139_v41, %v14316_v47 }
 0x4d6   : > { %v13230_v51 = vpop.f32.mrf.mxu0  ;;  %12059 = vmatprep.mubr.msk.bf16.mxu1 %vm542_vm4, %v6390_v62  ;;  %6827 = vmatpush2.bf16.msra.mxu1 %v17129_v32  ;;  %v17167_v62 = vld [vmem:[%s14182_s9 + $0x50] sm:$0xff]   ;;  %vm6687_vm2 = vcmp.eq.s32.totalorder %v17148_v55, %v14316_v47 }
 0x4d7   : > { %v5288_v52 = vpop.f32.mrf.mxu1  ;;  %6828 = vmatprep.subr.bf16.mxu1 %v14074_v0  ;;  %13361 = vmatpush3.bf16.msra.mxu0 %v13917_v13  ;;  %vm12104_vm3 = vmpackc.low %vm6687_vm2, %vm6685_vm1 }
 0x4d8   : > { %v3879_v44 = vpop.f32.mrf.mxu0  ;;  %13390 = vmatprep.subr.bf16.mxu0 %v14075_v1  ;;  %v6657_v55 = vpop.permute.xlu0 %6656 }
 0x4d9   : > { %v17142_v42 = vadd.f32 %v3879_v44, %v16894_v58  ;;  %v5289_v59 = vpop.f32.mrf.mxu1  ;;  %vm6694_vm8 = vcmp.eq.s32.totalorder %v6657_v55, %v14319_v48 }
 0x4da   : > { %v5334_v3 = vpack.c.bf16 %v5289_v59, %v5286_v45  ;;  %v13231_v17 = vpop.f32.mrf.mxu0  ;;  %6829 = vmatpush2.bf16.msra.mxu1 %v17145_v11  ;;  %v17171_v45 = vpop.permute.xlu1 %6650 }
 0x4db   : > { %v5291_v54 = vpop.f32.mrf.mxu1  ;;  %6830 = vmatprep.subr.bf16.mxu1 %v14074_v0  ;;  %v17183_v17 = vld [vmem:[%s14182_s9 + $0x48] sm:$0xff]   ;;  %vm6690_vm15 = vcmp.eq.s32.totalorder %v17171_v45, %v14319_v48 }
 0x4dc   : > { %v3884_v58 = vpop.f32.mrf.mxu0  ;;  %13337 = vmatmul.mubr.msk.bf16.gmra.mxu0 %vm234_vm7, %v5334_v3 }
 0x4dd   : > { %v17160_v63 = vadd.f32 %v3884_v58, %v16908_v16  ;;  %v5294_v13 = vpop.f32.mrf.mxu1  ;;  %12061 = vmatmul.mubr.msk.bf16.gmra.mxu1 %vm12060_vm9, %v14078_v61  ;;  %13340 = vmatprep.mubr.msk.bf16.mxu0 %vm14079_vm6, %v14075_v1  ;;  %v12078_v16 = vsel %vm6688_vm11, 1.0, %v14075_v1  ;;  %vm6689_vm9 = vcmp.eq.s32.totalorder %v17171_v45, %v14316_v47 }
 0x4de   : > { %v13234_v12 = vpop.f32.mrf.mxu0  ;;  %12062 = vmatprep.mubr.msk.bf16.mxu1 %vm542_vm4, %v6392_v5  ;;  %6831 = vmatpush2.bf16.msra.mxu1 %v17167_v62  ;;  %v6770_v46 = vpack.c.bf16 %v12078_v16, %v12076_v50  ;;  %v6654_v40 = vpop.permute.xlu1 %6653  ;;  %v12080_v50 = vsel %vm6690_vm15, 1.0, %v14075_v1  ;;  %vm6693_vm15 = vcmp.eq.s32.totalorder %v6657_v55, %v14316_v47 }
 0x4df   : > { %v5296_v51 = vpop.f32.mrf.mxu1  ;;  %6832 = vmatprep.subr.bf16.mxu1 %v14074_v0  ;;  %vm6692_vm0 = vcmp.eq.s32.totalorder %v6654_v40, %v14319_v48  ;;  %vm6691_vm10 = vcmp.eq.s32.totalorder %v6654_v40, %v14316_v47 }
 0x4e0   : > { %v3887_v52 = vpop.f32.mrf.mxu0  ;;  %v12082_v16 = vsel %vm6692_vm0, 1.0, %v14075_v1  ;;  %vm12107_vm11 = vmpackc.low %vm6691_vm10, %vm6689_vm9 }
 0x4e1   : > { %v17180_v44 = vadd.f32 %v3887_v52, %v16923_v26  ;;  %v5297_v53 = vpop.f32.mrf.mxu1 }
 0x4e2   : > { %v5335_v59 = vpack.c.bf16 %v5297_v53, %v5294_v13  ;;  %v13235_v3 = vpop.f32.mrf.mxu0  ;;  %6833 = vmatpush2.bf16.msra.mxu1 %v17183_v17  ;;  %v17198_v13 = vld [vmem:[%s14182_s9 + $0x40] sm:$0xff]   ;;  %v17212_v41 = vpop.permute.xlu1 %6659 }
 0x4e3   : > { %v5299_v54 = vpop.f32.mrf.mxu1  ;;  %6834 = vmatprep.subr.bf16.mxu1 %v14074_v0  ;;  %v14098_v3 = vmov 21   ;;  %vm6696_vm5 = vcmp.eq.s32.totalorder %v17212_v41, %v14319_v48 }
 0x4e4   : > { %v3892_v37 = vpop.f32.mrf.mxu0  ;;  %13341 = vmatmul.mubr.msk.bf16.gmra.mxu0 %vm234_vm7, %v5335_v59  ;;  %13880 = vset.pattern.permute.xlu1 %v14098_v3  ;;  %v6772_v54 = vpack.c.bf16 %v12082_v16, %v12080_v50  ;;  %v12084_v50 = vsel %vm6694_vm8, 1.0, %v14075_v1 }
 0x4e5   : > { %v17189_v26 = vadd.f32 %v3892_v37, %v16931_v38  ;;  %v5302_v5 = vpop.f32.mrf.mxu1  ;;  %12064 = vmatmul.mubr.msk.bf16.gmra.mxu1 %vm12063_vm14, %v14078_v61  ;;  %13344 = vmatprep.mubr.msk.bf16.mxu0 %vm14079_vm6, %v14075_v1  ;;  %vm6695_vm14 = vcmp.eq.s32.totalorder %v17212_v41, %v14316_v47 }
 0x4e6   : > { %v13238_v58 = vpop.f32.mrf.mxu0  ;;  %6835 = vmatpush2.bf16.msra.mxu1 %v17198_v13  ;;  %12103 = vmatprep.mubr.msk.bf16.mxu1 %vm542_vm4, %v6770_v46  ;;  %v17241_v40 = vpop.permute.xlu1 %6665  ;;  %vm12110_vm0 = vmpackc.low %vm6695_vm14, %vm6693_vm15 }
 0x4e7   : > { %v5304_v38 = vpop.f32.mrf.mxu1  ;;  %7194 = vmatprep.subr.bf16.mxu1 %v14074_v0  ;;  %13879 = vset.pattern.permute.xlu0 %v14098_v3  ;;  %vm6700_vm12 = vcmp.eq.s32.totalorder %v17241_v40, %v14319_v48 }
 0x4e8   : > { %v3895_v12 = vpop.f32.mrf.mxu0  ;;  %8597 = vperm.xlu1 %13880, %v14174_v10   ;;  %8594 = vperm.xlu0 %13879, %v14167_v7  }
 0x4e9   : > { %v17210_v51 = vadd.f32 %v3895_v12, %v16949_v21  ;;  %v5305_v52 = vpop.f32.mrf.mxu1  ;;  %v12086_v12 = vsel %vm6696_vm5, 1.0, %v14075_v1 }
 0x4ea   : > { %v5336_v53 = vpack.c.bf16 %v5305_v52, %v5302_v5  ;;  %v13239_v46 = vpop.f32.mrf.mxu0  ;;  %v6774_v45 = vpack.c.bf16 %v12086_v12, %v12084_v50  ;;  %v17270_v55 = vpop.permute.xlu1 %6671 }
 0x4eb   : > { %v5307_v59 = vpop.f32.mrf.mxu1  ;;  %vm6704_vm1 = vcmp.eq.s32.totalorder %v17270_v55, %v14319_v48 }
 0x4ec   : > { %v4234_v37 = vpop.f32.mrf.mxu0  ;;  %13345 = vmatmul.mubr.msk.bf16.gmra.mxu0 %vm234_vm7, %v5336_v53  ;;  %8600 = vperm.xlu1 %13880, %v14165_v6  }
 0x4ed   : > { %v17217_v21 = vadd.f32 %v4234_v37, %v16959_v43  ;;  %v5310_v58 = vpop.f32.mrf.mxu1  ;;  %12105 = vmatmul.mubr.msk.bf16.vlgmr.msra.gmra.mxu1 %vm12104_vm3, %v14078_v61  ;;  %13348 = vmatprep.mubr.msk.bf16.mxu0 %vm14079_vm6, %v14075_v1  ;;  %vm6699_vm3 = vcmp.eq.s32.totalorder %v17241_v40, %v14316_v47 }
 0x4ee   : > { %7195 = vmatpush1.bf16.msra.mxu1 %v16969_v49  ;;  %v13244_v5 = vpop.f32.mrf.mxu0  ;;  %12106 = vmatprep.mubr.msk.bf16.mxu1 %vm542_vm4, %v6772_v54 }
 0x4ef   : > { %v5312_v38 = vpop.f32.mrf.mxu1  ;;  %7196 = vmatprep.subr.bf16.mxu1 %v14074_v0  ;;  %8603 = vperm.xlu0 %13879, %v14172_v9  }
 0x4f0   : > { %v4237_v43 = vpop.f32.mrf.mxu0  ;;  %8606 = vperm.xlu1 %13880, %v14188_v15   ;;  %v12090_v38 = vsel %vm6700_vm12, 1.0, %v14075_v1 }
 0x4f1   : > { %v17236_v16 = vadd.f32 %v4237_v43, %v16982_v22  ;;  %v5313_v52 = vpop.f32.mrf.mxu1  ;;  %v6663_v22 = vpop.permute.xlu0 %6662 }
 0x4f2   : > { %v5337_v53 = vpack.c.bf16 %v5313_v52, %v5310_v58  ;;  %v13245_v46 = vpop.f32.mrf.mxu0  ;;  %7197 = vmatpush1.bf16.msra.mxu1 %v16985_v18  ;;  %vm6698_vm13 = vcmp.eq.s32.totalorder %v6663_v22, %v14319_v48  ;;  %vm6697_vm5 = vcmp.eq.s32.totalorder %v6663_v22, %v14316_v47  ;;  %v17299_v22 = vpop.permute.xlu1 %6677 }
 0x4f3   : > { %v5315_v59 = vpop.f32.mrf.mxu1  ;;  %7198 = vmatprep.subr.bf16.mxu1 %v14074_v0  ;;  %8609 = vperm.xlu0 %13879, %v14186_v14   ;;  %v12088_v43 = vsel %vm6698_vm13, 1.0, %v14075_v1  ;;  %vm12113_vm8 = vmpackc.low %vm6699_vm3, %vm6697_vm5  ;;  %vm6708_vm9 = vcmp.eq.s32.totalorder %v17299_v22, %v14319_v48 }
 0x4f4   : > { %v4242_v3 = vpop.f32.mrf.mxu0  ;;  %13349 = vmatmul.mubr.msk.bf16.gmra.mxu0 %vm234_vm7, %v5337_v53  ;;  %8612 = vperm.xlu1 %13880, %v14203_v20   ;;  %v6776_v41 = vpack.c.bf16 %v12090_v38, %v12088_v43 }
 0x4f5   : > { %v17246_v54 = vadd.f32 %v4242_v3, %v17000_v27  ;;  %v5318_v37 = vpop.f32.mrf.mxu1  ;;  %12108 = vmatmul.mubr.msk.bf16.gmra.mxu1 %vm12107_vm11, %v14078_v61  ;;  %13352 = vmatprep.mubr.msk.bf16.mxu0 %vm14079_vm6, %v14075_v1  ;;  %vm6703_vm11 = vcmp.eq.s32.totalorder %v17270_v55, %v14316_v47 }
 0x4f6   : > { %v13248_v58 = vpop.f32.mrf.mxu0  ;;  %12109 = vmatprep.mubr.msk.bf16.mxu1 %vm542_vm4, %v6774_v45  ;;  %7199 = vmatpush1.bf16.msra.mxu1 %v17011_v57 }
 0x4f7   : > { %v5320_v5 = vpop.f32.mrf.mxu1  ;;  %7200 = vmatprep.subr.bf16.mxu1 %v14074_v0  ;;  %8615 = vperm.xlu0 %13879, %v14201_v19  }
 0x4f8   : > { %v4245_v27 = vpop.f32.mrf.mxu0  ;;  %8618 = vperm.xlu1 %13880, %v14216_v25   ;;  %v12094_v5 = vsel %vm6704_vm1, 1.0, %v14075_v1 }
 0x4f9   : > { %v17265_v12 = vadd.f32 %v4245_v27, %v17024_v39  ;;  %v5321_v50 = vpop.f32.mrf.mxu1  ;;  %v6669_v39 = vpop.permute.xlu0 %6668 }
 0x4fa   : > { %v5338_v52 = vpack.c.bf16 %v5321_v50, %v5318_v37  ;;  %v13249_v53 = vpop.f32.mrf.mxu0  ;;  %7201 = vmatpush1.bf16.msra.mxu1 %v17027_v60  ;;  %vm6702_vm2 = vcmp.eq.s32.totalorder %v6669_v39, %v14319_v48  ;;  %vm6701_vm12 = vcmp.eq.s32.totalorder %v6669_v39, %v14316_v47  ;;  %v13918_v39 = vld [vmem:[%s19706_s3 + $0x70] sm:$0xff]  }
 0x4fb   : > { %v5323_v46 = vpop.f32.mrf.mxu1  ;;  %7202 = vmatprep.subr.bf16.mxu1 %v14074_v0  ;;  %8621 = vperm.xlu0 %13879, %v14214_v24   ;;  %v12092_v27 = vsel %vm6702_vm2, 1.0, %v14075_v1  ;;  %vm12116_vm13 = vmpackc.low %vm6703_vm11, %vm6701_vm12 }
 0x4fc   : > { %v4250_v59 = vpop.f32.mrf.mxu0  ;;  %13353 = vmatmul.mubr.msk.bf16.gmra.mxu0 %vm234_vm7, %v5338_v52  ;;  %8624 = vperm.xlu1 %13880, %v14230_v31   ;;  %v6778_v40 = vpack.c.bf16 %v12094_v5, %v12092_v27 }
 0x4fd   : > { %v17275_v45 = vadd.f32 %v4250_v59, %v17042_v23  ;;  %v5326_v3 = vpop.f32.mrf.mxu1  ;;  %12111 = vmatmul.mubr.msk.bf16.gmra.mxu1 %vm12110_vm0, %v14078_v61  ;;  %13356 = vmatprep.mubr.msk.bf16.mxu0 %vm14079_vm6, %v14075_v1  ;;  %vm6707_vm0 = vcmp.eq.s32.totalorder %v17299_v22, %v14316_v47 }
 0x4fe   : > { %v13252_v37 = vpop.f32.mrf.mxu0  ;;  %12112 = vmatprep.mubr.msk.bf16.mxu1 %vm542_vm4, %v6776_v41  ;;  %7203 = vmatpush1.bf16.msra.mxu1 %v17053_v29 }
 0x4ff   : > { %v5328_v58 = vpop.f32.mrf.mxu1  ;;  %7204 = vmatprep.subr.bf16.mxu1 %v14074_v0  ;;  %8627 = vperm.xlu0 %13879, %v14228_v30  }
 0x500   : > { %v4253_v23 = vpop.f32.mrf.mxu0  ;;  %8630 = vperm.xlu1 %13880, %v14242_v35   ;;  %v12098_v58 = vsel %vm6708_vm9, 1.0, %v14075_v1 }
 0x501   : > { %v17294_v38 = vadd.f32 %v4253_v23, %v17066_v2  ;;  %v5329_v43 = vpop.f32.mrf.mxu1  ;;  %v6675_v2 = vpop.permute.xlu0 %6674 }
 0x502   : > { %v5339_v50 = vpack.c.bf16 %v5329_v43, %v5326_v3  ;;  %v13253_v52 = vpop.f32.mrf.mxu0  ;;  %7205 = vmatpush1.bf16.msra.mxu1 %v17069_v4  ;;  %vm6706_vm10 = vcmp.eq.s32.totalorder %v6675_v2, %v14319_v48  ;;  %v17324_v43 = vpop.permute.xlu1 %6683  ;;  %vm6705_vm1 = vcmp.eq.s32.totalorder %v6675_v2, %v14316_v47 }
 0x503   : > { %v5331_v53 = vpop.f32.mrf.mxu1  ;;  %7206 = vmatprep.subr.bf16.mxu1 %v14074_v0  ;;  %8633 = vperm.xlu0 %13879, %v14240_v34   ;;  %v12096_v23 = vsel %vm6706_vm10, 1.0, %v14075_v1  ;;  %vm6712_vm14 = vcmp.eq.s32.totalorder %v17324_v43, %v14319_v48  ;;  %vm12119_vm2 = vmpackc.low %vm6707_vm0, %vm6705_vm1 }
 0x504   : > { %v4258_v46 = vpop.f32.mrf.mxu0  ;;  %13357 = vmatmul.mubr.msk.bf16.gmra.mxu0 %vm234_vm7, %v5339_v50 }
 0x505   : > { %v17304_v41 = vadd.f32 %v4258_v46, %v17078_v56  ;;  %v5668_v59 = vpop.f32.mrf.mxu1  ;;  %12114 = vmatmul.mubr.msk.bf16.gmra.mxu1 %vm12113_vm8, %v14078_v61  ;;  %13362 = vmatprep.mubr.msk.bf16.mxu0 %vm14079_vm6, %v14075_v1  ;;  %v17327_v53 = vpop.permute.xlu0 %6680  ;;  %vm6711_vm8 = vcmp.eq.s32.totalorder %v17324_v43, %v14316_v47 }
 0x506   : > { %v13256_v3 = vpop.f32.mrf.mxu0  ;;  %12115 = vmatprep.mubr.msk.bf16.mxu1 %vm542_vm4, %v6778_v40  ;;  %7207 = vmatpush1.bf16.msra.mxu1 %v17088_v33  ;;  %vm6710_vm15 = vcmp.eq.s32.totalorder %v17327_v53, %v14319_v48  ;;  %vm6709_vm9 = vcmp.eq.s32.totalorder %v17327_v53, %v14316_v47 }
 0x507   : > { %v5670_v37 = vpop.f32.mrf.mxu1  ;;  %7208 = vmatprep.subr.bf16.mxu1 %v14074_v0  ;;  %vm12122_vm10 = vmpackc.low %vm6711_vm8, %vm6709_vm9 }
 0x508   : > { %v4261_v56 = vpop.f32.mrf.mxu0 }
 0x509   : > { %v17322_v5 = vadd.f32 %v4261_v56, %v17099_v8  ;;  %v5671_v27 = vpop.f32.mrf.mxu1  ;;  %v6780_v8 = vpack.c.bf16 %v12098_v58, %v12096_v23  ;;  %v12102_v56 = vsel %vm6712_vm14, 1.0, %v14075_v1  ;;  %v12100_v58 = vsel %vm6710_vm15, 1.0, %v14075_v1 }
 0x50a   : > { %v5723_v50 = vpack.c.bf16 %v5671_v27, %v5668_v59  ;;  %v13257_v52 = vpop.f32.mrf.mxu0  ;;  %7209 = vmatpush1.bf16.msra.mxu1 %v17104_v36  ;;  %v6782_v2 = vpack.c.bf16 %v12102_v56, %v12100_v58 }
 0x50b   : > { %v5673_v40 = vpop.f32.mrf.mxu1  ;;  %7216 = vmatprep.subr.bf16.mxu1 %v14074_v0 }
 0x50c   : > { %v4266_v46 = vpop.f32.mrf.mxu0  ;;  %13363 = vmatmul.mubr.msk.bf16.vlgmr.msra.gmra.mxu0 %vm234_vm7, %v5723_v50  ;;  %v17359_v50 = vpop.permute.xlu1 %7037 }
 0x50d   : > { %v17338_v59 = vadd.f32 %v4266_v46, %v17118_v28  ;;  %v5676_v3 = vpop.f32.mrf.mxu1  ;;  %12117 = vmatmul.mubr.msk.bf16.gmra.mxu1 %vm12116_vm13, %v14078_v61  ;;  %13366 = vmatprep.mubr.msk.bf16.mxu0 %vm14079_vm6, %v14075_v1  ;;  %vm7078_vm3 = vcmp.eq.s32.totalorder %v17359_v50, %v14319_v48  ;;  %vm7077_vm13 = vcmp.eq.s32.totalorder %v17359_v50, %v14316_v47 }
 0x50e   : > { %v13260_v55 = vpop.f32.mrf.mxu0  ;;  %12118 = vmatprep.mubr.msk.bf16.mxu1 %vm542_vm4, %v6780_v8  ;;  %7217 = vmatpush2.bf16.msra.mxu1 %v17129_v32 }
 0x50f   : > { %v5678_v37 = vpop.f32.mrf.mxu1  ;;  %7218 = vmatprep.subr.bf16.mxu1 %v14074_v0  ;;  %13391 = vmatpush3.bf16.msra.mxu0 %v13918_v39  ;;  %v7035_v39 = vpop.permute.xlu0 %7034  ;;  %v12137_v55 = vsel %vm7078_vm3, 1.0, %v14075_v1 }
 0x510   : > { %v4269_v28 = vpop.f32.mrf.mxu0  ;;  %13420 = vmatprep.subr.bf16.mxu0 %v14075_v1  ;;  %vm7076_vm5 = vcmp.eq.s32.totalorder %v7035_v39, %v14319_v48  ;;  %vm7075_vm14 = vcmp.eq.s32.totalorder %v7035_v39, %v14316_v47 }
 0x511   : > { %v17357_v23 = vadd.f32 %v4269_v28, %v17142_v42  ;;  %v5679_v27 = vpop.f32.mrf.mxu1  ;;  %v12135_v37 = vsel %vm7076_vm5, 1.0, %v14075_v1  ;;  %vm12163_vm15 = vmpackc.low %vm7077_vm13, %vm7075_vm14 }
 0x512   : > { %v5724_v52 = vpack.c.bf16 %v5679_v27, %v5676_v3  ;;  %v13261_v40 = vpop.f32.mrf.mxu0  ;;  %7219 = vmatpush2.bf16.msra.mxu1 %v17145_v11  ;;  %v7160_v27 = vpack.c.bf16 %v12137_v55, %v12135_v37 }
 0x513   : > { %v5681_v8 = vpop.f32.mrf.mxu1  ;;  %7220 = vmatprep.subr.bf16.mxu1 %v14074_v0  ;;  %v7044_v43 = vpop.permute.xlu0 %7043 }
 0x514   : > { %v4274_v42 = vpop.f32.mrf.mxu0  ;;  %13367 = vmatmul.mubr.msk.bf16.gmra.mxu0 %vm234_vm7, %v5724_v52  ;;  %vm7082_vm12 = vcmp.eq.s32.totalorder %v7044_v43, %v14319_v48  ;;  %vm7081_vm3 = vcmp.eq.s32.totalorder %v7044_v43, %v14316_v47 }
 0x515   : > { %v17371_v46 = vadd.f32 %v4274_v42, %v17160_v63  ;;  %v5684_v3 = vpop.f32.mrf.mxu1  ;;  %12120 = vmatmul.mubr.msk.bf16.gmra.mxu1 %vm12119_vm2, %v14078_v61  ;;  %13370 = vmatprep.mubr.msk.bf16.mxu0 %vm14079_vm6, %v14075_v1 }
 0x516   : > { %v13264_v22 = vpop.f32.mrf.mxu0  ;;  %12121 = vmatprep.mubr.msk.bf16.mxu1 %vm542_vm4, %v6782_v2  ;;  %7221 = vmatpush2.bf16.msra.mxu1 %v17167_v62  ;;  %v17390_v2 = vpop.permute.xlu1 %7040 }
 0x517   : > { %v5686_v28 = vpop.f32.mrf.mxu1  ;;  %7222 = vmatprep.subr.bf16.mxu1 %v14074_v0  ;;  %vm7080_vm11 = vcmp.eq.s32.totalorder %v17390_v2, %v14319_v48  ;;  %v7050_v39 = vpop.permute.xlu0 %7049  ;;  %vm7079_vm2 = vcmp.eq.s32.totalorder %v17390_v2, %v14316_v47 }
 0x518   : > { %v4277_v63 = vpop.f32.mrf.mxu0  ;;  %v12139_v37 = vsel %vm7080_vm11, 1.0, %v14075_v1  ;;  %v12141_v28 = vsel %vm7082_vm12, 1.0, %v14075_v1  ;;  %vm7086_vm1 = vcmp.eq.s32.totalorder %v7050_v39, %v14319_v48  ;;  %vm12166_vm5 = vmpackc.low %vm7081_vm3, %vm7079_vm2  ;;  %vm7085_vm11 = vcmp.eq.s32.totalorder %v7050_v39, %v14316_v47 }
 0x519   : > { %v17386_v56 = vadd.f32 %v4277_v63, %v17180_v44  ;;  %v5687_v58 = vpop.f32.mrf.mxu1  ;;  %v7162_v50 = vpack.c.bf16 %v12141_v28, %v12139_v37 }
 0x51a   : > { %v5725_v52 = vpack.c.bf16 %v5687_v58, %v5684_v3  ;;  %v13265_v40 = vpop.f32.mrf.mxu0  ;;  %7223 = vmatpush2.bf16.msra.mxu1 %v17183_v17 }
 0x51b   : > { %v5689_v8 = vpop.f32.mrf.mxu1  ;;  %7224 = vmatprep.subr.bf16.mxu1 %v14074_v0 }
 0x51c   : > { %v4282_v42 = vpop.f32.mrf.mxu0  ;;  %13371 = vmatmul.mubr.msk.bf16.gmra.mxu0 %vm234_vm7, %v5725_v52  ;;  %v17415_v8 = vpop.permute.xlu1 %7046 }
 0x51d   : > { %v17394_v53 = vadd.f32 %v4282_v42, %v17189_v26  ;;  %v5692_v44 = vpop.f32.mrf.mxu1  ;;  %12123 = vmatmul.mubr.msk.bf16.gmra.mxu1 %vm12122_vm10, %v14078_v61  ;;  %13374 = vmatprep.mubr.msk.bf16.mxu0 %vm14079_vm6, %v14075_v1  ;;  %v14099_v26 = vmov 22   ;;  %vm7084_vm0 = vcmp.eq.s32.totalorder %v17415_v8, %v14319_v48  ;;  %vm7083_vm10 = vcmp.eq.s32.totalorder %v17415_v8, %v14316_v47 }
 0x51e   : > { %v13268_v3 = vpop.f32.mrf.mxu0  ;;  %7225 = vmatpush2.bf16.msra.mxu1 %v17198_v13  ;;  %12162 = vmatprep.mubr.msk.bf16.mxu1 %vm542_vm4, %v7160_v27  ;;  %vm12169_vm12 = vmpackc.low %vm7085_vm11, %vm7083_vm10 }
 0x51f   : > { %v5694_v22 = vpop.f32.mrf.mxu1  ;;  %7584 = vmatprep.subr.bf16.mxu1 %v14074_v0  ;;  %13881 = vset.pattern.permute.xlu1 %v14099_v26 }
 0x520   : > { %v4285_v55 = vpop.f32.mrf.mxu0  ;;  %8984 = vperm.xlu1 %13881, %v14167_v7   ;;  %13882 = vset.pattern.permute.xlu0 %v14099_v26  ;;  %v12143_v26 = vsel %vm7084_vm0, 1.0, %v14075_v1  ;;  %v17444_v43 = vpop.permute.xlu1 %7052 }
 0x521   : > { %v17412_v63 = vadd.f32 %v4285_v55, %v17210_v51  ;;  %v5695_v58 = vpop.f32.mrf.mxu1  ;;  %8987 = vperm.xlu0 %13882, %v14174_v10   ;;  %vm7088_vm8 = vcmp.eq.s32.totalorder %v17444_v43, %v14319_v48 }
 0x522   : > { %v5726_v27 = vpack.c.bf16 %v5695_v58, %v5692_v44  ;;  %v13269_v52 = vpop.f32.mrf.mxu0 }
 0x523   : > { %v5697_v40 = vpop.f32.mrf.mxu1 }
 0x524   : > { %v4624_v42 = vpop.f32.mrf.mxu0  ;;  %13375 = vmatmul.mubr.msk.bf16.gmra.mxu0 %vm234_vm7, %v5726_v27  ;;  %8990 = vperm.xlu1 %13881, %v14165_v6   ;;  %v17473_v39 = vpop.permute.xlu1 %7058 }
 0x525   : > { %v17420_v3 = vadd.f32 %v4624_v42, %v17217_v21  ;;  %v5700_v51 = vpop.f32.mrf.mxu1  ;;  %12164 = vmatmul.mubr.msk.bf16.vlgmr.msra.gmra.mxu1 %vm12163_vm15, %v14078_v61  ;;  %13378 = vmatprep.mubr.msk.bf16.mxu0 %vm14079_vm6, %v14075_v1  ;;  %vm7092_vm13 = vcmp.eq.s32.totalorder %v17473_v39, %v14319_v48  ;;  %vm7087_vm15 = vcmp.eq.s32.totalorder %v17444_v43, %v14316_v47 }
 0x526   : > { %7585 = vmatpush1.bf16.msra.mxu1 %v16969_v49  ;;  %v13274_v44 = vpop.f32.mrf.mxu0  ;;  %12165 = vmatprep.mubr.msk.bf16.mxu1 %vm542_vm4, %v7162_v50  ;;  %v12145_v49 = vsel %vm7086_vm1, 1.0, %v14075_v1 }
 0x527   : > { %v5702_v22 = vpop.f32.mrf.mxu1  ;;  %7586 = vmatprep.subr.bf16.mxu1 %v14074_v0  ;;  %8996 = vperm.xlu0 %13882, %v14188_v15   ;;  %v7164_v2 = vpack.c.bf16 %v12145_v49, %v12143_v26 }
 0x528   : > { %v4627_v21 = vpop.f32.mrf.mxu0  ;;  %8993 = vperm.xlu1 %13881, %v14172_v9  }
 0x529   : > { %v17439_v55 = vadd.f32 %v4627_v21, %v17236_v16  ;;  %v5703_v37 = vpop.f32.mrf.mxu1  ;;  %v7056_v16 = vpop.permute.xlu0 %7055 }
 0x52a   : > { %v5727_v28 = vpack.c.bf16 %v5703_v37, %v5700_v51  ;;  %v13275_v58 = vpop.f32.mrf.mxu0  ;;  %7587 = vmatpush1.bf16.msra.mxu1 %v16985_v18  ;;  %vm7090_vm9 = vcmp.eq.s32.totalorder %v7056_v16, %v14319_v48  ;;  %v12147_v51 = vsel %vm7088_vm8, 1.0, %v14075_v1  ;;  %vm7089_vm0 = vcmp.eq.s32.totalorder %v7056_v16, %v14316_v47 }
 0x52b   : > { %v5705_v27 = vpop.f32.mrf.mxu1  ;;  %7588 = vmatprep.subr.bf16.mxu1 %v14074_v0  ;;  %9002 = vperm.xlu0 %13882, %v14203_v20   ;;  %v12149_v44 = vsel %vm7090_vm9, 1.0, %v14075_v1  ;;  %vm12172_vm1 = vmpackc.low %vm7089_vm0, %vm7087_vm15 }
 0x52c   : > { %v4632_v52 = vpop.f32.mrf.mxu0  ;;  %13379 = vmatmul.mubr.msk.bf16.gmra.mxu0 %vm234_vm7, %v5727_v28  ;;  %8999 = vperm.xlu1 %13881, %v14186_v14   ;;  %v7166_v8 = vpack.c.bf16 %v12149_v44, %v12147_v51  ;;  %v7065_v51 = vpop.permute.xlu1 %7064 }
 0x52d   : > { %v17449_v40 = vadd.f32 %v4632_v52, %v17246_v54  ;;  %v5708_v50 = vpop.f32.mrf.mxu1  ;;  %12167 = vmatmul.mubr.msk.bf16.gmra.mxu1 %vm12166_vm5, %v14078_v61  ;;  %13382 = vmatprep.mubr.msk.bf16.mxu0 %vm14079_vm6, %v14075_v1  ;;  %vm7096_vm2 = vcmp.eq.s32.totalorder %v7065_v51, %v14319_v48  ;;  %vm7091_vm5 = vcmp.eq.s32.totalorder %v17473_v39, %v14316_v47 }
 0x52e   : > { %v13278_v18 = vpop.f32.mrf.mxu0  ;;  %12168 = vmatprep.mubr.msk.bf16.mxu1 %vm542_vm4, %v7164_v2  ;;  %7589 = vmatpush1.bf16.msra.mxu1 %v17011_v57  ;;  %v12151_v2 = vsel %vm7092_vm13, 1.0, %v14075_v1 }
 0x52f   : > { %v5710_v42 = vpop.f32.mrf.mxu1  ;;  %7590 = vmatprep.subr.bf16.mxu1 %v14074_v0  ;;  %9008 = vperm.xlu0 %13882, %v14216_v25  }
 0x530   : > { %v4635_v54 = vpop.f32.mrf.mxu0  ;;  %9005 = vperm.xlu1 %13881, %v14201_v19  }
 0x531   : > { %v17468_v22 = vadd.f32 %v4635_v54, %v17265_v12  ;;  %v5711_v57 = vpop.f32.mrf.mxu1  ;;  %v7062_v12 = vpop.permute.xlu0 %7061 }
 0x532   : > { %v5728_v21 = vpack.c.bf16 %v5711_v57, %v5708_v50  ;;  %v13279_v26 = vpop.f32.mrf.mxu0  ;;  %7591 = vmatpush1.bf16.msra.mxu1 %v17027_v60  ;;  %vm7094_vm14 = vcmp.eq.s32.totalorder %v7062_v12, %v14319_v48  ;;  %vm7093_vm8 = vcmp.eq.s32.totalorder %v7062_v12, %v14316_v47  ;;  %v13919_v12 = vld [vmem:[%s19706_s3 + $0x78] sm:$0xff]  }
 0x533   : > { %v5713_v49 = vpop.f32.mrf.mxu1  ;;  %7592 = vmatprep.subr.bf16.mxu1 %v14074_v0  ;;  %9014 = vperm.xlu0 %13882, %v14230_v31   ;;  %v12153_v52 = vsel %vm7094_vm14, 1.0, %v14075_v1  ;;  %v12155_v26 = vsel %vm7096_vm2, 1.0, %v14075_v1  ;;  %vm12175_vm9 = vmpackc.low %vm7093_vm8, %vm7091_vm5 }
 0x534   : > { %v4640_v37 = vpop.f32.mrf.mxu0  ;;  %13383 = vmatmul.mubr.msk.bf16.gmra.mxu0 %vm234_vm7, %v5728_v21  ;;  %9011 = vperm.xlu1 %13881, %v14214_v24   ;;  %v7168_v43 = vpack.c.bf16 %v12153_v52, %v12151_v2 }
 0x535   : > { %v17478_v28 = vadd.f32 %v4640_v37, %v17275_v45  ;;  %v5716_v58 = vpop.f32.mrf.mxu1  ;;  %12170 = vmatmul.mubr.msk.bf16.gmra.mxu1 %vm12169_vm12, %v14078_v61  ;;  %13386 = vmatprep.mubr.msk.bf16.mxu0 %vm14079_vm6, %v14075_v1  ;;  %v7068_v16 = vpop.permute.xlu0 %7067  ;;  %vm7095_vm12 = vcmp.eq.s32.totalorder %v7065_v51, %v14316_v47 }
 0x536   : > { %v13282_v60 = vpop.f32.mrf.mxu0  ;;  %12171 = vmatprep.mubr.msk.bf16.mxu1 %vm542_vm4, %v7166_v8  ;;  %7593 = vmatpush1.bf16.msra.mxu1 %v17053_v29  ;;  %vm7098_vm3 = vcmp.eq.s32.totalorder %v7068_v16, %v14319_v48  ;;  %vm7097_vm13 = vcmp.eq.s32.totalorder %v7068_v16, %v14316_v47 }
 0x537   : > { %v5718_v27 = vpop.f32.mrf.mxu1  ;;  %7594 = vmatprep.subr.bf16.mxu1 %v14074_v0  ;;  %9020 = vperm.xlu0 %13882, %v14242_v35   ;;  %v12157_v49 = vsel %vm7098_vm3, 1.0, %v14075_v1  ;;  %vm12178_vm14 = vmpackc.low %vm7097_vm13, %vm7095_vm12 }
 0x538   : > { %v4643_v45 = vpop.f32.mrf.mxu0  ;;  %9017 = vperm.xlu1 %13881, %v14228_v30  }
 0x539   : > { %v17497_v50 = vadd.f32 %v4643_v45, %v17294_v38  ;;  %v5719_v29 = vpop.f32.mrf.mxu1  ;;  %v17525_v27 = vpop.permute.xlu0 %7073 }
 0x53a   : > { %v5729_v18 = vpack.c.bf16 %v5719_v29, %v5716_v58  ;;  %v13283_v42 = vpop.f32.mrf.mxu0  ;;  %7595 = vmatpush1.bf16.msra.mxu1 %v17069_v4  ;;  %v17522_v58 = vpop.permute.xlu1 %7070  ;;  %vm7102_vm11 = vcmp.eq.s32.totalorder %v17525_v27, %v14319_v48  ;;  %vm7101_vm2 = vcmp.eq.s32.totalorder %v17525_v27, %v14316_v47 }
 0x53b   : > { %v5721_v54 = vpop.f32.mrf.mxu1  ;;  %7596 = vmatprep.subr.bf16.mxu1 %v14074_v0  ;;  %vm7100_vm10 = vcmp.eq.s32.totalorder %v17522_v58, %v14319_v48  ;;  %v12161_v42 = vsel %vm7102_vm11, 1.0, %v14075_v1 }
 0x53c   : > { %v4648_v44 = vpop.f32.mrf.mxu0  ;;  %13387 = vmatmul.mubr.msk.bf16.gmra.mxu0 %vm234_vm7, %v5729_v18  ;;  %9023 = vperm.xlu1 %13881, %v14240_v34   ;;  %v12159_v18 = vsel %vm7100_vm10, 1.0, %v14075_v1 }
 0x53d   : > { %v17504_v38 = vadd.f32 %v4648_v44, %v17304_v41  ;;  %v6058_v57 = vpop.f32.mrf.mxu1  ;;  %12173 = vmatmul.mubr.msk.bf16.gmra.mxu1 %vm12172_vm1, %v14078_v61  ;;  %13392 = vmatprep.mubr.msk.bf16.mxu0 %vm14079_vm6, %v14075_v1  ;;  %v7172_v16 = vpack.c.bf16 %v12161_v42, %v12159_v18  ;;  %vm7099_vm1 = vcmp.eq.s32.totalorder %v17522_v58, %v14316_v47 }
 0x53e   : > { %v13286_v4 = vpop.f32.mrf.mxu0  ;;  %12174 = vmatprep.mubr.msk.bf16.mxu1 %vm542_vm4, %v7168_v43  ;;  %7597 = vmatpush1.bf16.msra.mxu1 %v17088_v33  ;;  %v17553_v54 = vpop.permute.xlu1 %7424  ;;  %vm12181_vm3 = vmpackc.low %vm7101_vm2, %vm7099_vm1 }
 0x53f   : > { %v6060_v21 = vpop.f32.mrf.mxu1  ;;  %7598 = vmatprep.subr.bf16.mxu1 %v14074_v0  ;;  %v7428_v4 = vpop.permute.xlu0 %7427  ;;  %vm7466_vm15 = vcmp.eq.s32.totalorder %v17553_v54, %v14319_v48 }
 0x540   : > { %v4651_v41 = vpop.f32.mrf.mxu0  ;;  %vm7468_vm0 = vcmp.eq.s32.totalorder %v7428_v4, %v14319_v48  ;;  %vm7467_vm10 = vcmp.eq.s32.totalorder %v7428_v4, %v14316_v47 }
 0x541   : > { %v17520_v8 = vadd.f32 %v4651_v41, %v17322_v5  ;;  %v6061_v37 = vpop.f32.mrf.mxu1  ;;  %v7170_v5 = vpack.c.bf16 %v12157_v49, %v12155_v26  ;;  %v12194_v26 = vsel %vm7466_vm15, 1.0, %v14075_v1 }
 0x542   : > { %v6113_v33 = vpack.c.bf16 %v6061_v37, %v6058_v57  ;;  %v13287_v60 = vpop.f32.mrf.mxu0  ;;  %7599 = vmatpush1.bf16.msra.mxu1 %v17104_v36  ;;  %v17575_v49 = vpop.permute.xlu1 %7430  ;;  %v12196_v37 = vsel %vm7468_vm0, 1.0, %v14075_v1 }
 0x543   : > { %v6063_v45 = vpop.f32.mrf.mxu1  ;;  %7606 = vmatprep.subr.bf16.mxu1 %v14074_v0  ;;  %vm7470_vm5 = vcmp.eq.s32.totalorder %v17575_v49, %v14319_v48  ;;  %v17613_v4 = vpop.permute.xlu0 %7436 }
 0x544   : > { %v4656_v2 = vpop.f32.mrf.mxu0  ;;  %13393 = vmatmul.mubr.msk.bf16.vlgmr.msra.gmra.mxu0 %vm234_vm7, %v6113_v33  ;;  %v7550_v45 = vpack.c.bf16 %v12196_v37, %v12194_v26  ;;  %vm7474_vm13 = vcmp.eq.s32.totalorder %v17613_v4, %v14319_v48 }
 0x545   : > { %v17536_v52 = vadd.f32 %v4656_v2, %v17338_v59  ;;  %v6066_v36 = vpop.f32.mrf.mxu1  ;;  %12176 = vmatmul.mubr.msk.bf16.gmra.mxu1 %vm12175_vm9, %v14078_v61  ;;  %13396 = vmatprep.mubr.msk.bf16.mxu0 %vm14079_vm6, %v14075_v1  ;;  %vm7465_vm9 = vcmp.eq.s32.totalorder %v17553_v54, %v14316_v47 }
 0x546   : > { %v13290_v39 = vpop.f32.mrf.mxu0  ;;  %12177 = vmatprep.mubr.msk.bf16.mxu1 %vm542_vm4, %v7170_v5  ;;  %7607 = vmatpush2.bf16.msra.mxu1 %v17129_v32  ;;  %v7434_v58 = vpop.permute.xlu1 %7433  ;;  %vm12222_vm11 = vmpackc.low %vm7467_vm10, %vm7465_vm9 }
 0x547   : > { %v6068_v29 = vpop.f32.mrf.mxu1  ;;  %7608 = vmatprep.subr.bf16.mxu1 %v14074_v0  ;;  %13421 = vmatpush3.bf16.msra.mxu0 %v13919_v12  ;;  %vm7472_vm8 = vcmp.eq.s32.totalorder %v7434_v58, %v14319_v48  ;;  %vm7471_vm15 = vcmp.eq.s32.totalorder %v7434_v58, %v14316_v47 }
 0x548   : > { %v4659_v59 = vpop.f32.mrf.mxu0  ;;  %13450 = vmatprep.subr.bf16.mxu0 %v14075_v1  ;;  %v12198_v29 = vsel %vm7470_vm5, 1.0, %v14075_v1  ;;  %vm7473_vm5 = vcmp.eq.s32.totalorder %v17613_v4, %v14316_v47 }
 0x549   : > { %v17556_v43 = vadd.f32 %v4659_v59, %v17357_v23  ;;  %v6069_v32 = vpop.f32.mrf.mxu1  ;;  %v12200_v59 = vsel %vm7472_vm8, 1.0, %v14075_v1 }
 0x54a   : > { %v6114_v44 = vpack.c.bf16 %v6069_v32, %v6066_v36  ;;  %v13291_v57 = vpop.f32.mrf.mxu0  ;;  %7609 = vmatpush2.bf16.msra.mxu1 %v17145_v11  ;;  %v17609_v54 = vpop.permute.xlu1 %7439 }
 0x54b   : > { %v6071_v21 = vpop.f32.mrf.mxu1  ;;  %7610 = vmatprep.subr.bf16.mxu1 %v14074_v0  ;;  %v14100_v57 = vmov 23   ;;  %vm7476_vm12 = vcmp.eq.s32.totalorder %v17609_v54, %v14319_v48 }
 0x54c   : > { %v4664_v23 = vpop.f32.mrf.mxu0  ;;  %13397 = vmatmul.mubr.msk.bf16.gmra.mxu0 %vm234_vm7, %v6114_v44  ;;  %13884 = vset.pattern.permute.xlu1 %v14100_v57  ;;  %v7552_v21 = vpack.c.bf16 %v12200_v59, %v12198_v29  ;;  %v12204_v37 = vsel %vm7476_vm12, 1.0, %v14075_v1 }
 0x54d   : > { %v17567_v41 = vadd.f32 %v4664_v23, %v17371_v46  ;;  %v6074_v11 = vpop.f32.mrf.mxu1  ;;  %12179 = vmatmul.mubr.msk.bf16.gmra.mxu1 %vm12178_vm14, %v14078_v61  ;;  %13400 = vmatprep.mubr.msk.bf16.mxu0 %vm14079_vm6, %v14075_v1  ;;  %vm7469_vm14 = vcmp.eq.s32.totalorder %v17575_v49, %v14316_v47 }
 0x54e   : > { %v13294_v51 = vpop.f32.mrf.mxu0  ;;  %12180 = vmatprep.mubr.msk.bf16.mxu1 %vm542_vm4, %v7172_v16  ;;  %7611 = vmatpush2.bf16.msra.mxu1 %v17167_v62  ;;  %vm12225_vm0 = vmpackc.low %vm7471_vm15, %vm7469_vm14 }
 0x54f   : > { %v6076_v33 = vpop.f32.mrf.mxu1  ;;  %7612 = vmatprep.subr.bf16.mxu1 %v14074_v0  ;;  %13883 = vset.pattern.permute.xlu0 %v14100_v57 }
 0x550   : > { %v4667_v46 = vpop.f32.mrf.mxu0  ;;  %9377 = vperm.xlu1 %13884, %v14174_v10   ;;  %9374 = vperm.xlu0 %13883, %v14167_v7   ;;  %v12202_v33 = vsel %vm7474_vm13, 1.0, %v14075_v1 }
 0x551   : > { %v17584_v60 = vadd.f32 %v4667_v46, %v17386_v56  ;;  %v6077_v62 = vpop.f32.mrf.mxu1 }
 0x552   : > { %v6115_v12 = vpack.c.bf16 %v6077_v62, %v6074_v11  ;;  %v13295_v5 = vpop.f32.mrf.mxu0  ;;  %7613 = vmatpush2.bf16.msra.mxu1 %v17183_v17  ;;  %v17626_v11 = vld [vmem:[%s14182_s9 + $0x38] sm:$0xff]  }
 0x553   : > { %v6079_v2 = vpop.f32.mrf.mxu1  ;;  %7614 = vmatprep.subr.bf16.mxu1 %v14074_v0  ;;  %v17642_v5 = vld [vmem:[%s14182_s9 + $0x30] sm:$0xff]  }
 0x554   : > { %v4672_v36 = vpop.f32.mrf.mxu0  ;;  %13401 = vmatmul.mubr.msk.bf16.gmra.mxu0 %vm234_vm7, %v6115_v12  ;;  %9380 = vperm.xlu1 %13884, %v14165_v6  }
 0x555   : > { %v17590_v39 = vadd.f32 %v4672_v36, %v17394_v53  ;;  %v6082_v27 = vpop.f32.mrf.mxu1  ;;  %12182 = vmatmul.mubr.msk.bf16.gmra.mxu1 %vm12181_vm3, %v14078_v61  ;;  %13404 = vmatprep.mubr.msk.bf16.mxu0 %vm14079_vm6, %v14075_v1  ;;  %v7554_v36 = vpack.c.bf16 %v12204_v37, %v12202_v33  ;;  %vm7475_vm3 = vcmp.eq.s32.totalorder %v17609_v54, %v14316_v47  ;;  %v17710_v37 = vld [vmem:[%s14182_s9 + $0x18] sm:$0xff]  }
 0x556   : > { %v13298_v17 = vpop.f32.mrf.mxu0  ;;  %7615 = vmatpush2.bf16.msra.mxu1 %v17198_v13  ;;  %12221 = vmatprep.mubr.msk.bf16.mxu1 %vm542_vm4, %v7550_v45  ;;  %vm12228_vm8 = vmpackc.low %vm7475_vm3, %vm7473_vm5 }
 0x557   : > { %v6084_v56 = vpop.f32.mrf.mxu1  ;;  %7974 = vmatprep.subr.bf16.mxu1 %v14074_v0  ;;  %9383 = vperm.xlu0 %13883, %v14172_v9  }
 0x558   : > { %v4675_v53 = vpop.f32.mrf.mxu0  ;;  %9386 = vperm.xlu1 %13884, %v14188_v15  }
 0x559   : > { %v17607_v18 = vadd.f32 %v4675_v53, %v17412_v63  ;;  %v6085_v42 = vpop.f32.mrf.mxu1  ;;  %v17668_v53 = vld [vmem:[%s14182_s9 + $0x28] sm:$0xff]  }
 0x55a   : > { %v6116_v13 = vpack.c.bf16 %v6085_v42, %v6082_v27  ;;  %v13299_v32 = vpop.f32.mrf.mxu0  ;;  %v17654_v27 = vpop.permute.xlu0 %7442 }
 0x55b   : > { %v6087_v44 = vpop.f32.mrf.mxu1  ;;  %vm7478_vm2 = vcmp.eq.s32.totalorder %v17654_v27, %v14319_v48  ;;  %9389 = vperm.xlu0 %13883, %v14186_v14   ;;  %vm7477_vm12 = vcmp.eq.s32.totalorder %v17654_v27, %v14316_v47 }
 0x55c   : > { %v5014_v16 = vpop.f32.mrf.mxu0  ;;  %13405 = vmatmul.mubr.msk.bf16.gmra.mxu0 %vm234_vm7, %v6116_v13  ;;  %9392 = vperm.xlu1 %13884, %v14203_v20   ;;  %v12206_v42 = vsel %vm7478_vm2, 1.0, %v14075_v1 }
 0x55d   : > { %v17616_v63 = vadd.f32 %v5014_v16, %v17420_v3  ;;  %v6090_v23 = vpop.f32.mrf.mxu1  ;;  %12223 = vmatmul.mubr.msk.bf16.vlgmr.msra.gmra.mxu1 %vm12222_vm11, %v14078_v61  ;;  %13408 = vmatprep.mubr.msk.bf16.mxu0 %vm14079_vm6, %v14075_v1 }
 0x55e   : > { %7975 = vmatpush1.bf16.msra.mxu1 %v17626_v11  ;;  %v13304_v51 = vpop.f32.mrf.mxu0  ;;  %12224 = vmatprep.mubr.msk.bf16.mxu1 %vm542_vm4, %v7552_v21  ;;  %v17684_v21 = vld [vmem:[%s14182_s9 + $0x20] sm:$0xff]  }
 0x55f   : > { %v6092_v3 = vpop.f32.mrf.mxu1  ;;  %7976 = vmatprep.subr.bf16.mxu1 %v14074_v0  ;;  %9395 = vperm.xlu0 %13883, %v14201_v19   ;;  %v17696_v51 = vpop.permute.xlu0 %7448 }
 0x560   : > { %v5017_v26 = vpop.f32.mrf.mxu0  ;;  %9398 = vperm.xlu1 %13884, %v14216_v25   ;;  %vm7482_vm10 = vcmp.eq.s32.totalorder %v17696_v51, %v14319_v48 }
 0x561   : > { %v17639_v46 = vadd.f32 %v5017_v26, %v17439_v55  ;;  %v6093_v62 = vpop.f32.mrf.mxu1  ;;  %v17650_v55 = vpop.permute.xlu1 %7445 }
 0x562   : > { %v6117_v45 = vpack.c.bf16 %v6093_v62, %v6090_v23  ;;  %v13305_v12 = vpop.f32.mrf.mxu0  ;;  %7977 = vmatpush1.bf16.msra.mxu1 %v17642_v5  ;;  %vm7480_vm1 = vcmp.eq.s32.totalorder %v17650_v55, %v14319_v48  ;;  %vm7479_vm11 = vcmp.eq.s32.totalorder %v17650_v55, %v14316_v47 }
 0x563   : > { %v6095_v2 = vpop.f32.mrf.mxu1  ;;  %7978 = vmatprep.subr.bf16.mxu1 %v14074_v0  ;;  %v12208_v59 = vsel %vm7480_vm1, 1.0, %v14075_v1  ;;  %9401 = vperm.xlu0 %13883, %v14214_v24   ;;  %vm12231_vm13 = vmpackc.low %vm7479_vm11, %vm7477_vm12  ;;  %vm7481_vm1 = vcmp.eq.s32.totalorder %v17696_v51, %v14316_v47 }
 0x564   : > { %v5022_v58 = vpop.f32.mrf.mxu0  ;;  %13409 = vmatmul.mubr.msk.bf16.gmra.mxu0 %vm234_vm7, %v6117_v45  ;;  %v7556_v4 = vpack.c.bf16 %v12208_v59, %v12206_v42  ;;  %9404 = vperm.xlu1 %13884, %v14230_v31   ;;  %v12210_v45 = vsel %vm7482_vm10, 1.0, %v14075_v1 }
 0x565   : > { %v17657_v17 = vadd.f32 %v5022_v58, %v17449_v40  ;;  %v6098_v56 = vpop.f32.mrf.mxu1  ;;  %12226 = vmatmul.mubr.msk.bf16.gmra.mxu1 %vm12225_vm0, %v14078_v61  ;;  %13412 = vmatprep.mubr.msk.bf16.mxu0 %vm14079_vm6, %v14075_v1 }
 0x566   : > { %v13308_v49 = vpop.f32.mrf.mxu0  ;;  %12227 = vmatprep.mubr.msk.bf16.mxu1 %vm542_vm4, %v7554_v36  ;;  %7979 = vmatpush1.bf16.msra.mxu1 %v17668_v53 }
 0x567   : > { %v6100_v40 = vpop.f32.mrf.mxu1  ;;  %7980 = vmatprep.subr.bf16.mxu1 %v14074_v0  ;;  %9407 = vperm.xlu0 %13883, %v14228_v30  }
 0x568   : > { %v5025_v29 = vpop.f32.mrf.mxu0  ;;  %9410 = vperm.xlu1 %13884, %v14242_v35  }
 0x569   : > { %v17681_v13 = vadd.f32 %v5025_v29, %v17468_v22  ;;  %v6101_v32 = vpop.f32.mrf.mxu1  ;;  %v17692_v22 = vpop.permute.xlu1 %7451 }
 0x56a   : > { %v6118_v44 = vpack.c.bf16 %v6101_v32, %v6098_v56  ;;  %v13309_v57 = vpop.f32.mrf.mxu0  ;;  %7981 = vmatpush1.bf16.msra.mxu1 %v17684_v21  ;;  %vm7484_vm9 = vcmp.eq.s32.totalorder %v17692_v22, %v14319_v48  ;;  %v17726_v56 = vld [vmem:[%s14182_s9 + $0x10] sm:$0xff]   ;;  %v17738_v29 = vpop.permute.xlu0 %7454  ;;  %v17752_v32 = vld [vmem:[%s14182_s9 + $0x8] sm:$0xff]   ;;  %vm7483_vm0 = vcmp.eq.s32.totalorder %v17692_v22, %v14316_v47 }
 0x56b   : > { %v6103_v16 = vpop.f32.mrf.mxu1  ;;  %7982 = vmatprep.subr.bf16.mxu1 %v14074_v0  ;;  %v12212_v62 = vsel %vm7484_vm9, 1.0, %v14075_v1  ;;  %vm7486_vm15 = vcmp.eq.s32.totalorder %v17738_v29, %v14319_v48  ;;  %9413 = vperm.xlu0 %13883, %v14240_v34   ;;  %vm12234_vm2 = vmpackc.low %vm7483_vm0, %vm7481_vm1  ;;  %vm7485_vm9 = vcmp.eq.s32.totalorder %v17738_v29, %v14316_v47 }
 0x56c   : > { %v5030_v23 = vpop.f32.mrf.mxu0  ;;  %13413 = vmatmul.mubr.msk.bf16.gmra.mxu0 %vm234_vm7, %v6118_v44  ;;  %v7558_v27 = vpack.c.bf16 %v12212_v62, %v12210_v45  ;;  %v12214_v16 = vsel %vm7486_vm15, 1.0, %v14075_v1 }
 0x56d   : > { %v17699_v3 = vadd.f32 %v5030_v23, %v17478_v28  ;;  %v6106_v26 = vpop.f32.mrf.mxu1  ;;  %12229 = vmatmul.mubr.msk.bf16.gmra.mxu1 %vm12228_vm8, %v14078_v61  ;;  %13416 = vmatprep.mubr.msk.bf16.mxu0 %vm14079_vm6, %v14075_v1 }
 0x56e   : > { %v13312_v54 = vpop.f32.mrf.mxu0  ;;  %12230 = vmatprep.mubr.msk.bf16.mxu1 %vm542_vm4, %v7556_v4  ;;  %7983 = vmatpush1.bf16.msra.mxu1 %v17710_v37  ;;  %v17772_v62 = vpop.permute.xlu0 %7460 }
 0x56f   : > { %v6108_v28 = vpop.f32.mrf.mxu1  ;;  %7984 = vmatprep.subr.bf16.mxu1 %v14074_v0  ;;  %vm7490_vm5 = vcmp.eq.s32.totalorder %v17772_v62, %v14319_v48 }
 0x570   : > { %v5033_v33 = vpop.f32.mrf.mxu0 }
 0x571   : > { %v17723_v12 = vadd.f32 %v5033_v33, %v17497_v50  ;;  %v6109_v2 = vpop.f32.mrf.mxu1  ;;  %v17734_v50 = vpop.permute.xlu1 %7457  ;;  %v17769_v33 = vld [vmem:[%s14182_s9] sm:$0xff]  }
 0x572   : > { %v6119_v36 = vpack.c.bf16 %v6109_v2, %v6106_v26  ;;  %v13313_v58 = vpop.f32.mrf.mxu0  ;;  %7985 = vmatpush1.bf16.msra.mxu1 %v17726_v56  ;;  %vm7488_vm14 = vcmp.eq.s32.totalorder %v17734_v50, %v14319_v48  ;;  %vm7487_vm8 = vcmp.eq.s32.totalorder %v17734_v50, %v14316_v47 }
 0x573   : > { %v6111_v49 = vpop.f32.mrf.mxu1  ;;  %7986 = vmatprep.subr.bf16.mxu1 %v14074_v0  ;;  %v12216_v57 = vsel %vm7488_vm14, 1.0, %v14075_v1  ;;  %vm12237_vm10 = vmpackc.low %vm7487_vm8, %vm7485_vm9  ;;  %vm7489_vm14 = vcmp.eq.s32.totalorder %v17772_v62, %v14316_v47 }
 0x574   : > { %v5038_v40 = vpop.f32.mrf.mxu0  ;;  %13417 = vmatmul.mubr.msk.bf16.gmra.mxu0 %vm234_vm7, %v6119_v36  ;;  %v7560_v45 = vpack.c.bf16 %v12216_v57, %v12214_v16  ;;  %v17794_v49 = vld [vmem:[%s14182_s9 + $0x60] sm:$0xff]  }
 0x575   : > { %v17741_v59 = vadd.f32 %v5038_v40, %v17504_v38  ;;  %v6448_v42 = vpop.f32.mrf.mxu1  ;;  %12232 = vmatmul.mubr.msk.bf16.gmra.mxu1 %vm12231_vm13, %v14078_v61  ;;  %13422 = vmatprep.mubr.msk.bf16.mxu0 %vm14079_vm6, %v14075_v1  ;;  %v17766_v26 = vpop.permute.xlu1 %7463 }
 0x576   : > { %v13316_v55 = vpop.f32.mrf.mxu0  ;;  %12233 = vmatprep.mubr.msk.bf16.mxu1 %vm542_vm4, %v7558_v27  ;;  %7987 = vmatpush1.bf16.msra.mxu1 %v17752_v32  ;;  %vm7492_vm3 = vcmp.eq.s32.totalorder %v17766_v26, %v14319_v48  ;;  %vm7491_vm13 = vcmp.eq.s32.totalorder %v17766_v26, %v14316_v47 }
 0x577   : > { %v6450_v38 = vpop.f32.mrf.mxu1  ;;  %7988 = vmatprep.subr.bf16.mxu1 %v14074_v0  ;;  %v12220_v40 = vsel %vm7492_vm3, 1.0, %v14075_v1  ;;  %vm12240_vm15 = vmpackc.low %vm7491_vm13, %vm7489_vm14 }
 0x578   : > { %v5041_v44 = vpop.f32.mrf.mxu0 }
 0x579   : > { %v17764_v4 = vadd.f32 %v5041_v44, %v17520_v8  ;;  %v6451_v23 = vpop.f32.mrf.mxu1  ;;  %v13920_v8 = vld [vmem:[%s19706_s3 + $0x80] sm:$0xff]   ;;  %v17808_v44 = vpop.permute.xlu1 %7817 }
 0x57a   : > { %v6503_v54 = vpack.c.bf16 %v6451_v23, %v6448_v42  ;;  %v13317_v28 = vpop.f32.mrf.mxu0  ;;  %7989 = vmatpush1.bf16.msra.mxu1 %v17769_v33  ;;  %v12218_v42 = vsel %vm7490_vm5, 1.0, %v14075_v1  ;;  %v17811_v23 = vld [vmem:[%s14182_s9 + $0x58] sm:$0xff]   ;;  %vm7858_vm11 = vcmp.eq.s32.totalorder %v17808_v44, %v14319_v48 }
 0x57b   : > { %v6453_v51 = vpop.f32.mrf.mxu1  ;;  %7996 = vmatprep.subr.bf16.mxu1 %v14074_v0 }
 0x57c   : > { %v5046_v2 = vpop.f32.mrf.mxu0  ;;  %13423 = vmatmul.mubr.msk.bf16.vlgmr.msra.gmra.mxu0 %vm234_vm7, %v6503_v54  ;;  %v17814_v54 = vpop.permute.xlu0 %7814 }
 0x57d   : > { %v17783_v36 = vadd.f32 %v5046_v2, %v17536_v52  ;;  %v6456_v58 = vpop.f32.mrf.mxu1  ;;  %12235 = vmatmul.mubr.msk.bf16.gmra.mxu1 %vm12234_vm2, %v14078_v61  ;;  %13426 = vmatprep.mubr.msk.bf16.mxu0 %vm14079_vm6, %v14075_v1  ;;  %vm7856_vm12 = vcmp.eq.s32.totalorder %v17814_v54, %v14319_v48  ;;  %v12255_v2 = vsel %vm7858_vm11, 1.0, %v14075_v1  ;;  %v17851_v26 = vpop.permute.xlu1 %7820  ;;  %vm7857_vm2 = vcmp.eq.s32.totalorder %v17808_v44, %v14316_v47 }
 0x57e   : > { %v13320_v22 = vpop.f32.mrf.mxu0  ;;  %12236 = vmatprep.mubr.msk.bf16.mxu1 %vm542_vm4, %v7560_v45  ;;  %7997 = vmatpush2.bf16.msra.mxu1 %v17794_v49  ;;  %v17833_v45 = vld [vmem:[%s14182_s9 + $0x50] sm:$0xff]   ;;  %vm7860_vm0 = vcmp.eq.s32.totalorder %v17851_v26, %v14319_v48  ;;  %vm7855_vm3 = vcmp.eq.s32.totalorder %v17814_v54, %v14316_v47 }
 0x57f   : > { %v6458_v52 = vpop.f32.mrf.mxu1  ;;  %7998 = vmatprep.subr.bf16.mxu1 %v14074_v0  ;;  %13451 = vmatpush3.bf16.msra.mxu0 %v13920_v8  ;;  %vm12281_vm5 = vmpackc.low %vm7857_vm2, %vm7855_vm3 }
 0x580   : > { %v5049_v27 = vpop.f32.mrf.mxu0  ;;  %13480 = vmatprep.subr.bf16.mxu0 %v14075_v1 }
 0x581   : > { %v17806_v55 = vadd.f32 %v5049_v27, %v17556_v43  ;;  %v6459_v38 = vpop.f32.mrf.mxu1  ;;  %v7562_v43 = vpack.c.bf16 %v12220_v40, %v12218_v42 }
 0x582   : > { %v6504_v57 = vpack.c.bf16 %v6459_v38, %v6456_v58  ;;  %v13321_v16 = vpop.f32.mrf.mxu0  ;;  %7999 = vmatpush2.bf16.msra.mxu1 %v17811_v23  ;;  %v12253_v58 = vsel %vm7856_vm12, 1.0, %v14075_v1 }
 0x583   : > { %v6461_v29 = vpop.f32.mrf.mxu1  ;;  %8000 = vmatprep.subr.bf16.mxu1 %v14074_v0  ;;  %v7940_v40 = vpack.c.bf16 %v12255_v2, %v12253_v58  ;;  %v12257_v58 = vsel %vm7860_vm0, 1.0, %v14075_v1 }
 0x584   : > { %v5054_v28 = vpop.f32.mrf.mxu0  ;;  %13427 = vmatmul.mubr.msk.bf16.gmra.mxu0 %vm234_vm7, %v6504_v57  ;;  %v17847_v57 = vld [vmem:[%s14182_s9 + $0x48] sm:$0xff]  }
 0x585   : > { %v17826_v51 = vadd.f32 %v5054_v28, %v17567_v41  ;;  %v6464_v8 = vpop.f32.mrf.mxu1  ;;  %12238 = vmatmul.mubr.msk.bf16.gmra.mxu1 %vm12237_vm10, %v14078_v61  ;;  %13430 = vmatprep.mubr.msk.bf16.mxu0 %vm14079_vm6, %v14075_v1  ;;  %vm7859_vm10 = vcmp.eq.s32.totalorder %v17851_v26, %v14316_v47 }
 0x586   : > { %v13324_v50 = vpop.f32.mrf.mxu0  ;;  %12239 = vmatprep.mubr.msk.bf16.mxu1 %vm542_vm4, %v7562_v43  ;;  %8001 = vmatpush2.bf16.msra.mxu1 %v17833_v45 }
 0x587   : > { %v6466_v41 = vpop.f32.mrf.mxu1  ;;  %8002 = vmatprep.subr.bf16.mxu1 %v14074_v0  ;;  %v14101_v50 = vmov 24  }
 0x588   : > { %v5057_v22 = vpop.f32.mrf.mxu0  ;;  %13885 = vset.pattern.permute.xlu1 %v14101_v50  ;;  %13886 = vset.pattern.permute.xlu0 %v14101_v50 }
 0x589   : > { %v17844_v52 = vadd.f32 %v5057_v22, %v17584_v60  ;;  %v6467_v27 = vpop.f32.mrf.mxu1  ;;  %v7824_v60 = vpop.permute.xlu0 %7823  ;;  %9764 = vperm.xlu1 %13885, %v14167_v7   ;;  %9767 = vperm.xlu0 %13886, %v14174_v10  }
 0x58a   : > { %v6505_v42 = vpack.c.bf16 %v6467_v27, %v6464_v8  ;;  %v13325_v38 = vpop.f32.mrf.mxu0  ;;  %8003 = vmatpush2.bf16.msra.mxu1 %v17847_v57  ;;  %vm7862_vm1 = vcmp.eq.s32.totalorder %v7824_v60, %v14319_v48  ;;  %v17864_v8 = vld [vmem:[%s14182_s9 + $0x40] sm:$0xff]   ;;  %vm7861_vm11 = vcmp.eq.s32.totalorder %v7824_v60, %v14316_v47 }
 0x58b   : > { %v6469_v16 = vpop.f32.mrf.mxu1  ;;  %8004 = vmatprep.subr.bf16.mxu1 %v14074_v0  ;;  %v12259_v41 = vsel %vm7862_vm1, 1.0, %v14075_v1  ;;  %vm12284_vm12 = vmpackc.low %vm7861_vm11, %vm7859_vm10 }
 0x58c   : > { %v5062_v29 = vpop.f32.mrf.mxu0  ;;  %13431 = vmatmul.mubr.msk.bf16.gmra.mxu0 %vm234_vm7, %v6505_v42  ;;  %v7942_v38 = vpack.c.bf16 %v12259_v41, %v12257_v58  ;;  %v17880_v16 = vpop.permute.xlu1 %7826 }
 0x58d   : > { %v17855_v62 = vadd.f32 %v5062_v29, %v17590_v39  ;;  %v6472_v43 = vpop.f32.mrf.mxu1  ;;  %12241 = vmatmul.mubr.msk.bf16.gmra.mxu1 %vm12240_vm15, %v14078_v61  ;;  %13434 = vmatprep.mubr.msk.bf16.mxu0 %vm14079_vm6, %v14075_v1  ;;  %v7830_v54 = vpop.permute.xlu0 %7829  ;;  %vm7864_vm8 = vcmp.eq.s32.totalorder %v17880_v16, %v14319_v48  ;;  %vm7863_vm15 = vcmp.eq.s32.totalorder %v17880_v16, %v14316_v47 }
 0x58e   : > { %v13328_v28 = vpop.f32.mrf.mxu0  ;;  %8005 = vmatpush2.bf16.msra.mxu1 %v17864_v8  ;;  %12280 = vmatprep.mubr.msk.bf16.mxu1 %vm542_vm4, %v7940_v40  ;;  %vm7866_vm9 = vcmp.eq.s32.totalorder %v7830_v54, %v14319_v48  ;;  %v12261_v50 = vsel %vm7864_vm8, 1.0, %v14075_v1  ;;  %vm7865_vm0 = vcmp.eq.s32.totalorder %v7830_v54, %v14316_v47 }
 0x58f   : > { %v6474_v39 = vpop.f32.mrf.mxu1  ;;  %8364 = vmatprep.subr.bf16.mxu1 %v14074_v0  ;;  %9770 = vperm.xlu1 %13885, %v14165_v6   ;;  %vm12287_vm1 = vmpackc.low %vm7865_vm0, %vm7863_vm15 }
 0x590   : > { %v5065_v2 = vpop.f32.mrf.mxu0  ;;  %9776 = vperm.xlu0 %13886, %v14188_v15   ;;  %v17909_v60 = vpop.permute.xlu1 %7832 }
 0x591   : > { %v17877_v22 = vadd.f32 %v5065_v2, %v17607_v18  ;;  %v6475_v27 = vpop.f32.mrf.mxu1  ;;  %v12263_v2 = vsel %vm7866_vm9, 1.0, %v14075_v1  ;;  %vm7868_vm13 = vcmp.eq.s32.totalorder %v17909_v60, %v14319_v48 }
 0x592   : > { %v6506_v40 = vpack.c.bf16 %v6475_v27, %v6472_v43  ;;  %v13329_v42 = vpop.f32.mrf.mxu0  ;;  %v7944_v26 = vpack.c.bf16 %v12263_v2, %v12261_v50 }
 0x593   : > { %v6477_v44 = vpop.f32.mrf.mxu1  ;;  %9773 = vperm.xlu1 %13885, %v14172_v9  }
 0x594   : > { %v5404_v29 = vpop.f32.mrf.mxu0  ;;  %13435 = vmatmul.mubr.msk.bf16.gmra.mxu0 %vm234_vm7, %v6506_v40  ;;  %9782 = vperm.xlu0 %13886, %v14203_v20   ;;  %v17938_v54 = vpop.permute.xlu1 %7838 }
 0x595   : > { %v17885_v28 = vadd.f32 %v5404_v29, %v17616_v63  ;;  %v6480_v18 = vpop.f32.mrf.mxu1  ;;  %12282 = vmatmul.mubr.msk.bf16.vlgmr.msra.gmra.mxu1 %vm12281_vm5, %v14078_v61  ;;  %13438 = vmatprep.mubr.msk.bf16.mxu0 %vm14079_vm6, %v14075_v1  ;;  %vm7872_vm2 = vcmp.eq.s32.totalorder %v17938_v54, %v14319_v48  ;;  %vm7867_vm5 = vcmp.eq.s32.totalorder %v17909_v60, %v14316_v47 }
 0x596   : > { %8365 = vmatpush1.bf16.msra.mxu1 %v17626_v11  ;;  %v13334_v43 = vpop.f32.mrf.mxu0  ;;  %12283 = vmatprep.mubr.msk.bf16.mxu1 %vm542_vm4, %v7942_v38 }
 0x597   : > { %v6482_v39 = vpop.f32.mrf.mxu1  ;;  %8366 = vmatprep.subr.bf16.mxu1 %v14074_v0  ;;  %9779 = vperm.xlu1 %13885, %v14186_v14  }
 0x598   : > { %v5407_v63 = vpop.f32.mrf.mxu0  ;;  %9788 = vperm.xlu0 %13886, %v14216_v25   ;;  %v12265_v39 = vsel %vm7868_vm13, 1.0, %v14075_v1 }
 0x599   : > { %v17904_v58 = vadd.f32 %v5407_v63, %v17639_v46  ;;  %v6483_v41 = vpop.f32.mrf.mxu1  ;;  %v7836_v46 = vpop.permute.xlu0 %7835 }
 0x59a   : > { %v6507_v27 = vpack.c.bf16 %v6483_v41, %v6480_v18  ;;  %v13335_v40 = vpop.f32.mrf.mxu0  ;;  %8367 = vmatpush1.bf16.msra.mxu1 %v17642_v5  ;;  %vm7870_vm14 = vcmp.eq.s32.totalorder %v7836_v46, %v14319_v48  ;;  %vm7869_vm8 = vcmp.eq.s32.totalorder %v7836_v46, %v14316_v47 }
 0x59b   : > { %v6485_v42 = vpop.f32.mrf.mxu1  ;;  %8368 = vmatprep.subr.bf16.mxu1 %v14074_v0  ;;  %9785 = vperm.xlu1 %13885, %v14201_v19   ;;  %v12267_v63 = vsel %vm7870_vm14, 1.0, %v14075_v1  ;;  %vm12290_vm9 = vmpackc.low %vm7869_vm8, %vm7867_vm5 }
 0x59c   : > { %v5412_v44 = vpop.f32.mrf.mxu0  ;;  %13439 = vmatmul.mubr.msk.bf16.gmra.mxu0 %vm234_vm7, %v6507_v27  ;;  %9794 = vperm.xlu0 %13886, %v14230_v31   ;;  %v7946_v16 = vpack.c.bf16 %v12267_v63, %v12265_v39 }
 0x59d   : > { %v17914_v38 = vadd.f32 %v5412_v44, %v17657_v17  ;;  %v6488_v29 = vpop.f32.mrf.mxu1  ;;  %12285 = vmatmul.mubr.msk.bf16.gmra.mxu1 %vm12284_vm12, %v14078_v61  ;;  %13442 = vmatprep.mubr.msk.bf16.mxu0 %vm14079_vm6, %v14075_v1  ;;  %vm7871_vm12 = vcmp.eq.s32.totalorder %v17938_v54, %v14316_v47 }
 0x59e   : > { %v13338_v18 = vpop.f32.mrf.mxu0  ;;  %12286 = vmatprep.mubr.msk.bf16.mxu1 %vm542_vm4, %v7944_v26  ;;  %8369 = vmatpush1.bf16.msra.mxu1 %v17668_v53 }
 0x59f   : > { %v6490_v43 = vpop.f32.mrf.mxu1  ;;  %8370 = vmatprep.subr.bf16.mxu1 %v14074_v0  ;;  %9791 = vperm.xlu1 %13885, %v14214_v24  }
 0x5a0   : > { %v5415_v17 = vpop.f32.mrf.mxu0  ;;  %9800 = vperm.xlu0 %13886, %v14242_v35   ;;  %v12269_v43 = vsel %vm7872_vm2, 1.0, %v14075_v1 }
 0x5a1   : > { %v17933_v50 = vadd.f32 %v5415_v17, %v17681_v13  ;;  %v6491_v2 = vpop.f32.mrf.mxu1  ;;  %v7842_v13 = vpop.permute.xlu0 %7841 }
 0x5a2   : > { %v6508_v41 = vpack.c.bf16 %v6491_v2, %v6488_v29  ;;  %v13339_v27 = vpop.f32.mrf.mxu0  ;;  %8371 = vmatpush1.bf16.msra.mxu1 %v17684_v21  ;;  %vm7874_vm3 = vcmp.eq.s32.totalorder %v7842_v13, %v14319_v48  ;;  %vm7873_vm13 = vcmp.eq.s32.totalorder %v7842_v13, %v14316_v47  ;;  %v13921_v13 = vld [vmem:[%s19706_s3 + $0x88] sm:$0xff]  }
 0x5a3   : > { %v6493_v40 = vpop.f32.mrf.mxu1  ;;  %8372 = vmatprep.subr.bf16.mxu1 %v14074_v0  ;;  %9797 = vperm.xlu1 %13885, %v14228_v30   ;;  %v12271_v17 = vsel %vm7874_vm3, 1.0, %v14075_v1  ;;  %vm12293_vm14 = vmpackc.low %vm7873_vm13, %vm7871_vm12 }
 0x5a4   : > { %v5420_v42 = vpop.f32.mrf.mxu0  ;;  %13443 = vmatmul.mubr.msk.bf16.gmra.mxu0 %vm234_vm7, %v6508_v41  ;;  %v7948_v60 = vpack.c.bf16 %v12271_v17, %v12269_v43  ;;  %v7845_v40 = vpop.permute.xlu1 %7844 }
 0x5a5   : > { %v17943_v26 = vadd.f32 %v5420_v42, %v17699_v3  ;;  %v6496_v44 = vpop.f32.mrf.mxu1  ;;  %12288 = vmatmul.mubr.msk.bf16.gmra.mxu1 %vm12287_vm1, %v14078_v61  ;;  %13446 = vmatprep.mubr.msk.bf16.mxu0 %vm14079_vm6, %v14075_v1  ;;  %v7848_v46 = vpop.permute.xlu0 %7847  ;;  %vm7876_vm10 = vcmp.eq.s32.totalorder %v7845_v40, %v14319_v48  ;;  %vm7875_vm1 = vcmp.eq.s32.totalorder %v7845_v40, %v14316_v47 }
 0x5a6   : > { %v13342_v29 = vpop.f32.mrf.mxu0  ;;  %12289 = vmatprep.mubr.msk.bf16.mxu1 %vm542_vm4, %v7946_v16  ;;  %8373 = vmatpush1.bf16.msra.mxu1 %v17710_v37  ;;  %vm7878_vm11 = vcmp.eq.s32.totalorder %v7848_v46, %v14319_v48  ;;  %vm7877_vm2 = vcmp.eq.s32.totalorder %v7848_v46, %v14316_v47 }
 0x5a7   : > { %v6498_v18 = vpop.f32.mrf.mxu1  ;;  %8374 = vmatprep.subr.bf16.mxu1 %v14074_v0  ;;  %9803 = vperm.xlu1 %13885, %v14240_v34   ;;  %vm12296_vm3 = vmpackc.low %vm7877_vm2, %vm7875_vm1 }
 0x5a8   : > { %v5423_v3 = vpop.f32.mrf.mxu0  ;;  %v12273_v18 = vsel %vm7876_vm10, 1.0, %v14075_v1 }
 0x5a9   : > { %v17962_v39 = vadd.f32 %v5423_v3, %v17723_v12  ;;  %v6499_v63 = vpop.f32.mrf.mxu1  ;;  %v12275_v3 = vsel %vm7878_vm11, 1.0, %v14075_v1 }
 0x5aa   : > { %v6509_v2 = vpack.c.bf16 %v6499_v63, %v6496_v44  ;;  %v13343_v41 = vpop.f32.mrf.mxu0  ;;  %8375 = vmatpush1.bf16.msra.mxu1 %v17726_v56  ;;  %v17987_v63 = vpop.permute.xlu1 %7850 }
 0x5ab   : > { %v6501_v27 = vpop.f32.mrf.mxu1  ;;  %8376 = vmatprep.subr.bf16.mxu1 %v14074_v0  ;;  %vm7880_vm15 = vcmp.eq.s32.totalorder %v17987_v63, %v14319_v48 }
 0x5ac   : > { %v5428_v16 = vpop.f32.mrf.mxu0  ;;  %13447 = vmatmul.mubr.msk.bf16.gmra.mxu0 %vm234_vm7, %v6509_v2  ;;  %v17990_v27 = vpop.permute.xlu0 %7853 }
 0x5ad   : > { %v17969_v12 = vadd.f32 %v5428_v16, %v17741_v59  ;;  %v6838_v42 = vpop.f32.mrf.mxu1  ;;  %12291 = vmatmul.mubr.msk.bf16.gmra.mxu1 %vm12290_vm9, %v14078_v61  ;;  %13452 = vmatprep.mubr.msk.bf16.mxu0 %vm14079_vm6, %v14075_v1  ;;  %vm7882_vm0 = vcmp.eq.s32.totalorder %v17990_v27, %v14319_v48  ;;  %vm7879_vm9 = vcmp.eq.s32.totalorder %v17987_v63, %v14316_v47 }
 0x5ae   : > { %v13346_v44 = vpop.f32.mrf.mxu0  ;;  %12292 = vmatprep.mubr.msk.bf16.mxu1 %vm542_vm4, %v7948_v60  ;;  %8377 = vmatpush1.bf16.msra.mxu1 %v17752_v32  ;;  %vm7881_vm10 = vcmp.eq.s32.totalorder %v17990_v27, %v14316_v47 }
 0x5af   : > { %v6840_v29 = vpop.f32.mrf.mxu1  ;;  %8378 = vmatprep.subr.bf16.mxu1 %v14074_v0  ;;  %vm12299_vm11 = vmpackc.low %vm7881_vm10, %vm7879_vm9 }
 0x5b0   : > { %v5431_v59 = vpop.f32.mrf.mxu0 }
 0x5b1   : > { %v17985_v43 = vadd.f32 %v5431_v59, %v17764_v4  ;;  %v6841_v17 = vpop.f32.mrf.mxu1  ;;  %v7950_v4 = vpack.c.bf16 %v12275_v3, %v12273_v18  ;;  %v12277_v59 = vsel %vm7880_vm15, 1.0, %v14075_v1  ;;  %v12279_v18 = vsel %vm7882_vm0, 1.0, %v14075_v1  ;;  %v18018_v3 = vpop.permute.xlu1 %8204 }
 0x5b2   : > { %v6893_v2 = vpack.c.bf16 %v6841_v17, %v6838_v42  ;;  %v13347_v41 = vpop.f32.mrf.mxu0  ;;  %8379 = vmatpush1.bf16.msra.mxu1 %v17769_v33  ;;  %v7952_v46 = vpack.c.bf16 %v12279_v18, %v12277_v59  ;;  %vm8246_vm5 = vcmp.eq.s32.totalorder %v18018_v3, %v14319_v48 }
 0x5b3   : > { %v6843_v60 = vpop.f32.mrf.mxu1  ;;  %8386 = vmatprep.subr.bf16.mxu1 %v14074_v0 }
 0x5b4   : > { %v5436_v16 = vpop.f32.mrf.mxu0  ;;  %13453 = vmatmul.mubr.msk.bf16.vlgmr.msra.gmra.mxu0 %vm234_vm7, %v6893_v2 }
 0x5b5   : > { %v18001_v42 = vadd.f32 %v5436_v16, %v17783_v36  ;;  %v6846_v44 = vpop.f32.mrf.mxu1  ;;  %12294 = vmatmul.mubr.msk.bf16.gmra.mxu1 %vm12293_vm14, %v14078_v61  ;;  %13456 = vmatprep.mubr.msk.bf16.mxu0 %vm14079_vm6, %v14075_v1  ;;  %vm8245_vm14 = vcmp.eq.s32.totalorder %v18018_v3, %v14316_v47 }
 0x5b6   : > { %v13350_v54 = vpop.f32.mrf.mxu0  ;;  %12295 = vmatprep.mubr.msk.bf16.mxu1 %vm542_vm4, %v7950_v4  ;;  %8387 = vmatpush2.bf16.msra.mxu1 %v17794_v49 }
 0x5b7   : > { %v6848_v29 = vpop.f32.mrf.mxu1  ;;  %8388 = vmatprep.subr.bf16.mxu1 %v14074_v0  ;;  %13481 = vmatpush3.bf16.msra.mxu0 %v13921_v13  ;;  %v8208_v13 = vpop.permute.xlu0 %8207  ;;  %v12312_v54 = vsel %vm8246_vm5, 1.0, %v14075_v1 }
 0x5b8   : > { %v5439_v36 = vpop.f32.mrf.mxu0  ;;  %13510 = vmatprep.subr.bf16.mxu0 %v14075_v1  ;;  %vm8248_vm8 = vcmp.eq.s32.totalorder %v8208_v13, %v14319_v48  ;;  %v18040_v29 = vpop.permute.xlu1 %8210  ;;  %vm8247_vm15 = vcmp.eq.s32.totalorder %v8208_v13, %v14316_v47 }
 0x5b9   : > { %v18021_v17 = vadd.f32 %v5439_v36, %v17806_v55  ;;  %v6849_v2 = vpop.f32.mrf.mxu1  ;;  %v12314_v36 = vsel %vm8248_vm8, 1.0, %v14075_v1  ;;  %vm8250_vm12 = vcmp.eq.s32.totalorder %v18040_v29, %v14319_v48  ;;  %vm12340_vm0 = vmpackc.low %vm8247_vm15, %vm8245_vm14 }
 0x5ba   : > { %v6894_v41 = vpack.c.bf16 %v6849_v2, %v6846_v44  ;;  %v13351_v60 = vpop.f32.mrf.mxu0  ;;  %8389 = vmatpush2.bf16.msra.mxu1 %v17811_v23 }
 0x5bb   : > { %v6851_v4 = vpop.f32.mrf.mxu1  ;;  %8390 = vmatprep.subr.bf16.mxu1 %v14074_v0  ;;  %v8217_v13 = vpop.permute.xlu0 %8216 }
 0x5bc   : > { %v5444_v55 = vpop.f32.mrf.mxu0  ;;  %13457 = vmatmul.mubr.msk.bf16.gmra.mxu0 %vm234_vm7, %v6894_v41  ;;  %v8330_v41 = vpack.c.bf16 %v12314_v36, %v12312_v54  ;;  %v8214_v63 = vpop.permute.xlu1 %8213  ;;  %v12316_v54 = vsel %vm8250_vm12, 1.0, %v14075_v1  ;;  %vm8254_vm2 = vcmp.eq.s32.totalorder %v8217_v13, %v14319_v48  ;;  %vm8253_vm12 = vcmp.eq.s32.totalorder %v8217_v13, %v14316_v47 }
 0x5bd   : > { %v18032_v16 = vadd.f32 %v5444_v55, %v17826_v51  ;;  %v6854_v44 = vpop.f32.mrf.mxu1  ;;  %12297 = vmatmul.mubr.msk.bf16.gmra.mxu1 %vm12296_vm3, %v14078_v61  ;;  %13460 = vmatprep.mubr.msk.bf16.mxu0 %vm14079_vm6, %v14075_v1  ;;  %vm8252_vm13 = vcmp.eq.s32.totalorder %v8214_v63, %v14319_v48  ;;  %vm8249_vm3 = vcmp.eq.s32.totalorder %v18040_v29, %v14316_v47 }
 0x5be   : > { %v13354_v40 = vpop.f32.mrf.mxu0  ;;  %12298 = vmatprep.mubr.msk.bf16.mxu1 %vm542_vm4, %v7952_v46  ;;  %8391 = vmatpush2.bf16.msra.mxu1 %v17833_v45  ;;  %v12318_v36 = vsel %vm8252_vm13, 1.0, %v14075_v1  ;;  %vm8251_vm5 = vcmp.eq.s32.totalorder %v8214_v63, %v14316_v47 }
 0x5bf   : > { %v6856_v59 = vpop.f32.mrf.mxu1  ;;  %8392 = vmatprep.subr.bf16.mxu1 %v14074_v0  ;;  %vm12343_vm8 = vmpackc.low %vm8251_vm5, %vm8249_vm3 }
 0x5c0   : > { %v5447_v51 = vpop.f32.mrf.mxu0  ;;  %v18074_v3 = vpop.permute.xlu1 %8219 }
 0x5c1   : > { %v18049_v18 = vadd.f32 %v5447_v51, %v17844_v52  ;;  %v6857_v2 = vpop.f32.mrf.mxu1  ;;  %vm8256_vm1 = vcmp.eq.s32.totalorder %v18074_v3, %v14319_v48 }
 0x5c2   : > { %v6895_v60 = vpack.c.bf16 %v6857_v2, %v6854_v44  ;;  %v13355_v4 = vpop.f32.mrf.mxu0  ;;  %8393 = vmatpush2.bf16.msra.mxu1 %v17847_v57 }
 0x5c3   : > { %v6859_v46 = vpop.f32.mrf.mxu1  ;;  %8394 = vmatprep.subr.bf16.mxu1 %v14074_v0  ;;  %v14102_v4 = vmov 25  }
 0x5c4   : > { %v5452_v55 = vpop.f32.mrf.mxu0  ;;  %13461 = vmatmul.mubr.msk.bf16.gmra.mxu0 %vm234_vm7, %v6895_v60  ;;  %13888 = vset.pattern.permute.xlu1 %v14102_v4  ;;  %v8332_v46 = vpack.c.bf16 %v12318_v36, %v12316_v54  ;;  %v18103_v63 = vpop.permute.xlu1 %8225 }
 0x5c5   : > { %v18055_v40 = vadd.f32 %v5452_v55, %v17855_v62  ;;  %v6862_v27 = vpop.f32.mrf.mxu1  ;;  %12300 = vmatmul.mubr.msk.bf16.gmra.mxu1 %vm12299_vm11, %v14078_v61  ;;  %13464 = vmatprep.mubr.msk.bf16.mxu0 %vm14079_vm6, %v14075_v1  ;;  %vm8260_vm9 = vcmp.eq.s32.totalorder %v18103_v63, %v14319_v48  ;;  %vm8255_vm11 = vcmp.eq.s32.totalorder %v18074_v3, %v14316_v47 }
 0x5c6   : > { %v13358_v52 = vpop.f32.mrf.mxu0  ;;  %8395 = vmatpush2.bf16.msra.mxu1 %v17864_v8  ;;  %12339 = vmatprep.mubr.msk.bf16.mxu1 %vm542_vm4, %v8330_v41  ;;  %vm12346_vm13 = vmpackc.low %vm8255_vm11, %vm8253_vm12 }
 0x5c7   : > { %v6864_v44 = vpop.f32.mrf.mxu1  ;;  %8754 = vmatprep.subr.bf16.mxu1 %v14074_v0  ;;  %13887 = vset.pattern.permute.xlu0 %v14102_v4 }
 0x5c8   : > { %v5455_v62 = vpop.f32.mrf.mxu0  ;;  %10157 = vperm.xlu1 %13888, %v14174_v10   ;;  %10154 = vperm.xlu0 %13887, %v14167_v7   ;;  %v18132_v13 = vpop.permute.xlu1 %8231 }
 0x5c9   : > { %v18072_v59 = vadd.f32 %v5455_v62, %v17877_v22  ;;  %v6865_v51 = vpop.f32.mrf.mxu1  ;;  %v12322_v62 = vsel %vm8256_vm1, 1.0, %v14075_v1  ;;  %vm8264_vm14 = vcmp.eq.s32.totalorder %v18132_v13, %v14319_v48 }
 0x5ca   : > { %v6896_v2 = vpack.c.bf16 %v6865_v51, %v6862_v27  ;;  %v13359_v60 = vpop.f32.mrf.mxu0 }
 0x5cb   : > { %v6867_v41 = vpop.f32.mrf.mxu1 }
 0x5cc   : > { %v5794_v55 = vpop.f32.mrf.mxu0  ;;  %13465 = vmatmul.mubr.msk.bf16.gmra.mxu0 %vm234_vm7, %v6896_v2  ;;  %10160 = vperm.xlu1 %13888, %v14165_v6  }
 0x5cd   : > { %v18079_v22 = vadd.f32 %v5794_v55, %v17885_v28  ;;  %v6870_v52 = vpop.f32.mrf.mxu1  ;;  %12341 = vmatmul.mubr.msk.bf16.vlgmr.msra.gmra.mxu1 %vm12340_vm0, %v14078_v61  ;;  %13468 = vmatprep.mubr.msk.bf16.mxu0 %vm14079_vm6, %v14075_v1  ;;  %vm8259_vm0 = vcmp.eq.s32.totalorder %v18103_v63, %v14316_v47 }
 0x5ce   : > { %8755 = vmatpush1.bf16.msra.mxu1 %v17626_v11  ;;  %v13364_v27 = vpop.f32.mrf.mxu0  ;;  %12342 = vmatprep.mubr.msk.bf16.mxu1 %vm542_vm4, %v8332_v46  ;;  %v12320_v11 = vsel %vm8254_vm2, 1.0, %v14075_v1 }
 0x5cf   : > { %v6872_v44 = vpop.f32.mrf.mxu1  ;;  %8756 = vmatprep.subr.bf16.mxu1 %v14074_v0  ;;  %10163 = vperm.xlu0 %13887, %v14172_v9   ;;  %v8334_v29 = vpack.c.bf16 %v12322_v62, %v12320_v11 }
 0x5d0   : > { %v5797_v28 = vpop.f32.mrf.mxu0  ;;  %10166 = vperm.xlu1 %13888, %v14188_v15  }
 0x5d1   : > { %v18098_v54 = vadd.f32 %v5797_v28, %v17904_v58  ;;  %v6873_v36 = vpop.f32.mrf.mxu1  ;;  %v8223_v58 = vpop.permute.xlu0 %8222 }
 0x5d2   : > { %v6897_v51 = vpack.c.bf16 %v6873_v36, %v6870_v52  ;;  %v13365_v2 = vpop.f32.mrf.mxu0  ;;  %8757 = vmatpush1.bf16.msra.mxu1 %v17642_v5  ;;  %vm8258_vm10 = vcmp.eq.s32.totalorder %v8223_v58, %v14319_v48  ;;  %v12326_v52 = vsel %vm8260_vm9, 1.0, %v14075_v1  ;;  %vm8257_vm1 = vcmp.eq.s32.totalorder %v8223_v58, %v14316_v47  ;;  %v18161_v58 = vpop.permute.xlu1 %8237 }
 0x5d3   : > { %v6875_v60 = vpop.f32.mrf.mxu1  ;;  %8758 = vmatprep.subr.bf16.mxu1 %v14074_v0  ;;  %10169 = vperm.xlu0 %13887, %v14186_v14   ;;  %v12324_v27 = vsel %vm8258_vm10, 1.0, %v14075_v1  ;;  %vm12349_vm2 = vmpackc.low %vm8259_vm0, %vm8257_vm1  ;;  %vm8268_vm3 = vcmp.eq.s32.totalorder %v18161_v58, %v14319_v48 }
 0x5d4   : > { %v5802_v41 = vpop.f32.mrf.mxu0  ;;  %13469 = vmatmul.mubr.msk.bf16.gmra.mxu0 %vm234_vm7, %v6897_v51  ;;  %10172 = vperm.xlu1 %13888, %v14203_v20   ;;  %v8336_v3 = vpack.c.bf16 %v12326_v52, %v12324_v27 }
 0x5d5   : > { %v18108_v4 = vadd.f32 %v5802_v41, %v17914_v38  ;;  %v6878_v46 = vpop.f32.mrf.mxu1  ;;  %12344 = vmatmul.mubr.msk.bf16.gmra.mxu1 %vm12343_vm8, %v14078_v61  ;;  %13472 = vmatprep.mubr.msk.bf16.mxu0 %vm14079_vm6, %v14075_v1  ;;  %vm8263_vm8 = vcmp.eq.s32.totalorder %v18132_v13, %v14316_v47 }
 0x5d6   : > { %v13368_v5 = vpop.f32.mrf.mxu0  ;;  %12345 = vmatprep.mubr.msk.bf16.mxu1 %vm542_vm4, %v8334_v29  ;;  %8759 = vmatpush1.bf16.msra.mxu1 %v17668_v53  ;;  %v12330_v29 = vsel %vm8264_vm14, 1.0, %v14075_v1 }
 0x5d7   : > { %v6880_v55 = vpop.f32.mrf.mxu1  ;;  %8760 = vmatprep.subr.bf16.mxu1 %v14074_v0  ;;  %10175 = vperm.xlu0 %13887, %v14201_v19  }
 0x5d8   : > { %v5805_v38 = vpop.f32.mrf.mxu0  ;;  %10178 = vperm.xlu1 %13888, %v14216_v25  }
 0x5d9   : > { %v18127_v44 = vadd.f32 %v5805_v38, %v17933_v50  ;;  %v6881_v53 = vpop.f32.mrf.mxu1  ;;  %v8229_v50 = vpop.permute.xlu0 %8228 }
 0x5da   : > { %v6898_v28 = vpack.c.bf16 %v6881_v53, %v6878_v46  ;;  %v13369_v62 = vpop.f32.mrf.mxu0  ;;  %8761 = vmatpush1.bf16.msra.mxu1 %v17684_v21  ;;  %vm8262_vm15 = vcmp.eq.s32.totalorder %v8229_v50, %v14319_v48  ;;  %vm8261_vm9 = vcmp.eq.s32.totalorder %v8229_v50, %v14316_v47  ;;  %v13922_v50 = vld [vmem:[%s19706_s3 + $0x90] sm:$0xff]  }
 0x5db   : > { %v6883_v11 = vpop.f32.mrf.mxu1  ;;  %8762 = vmatprep.subr.bf16.mxu1 %v14074_v0  ;;  %10181 = vperm.xlu0 %13887, %v14214_v24   ;;  %v12328_v41 = vsel %vm8262_vm15, 1.0, %v14075_v1  ;;  %v12334_v62 = vsel %vm8268_vm3, 1.0, %v14075_v1  ;;  %vm12352_vm10 = vmpackc.low %vm8263_vm8, %vm8261_vm9 }
 0x5dc   : > { %v5810_v36 = vpop.f32.mrf.mxu0  ;;  %13473 = vmatmul.mubr.msk.bf16.gmra.mxu0 %vm234_vm7, %v6898_v28  ;;  %10184 = vperm.xlu1 %13888, %v14230_v31   ;;  %v8338_v63 = vpack.c.bf16 %v12330_v29, %v12328_v41 }
 0x5dd   : > { %v18137_v51 = vadd.f32 %v5810_v36, %v17943_v26  ;;  %v6886_v2 = vpop.f32.mrf.mxu1  ;;  %12347 = vmatmul.mubr.msk.bf16.gmra.mxu1 %vm12346_vm13, %v14078_v61  ;;  %13476 = vmatprep.mubr.msk.bf16.mxu0 %vm14079_vm6, %v14075_v1  ;;  %vm8267_vm13 = vcmp.eq.s32.totalorder %v18161_v58, %v14316_v47 }
 0x5de   : > { %v13372_v21 = vpop.f32.mrf.mxu0  ;;  %12348 = vmatprep.mubr.msk.bf16.mxu1 %vm542_vm4, %v8336_v3  ;;  %8763 = vmatpush1.bf16.msra.mxu1 %v17710_v37 }
 0x5df   : > { %v6888_v60 = vpop.f32.mrf.mxu1  ;;  %8764 = vmatprep.subr.bf16.mxu1 %v14074_v0  ;;  %10187 = vperm.xlu0 %13887, %v14228_v30  }
 0x5e0   : > { %v5813_v26 = vpop.f32.mrf.mxu0  ;;  %10190 = vperm.xlu1 %13888, %v14242_v35  }
 0x5e1   : > { %v18156_v46 = vadd.f32 %v5813_v26, %v17962_v39  ;;  %v6889_v37 = vpop.f32.mrf.mxu1  ;;  %v8235_v39 = vpop.permute.xlu0 %8234 }
 0x5e2   : > { %v6899_v5 = vpack.c.bf16 %v6889_v37, %v6886_v2  ;;  %v13373_v55 = vpop.f32.mrf.mxu0  ;;  %8765 = vmatpush1.bf16.msra.mxu1 %v17726_v56  ;;  %vm8266_vm5 = vcmp.eq.s32.totalorder %v8235_v39, %v14319_v48  ;;  %vm8265_vm14 = vcmp.eq.s32.totalorder %v8235_v39, %v14316_v47 }
 0x5e3   : > { %v6891_v38 = vpop.f32.mrf.mxu1  ;;  %8766 = vmatprep.subr.bf16.mxu1 %v14074_v0  ;;  %10193 = vperm.xlu0 %13887, %v14240_v34   ;;  %v12332_v11 = vsel %vm8266_vm5, 1.0, %v14075_v1  ;;  %vm12355_vm15 = vmpackc.low %vm8267_vm13, %vm8265_vm14 }
 0x5e4   : > { %v5818_v52 = vpop.f32.mrf.mxu0  ;;  %13477 = vmatmul.mubr.msk.bf16.gmra.mxu0 %vm234_vm7, %v6899_v5 }
 0x5e5   : > { %v18166_v27 = vadd.f32 %v5818_v52, %v17969_v12  ;;  %v7228_v53 = vpop.f32.mrf.mxu1  ;;  %12350 = vmatmul.mubr.msk.bf16.gmra.mxu1 %vm12349_vm2, %v14078_v61  ;;  %13482 = vmatprep.mubr.msk.bf16.mxu0 %vm14079_vm6, %v14075_v1  ;;  %v18189_v60 = vpop.permute.xlu0 %8240 }
 0x5e6   : > { %v13376_v56 = vpop.f32.mrf.mxu0  ;;  %12351 = vmatprep.mubr.msk.bf16.mxu1 %vm542_vm4, %v8338_v63  ;;  %8767 = vmatpush1.bf16.msra.mxu1 %v17752_v32  ;;  %v18186_v32 = vpop.permute.xlu1 %8243  ;;  %vm8270_vm12 = vcmp.eq.s32.totalorder %v18189_v60, %v14319_v48  ;;  %vm8269_vm3 = vcmp.eq.s32.totalorder %v18189_v60, %v14316_v47 }
 0x5e7   : > { %v7230_v28 = vpop.f32.mrf.mxu1  ;;  %8768 = vmatprep.subr.bf16.mxu1 %v14074_v0  ;;  %vm8272_vm11 = vcmp.eq.s32.totalorder %v18186_v32, %v14319_v48  ;;  %v12336_v55 = vsel %vm8270_vm12, 1.0, %v14075_v1  ;;  %vm8271_vm2 = vcmp.eq.s32.totalorder %v18186_v32, %v14316_v47 }
 0x5e8   : > { %v5821_v12 = vpop.f32.mrf.mxu0  ;;  %v12338_v5 = vsel %vm8272_vm11, 1.0, %v14075_v1  ;;  %vm12358_vm5 = vmpackc.low %vm8271_vm2, %vm8269_vm3 }
 0x5e9   : > { %v18184_v3 = vadd.f32 %v5821_v12, %v17985_v43  ;;  %v7231_v36 = vpop.f32.mrf.mxu1  ;;  %v8340_v43 = vpack.c.bf16 %v12334_v62, %v12332_v11  ;;  %v8595_v56 = vpop.permute.xlu0 %8594  ;;  %v8342_v39 = vpack.c.bf16 %v12338_v5, %v12336_v55 }
 0x5ea   : > { %v7283_v2 = vpack.c.bf16 %v7231_v36, %v7228_v53  ;;  %v13377_v21 = vpop.f32.mrf.mxu0  ;;  %8769 = vmatpush1.bf16.msra.mxu1 %v17769_v33  ;;  %v18221_v63 = vpop.permute.xlu1 %8597  ;;  %vm8636_vm1 = vcmp.eq.s32.totalorder %v8595_v56, %v14319_v48  ;;  %vm8635_vm11 = vcmp.eq.s32.totalorder %v8595_v56, %v14316_v47 }
 0x5eb   : > { %v7233_v26 = vpop.f32.mrf.mxu1  ;;  %8776 = vmatprep.subr.bf16.mxu1 %v14074_v0  ;;  %vm8638_vm0 = vcmp.eq.s32.totalorder %v18221_v63, %v14319_v48  ;;  %v12371_v11 = vsel %vm8636_vm1, 1.0, %v14075_v1 }
 0x5ec   : > { %v5826_v29 = vpop.f32.mrf.mxu0  ;;  %13483 = vmatmul.mubr.msk.bf16.vlgmr.msra.gmra.mxu0 %vm234_vm7, %v7283_v2  ;;  %v12373_v62 = vsel %vm8638_vm0, 1.0, %v14075_v1 }
 0x5ed   : > { %v18200_v41 = vadd.f32 %v5826_v29, %v18001_v42  ;;  %v7236_v33 = vpop.f32.mrf.mxu1  ;;  %12353 = vmatmul.mubr.msk.bf16.gmra.mxu1 %vm12352_vm10, %v14078_v61  ;;  %13486 = vmatprep.mubr.msk.bf16.mxu0 %vm14079_vm6, %v14075_v1  ;;  %v8720_v26 = vpack.c.bf16 %v12373_v62, %v12371_v11  ;;  %v8604_v32 = vpop.permute.xlu0 %8603  ;;  %vm8637_vm10 = vcmp.eq.s32.totalorder %v18221_v63, %v14316_v47 }
 0x5ee   : > { %v13380_v13 = vpop.f32.mrf.mxu0  ;;  %12354 = vmatprep.mubr.msk.bf16.mxu1 %vm542_vm4, %v8340_v43  ;;  %8777 = vmatpush2.bf16.msra.mxu1 %v17794_v49  ;;  %v18252_v29 = vpop.permute.xlu1 %8600  ;;  %vm8642_vm9 = vcmp.eq.s32.totalorder %v8604_v32, %v14319_v48  ;;  %vm12399_vm12 = vmpackc.low %vm8637_vm10, %vm8635_vm11  ;;  %vm8641_vm0 = vcmp.eq.s32.totalorder %v8604_v32, %v14316_v47 }
 0x5ef   : > { %v7238_v37 = vpop.f32.mrf.mxu1  ;;  %8778 = vmatprep.subr.bf16.mxu1 %v14074_v0  ;;  %13511 = vmatpush3.bf16.msra.mxu0 %v13922_v50  ;;  %vm8640_vm8 = vcmp.eq.s32.totalorder %v18252_v29, %v14319_v48 }
 0x5f0   : > { %v5829_v42 = vpop.f32.mrf.mxu0  ;;  %13540 = vmatprep.subr.bf16.mxu0 %v14075_v1 }
 0x5f1   : > { %v18219_v38 = vadd.f32 %v5829_v42, %v18021_v17  ;;  %v7239_v49 = vpop.f32.mrf.mxu1  ;;  %v12375_v42 = vsel %vm8640_vm8, 1.0, %v14075_v1  ;;  %v18281_v56 = vpop.permute.xlu0 %8609 }
 0x5f2   : > { %v7284_v52 = vpack.c.bf16 %v7239_v49, %v7236_v33  ;;  %v13381_v53 = vpop.f32.mrf.mxu0  ;;  %8779 = vmatpush2.bf16.msra.mxu1 %v17811_v23  ;;  %vm8646_vm14 = vcmp.eq.s32.totalorder %v18281_v56, %v14319_v48  ;;  %vm8645_vm8 = vcmp.eq.s32.totalorder %v18281_v56, %v14316_v47 }
 0x5f3   : > { %v7241_v28 = vpop.f32.mrf.mxu1  ;;  %8780 = vmatprep.subr.bf16.mxu1 %v14074_v0 }
 0x5f4   : > { %v5834_v17 = vpop.f32.mrf.mxu0  ;;  %13487 = vmatmul.mubr.msk.bf16.gmra.mxu0 %vm234_vm7, %v7284_v52 }
 0x5f5   : > { %v18233_v12 = vadd.f32 %v5834_v17, %v18032_v16  ;;  %v7244_v23 = vpop.f32.mrf.mxu1  ;;  %12356 = vmatmul.mubr.msk.bf16.gmra.mxu1 %vm12355_vm15, %v14078_v61  ;;  %13490 = vmatprep.mubr.msk.bf16.mxu0 %vm14079_vm6, %v14075_v1  ;;  %vm8639_vm15 = vcmp.eq.s32.totalorder %v18252_v29, %v14316_v47 }
 0x5f6   : > { %v13384_v58 = vpop.f32.mrf.mxu0  ;;  %12357 = vmatprep.mubr.msk.bf16.mxu1 %vm542_vm4, %v8342_v39  ;;  %8781 = vmatpush2.bf16.msra.mxu1 %v17833_v45  ;;  %vm12402_vm1 = vmpackc.low %vm8641_vm0, %vm8639_vm15 }
 0x5f7   : > { %v7246_v36 = vpop.f32.mrf.mxu1  ;;  %8782 = vmatprep.subr.bf16.mxu1 %v14074_v0  ;;  %v12381_v58 = vsel %vm8646_vm14, 1.0, %v14075_v1 }
 0x5f8   : > { %v5837_v16 = vpop.f32.mrf.mxu0 }
 0x5f9   : > { %v18248_v2 = vadd.f32 %v5837_v16, %v18049_v18  ;;  %v7247_v21 = vpop.f32.mrf.mxu1 }
 0x5fa   : > { %v7285_v45 = vpack.c.bf16 %v7247_v21, %v7244_v23  ;;  %v13385_v50 = vpop.f32.mrf.mxu0  ;;  %8783 = vmatpush2.bf16.msra.mxu1 %v17847_v57  ;;  %v18310_v21 = vld [vmem:[%s14182_s9 + $0x30] sm:$0xff]  }
 0x5fb   : > { %v7249_v43 = vpop.f32.mrf.mxu1  ;;  %8784 = vmatprep.subr.bf16.mxu1 %v14074_v0 }
 0x5fc   : > { %v5842_v33 = vpop.f32.mrf.mxu0  ;;  %13491 = vmatmul.mubr.msk.bf16.gmra.mxu0 %vm234_vm7, %v7285_v45  ;;  %v18322_v45 = vpop.permute.xlu0 %8615 }
 0x5fd   : > { %v18256_v60 = vadd.f32 %v5842_v33, %v18055_v40  ;;  %v7252_v18 = vpop.f32.mrf.mxu1  ;;  %12359 = vmatmul.mubr.msk.bf16.gmra.mxu1 %vm12358_vm5, %v14078_v61  ;;  %13494 = vmatprep.mubr.msk.bf16.mxu0 %vm14079_vm6, %v14075_v1  ;;  %v14103_v40 = vmov 26   ;;  %vm8650_vm3 = vcmp.eq.s32.totalorder %v18322_v45, %v14319_v48 }
 0x5fe   : > { %v13388_v57 = vpop.f32.mrf.mxu0  ;;  %8785 = vmatpush2.bf16.msra.mxu1 %v17864_v8  ;;  %12398 = vmatprep.mubr.msk.bf16.mxu1 %vm542_vm4, %v8720_v26  ;;  %v12377_v8 = vsel %vm8642_vm9, 1.0, %v14075_v1  ;;  %v12385_v32 = vsel %vm8650_vm3, 1.0, %v14075_v1 }
 0x5ff   : > { %v7254_v13 = vpop.f32.mrf.mxu1  ;;  %9144 = vmatprep.subr.bf16.mxu1 %v14074_v0  ;;  %13889 = vset.pattern.permute.xlu1 %v14103_v40  ;;  %v8722_v53 = vpack.c.bf16 %v12377_v8, %v12375_v42 }
 0x600   : > { %v5845_v37 = vpop.f32.mrf.mxu0  ;;  %10544 = vperm.xlu1 %13889, %v14167_v7   ;;  %13890 = vset.pattern.permute.xlu0 %v14103_v40  ;;  %v18277_v7 = vpop.permute.xlu1 %8606 }
 0x601   : > { %v18274_v5 = vadd.f32 %v5845_v37, %v18072_v59  ;;  %v7255_v55 = vpop.f32.mrf.mxu1  ;;  %10547 = vperm.xlu0 %13890, %v14174_v10   ;;  %vm8644_vm13 = vcmp.eq.s32.totalorder %v18277_v7, %v14319_v48  ;;  %v18294_v10 = vld [vmem:[%s14182_s9 + $0x38] sm:$0xff]   ;;  %vm8643_vm5 = vcmp.eq.s32.totalorder %v18277_v7, %v14316_v47  ;;  %v18364_v8 = vpop.permute.xlu0 %8621 }
 0x602   : > { %v7286_v49 = vpack.c.bf16 %v7255_v55, %v7252_v18  ;;  %v13389_v52 = vpop.f32.mrf.mxu0  ;;  %v12379_v23 = vsel %vm8644_vm13, 1.0, %v14075_v1  ;;  %vm12405_vm9 = vmpackc.low %vm8645_vm8, %vm8643_vm5  ;;  %vm8654_vm11 = vcmp.eq.s32.totalorder %v18364_v8, %v14319_v48  ;;  %vm8649_vm13 = vcmp.eq.s32.totalorder %v18322_v45, %v14316_v47 }
 0x603   : > { %v7257_v63 = vpop.f32.mrf.mxu1 }
 0x604   : > { %v6184_v28 = vpop.f32.mrf.mxu0  ;;  %13495 = vmatmul.mubr.msk.bf16.gmra.mxu0 %vm234_vm7, %v7286_v49  ;;  %10550 = vperm.xlu1 %13889, %v14165_v6  }
 0x605   : > { %v18284_v59 = vadd.f32 %v6184_v28, %v18079_v22  ;;  %v7260_v39 = vpop.f32.mrf.mxu1  ;;  %12400 = vmatmul.mubr.msk.bf16.vlgmr.msra.gmra.mxu1 %vm12399_vm12, %v14078_v61  ;;  %13498 = vmatprep.mubr.msk.bf16.mxu0 %vm14079_vm6, %v14075_v1 }
 0x606   : > { %9145 = vmatpush1.bf16.msra.mxu1 %v18294_v10  ;;  %v13394_v6 = vpop.f32.mrf.mxu0  ;;  %12401 = vmatprep.mubr.msk.bf16.mxu1 %vm542_vm4, %v8722_v53  ;;  %v12389_v53 = vsel %vm8654_vm11, 1.0, %v14075_v1 }
 0x607   : > { %v7262_v22 = vpop.f32.mrf.mxu1  ;;  %9146 = vmatprep.subr.bf16.mxu1 %v14074_v0  ;;  %10556 = vperm.xlu0 %13890, %v14188_v15  }
 0x608   : > { %v6187_v17 = vpop.f32.mrf.mxu0  ;;  %10553 = vperm.xlu1 %13889, %v14172_v9   ;;  %v8724_v9 = vpack.c.bf16 %v12381_v58, %v12379_v23 }
 0x609   : > { %v18307_v62 = vadd.f32 %v6187_v17, %v18098_v54  ;;  %v7263_v11 = vpop.f32.mrf.mxu1  ;;  %v18318_v54 = vpop.permute.xlu1 %8612 }
 0x60a   : > { %v7287_v36 = vpack.c.bf16 %v7263_v11, %v7260_v39  ;;  %v13395_v16 = vpop.f32.mrf.mxu0  ;;  %9147 = vmatpush1.bf16.msra.mxu1 %v18310_v21  ;;  %vm8648_vm2 = vcmp.eq.s32.totalorder %v18318_v54, %v14319_v48  ;;  %vm8647_vm12 = vcmp.eq.s32.totalorder %v18318_v54, %v14316_v47 }
 0x60b   : > { %v7265_v15 = vpop.f32.mrf.mxu1  ;;  %9148 = vmatprep.subr.bf16.mxu1 %v14074_v0  ;;  %10562 = vperm.xlu0 %13890, %v14203_v20   ;;  %v12383_v33 = vsel %vm8648_vm2, 1.0, %v14075_v1  ;;  %vm12408_vm14 = vmpackc.low %vm8649_vm13, %vm8647_vm12  ;;  %vm8653_vm2 = vcmp.eq.s32.totalorder %v18364_v8, %v14316_v47 }
 0x60c   : > { %v6192_v26 = vpop.f32.mrf.mxu0  ;;  %13499 = vmatmul.mubr.msk.bf16.gmra.mxu0 %vm234_vm7, %v7287_v36  ;;  %10559 = vperm.xlu1 %13889, %v14186_v14   ;;  %v18336_v14 = vld [vmem:[%s14182_s9 + $0x28] sm:$0xff]  }
 0x60d   : > { %v18325_v50 = vadd.f32 %v6192_v26, %v18108_v4  ;;  %v7268_v43 = vpop.f32.mrf.mxu1  ;;  %12403 = vmatmul.mubr.msk.bf16.gmra.mxu1 %vm12402_vm1, %v14078_v61  ;;  %13502 = vmatprep.mubr.msk.bf16.mxu0 %vm14079_vm6, %v14075_v1 }
 0x60e   : > { %v13398_v20 = vpop.f32.mrf.mxu0  ;;  %12404 = vmatprep.mubr.msk.bf16.mxu1 %vm542_vm4, %v8724_v9  ;;  %9149 = vmatpush1.bf16.msra.mxu1 %v18336_v14 }
 0x60f   : > { %v7270_v4 = vpop.f32.mrf.mxu1  ;;  %9150 = vmatprep.subr.bf16.mxu1 %v14074_v0  ;;  %10568 = vperm.xlu0 %13890, %v14216_v25   ;;  %v18352_v25 = vld [vmem:[%s14182_s9 + $0x20] sm:$0xff]  }
 0x610   : > { %v6195_v29 = vpop.f32.mrf.mxu0  ;;  %10565 = vperm.xlu1 %13889, %v14201_v19   ;;  %v8726_v19 = vpack.c.bf16 %v12385_v32, %v12383_v33  ;;  %v18429_v20 = vld [vmem:[%s14182_s9] sm:$0xff]  }
 0x611   : > { %v18349_v18 = vadd.f32 %v6195_v29, %v18127_v44  ;;  %v7271_v57 = vpop.f32.mrf.mxu1  ;;  %v18360_v44 = vpop.permute.xlu1 %8618 }
 0x612   : > { %v7288_v13 = vpack.c.bf16 %v7271_v57, %v7268_v43  ;;  %v13399_v40 = vpop.f32.mrf.mxu0  ;;  %9151 = vmatpush1.bf16.msra.mxu1 %v18352_v25  ;;  %vm8652_vm10 = vcmp.eq.s32.totalorder %v18360_v44, %v14319_v48  ;;  %vm8651_vm1 = vcmp.eq.s32.totalorder %v18360_v44, %v14316_v47 }
 0x613   : > { %v7273_v37 = vpop.f32.mrf.mxu1  ;;  %9152 = vmatprep.subr.bf16.mxu1 %v14074_v0  ;;  %10574 = vperm.xlu0 %13890, %v14230_v31   ;;  %v12387_v63 = vsel %vm8652_vm10, 1.0, %v14075_v1  ;;  %vm12411_vm3 = vmpackc.low %vm8653_vm2, %vm8651_vm1 }
 0x614   : > { %v6200_v42 = vpop.f32.mrf.mxu0  ;;  %13503 = vmatmul.mubr.msk.bf16.gmra.mxu0 %vm234_vm7, %v7288_v13  ;;  %10571 = vperm.xlu1 %13889, %v14214_v24   ;;  %v18378_v24 = vld [vmem:[%s14182_s9 + $0x18] sm:$0xff]   ;;  %v18454_v37 = vld [vmem:[%s14182_s9 + $0x60] sm:$0xff]  }
 0x615   : > { %v18367_v55 = vadd.f32 %v6200_v42, %v18137_v51  ;;  %v7276_v49 = vpop.f32.mrf.mxu1  ;;  %12406 = vmatmul.mubr.msk.bf16.gmra.mxu1 %vm12405_vm9, %v14078_v61  ;;  %13506 = vmatprep.mubr.msk.bf16.mxu0 %vm14079_vm6, %v14075_v1  ;;  %v18398_v22 = vpop.permute.xlu1 %8624 }
 0x616   : > { %v13402_v31 = vpop.f32.mrf.mxu0  ;;  %12407 = vmatprep.mubr.msk.bf16.mxu1 %vm542_vm4, %v8726_v19  ;;  %9153 = vmatpush1.bf16.msra.mxu1 %v18378_v24  ;;  %vm8656_vm15 = vcmp.eq.s32.totalorder %v18398_v22, %v14319_v48  ;;  %vm8655_vm9 = vcmp.eq.s32.totalorder %v18398_v22, %v14316_v47  ;;  %v18489_v22 = vld [vmem:[%s14182_s9 + $0x50] sm:$0xff]  }
 0x617   : > { %v7278_v51 = vpop.f32.mrf.mxu1  ;;  %9154 = vmatprep.subr.bf16.mxu1 %v14074_v0  ;;  %10580 = vperm.xlu0 %13890, %v14242_v35   ;;  %v18394_v35 = vld [vmem:[%s14182_s9 + $0x10] sm:$0xff]   ;;  %v12391_v16 = vsel %vm8656_vm15, 1.0, %v14075_v1 }
 0x618   : > { %v6203_v52 = vpop.f32.mrf.mxu0  ;;  %10577 = vperm.xlu1 %13889, %v14228_v30   ;;  %v8728_v30 = vpack.c.bf16 %v12389_v53, %v12387_v63  ;;  %v18470_v63 = vld [vmem:[%s14182_s9 + $0x58] sm:$0xff]  }
 0x619   : > { %v18391_v7 = vadd.f32 %v6203_v52, %v18156_v46  ;;  %v7279_v28 = vpop.f32.mrf.mxu1  ;;  %v8628_v46 = vpop.permute.xlu0 %8627 }
 0x61a   : > { %v7289_v56 = vpack.c.bf16 %v7279_v28, %v7276_v49  ;;  %v13403_v39 = vpop.f32.mrf.mxu0  ;;  %9155 = vmatpush1.bf16.msra.mxu1 %v18394_v35  ;;  %vm8658_vm0 = vcmp.eq.s32.totalorder %v8628_v46, %v14319_v48  ;;  %v18426_v26 = vpop.permute.xlu1 %8630  ;;  %vm8657_vm10 = vcmp.eq.s32.totalorder %v8628_v46, %v14316_v47 }
 0x61b   : > { %v7281_v6 = vpop.f32.mrf.mxu1  ;;  %9156 = vmatprep.subr.bf16.mxu1 %v14074_v0  ;;  %v12393_v15 = vsel %vm8658_vm0, 1.0, %v14075_v1  ;;  %vm8660_vm5 = vcmp.eq.s32.totalorder %v18426_v26, %v14319_v48  ;;  %vm12414_vm11 = vmpackc.low %vm8657_vm10, %vm8655_vm9 }
 0x61c   : > { %v6208_v17 = vpop.f32.mrf.mxu0  ;;  %13507 = vmatmul.mubr.msk.bf16.gmra.mxu0 %vm234_vm7, %v7289_v56  ;;  %10583 = vperm.xlu1 %13889, %v14240_v34   ;;  %v18413_v34 = vld [vmem:[%s14182_s9 + $0x8] sm:$0xff]   ;;  %v8730_v33 = vpack.c.bf16 %v12393_v15, %v12391_v16  ;;  %v12395_v44 = vsel %vm8660_vm5, 1.0, %v14075_v1 }
 0x61d   : > { %v18403_v23 = vadd.f32 %v6208_v17, %v18166_v27  ;;  %v7618_v58 = vpop.f32.mrf.mxu1  ;;  %12409 = vmatmul.mubr.msk.bf16.gmra.mxu1 %vm12408_vm14, %v14078_v61  ;;  %13512 = vmatprep.mubr.msk.bf16.mxu0 %vm14079_vm6, %v14075_v1  ;;  %v18432_v4 = vpop.permute.xlu0 %8633  ;;  %vm8659_vm14 = vcmp.eq.s32.totalorder %v18426_v26, %v14316_v47 }
 0x61e   : > { %v13406_v11 = vpop.f32.mrf.mxu0  ;;  %12410 = vmatprep.mubr.msk.bf16.mxu1 %vm542_vm4, %v8728_v30  ;;  %9157 = vmatpush1.bf16.msra.mxu1 %v18413_v34  ;;  %vm8662_vm8 = vcmp.eq.s32.totalorder %v18432_v4, %v14319_v48  ;;  %v18464_v8 = vpop.permute.xlu1 %8984  ;;  %vm8661_vm15 = vcmp.eq.s32.totalorder %v18432_v4, %v14316_v47 }
 0x61f   : > { %v7620_v27 = vpop.f32.mrf.mxu1  ;;  %9158 = vmatprep.subr.bf16.mxu1 %v14074_v0  ;;  %v12397_v42 = vsel %vm8662_vm8, 1.0, %v14075_v1  ;;  %vm9026_vm12 = vcmp.eq.s32.totalorder %v18464_v8, %v14319_v48  ;;  %vm12417_vm0 = vmpackc.low %vm8661_vm15, %vm8659_vm14 }
 0x620   : > { %v6211_v36 = vpop.f32.mrf.mxu0  ;;  %v8732_v56 = vpack.c.bf16 %v12397_v42, %v12395_v44  ;;  %v12430_v17 = vsel %vm9026_vm12, 1.0, %v14075_v1 }
 0x621   : > { %v18424_v9 = vadd.f32 %v6211_v36, %v18184_v3  ;;  %v7621_v54 = vpop.f32.mrf.mxu1  ;;  %v13923_v3 = vld [vmem:[%s19706_s3 + $0x98] sm:$0xff]   ;;  %v8988_v53 = vpop.permute.xlu0 %8987 }
 0x622   : > { %v7673_v45 = vpack.c.bf16 %v7621_v54, %v7618_v58  ;;  %v13407_v43 = vpop.f32.mrf.mxu0  ;;  %9159 = vmatpush1.bf16.msra.mxu1 %v18429_v20  ;;  %vm9028_vm13 = vcmp.eq.s32.totalorder %v8988_v53, %v14319_v48  ;;  %v18493_v46 = vpop.permute.xlu1 %8990  ;;  %vm9027_vm5 = vcmp.eq.s32.totalorder %v8988_v53, %v14316_v47 }
 0x623   : > { %v7623_v29 = vpop.f32.mrf.mxu1  ;;  %9166 = vmatprep.subr.bf16.mxu1 %v14074_v0  ;;  %vm9030_vm1 = vcmp.eq.s32.totalorder %v18493_v46, %v14319_v48 }
 0x624   : > { %v6216_v32 = vpop.f32.mrf.mxu0  ;;  %13513 = vmatmul.mubr.msk.bf16.vlgmr.msra.gmra.mxu0 %vm234_vm7, %v7673_v45  ;;  %v18505_v45 = vld [vmem:[%s14182_s9 + $0x48] sm:$0xff]  }
 0x625   : > { %v18443_v57 = vadd.f32 %v6216_v32, %v18200_v41  ;;  %v7626_v13 = vpop.f32.mrf.mxu1  ;;  %12412 = vmatmul.mubr.msk.bf16.gmra.mxu1 %vm12411_vm3, %v14078_v61  ;;  %13516 = vmatprep.mubr.msk.bf16.mxu0 %vm14079_vm6, %v14075_v1  ;;  %vm9025_vm3 = vcmp.eq.s32.totalorder %v18464_v8, %v14316_v47  ;;  %v8997_v8 = vpop.permute.xlu0 %8996 }
 0x626   : > { %v13410_v40 = vpop.f32.mrf.mxu0  ;;  %12413 = vmatprep.mubr.msk.bf16.mxu1 %vm542_vm4, %v8730_v33  ;;  %9167 = vmatpush2.bf16.msra.mxu1 %v18454_v37  ;;  %v8994_v4 = vpop.permute.xlu1 %8993  ;;  %v18520_v33 = vld [vmem:[%s14182_s9 + $0x40] sm:$0xff]   ;;  %vm12458_vm8 = vmpackc.low %vm9027_vm5, %vm9025_vm3  ;;  %vm9034_vm10 = vcmp.eq.s32.totalorder %v8997_v8, %v14319_v48 }
 0x627   : > { %v7628_v41 = vpop.f32.mrf.mxu1  ;;  %9168 = vmatprep.subr.bf16.mxu1 %v14074_v0  ;;  %13541 = vmatpush3.bf16.msra.mxu0 %v13923_v3  ;;  %vm9032_vm2 = vcmp.eq.s32.totalorder %v8994_v4, %v14319_v48  ;;  %vm9031_vm12 = vcmp.eq.s32.totalorder %v8994_v4, %v14316_v47 }
 0x628   : > { %v6219_v19 = vpop.f32.mrf.mxu0  ;;  %13570 = vmatprep.subr.bf16.mxu0 %v14075_v1  ;;  %v12436_v40 = vsel %vm9032_vm2, 1.0, %v14075_v1 }
 0x629   : > { %v18467_v49 = vadd.f32 %v6219_v19, %v18219_v38  ;;  %v7629_v31 = vpop.f32.mrf.mxu1 }
 0x62a   : > { %v7674_v51 = vpack.c.bf16 %v7629_v31, %v7626_v13  ;;  %v13411_v52 = vpop.f32.mrf.mxu0  ;;  %9169 = vmatpush2.bf16.msra.mxu1 %v18470_v63  ;;  %v12434_v13 = vsel %vm9030_vm1, 1.0, %v14075_v1  ;;  %vm9033_vm1 = vcmp.eq.s32.totalorder %v8997_v8, %v14316_v47 }
 0x62b   : > { %v7631_v28 = vpop.f32.mrf.mxu1  ;;  %9170 = vmatprep.subr.bf16.mxu1 %v14074_v0  ;;  %v9000_v52 = vpop.permute.xlu1 %8999 }
 0x62c   : > { %v6224_v38 = vpop.f32.mrf.mxu0  ;;  %13517 = vmatmul.mubr.msk.bf16.gmra.mxu0 %vm234_vm7, %v7674_v51  ;;  %v9112_v51 = vpack.c.bf16 %v12436_v40, %v12434_v13  ;;  %vm9036_vm9 = vcmp.eq.s32.totalorder %v9000_v52, %v14319_v48 }
 0x62d   : > { %v18482_v39 = vadd.f32 %v6224_v38, %v18233_v12  ;;  %v7634_v6 = vpop.f32.mrf.mxu1  ;;  %12415 = vmatmul.mubr.msk.bf16.gmra.mxu1 %vm12414_vm11, %v14078_v61  ;;  %13520 = vmatprep.mubr.msk.bf16.mxu0 %vm14079_vm6, %v14075_v1  ;;  %v12432_v12 = vsel %vm9028_vm13, 1.0, %v14075_v1  ;;  %vm9029_vm11 = vcmp.eq.s32.totalorder %v18493_v46, %v14316_v47 }
 0x62e   : > { %v13414_v30 = vpop.f32.mrf.mxu0  ;;  %12416 = vmatprep.mubr.msk.bf16.mxu1 %vm542_vm4, %v8732_v56  ;;  %9171 = vmatpush2.bf16.msra.mxu1 %v18489_v22  ;;  %v9110_v16 = vpack.c.bf16 %v12432_v12, %v12430_v17  ;;  %vm12461_vm13 = vmpackc.low %vm9031_vm12, %vm9029_vm11 }
 0x62f   : > { %v7636_v58 = vpop.f32.mrf.mxu1  ;;  %9172 = vmatprep.subr.bf16.mxu1 %v14074_v0  ;;  %v12438_v30 = vsel %vm9034_vm10, 1.0, %v14075_v1 }
 0x630   : > { %v6227_v11 = vpop.f32.mrf.mxu0 }
 0x631   : > { %v18502_v27 = vadd.f32 %v6227_v11, %v18248_v2  ;;  %v7637_v36 = vpop.f32.mrf.mxu1 }
 0x632   : > { %v7675_v15 = vpack.c.bf16 %v7637_v36, %v7634_v6  ;;  %v13415_v54 = vpop.f32.mrf.mxu0  ;;  %9173 = vmatpush2.bf16.msra.mxu1 %v18505_v45  ;;  %v12440_v6 = vsel %vm9036_vm9, 1.0, %v14075_v1 }
 0x633   : > { %v7639_v43 = vpop.f32.mrf.mxu1  ;;  %9174 = vmatprep.subr.bf16.mxu1 %v14074_v0  ;;  %v9114_v46 = vpack.c.bf16 %v12440_v6, %v12438_v30  ;;  %v9003_v54 = vpop.permute.xlu0 %9002 }
 0x634   : > { %v6232_v26 = vpop.f32.mrf.mxu0  ;;  %13521 = vmatmul.mubr.msk.bf16.gmra.mxu0 %vm234_vm7, %v7675_v15  ;;  %vm9038_vm15 = vcmp.eq.s32.totalorder %v9003_v54, %v14319_v48  ;;  %vm9037_vm9 = vcmp.eq.s32.totalorder %v9003_v54, %v14316_v47 }
 0x635   : > { %v18511_v2 = vadd.f32 %v6232_v26, %v18256_v60  ;;  %v7642_v29 = vpop.f32.mrf.mxu1  ;;  %12418 = vmatmul.mubr.msk.bf16.gmra.mxu1 %vm12417_vm0, %v14078_v61  ;;  %13524 = vmatprep.mubr.msk.bf16.mxu0 %vm14079_vm6, %v14075_v1  ;;  %vm9035_vm0 = vcmp.eq.s32.totalorder %v9000_v52, %v14316_v47 }
 0x636   : > { %v13418_v3 = vpop.f32.mrf.mxu0  ;;  %9175 = vmatpush2.bf16.msra.mxu1 %v18520_v33  ;;  %12457 = vmatprep.mubr.msk.bf16.mxu1 %vm542_vm4, %v9110_v16  ;;  %v9006_v16 = vpop.permute.xlu1 %9005  ;;  %vm12464_vm2 = vmpackc.low %vm9035_vm0, %vm9033_vm1 }
 0x637   : > { %v7644_v60 = vpop.f32.mrf.mxu1  ;;  %9534 = vmatprep.subr.bf16.mxu1 %v14074_v0  ;;  %vm9040_vm14 = vcmp.eq.s32.totalorder %v9006_v16, %v14319_v48  ;;  %v12442_v3 = vsel %vm9038_vm15, 1.0, %v14075_v1 }
 0x638   : > { %v6235_v32 = vpop.f32.mrf.mxu0 }
 0x639   : > { %v18531_v41 = vadd.f32 %v6235_v32, %v18274_v5  ;;  %v7645_v19 = vpop.f32.mrf.mxu1 }
 0x63a   : > { %v7676_v44 = vpack.c.bf16 %v7645_v19, %v7642_v29  ;;  %v13419_v42 = vpop.f32.mrf.mxu0  ;;  %v12444_v29 = vsel %vm9040_vm14, 1.0, %v14075_v1 }
 0x63b   : > { %v7647_v31 = vpop.f32.mrf.mxu1  ;;  %v9012_v42 = vpop.permute.xlu1 %9011 }
 0x63c   : > { %v6574_v28 = vpop.f32.mrf.mxu0  ;;  %13525 = vmatmul.mubr.msk.bf16.gmra.mxu0 %vm234_vm7, %v7676_v44  ;;  %v9116_v44 = vpack.c.bf16 %v12444_v29, %v12442_v3  ;;  %vm9044_vm3 = vcmp.eq.s32.totalorder %v9012_v42, %v14319_v48 }
 0x63d   : > { %v18535_v56 = vadd.f32 %v6574_v28, %v18284_v59  ;;  %v7650_v38 = vpop.f32.mrf.mxu1  ;;  %12459 = vmatmul.mubr.msk.bf16.vlgmr.msra.gmra.mxu1 %vm12458_vm8, %v14078_v61  ;;  %13528 = vmatprep.mubr.msk.bf16.mxu0 %vm14079_vm6, %v14075_v1  ;;  %vm9039_vm8 = vcmp.eq.s32.totalorder %v9006_v16, %v14316_v47 }
 0x63e   : > { %9535 = vmatpush1.bf16.msra.mxu1 %v18294_v10  ;;  %v13424_v5 = vpop.f32.mrf.mxu0  ;;  %12460 = vmatprep.mubr.msk.bf16.mxu1 %vm542_vm4, %v9112_v51  ;;  %v9009_v51 = vpop.permute.xlu0 %9008  ;;  %vm12467_vm10 = vmpackc.low %vm9039_vm8, %vm9037_vm9 }
 0x63f   : > { %v7652_v53 = vpop.f32.mrf.mxu1  ;;  %9536 = vmatprep.subr.bf16.mxu1 %v14074_v0  ;;  %vm9042_vm5 = vcmp.eq.s32.totalorder %v9009_v51, %v14319_v48  ;;  %vm9041_vm14 = vcmp.eq.s32.totalorder %v9009_v51, %v14316_v47 }
 0x640   : > { %v6577_v59 = vpop.f32.mrf.mxu0  ;;  %v12446_v5 = vsel %vm9042_vm5, 1.0, %v14075_v1 }
 0x641   : > { %v18551_v17 = vadd.f32 %v6577_v59, %v18307_v62  ;;  %v7653_v12 = vpop.f32.mrf.mxu1 }
 0x642   : > { %v7677_v58 = vpack.c.bf16 %v7653_v12, %v7650_v38  ;;  %v13425_v11 = vpop.f32.mrf.mxu0  ;;  %9537 = vmatpush1.bf16.msra.mxu1 %v18310_v21  ;;  %v12448_v38 = vsel %vm9044_vm3, 1.0, %v14075_v1 }
 0x643   : > { %v7655_v36 = vpop.f32.mrf.mxu1  ;;  %9538 = vmatprep.subr.bf16.mxu1 %v14074_v0  ;;  %v9018_v11 = vpop.permute.xlu1 %9017 }
 0x644   : > { %v6582_v15 = vpop.f32.mrf.mxu0  ;;  %13529 = vmatmul.mubr.msk.bf16.gmra.mxu0 %vm234_vm7, %v7677_v58  ;;  %v9118_v58 = vpack.c.bf16 %v12448_v38, %v12446_v5  ;;  %vm9048_vm11 = vcmp.eq.s32.totalorder %v9018_v11, %v14319_v48 }
 0x645   : > { %v18557_v43 = vadd.f32 %v6582_v15, %v18325_v50  ;;  %v7658_v62 = vpop.f32.mrf.mxu1  ;;  %12462 = vmatmul.mubr.msk.bf16.gmra.mxu1 %vm12461_vm13, %v14078_v61  ;;  %13532 = vmatprep.mubr.msk.bf16.mxu0 %vm14079_vm6, %v14075_v1  ;;  %vm9043_vm13 = vcmp.eq.s32.totalorder %v9012_v42, %v14316_v47 }
 0x646   : > { %v13428_v26 = vpop.f32.mrf.mxu0  ;;  %12463 = vmatprep.mubr.msk.bf16.mxu1 %vm542_vm4, %v9114_v46  ;;  %9539 = vmatpush1.bf16.msra.mxu1 %v18336_v14  ;;  %v9015_v46 = vpop.permute.xlu0 %9014  ;;  %vm12470_vm15 = vmpackc.low %vm9043_vm13, %vm9041_vm14 }
 0x647   : > { %v7660_v4 = vpop.f32.mrf.mxu1  ;;  %9540 = vmatprep.subr.bf16.mxu1 %v14074_v0  ;;  %vm9046_vm12 = vcmp.eq.s32.totalorder %v9015_v46, %v14319_v48  ;;  %v18616_v29 = vpop.permute.xlu1 %9023  ;;  %vm9045_vm3 = vcmp.eq.s32.totalorder %v9015_v46, %v14316_v47 }
 0x648   : > { %v6585_v50 = vpop.f32.mrf.mxu0  ;;  %v12450_v26 = vsel %vm9046_vm12, 1.0, %v14075_v1  ;;  %vm9052_vm0 = vcmp.eq.s32.totalorder %v18616_v29, %v14319_v48 }
 0x649   : > { %v18572_v60 = vadd.f32 %v6585_v50, %v18349_v18  ;;  %v7661_v32 = vpop.f32.mrf.mxu1 }
 0x64a   : > { %v7678_v13 = vpack.c.bf16 %v7661_v32, %v7658_v62  ;;  %v13429_v40 = vpop.f32.mrf.mxu0  ;;  %9541 = vmatpush1.bf16.msra.mxu1 %v18352_v25  ;;  %v12452_v62 = vsel %vm9048_vm11, 1.0, %v14075_v1 }
 0x64b   : > { %v7663_v19 = vpop.f32.mrf.mxu1  ;;  %9542 = vmatprep.subr.bf16.mxu1 %v14074_v0  ;;  %v9378_v5 = vpop.permute.xlu1 %9377 }
 0x64c   : > { %v6590_v31 = vpop.f32.mrf.mxu0  ;;  %13533 = vmatmul.mubr.msk.bf16.gmra.mxu0 %vm234_vm7, %v7678_v13  ;;  %v18619_v13 = vpop.permute.xlu0 %9020  ;;  %v13924_v19 = vld [vmem:[%s19706_s3 + $0xa0] sm:$0xff]   ;;  %vm9418_vm8 = vcmp.eq.s32.totalorder %v9378_v5, %v14319_v48 }
 0x64d   : > { %v18578_v52 = vadd.f32 %v6590_v31, %v18367_v55  ;;  %v7666_v18 = vpop.f32.mrf.mxu1  ;;  %12465 = vmatmul.mubr.msk.bf16.gmra.mxu1 %vm12464_vm2, %v14078_v61  ;;  %13536 = vmatprep.mubr.msk.bf16.mxu0 %vm14079_vm6, %v14075_v1  ;;  %vm9050_vm1 = vcmp.eq.s32.totalorder %v18619_v13, %v14319_v48  ;;  %vm9047_vm2 = vcmp.eq.s32.totalorder %v9018_v11, %v14316_v47  ;;  %v12491_v11 = vsel %vm9418_vm8, 1.0, %v14075_v1 }
 0x64e   : > { %v13432_v28 = vpop.f32.mrf.mxu0  ;;  %12466 = vmatprep.mubr.msk.bf16.mxu1 %vm542_vm4, %v9116_v44  ;;  %9543 = vmatpush1.bf16.msra.mxu1 %v18378_v24  ;;  %vm12473_vm5 = vmpackc.low %vm9047_vm2, %vm9045_vm3  ;;  %vm9049_vm11 = vcmp.eq.s32.totalorder %v18619_v13, %v14316_v47 }
 0x64f   : > { %v7668_v8 = vpop.f32.mrf.mxu1  ;;  %9544 = vmatprep.subr.bf16.mxu1 %v14074_v0  ;;  %v12456_v28 = vsel %vm9052_vm0, 1.0, %v14075_v1 }
 0x650   : > { %v6593_v55 = vpop.f32.mrf.mxu0  ;;  %v12454_v8 = vsel %vm9050_vm1, 1.0, %v14075_v1 }
 0x651   : > { %v18593_v53 = vadd.f32 %v6593_v55, %v18391_v7  ;;  %v7669_v59 = vpop.f32.mrf.mxu1 }
 0x652   : > { %v7679_v6 = vpack.c.bf16 %v7669_v59, %v7666_v18  ;;  %v13433_v30 = vpop.f32.mrf.mxu0  ;;  %9545 = vmatpush1.bf16.msra.mxu1 %v18394_v35 }
 0x653   : > { %v7671_v12 = vpop.f32.mrf.mxu1  ;;  %9546 = vmatprep.subr.bf16.mxu1 %v14074_v0  ;;  %v9375_v30 = vpop.permute.xlu0 %9374 }
 0x654   : > { %v6598_v36 = vpop.f32.mrf.mxu0  ;;  %13537 = vmatmul.mubr.msk.bf16.gmra.mxu0 %vm234_vm7, %v7679_v6  ;;  %vm9416_vm9 = vcmp.eq.s32.totalorder %v9375_v30, %v14319_v48  ;;  %vm9415_vm0 = vcmp.eq.s32.totalorder %v9375_v30, %v14316_v47 }
 0x655   : > { %v18599_v16 = vadd.f32 %v6598_v36, %v18403_v23  ;;  %v8008_v7 = vpop.f32.mrf.mxu1  ;;  %12468 = vmatmul.mubr.msk.bf16.gmra.mxu1 %vm12467_vm10, %v14078_v61  ;;  %13542 = vmatprep.mubr.msk.bf16.mxu0 %vm14079_vm6, %v14075_v1  ;;  %vm9051_vm10 = vcmp.eq.s32.totalorder %v18616_v29, %v14316_v47 }
 0x656   : > { %v13436_v15 = vpop.f32.mrf.mxu0  ;;  %12469 = vmatprep.mubr.msk.bf16.mxu1 %vm542_vm4, %v9118_v58  ;;  %9547 = vmatpush1.bf16.msra.mxu1 %v18413_v34  ;;  %v9122_v58 = vpack.c.bf16 %v12456_v28, %v12454_v8  ;;  %vm12476_vm12 = vmpackc.low %vm9051_vm10, %vm9049_vm11 }
 0x657   : > { %v8010_v54 = vpop.f32.mrf.mxu1  ;;  %9548 = vmatprep.subr.bf16.mxu1 %v14074_v0  ;;  %v12489_v15 = vsel %vm9416_vm9, 1.0, %v14075_v1  ;;  %v9384_v29 = vpop.permute.xlu0 %9383 }
 0x658   : > { %v6601_v23 = vpop.f32.mrf.mxu0  ;;  %vm9422_vm14 = vcmp.eq.s32.totalorder %v9384_v29, %v14319_v48  ;;  %vm9421_vm8 = vcmp.eq.s32.totalorder %v9384_v29, %v14316_v47 }
 0x659   : > { %v18614_v4 = vadd.f32 %v6601_v23, %v18424_v9  ;;  %v8011_v50 = vpop.f32.mrf.mxu1  ;;  %v9120_v9 = vpack.c.bf16 %v12452_v62, %v12450_v26  ;;  %v9500_v26 = vpack.c.bf16 %v12491_v11, %v12489_v15 }
 0x65a   : > { %v8063_v3 = vpack.c.bf16 %v8011_v50, %v8008_v7  ;;  %v13437_v32 = vpop.f32.mrf.mxu0  ;;  %9549 = vmatpush1.bf16.msra.mxu1 %v18429_v20 }
 0x65b   : > { %v8013_v40 = vpop.f32.mrf.mxu1  ;;  %9556 = vmatprep.subr.bf16.mxu1 %v14074_v0 }
 0x65c   : > { %v6606_v44 = vpop.f32.mrf.mxu0  ;;  %13543 = vmatmul.mubr.msk.bf16.vlgmr.msra.gmra.mxu0 %vm234_vm7, %v8063_v3  ;;  %v9381_v40 = vpop.permute.xlu1 %9380 }
 0x65d   : > { %v18629_v31 = vadd.f32 %v6606_v44, %v18443_v57  ;;  %v8016_v51 = vpop.f32.mrf.mxu1  ;;  %12471 = vmatmul.mubr.msk.bf16.gmra.mxu1 %vm12470_vm15, %v14078_v61  ;;  %13546 = vmatprep.mubr.msk.bf16.mxu0 %vm14079_vm6, %v14075_v1  ;;  %vm9420_vm13 = vcmp.eq.s32.totalorder %v9381_v40, %v14319_v48  ;;  %vm9417_vm15 = vcmp.eq.s32.totalorder %v9378_v5, %v14316_v47  ;;  %v9390_v5 = vpop.permute.xlu0 %9389 }
 0x65e   : > { %v13440_v42 = vpop.f32.mrf.mxu0  ;;  %12472 = vmatprep.mubr.msk.bf16.mxu1 %vm542_vm4, %v9120_v9  ;;  %9557 = vmatpush2.bf16.msra.mxu1 %v18454_v37  ;;  %vm12517_vm1 = vmpackc.low %vm9417_vm15, %vm9415_vm0  ;;  %vm9426_vm3 = vcmp.eq.s32.totalorder %v9390_v5, %v14319_v48 }
 0x65f   : > { %v8018_v18 = vpop.f32.mrf.mxu1  ;;  %9558 = vmatprep.subr.bf16.mxu1 %v14074_v0  ;;  %13571 = vmatpush3.bf16.msra.mxu0 %v13924_v19  ;;  %v12495_v42 = vsel %vm9422_vm14, 1.0, %v14075_v1 }
 0x660   : > { %v6609_v57 = vpop.f32.mrf.mxu0  ;;  %13600 = vmatprep.subr.bf16.mxu0 %v14075_v1 }
 0x661   : > { %v18647_v55 = vadd.f32 %v6609_v57, %v18467_v49  ;;  %v8019_v38 = vpop.f32.mrf.mxu1 }
 0x662   : > { %v8064_v59 = vpack.c.bf16 %v8019_v38, %v8016_v51  ;;  %v13441_v6 = vpop.f32.mrf.mxu0  ;;  %9559 = vmatpush2.bf16.msra.mxu1 %v18470_v63  ;;  %v12493_v51 = vsel %vm9420_vm13, 1.0, %v14075_v1  ;;  %vm9425_vm13 = vcmp.eq.s32.totalorder %v9390_v5, %v14316_v47 }
 0x663   : > { %v8021_v12 = vpop.f32.mrf.mxu1  ;;  %9560 = vmatprep.subr.bf16.mxu1 %v14074_v0  ;;  %v9387_v6 = vpop.permute.xlu1 %9386 }
 0x664   : > { %v6614_v49 = vpop.f32.mrf.mxu0  ;;  %13547 = vmatmul.mubr.msk.bf16.gmra.mxu0 %vm234_vm7, %v8064_v59  ;;  %v9502_v59 = vpack.c.bf16 %v12495_v42, %v12493_v51  ;;  %vm9424_vm2 = vcmp.eq.s32.totalorder %v9387_v6, %v14319_v48 }
 0x665   : > { %v18657_v36 = vadd.f32 %v6614_v49, %v18482_v39  ;;  %v8024_v46 = vpop.f32.mrf.mxu1  ;;  %12474 = vmatmul.mubr.msk.bf16.gmra.mxu1 %vm12473_vm5, %v14078_v61  ;;  %13550 = vmatprep.mubr.msk.bf16.mxu0 %vm14079_vm6, %v14075_v1  ;;  %vm9419_vm5 = vcmp.eq.s32.totalorder %v9381_v40, %v14316_v47 }
 0x666   : > { %v13444_v7 = vpop.f32.mrf.mxu0  ;;  %12475 = vmatprep.mubr.msk.bf16.mxu1 %vm542_vm4, %v9122_v58  ;;  %9561 = vmatpush2.bf16.msra.mxu1 %v18489_v22  ;;  %vm12520_vm9 = vmpackc.low %vm9421_vm8, %vm9419_vm5 }
 0x667   : > { %v8026_v54 = vpop.f32.mrf.mxu1  ;;  %9562 = vmatprep.subr.bf16.mxu1 %v14074_v0  ;;  %v12499_v7 = vsel %vm9426_vm3, 1.0, %v14075_v1 }
 0x668   : > { %v6617_v39 = vpop.f32.mrf.mxu0 }
 0x669   : > { %v18672_v23 = vadd.f32 %v6617_v39, %v18502_v27  ;;  %v8027_v62 = vpop.f32.mrf.mxu1 }
 0x66a   : > { %v8065_v50 = vpack.c.bf16 %v8027_v62, %v8024_v46  ;;  %v13445_v3 = vpop.f32.mrf.mxu0  ;;  %9563 = vmatpush2.bf16.msra.mxu1 %v18505_v45  ;;  %v12497_v46 = vsel %vm9424_vm2, 1.0, %v14075_v1 }
 0x66b   : > { %v8029_v32 = vpop.f32.mrf.mxu1  ;;  %9564 = vmatprep.subr.bf16.mxu1 %v14074_v0  ;;  %v9504_v62 = vpack.c.bf16 %v12499_v7, %v12497_v46  ;;  %v9396_v3 = vpop.permute.xlu0 %9395 }
 0x66c   : > { %v6622_v19 = vpop.f32.mrf.mxu0  ;;  %13551 = vmatmul.mubr.msk.bf16.gmra.mxu0 %vm234_vm7, %v8065_v50  ;;  %vm9430_vm11 = vcmp.eq.s32.totalorder %v9396_v3, %v14319_v48  ;;  %vm9429_vm2 = vcmp.eq.s32.totalorder %v9396_v3, %v14316_v47 }
 0x66d   : > { %v18678_v13 = vadd.f32 %v6622_v19, %v18511_v2  ;;  %v8032_v27 = vpop.f32.mrf.mxu1  ;;  %12477 = vmatmul.mubr.msk.bf16.gmra.mxu1 %vm12476_vm12, %v14078_v61  ;;  %13554 = vmatprep.mubr.msk.bf16.mxu0 %vm14079_vm6, %v14075_v1  ;;  %vm9423_vm12 = vcmp.eq.s32.totalorder %v9387_v6, %v14316_v47  ;;  %v12503_v29 = vsel %vm9430_vm11, 1.0, %v14075_v1 }
 0x66e   : > { %v13448_v9 = vpop.f32.mrf.mxu0  ;;  %9565 = vmatpush2.bf16.msra.mxu1 %v18520_v33  ;;  %12516 = vmatprep.mubr.msk.bf16.mxu1 %vm542_vm4, %v9500_v26  ;;  %v9393_v26 = vpop.permute.xlu1 %9392  ;;  %vm12523_vm14 = vmpackc.low %vm9425_vm13, %vm9423_vm12 }
 0x66f   : > { %v8034_v44 = vpop.f32.mrf.mxu1  ;;  %9924 = vmatprep.subr.bf16.mxu1 %v14074_v0  ;;  %vm9428_vm10 = vcmp.eq.s32.totalorder %v9393_v26, %v14319_v48 }
 0x670   : > { %v6625_v2 = vpop.f32.mrf.mxu0  ;;  %v12501_v19 = vsel %vm9428_vm10, 1.0, %v14075_v1 }
 0x671   : > { %v18693_v18 = vadd.f32 %v6625_v2, %v18531_v41  ;;  %v8035_v57 = vpop.f32.mrf.mxu1  ;;  %v9506_v51 = vpack.c.bf16 %v12503_v29, %v12501_v19 }
 0x672   : > { %v8066_v28 = vpack.c.bf16 %v8035_v57, %v8032_v27  ;;  %v13449_v8 = vpop.f32.mrf.mxu0  ;;  %v9399_v42 = vpop.permute.xlu1 %9398 }
 0x673   : > { %v8037_v38 = vpop.f32.mrf.mxu1  ;;  %vm9432_vm15 = vcmp.eq.s32.totalorder %v9399_v42, %v14319_v48 }
 0x674   : > { %v6964_v12 = vpop.f32.mrf.mxu0  ;;  %13555 = vmatmul.mubr.msk.bf16.gmra.mxu0 %vm234_vm7, %v8066_v28  ;;  %v9402_v28 = vpop.permute.xlu0 %9401 }
 0x675   : > { %v18697_v30 = vadd.f32 %v6964_v12, %v18535_v56  ;;  %v8040_v58 = vpop.f32.mrf.mxu1  ;;  %12518 = vmatmul.mubr.msk.bf16.vlgmr.msra.gmra.mxu1 %vm12517_vm1, %v14078_v61  ;;  %13558 = vmatprep.mubr.msk.bf16.mxu0 %vm14079_vm6, %v14075_v1  ;;  %vm9434_vm0 = vcmp.eq.s32.totalorder %v9402_v28, %v14319_v48  ;;  %vm9427_vm1 = vcmp.eq.s32.totalorder %v9393_v26, %v14316_v47 }
 0x676   : > { %9925 = vmatpush1.bf16.msra.mxu1 %v18294_v10  ;;  %v13454_v41 = vpop.f32.mrf.mxu0  ;;  %12519 = vmatprep.mubr.msk.bf16.mxu1 %vm542_vm4, %v9502_v59  ;;  %v12505_v59 = vsel %vm9432_vm15, 1.0, %v14075_v1  ;;  %v12507_v6 = vsel %vm9434_vm0, 1.0, %v14075_v1  ;;  %vm12526_vm3 = vmpackc.low %vm9429_vm2, %vm9427_vm1  ;;  %vm9433_vm10 = vcmp.eq.s32.totalorder %v9402_v28, %v14316_v47 }
 0x677   : > { %v8042_v49 = vpop.f32.mrf.mxu1  ;;  %9926 = vmatprep.subr.bf16.mxu1 %v14074_v0 }
 0x678   : > { %v6967_v56 = vpop.f32.mrf.mxu0  ;;  %v9508_v49 = vpack.c.bf16 %v12507_v6, %v12505_v59  ;;  %v9408_v7 = vpop.permute.xlu0 %9407 }
 0x679   : > { %v18712_v11 = vadd.f32 %v6967_v56, %v18551_v17  ;;  %v8043_v15 = vpop.f32.mrf.mxu1  ;;  %v9405_v56 = vpop.permute.xlu1 %9404  ;;  %vm9438_vm8 = vcmp.eq.s32.totalorder %v9408_v7, %v14319_v48  ;;  %vm9437_vm15 = vcmp.eq.s32.totalorder %v9408_v7, %v14316_v47 }
 0x67a   : > { %v8067_v10 = vpack.c.bf16 %v8043_v15, %v8040_v58  ;;  %v13455_v54 = vpop.f32.mrf.mxu0  ;;  %9927 = vmatpush1.bf16.msra.mxu1 %v18310_v21  ;;  %vm9436_vm5 = vcmp.eq.s32.totalorder %v9405_v56, %v14319_v48 }
 0x67b   : > { %v8045_v39 = vpop.f32.mrf.mxu1  ;;  %9928 = vmatprep.subr.bf16.mxu1 %v14074_v0  ;;  %v12509_v54 = vsel %vm9436_vm5, 1.0, %v14075_v1 }
 0x67c   : > { %v6972_v50 = vpop.f32.mrf.mxu0  ;;  %13559 = vmatmul.mubr.msk.bf16.gmra.mxu0 %vm234_vm7, %v8067_v10  ;;  %v12511_v39 = vsel %vm9438_vm8, 1.0, %v14075_v1 }
 0x67d   : > { %v18718_v32 = vadd.f32 %v6972_v50, %v18557_v43  ;;  %v8048_v17 = vpop.f32.mrf.mxu1  ;;  %12521 = vmatmul.mubr.msk.bf16.gmra.mxu1 %vm12520_vm9, %v14078_v61  ;;  %13562 = vmatprep.mubr.msk.bf16.mxu0 %vm14079_vm6, %v14075_v1  ;;  %vm9431_vm9 = vcmp.eq.s32.totalorder %v9399_v42, %v14316_v47  ;;  %v18777_v50 = vpop.permute.xlu1 %9410 }
 0x67e   : > { %v13458_v21 = vpop.f32.mrf.mxu0  ;;  %12522 = vmatprep.mubr.msk.bf16.mxu1 %vm542_vm4, %v9504_v62  ;;  %9929 = vmatpush1.bf16.msra.mxu1 %v18336_v14  ;;  %vm12529_vm11 = vmpackc.low %vm9433_vm10, %vm9431_vm9  ;;  %vm9440_vm12 = vcmp.eq.s32.totalorder %v18777_v50, %v14319_v48 }
 0x67f   : > { %v8050_v40 = vpop.f32.mrf.mxu1  ;;  %9930 = vmatprep.subr.bf16.mxu1 %v14074_v0 }
 0x680   : > { %v6975_v43 = vpop.f32.mrf.mxu0  ;;  %v13925_v40 = vld [vmem:[%s19706_s3 + $0xa8] sm:$0xff]  }
 0x681   : > { %v18733_v27 = vadd.f32 %v6975_v43, %v18572_v60  ;;  %v8051_v9 = vpop.f32.mrf.mxu1 }
 0x682   : > { %v8068_v44 = vpack.c.bf16 %v8051_v9, %v8048_v17  ;;  %v13459_v2 = vpop.f32.mrf.mxu0  ;;  %9931 = vmatpush1.bf16.msra.mxu1 %v18352_v25  ;;  %v18780_v17 = vpop.permute.xlu0 %9413 }
 0x683   : > { %v8053_v14 = vpop.f32.mrf.mxu1  ;;  %9932 = vmatprep.subr.bf16.mxu1 %v14074_v0  ;;  %vm9442_vm13 = vcmp.eq.s32.totalorder %v18780_v17, %v14319_v48  ;;  %vm9441_vm5 = vcmp.eq.s32.totalorder %v18780_v17, %v14316_v47 }
 0x684   : > { %v6980_v57 = vpop.f32.mrf.mxu0  ;;  %13563 = vmatmul.mubr.msk.bf16.gmra.mxu0 %vm234_vm7, %v8068_v44  ;;  %v12513_v44 = vsel %vm9440_vm12, 1.0, %v14075_v1  ;;  %v12515_v2 = vsel %vm9442_vm13, 1.0, %v14075_v1  ;;  %v18807_v14 = vpop.permute.xlu1 %9764 }
 0x685   : > { %v18739_v8 = vadd.f32 %v6980_v57, %v18578_v52  ;;  %v8056_v60 = vpop.f32.mrf.mxu1  ;;  %12524 = vmatmul.mubr.msk.bf16.gmra.mxu1 %vm12523_vm14, %v14078_v61  ;;  %13566 = vmatprep.mubr.msk.bf16.mxu0 %vm14079_vm6, %v14075_v1  ;;  %vm9435_vm14 = vcmp.eq.s32.totalorder %v9405_v56, %v14316_v47  ;;  %vm9806_vm1 = vcmp.eq.s32.totalorder %v18807_v14, %v14319_v48 }
 0x686   : > { %v13462_v25 = vpop.f32.mrf.mxu0  ;;  %12525 = vmatprep.mubr.msk.bf16.mxu1 %vm542_vm4, %v9506_v51  ;;  %9933 = vmatpush1.bf16.msra.mxu1 %v18378_v24  ;;  %v9768_v28 = vpop.permute.xlu0 %9767  ;;  %vm12532_vm0 = vmpackc.low %vm9437_vm15, %vm9435_vm14  ;;  %v12548_v59 = vsel %vm9806_vm1, 1.0, %v14075_v1 }
 0x687   : > { %v8058_v38 = vpop.f32.mrf.mxu1  ;;  %9934 = vmatprep.subr.bf16.mxu1 %v14074_v0  ;;  %v9512_v25 = vpack.c.bf16 %v12515_v2, %v12513_v44  ;;  %vm9808_vm2 = vcmp.eq.s32.totalorder %v9768_v28, %v14319_v48  ;;  %vm9807_vm12 = vcmp.eq.s32.totalorder %v9768_v28, %v14316_v47 }
 0x688   : > { %v6983_v52 = vpop.f32.mrf.mxu0  ;;  %v18829_v6 = vpop.permute.xlu1 %9770 }
 0x689   : > { %v18754_v12 = vadd.f32 %v6983_v52, %v18593_v53  ;;  %v8059_v5 = vpop.f32.mrf.mxu1  ;;  %vm9810_vm9 = vcmp.eq.s32.totalorder %v18829_v6, %v14319_v48 }
 0x68a   : > { %v8069_v58 = vpack.c.bf16 %v8059_v5, %v8056_v60  ;;  %v13463_v41 = vpop.f32.mrf.mxu0  ;;  %9935 = vmatpush1.bf16.msra.mxu1 %v18394_v35  ;;  %v12550_v5 = vsel %vm9808_vm2, 1.0, %v14075_v1 }
 0x68b   : > { %v8061_v24 = vpop.f32.mrf.mxu1  ;;  %9936 = vmatprep.subr.bf16.mxu1 %v14074_v0 }
 0x68c   : > { %v6988_v46 = vpop.f32.mrf.mxu0  ;;  %13567 = vmatmul.mubr.msk.bf16.gmra.mxu0 %vm234_vm7, %v8069_v58  ;;  %v9890_v24 = vpack.c.bf16 %v12550_v5, %v12548_v59  ;;  %v18902_v59 = vld [vmem:[%s14182_s9 + $0x28] sm:$0xff]  }
 0x68d   : > { %v18760_v15 = vadd.f32 %v6988_v46, %v18599_v16  ;;  %v8398_v53 = vpop.f32.mrf.mxu1  ;;  %12527 = vmatmul.mubr.msk.bf16.gmra.mxu1 %vm12526_vm3, %v14078_v61  ;;  %13572 = vmatprep.mubr.msk.bf16.mxu0 %vm14079_vm6, %v14075_v1  ;;  %vm9439_vm3 = vcmp.eq.s32.totalorder %v18777_v50, %v14316_v47 }
 0x68e   : > { %v13466_v35 = vpop.f32.mrf.mxu0  ;;  %12528 = vmatprep.mubr.msk.bf16.mxu1 %vm542_vm4, %v9508_v49  ;;  %9937 = vmatpush1.bf16.msra.mxu1 %v18413_v34  ;;  %vm12535_vm8 = vmpackc.low %vm9441_vm5, %vm9439_vm3 }
 0x68f   : > { %v8400_v10 = vpop.f32.mrf.mxu1  ;;  %9938 = vmatprep.subr.bf16.mxu1 %v14074_v0 }
 0x690   : > { %v6991_v16 = vpop.f32.mrf.mxu0 }
 0x691   : > { %v18775_v62 = vadd.f32 %v6991_v16, %v18614_v4  ;;  %v8401_v26 = vpop.f32.mrf.mxu1  ;;  %v9510_v4 = vpack.c.bf16 %v12511_v39, %v12509_v54  ;;  %v12552_v16 = vsel %vm9810_vm9, 1.0, %v14075_v1 }
 0x692   : > { %v8453_v3 = vpack.c.bf16 %v8401_v26, %v8398_v53  ;;  %v13467_v34 = vpop.f32.mrf.mxu0  ;;  %9939 = vmatpush1.bf16.msra.mxu1 %v18429_v20  ;;  %v9774_v53 = vpop.permute.xlu1 %9773 }
 0x693   : > { %v8403_v21 = vpop.f32.mrf.mxu1  ;;  %9946 = vmatprep.subr.bf16.mxu1 %v14074_v0  ;;  %vm9812_vm10 = vcmp.eq.s32.totalorder %v9774_v53, %v14319_v48  ;;  %vm9811_vm1 = vcmp.eq.s32.totalorder %v9774_v53, %v14316_v47 }
 0x694   : > { %v6996_v43 = vpop.f32.mrf.mxu0  ;;  %13573 = vmatmul.mubr.msk.bf16.vlgmr.msra.gmra.mxu0 %vm234_vm7, %v8453_v3  ;;  %v12554_v54 = vsel %vm9812_vm10, 1.0, %v14075_v1 }
 0x695   : > { %v18790_v19 = vadd.f32 %v6996_v43, %v18629_v31  ;;  %v8406_v20 = vpop.f32.mrf.mxu1  ;;  %12530 = vmatmul.mubr.msk.bf16.gmra.mxu1 %vm12529_vm11, %v14078_v61  ;;  %13576 = vmatprep.mubr.msk.bf16.mxu0 %vm14079_vm6, %v14075_v1  ;;  %vm9805_vm11 = vcmp.eq.s32.totalorder %v18807_v14, %v14316_v47  ;;  %v9892_v34 = vpack.c.bf16 %v12554_v54, %v12552_v16  ;;  %v18932_v16 = vld [vmem:[%s14182_s9 + $0x18] sm:$0xff]  }
 0x696   : > { %v13470_v29 = vpop.f32.mrf.mxu0  ;;  %12531 = vmatprep.mubr.msk.bf16.mxu1 %vm542_vm4, %v9510_v4  ;;  %9947 = vmatpush2.bf16.msra.mxu1 %v18454_v37  ;;  %vm12576_vm13 = vmpackc.low %vm9807_vm12, %vm9805_vm11  ;;  %v9780_v17 = vpop.permute.xlu1 %9779 }
 0x697   : > { %v8408_v9 = vpop.f32.mrf.mxu1  ;;  %9948 = vmatprep.subr.bf16.mxu1 %v14074_v0  ;;  %13601 = vmatpush3.bf16.msra.mxu0 %v13925_v40  ;;  %v9777_v40 = vpop.permute.xlu0 %9776  ;;  %vm9816_vm14 = vcmp.eq.s32.totalorder %v9780_v17, %v14319_v48 }
 0x698   : > { %v6999_v31 = vpop.f32.mrf.mxu0  ;;  %13630 = vmatprep.subr.bf16.mxu0 %v14075_v1  ;;  %vm9814_vm15 = vcmp.eq.s32.totalorder %v9777_v40, %v14319_v48  ;;  %v12558_v9 = vsel %vm9816_vm14, 1.0, %v14075_v1  ;;  %vm9813_vm9 = vcmp.eq.s32.totalorder %v9777_v40, %v14316_v47 }
 0x699   : > { %v18810_v51 = vadd.f32 %v6999_v31, %v18647_v55  ;;  %v8409_v37 = vpop.f32.mrf.mxu1  ;;  %v12556_v31 = vsel %vm9814_vm15, 1.0, %v14075_v1 }
 0x69a   : > { %v8454_v42 = vpack.c.bf16 %v8409_v37, %v8406_v20  ;;  %v13471_v57 = vpop.f32.mrf.mxu0  ;;  %9949 = vmatpush2.bf16.msra.mxu1 %v18470_v63  ;;  %v9894_v28 = vpack.c.bf16 %v12558_v9, %v12556_v31 }
 0x69b   : > { %v8411_v60 = vpop.f32.mrf.mxu1  ;;  %9950 = vmatprep.subr.bf16.mxu1 %v14074_v0 }
 0x69c   : > { %v7004_v55 = vpop.f32.mrf.mxu0  ;;  %13577 = vmatmul.mubr.msk.bf16.gmra.mxu0 %vm234_vm7, %v8454_v42  ;;  %v18887_v42 = vld [vmem:[%s14182_s9 + $0x30] sm:$0xff]   ;;  %v9786_v60 = vpop.permute.xlu1 %9785 }
 0x69d   : > { %v18821_v38 = vadd.f32 %v7004_v55, %v18657_v36  ;;  %v8414_v63 = vpop.f32.mrf.mxu1  ;;  %12533 = vmatmul.mubr.msk.bf16.gmra.mxu1 %vm12532_vm0, %v14078_v61  ;;  %13580 = vmatprep.mubr.msk.bf16.mxu0 %vm14079_vm6, %v14075_v1  ;;  %vm9809_vm0 = vcmp.eq.s32.totalorder %v18829_v6, %v14316_v47  ;;  %v9783_v55 = vpop.permute.xlu0 %9782  ;;  %vm9820_vm3 = vcmp.eq.s32.totalorder %v9786_v60, %v14319_v48 }
 0x69e   : > { %v13474_v52 = vpop.f32.mrf.mxu0  ;;  %12534 = vmatprep.mubr.msk.bf16.mxu1 %vm542_vm4, %v9512_v25  ;;  %9951 = vmatpush2.bf16.msra.mxu1 %v18489_v22  ;;  %vm12579_vm2 = vmpackc.low %vm9811_vm1, %vm9809_vm0  ;;  %vm9818_vm5 = vcmp.eq.s32.totalorder %v9783_v55, %v14319_v48  ;;  %v12562_v5 = vsel %vm9820_vm3, 1.0, %v14075_v1  ;;  %vm9817_vm14 = vcmp.eq.s32.totalorder %v9783_v55, %v14316_v47 }
 0x69f   : > { %v8416_v58 = vpop.f32.mrf.mxu1  ;;  %9952 = vmatprep.subr.bf16.mxu1 %v14074_v0 }
 0x6a0   : > { %v7007_v36 = vpop.f32.mrf.mxu0  ;;  %v12560_v58 = vsel %vm9818_vm5, 1.0, %v14075_v1  ;;  %v18918_v53 = vpop.permute.xlu1 %9791 }
 0x6a1   : > { %v18838_v41 = vadd.f32 %v7007_v36, %v18672_v23  ;;  %v8417_v22 = vpop.f32.mrf.mxu1  ;;  %vm9824_vm11 = vcmp.eq.s32.totalorder %v18918_v53, %v14319_v48 }
 0x6a2   : > { %v8455_v49 = vpack.c.bf16 %v8417_v22, %v8414_v63  ;;  %v13475_v56 = vpop.f32.mrf.mxu0  ;;  %9953 = vmatpush2.bf16.msra.mxu1 %v18505_v45 }
 0x6a3   : > { %v8419_v46 = vpop.f32.mrf.mxu1  ;;  %9954 = vmatprep.subr.bf16.mxu1 %v14074_v0  ;;  %v18914_v56 = vld [vmem:[%s14182_s9 + $0x20] sm:$0xff]  }
 0x6a4   : > { %v7012_v7 = vpop.f32.mrf.mxu0  ;;  %13581 = vmatmul.mubr.msk.bf16.gmra.mxu0 %vm234_vm7, %v8455_v49 }
 0x6a5   : > { %v18844_v35 = vadd.f32 %v7012_v7, %v18678_v13  ;;  %v8422_v10 = vpop.f32.mrf.mxu1  ;;  %12536 = vmatmul.mubr.msk.bf16.gmra.mxu1 %vm12535_vm8, %v14078_v61  ;;  %13584 = vmatprep.mubr.msk.bf16.mxu0 %vm14079_vm6, %v14075_v1  ;;  %vm9815_vm8 = vcmp.eq.s32.totalorder %v9780_v17, %v14316_v47  ;;  %v9896_v7 = vpack.c.bf16 %v12562_v5, %v12560_v58 }
 0x6a6   : > { %v13478_v45 = vpop.f32.mrf.mxu0  ;;  %9955 = vmatpush2.bf16.msra.mxu1 %v18520_v33  ;;  %12575 = vmatprep.mubr.msk.bf16.mxu1 %vm542_vm4, %v9890_v24  ;;  %vm12582_vm10 = vmpackc.low %vm9815_vm8, %vm9813_vm9 }
 0x6a7   : > { %v8424_v23 = vpop.f32.mrf.mxu1  ;;  %10314 = vmatprep.subr.bf16.mxu1 %v14074_v0 }
 0x6a8   : > { %v7015_v13 = vpop.f32.mrf.mxu0 }
 0x6a9   : > { %v18861_v39 = vadd.f32 %v7015_v13, %v18693_v18  ;;  %v8425_v26 = vpop.f32.mrf.mxu1  ;;  %v18873_v18 = vld [vmem:[%s14182_s9 + $0x38] sm:$0xff]  }
 0x6aa   : > { %v8456_v33 = vpack.c.bf16 %v8425_v26, %v8422_v10  ;;  %v13479_v50 = vpop.f32.mrf.mxu0  ;;  %v12566_v26 = vsel %vm9824_vm11, 1.0, %v14075_v1 }
 0x6ab   : > { %v8427_v3 = vpop.f32.mrf.mxu1 }
 0x6ac   : > { %v7354_v21 = vpop.f32.mrf.mxu0  ;;  %13585 = vmatmul.mubr.msk.bf16.gmra.mxu0 %vm234_vm7, %v8456_v33 }
 0x6ad   : > { %v18865_v4 = vadd.f32 %v7354_v21, %v18697_v30  ;;  %v8430_v43 = vpop.f32.mrf.mxu1  ;;  %12577 = vmatmul.mubr.msk.bf16.vlgmr.msra.gmra.mxu1 %vm12576_vm13, %v14078_v61  ;;  %13588 = vmatprep.mubr.msk.bf16.mxu0 %vm14079_vm6, %v14075_v1  ;;  %vm9819_vm13 = vcmp.eq.s32.totalorder %v9786_v60, %v14316_v47  ;;  %v18944_v21 = vld [vmem:[%s14182_s9 + $0x10] sm:$0xff]  }
 0x6ae   : > { %10315 = vmatpush1.bf16.msra.mxu1 %v18873_v18  ;;  %v13484_v20 = vpop.f32.mrf.mxu0  ;;  %12578 = vmatprep.mubr.msk.bf16.mxu1 %vm542_vm4, %v9892_v34  ;;  %vm12585_vm15 = vmpackc.low %vm9819_vm13, %vm9817_vm14 }
 0x6af   : > { %v8432_v30 = vpop.f32.mrf.mxu1  ;;  %10316 = vmatprep.subr.bf16.mxu1 %v14074_v0  ;;  %v18948_v20 = vpop.permute.xlu1 %9797 }
 0x6b0   : > { %v7357_v29 = vpop.f32.mrf.mxu0  ;;  %vm9828_vm0 = vcmp.eq.s32.totalorder %v18948_v20, %v14319_v48 }
 0x6b1   : > { %v18884_v44 = vadd.f32 %v7357_v29, %v18712_v11  ;;  %v8433_v2 = vpop.f32.mrf.mxu1 }
 0x6b2   : > { %v8457_v14 = vpack.c.bf16 %v8433_v2, %v8430_v43  ;;  %v13485_v37 = vpop.f32.mrf.mxu0  ;;  %10317 = vmatpush1.bf16.msra.mxu1 %v18887_v42  ;;  %v18962_v2 = vld [vmem:[%s14182_s9 + $0x8] sm:$0xff]  }
 0x6b3   : > { %v8435_v57 = vpop.f32.mrf.mxu1  ;;  %10318 = vmatprep.subr.bf16.mxu1 %v14074_v0  ;;  %v12570_v37 = vsel %vm9828_vm0, 1.0, %v14075_v1 }
 0x6b4   : > { %v7362_v25 = vpop.f32.mrf.mxu0  ;;  %13589 = vmatmul.mubr.msk.bf16.gmra.mxu0 %vm234_vm7, %v8457_v14 }
 0x6b5   : > { %v18893_v11 = vadd.f32 %v7362_v25, %v18718_v32  ;;  %v8438_v63 = vpop.f32.mrf.mxu1  ;;  %12580 = vmatmul.mubr.msk.bf16.gmra.mxu1 %vm12579_vm2, %v14078_v61  ;;  %13592 = vmatprep.mubr.msk.bf16.mxu0 %vm14079_vm6, %v14075_v1  ;;  %vm9823_vm2 = vcmp.eq.s32.totalorder %v18918_v53, %v14316_v47  ;;  %v18974_v25 = vpop.permute.xlu1 %9803 }
 0x6b6   : > { %v13488_v52 = vpop.f32.mrf.mxu0  ;;  %12581 = vmatprep.mubr.msk.bf16.mxu1 %vm542_vm4, %v9894_v28  ;;  %10319 = vmatpush1.bf16.msra.mxu1 %v18902_v59  ;;  %vm9832_vm8 = vcmp.eq.s32.totalorder %v18974_v25, %v14319_v48 }
 0x6b7   : > { %v8440_v32 = vpop.f32.mrf.mxu1  ;;  %10320 = vmatprep.subr.bf16.mxu1 %v14074_v0  ;;  %v18977_v52 = vld [vmem:[%s14182_s9] sm:$0xff]   ;;  %v12574_v53 = vsel %vm9832_vm8, 1.0, %v14075_v1 }
 0x6b8   : > { %v7365_v6 = vpop.f32.mrf.mxu0 }
 0x6b9   : > { %v18911_v36 = vadd.f32 %v7365_v6, %v18733_v27  ;;  %v8441_v22 = vpop.f32.mrf.mxu1  ;;  %v9789_v27 = vpop.permute.xlu0 %9788 }
 0x6ba   : > { %v8458_v24 = vpack.c.bf16 %v8441_v22, %v8438_v63  ;;  %v13489_v49 = vpop.f32.mrf.mxu0  ;;  %10321 = vmatpush1.bf16.msra.mxu1 %v18914_v56  ;;  %vm9822_vm12 = vcmp.eq.s32.totalorder %v9789_v27, %v14319_v48  ;;  %vm9821_vm3 = vcmp.eq.s32.totalorder %v9789_v27, %v14316_v47 }
 0x6bb   : > { %v8443_v46 = vpop.f32.mrf.mxu1  ;;  %10322 = vmatprep.subr.bf16.mxu1 %v14074_v0  ;;  %v12564_v33 = vsel %vm9822_vm12, 1.0, %v14075_v1  ;;  %vm12588_vm5 = vmpackc.low %vm9823_vm2, %vm9821_vm3 }
 0x6bc   : > { %v7370_v10 = vpop.f32.mrf.mxu0  ;;  %13593 = vmatmul.mubr.msk.bf16.gmra.mxu0 %vm234_vm7, %v8458_v24  ;;  %v9898_v43 = vpack.c.bf16 %v12566_v26, %v12564_v33  ;;  %v19002_v46 = vld [vmem:[%s14182_s9 + $0x60] sm:$0xff]   ;;  %v19018_v26 = vld [vmem:[%s14182_s9 + $0x58] sm:$0xff]  }
 0x6bd   : > { %v18922_v45 = vadd.f32 %v7370_v10, %v18739_v8  ;;  %v8446_v23 = vpop.f32.mrf.mxu1  ;;  %12583 = vmatmul.mubr.msk.bf16.gmra.mxu1 %vm12582_vm10, %v14078_v61  ;;  %13596 = vmatprep.mubr.msk.bf16.mxu0 %vm14079_vm6, %v14075_v1  ;;  %vm9827_vm10 = vcmp.eq.s32.totalorder %v18948_v20, %v14316_v47  ;;  %v19037_v20 = vld [vmem:[%s14182_s9 + $0x50] sm:$0xff]  }
 0x6be   : > { %v13492_v13 = vpop.f32.mrf.mxu0  ;;  %12584 = vmatprep.mubr.msk.bf16.mxu1 %vm542_vm4, %v9896_v7  ;;  %10323 = vmatpush1.bf16.msra.mxu1 %v18932_v16 }
 0x6bf   : > { %v8448_v8 = vpop.f32.mrf.mxu1  ;;  %10324 = vmatprep.subr.bf16.mxu1 %v14074_v0  ;;  %v19015_v13 = vpop.permute.xlu1 %10157 }
 0x6c0   : > { %v7373_v54 = vpop.f32.mrf.mxu0  ;;  %vm10198_vm13 = vcmp.eq.s32.totalorder %v19015_v13, %v14319_v48 }
 0x6c1   : > { %v18941_v50 = vadd.f32 %v7373_v54, %v18754_v12  ;;  %v8449_v3 = vpop.f32.mrf.mxu1  ;;  %v9795_v12 = vpop.permute.xlu0 %9794 }
 0x6c2   : > { %v8459_v34 = vpack.c.bf16 %v8449_v3, %v8446_v23  ;;  %v13493_v17 = vpop.f32.mrf.mxu0  ;;  %10325 = vmatpush1.bf16.msra.mxu1 %v18944_v21  ;;  %vm9826_vm1 = vcmp.eq.s32.totalorder %v9795_v12, %v14319_v48  ;;  %vm9825_vm11 = vcmp.eq.s32.totalorder %v9795_v12, %v14316_v47 }
 0x6c3   : > { %v8451_v40 = vpop.f32.mrf.mxu1  ;;  %10326 = vmatprep.subr.bf16.mxu1 %v14074_v0  ;;  %v12568_v57 = vsel %vm9826_vm1, 1.0, %v14075_v1  ;;  %vm12591_vm12 = vmpackc.low %vm9827_vm10, %vm9825_vm11 }
 0x6c4   : > { %v7378_v30 = vpop.f32.mrf.mxu0  ;;  %13597 = vmatmul.mubr.msk.bf16.gmra.mxu0 %vm234_vm7, %v8459_v34  ;;  %v9900_v5 = vpack.c.bf16 %v12570_v37, %v12568_v57 }
 0x6c5   : > { %v18952_v29 = vadd.f32 %v7378_v30, %v18760_v15  ;;  %v8788_v9 = vpop.f32.mrf.mxu1  ;;  %12586 = vmatmul.mubr.msk.bf16.gmra.mxu1 %vm12585_vm15, %v14078_v61  ;;  %13602 = vmatprep.mubr.msk.bf16.mxu0 %vm14079_vm6, %v14075_v1  ;;  %v18980_v32 = vpop.permute.xlu0 %9800  ;;  %v12609_v30 = vsel %vm10198_vm13, 1.0, %v14075_v1  ;;  %vm9831_vm15 = vcmp.eq.s32.totalorder %v18974_v25, %v14316_v47 }
 0x6c6   : > { %v13496_v31 = vpop.f32.mrf.mxu0  ;;  %12587 = vmatprep.mubr.msk.bf16.mxu1 %vm542_vm4, %v9898_v43  ;;  %10327 = vmatpush1.bf16.msra.mxu1 %v18962_v2  ;;  %vm9830_vm9 = vcmp.eq.s32.totalorder %v18980_v32, %v14319_v48  ;;  %vm9829_vm0 = vcmp.eq.s32.totalorder %v18980_v32, %v14316_v47  ;;  %v10161_v25 = vpop.permute.xlu1 %10160 }
 0x6c7   : > { %v8790_v15 = vpop.f32.mrf.mxu1  ;;  %10328 = vmatprep.subr.bf16.mxu1 %v14074_v0  ;;  %v12572_v10 = vsel %vm9830_vm9, 1.0, %v14075_v1  ;;  %vm12594_vm1 = vmpackc.low %vm9831_vm15, %vm9829_vm0  ;;  %vm10200_vm2 = vcmp.eq.s32.totalorder %v10161_v25, %v14319_v48 }
 0x6c8   : > { %v7381_v14 = vpop.f32.mrf.mxu0 }
 0x6c9   : > { %v18972_v28 = vadd.f32 %v7381_v14, %v18775_v62  ;;  %v8791_v60 = vpop.f32.mrf.mxu1  ;;  %v13926_v62 = vld [vmem:[%s19706_s3 + $0xb0] sm:$0xff]   ;;  %v10155_v33 = vpop.permute.xlu0 %10154 }
 0x6ca   : > { %v8843_v55 = vpack.c.bf16 %v8791_v60, %v8788_v9  ;;  %v13497_v63 = vpop.f32.mrf.mxu0  ;;  %10329 = vmatpush1.bf16.msra.mxu1 %v18977_v52  ;;  %vm10196_vm14 = vcmp.eq.s32.totalorder %v10155_v33, %v14319_v48  ;;  %v19051_v60 = vld [vmem:[%s14182_s9 + $0x48] sm:$0xff]   ;;  %vm10195_vm8 = vcmp.eq.s32.totalorder %v10155_v33, %v14316_v47 }
 0x6cb   : > { %v8793_v6 = vpop.f32.mrf.mxu1  ;;  %10336 = vmatprep.subr.bf16.mxu1 %v14074_v0  ;;  %v12607_v12 = vsel %vm10196_vm14, 1.0, %v14075_v1 }
 0x6cc   : > { %v7386_v58 = vpop.f32.mrf.mxu0  ;;  %13603 = vmatmul.mubr.msk.bf16.vlgmr.msra.gmra.mxu0 %vm234_vm7, %v8843_v55  ;;  %v10280_v14 = vpack.c.bf16 %v12609_v30, %v12607_v12 }
 0x6cd   : > { %v18991_v22 = vadd.f32 %v7386_v58, %v18790_v19  ;;  %v8796_v24 = vpop.f32.mrf.mxu1  ;;  %12589 = vmatmul.mubr.msk.bf16.gmra.mxu1 %vm12588_vm5, %v14078_v61  ;;  %13606 = vmatprep.mubr.msk.bf16.mxu0 %vm14079_vm6, %v14075_v1  ;;  %v10164_v32 = vpop.permute.xlu0 %10163  ;;  %vm10197_vm5 = vcmp.eq.s32.totalorder %v19015_v13, %v14316_v47 }
 0x6ce   : > { %v13500_v49 = vpop.f32.mrf.mxu0  ;;  %12590 = vmatprep.mubr.msk.bf16.mxu1 %vm542_vm4, %v9900_v5  ;;  %10337 = vmatpush2.bf16.msra.mxu1 %v19002_v46  ;;  %vm10202_vm3 = vcmp.eq.s32.totalorder %v10164_v32, %v14319_v48  ;;  %v19065_v5 = vld [vmem:[%s14182_s9 + $0x40] sm:$0xff]   ;;  %vm12635_vm9 = vmpackc.low %vm10197_vm5, %vm10195_vm8  ;;  %vm10201_vm13 = vcmp.eq.s32.totalorder %v10164_v32, %v14316_v47 }
 0x6cf   : > { %v8798_v19 = vpop.f32.mrf.mxu1  ;;  %10338 = vmatprep.subr.bf16.mxu1 %v14074_v0  ;;  %13631 = vmatpush3.bf16.msra.mxu0 %v13926_v62  ;;  %v12613_v49 = vsel %vm10202_vm3, 1.0, %v14075_v1 }
 0x6d0   : > { %v7389_v7 = vpop.f32.mrf.mxu0  ;;  %13660 = vmatprep.subr.bf16.mxu0 %v14075_v1 }
 0x6d1   : > { %v19013_v27 = vadd.f32 %v7389_v7, %v18810_v51  ;;  %v8799_v23 = vpop.f32.mrf.mxu1  ;;  %v9902_v51 = vpack.c.bf16 %v12574_v53, %v12572_v10  ;;  %v10170_v13 = vpop.permute.xlu0 %10169 }
 0x6d2   : > { %v8844_v8 = vpack.c.bf16 %v8799_v23, %v8796_v24  ;;  %v13501_v54 = vpop.f32.mrf.mxu0  ;;  %10339 = vmatpush2.bf16.msra.mxu1 %v19018_v26  ;;  %v12611_v24 = vsel %vm10200_vm2, 1.0, %v14075_v1  ;;  %vm10206_vm11 = vcmp.eq.s32.totalorder %v10170_v13, %v14319_v48  ;;  %vm10205_vm2 = vcmp.eq.s32.totalorder %v10170_v13, %v14316_v47 }
 0x6d3   : > { %v8801_v3 = vpop.f32.mrf.mxu1  ;;  %10340 = vmatprep.subr.bf16.mxu1 %v14074_v0  ;;  %v10167_v54 = vpop.permute.xlu1 %10166 }
 0x6d4   : > { %v7394_v34 = vpop.f32.mrf.mxu0  ;;  %13607 = vmatmul.mubr.msk.bf16.gmra.mxu0 %vm234_vm7, %v8844_v8  ;;  %v10282_v8 = vpack.c.bf16 %v12613_v49, %v12611_v24  ;;  %vm10204_vm10 = vcmp.eq.s32.totalorder %v10167_v54, %v14319_v48 }
 0x6d5   : > { %v19030_v17 = vadd.f32 %v7394_v34, %v18821_v38  ;;  %v8804_v40 = vpop.f32.mrf.mxu1  ;;  %12592 = vmatmul.mubr.msk.bf16.gmra.mxu1 %vm12591_vm12, %v14078_v61  ;;  %13610 = vmatprep.mubr.msk.bf16.mxu0 %vm14079_vm6, %v14075_v1  ;;  %vm10199_vm12 = vcmp.eq.s32.totalorder %v10161_v25, %v14316_v47 }
 0x6d6   : > { %v13504_v43 = vpop.f32.mrf.mxu0  ;;  %12593 = vmatprep.mubr.msk.bf16.mxu1 %vm542_vm4, %v9902_v51  ;;  %10341 = vmatpush2.bf16.msra.mxu1 %v19037_v20  ;;  %vm12638_vm14 = vmpackc.low %vm10201_vm13, %vm10199_vm12 }
 0x6d7   : > { %v8806_v38 = vpop.f32.mrf.mxu1  ;;  %10342 = vmatprep.subr.bf16.mxu1 %v14074_v0  ;;  %v12617_v43 = vsel %vm10206_vm11, 1.0, %v14075_v1 }
 0x6d8   : > { %v7397_v9 = vpop.f32.mrf.mxu0 }
 0x6d9   : > { %v19048_v31 = vadd.f32 %v7397_v9, %v18838_v41  ;;  %v8807_v15 = vpop.f32.mrf.mxu1 }
 0x6da   : > { %v8845_v37 = vpack.c.bf16 %v8807_v15, %v8804_v40  ;;  %v13505_v57 = vpop.f32.mrf.mxu0  ;;  %10343 = vmatpush2.bf16.msra.mxu1 %v19051_v60  ;;  %v12615_v40 = vsel %vm10204_vm10, 1.0, %v14075_v1 }
 0x6db   : > { %v8809_v55 = vpop.f32.mrf.mxu1  ;;  %10344 = vmatprep.subr.bf16.mxu1 %v14074_v0  ;;  %v10284_v15 = vpack.c.bf16 %v12617_v43, %v12615_v40  ;;  %v10176_v57 = vpop.permute.xlu0 %10175 }
 0x6dc   : > { %v7402_v63 = vpop.f32.mrf.mxu0  ;;  %13611 = vmatmul.mubr.msk.bf16.gmra.mxu0 %vm234_vm7, %v8845_v37  ;;  %vm10210_vm0 = vcmp.eq.s32.totalorder %v10176_v57, %v14319_v48  ;;  %vm10209_vm10 = vcmp.eq.s32.totalorder %v10176_v57, %v14316_v47 }
 0x6dd   : > { %v19057_v41 = vadd.f32 %v7402_v63, %v18844_v35  ;;  %v8812_v6 = vpop.f32.mrf.mxu1  ;;  %12595 = vmatmul.mubr.msk.bf16.gmra.mxu1 %vm12594_vm1, %v14078_v61  ;;  %13614 = vmatprep.mubr.msk.bf16.mxu0 %vm14079_vm6, %v14075_v1  ;;  %vm10203_vm1 = vcmp.eq.s32.totalorder %v10167_v54, %v14316_v47  ;;  %v12621_v32 = vsel %vm10210_vm0, 1.0, %v14075_v1 }
 0x6de   : > { %v13508_v62 = vpop.f32.mrf.mxu0  ;;  %10345 = vmatpush2.bf16.msra.mxu1 %v19065_v5  ;;  %12634 = vmatprep.mubr.msk.bf16.mxu1 %vm542_vm4, %v10280_v14  ;;  %v10173_v14 = vpop.permute.xlu1 %10172  ;;  %vm12641_vm3 = vmpackc.low %vm10205_vm2, %vm10203_vm1 }
 0x6df   : > { %v8814_v58 = vpop.f32.mrf.mxu1  ;;  %10704 = vmatprep.subr.bf16.mxu1 %v14074_v0  ;;  %vm10208_vm15 = vcmp.eq.s32.totalorder %v10173_v14, %v14319_v48 }
 0x6e0   : > { %v7405_v35 = vpop.f32.mrf.mxu0  ;;  %v12619_v63 = vsel %vm10208_vm15, 1.0, %v14075_v1 }
 0x6e1   : > { %v19076_v19 = vadd.f32 %v7405_v35, %v18861_v39  ;;  %v8815_v7 = vpop.f32.mrf.mxu1  ;;  %v10286_v24 = vpack.c.bf16 %v12621_v32, %v12619_v63 }
 0x6e2   : > { %v8846_v53 = vpack.c.bf16 %v8815_v7, %v8812_v6  ;;  %v13509_v10 = vpop.f32.mrf.mxu0  ;;  %v10179_v49 = vpop.permute.xlu1 %10178 }
 0x6e3   : > { %v8817_v23 = vpop.f32.mrf.mxu1  ;;  %vm10212_vm5 = vcmp.eq.s32.totalorder %v10179_v49, %v14319_v48 }
 0x6e4   : > { %v7744_v3 = vpop.f32.mrf.mxu0  ;;  %13615 = vmatmul.mubr.msk.bf16.gmra.mxu0 %vm234_vm7, %v8846_v53  ;;  %v10182_v53 = vpop.permute.xlu0 %10181 }
 0x6e5   : > { %v19080_v33 = vadd.f32 %v7744_v3, %v18865_v4  ;;  %v8820_v51 = vpop.f32.mrf.mxu1  ;;  %12636 = vmatmul.mubr.msk.bf16.vlgmr.msra.gmra.mxu1 %vm12635_vm9, %v14078_v61  ;;  %13618 = vmatprep.mubr.msk.bf16.mxu0 %vm14079_vm6, %v14075_v1  ;;  %vm10214_vm8 = vcmp.eq.s32.totalorder %v10182_v53, %v14319_v48  ;;  %vm10207_vm9 = vcmp.eq.s32.totalorder %v10173_v14, %v14316_v47 }
 0x6e6   : > { %10705 = vmatpush1.bf16.msra.mxu1 %v18873_v18  ;;  %v13514_v39 = vpop.f32.mrf.mxu0  ;;  %12637 = vmatprep.mubr.msk.bf16.mxu1 %vm542_vm4, %v10282_v8  ;;  %v12623_v8 = vsel %vm10212_vm5, 1.0, %v14075_v1  ;;  %v12625_v54 = vsel %vm10214_vm8, 1.0, %v14075_v1  ;;  %vm12644_vm11 = vmpackc.low %vm10209_vm10, %vm10207_vm9  ;;  %vm10213_vm15 = vcmp.eq.s32.totalorder %v10182_v53, %v14316_v47 }
 0x6e7   : > { %v8822_v34 = vpop.f32.mrf.mxu1  ;;  %10706 = vmatprep.subr.bf16.mxu1 %v14074_v0 }
 0x6e8   : > { %v7747_v4 = vpop.f32.mrf.mxu0  ;;  %v10288_v34 = vpack.c.bf16 %v12625_v54, %v12623_v8  ;;  %v10188_v43 = vpop.permute.xlu0 %10187 }
 0x6e9   : > { %v19095_v30 = vadd.f32 %v7747_v4, %v18884_v44  ;;  %v8823_v12 = vpop.f32.mrf.mxu1  ;;  %v10185_v4 = vpop.permute.xlu1 %10184  ;;  %vm10218_vm13 = vcmp.eq.s32.totalorder %v10188_v43, %v14319_v48  ;;  %vm10217_vm5 = vcmp.eq.s32.totalorder %v10188_v43, %v14316_v47 }
 0x6ea   : > { %v8847_v18 = vpack.c.bf16 %v8823_v12, %v8820_v51  ;;  %v13515_v38 = vpop.f32.mrf.mxu0  ;;  %10707 = vmatpush1.bf16.msra.mxu1 %v18887_v42  ;;  %vm10216_vm12 = vcmp.eq.s32.totalorder %v10185_v4, %v14319_v48 }
 0x6eb   : > { %v8825_v9 = vpop.f32.mrf.mxu1  ;;  %10708 = vmatprep.subr.bf16.mxu1 %v14074_v0  ;;  %v12627_v38 = vsel %vm10216_vm12, 1.0, %v14075_v1 }
 0x6ec   : > { %v7752_v37 = vpop.f32.mrf.mxu0  ;;  %13619 = vmatmul.mubr.msk.bf16.gmra.mxu0 %vm234_vm7, %v8847_v18  ;;  %v12629_v9 = vsel %vm10218_vm13, 1.0, %v14075_v1 }
 0x6ed   : > { %v19101_v55 = vadd.f32 %v7752_v37, %v18893_v11  ;;  %v8828_v44 = vpop.f32.mrf.mxu1  ;;  %12639 = vmatmul.mubr.msk.bf16.gmra.mxu1 %vm12638_vm14, %v14078_v61  ;;  %13622 = vmatprep.mubr.msk.bf16.mxu0 %vm14079_vm6, %v14075_v1  ;;  %vm10211_vm14 = vcmp.eq.s32.totalorder %v10179_v49, %v14316_v47  ;;  %v19160_v37 = vpop.permute.xlu1 %10190 }
 0x6ee   : > { %v13518_v42 = vpop.f32.mrf.mxu0  ;;  %12640 = vmatprep.mubr.msk.bf16.mxu1 %vm542_vm4, %v10284_v15  ;;  %10709 = vmatpush1.bf16.msra.mxu1 %v18902_v59  ;;  %vm12647_vm0 = vmpackc.low %vm10213_vm15, %vm10211_vm14  ;;  %vm10220_vm1 = vcmp.eq.s32.totalorder %v19160_v37, %v14319_v48 }
 0x6ef   : > { %v8830_v25 = vpop.f32.mrf.mxu1  ;;  %10710 = vmatprep.subr.bf16.mxu1 %v14074_v0 }
 0x6f0   : > { %v7755_v11 = vpop.f32.mrf.mxu0  ;;  %v13927_v25 = vld [vmem:[%s19706_s3 + $0xb8] sm:$0xff]  }
 0x6f1   : > { %v19116_v6 = vadd.f32 %v7755_v11, %v18911_v36  ;;  %v8831_v62 = vpop.f32.mrf.mxu1 }
 0x6f2   : > { %v8848_v58 = vpack.c.bf16 %v8831_v62, %v8828_v44  ;;  %v13519_v35 = vpop.f32.mrf.mxu0  ;;  %10711 = vmatpush1.bf16.msra.mxu1 %v18914_v56  ;;  %v19163_v44 = vpop.permute.xlu0 %10193 }
 0x6f3   : > { %v8833_v59 = vpop.f32.mrf.mxu1  ;;  %10712 = vmatprep.subr.bf16.mxu1 %v14074_v0  ;;  %vm10222_vm2 = vcmp.eq.s32.totalorder %v19163_v44, %v14319_v48  ;;  %vm10221_vm12 = vcmp.eq.s32.totalorder %v19163_v44, %v14316_v47 }
 0x6f4   : > { %v7760_v7 = vpop.f32.mrf.mxu0  ;;  %13623 = vmatmul.mubr.msk.bf16.gmra.mxu0 %vm234_vm7, %v8848_v58  ;;  %v12631_v58 = vsel %vm10220_vm1, 1.0, %v14075_v1  ;;  %v12633_v35 = vsel %vm10222_vm2, 1.0, %v14075_v1  ;;  %v19190_v59 = vpop.permute.xlu1 %10544 }
 0x6f5   : > { %v19122_v10 = vadd.f32 %v7760_v7, %v18922_v45  ;;  %v8836_v36 = vpop.f32.mrf.mxu1  ;;  %12642 = vmatmul.mubr.msk.bf16.gmra.mxu1 %vm12641_vm3, %v14078_v61  ;;  %13626 = vmatprep.mubr.msk.bf16.mxu0 %vm14079_vm6, %v14075_v1  ;;  %vm10215_vm3 = vcmp.eq.s32.totalorder %v10185_v4, %v14316_v47  ;;  %vm10586_vm9 = vcmp.eq.s32.totalorder %v19190_v59, %v14319_v48 }
 0x6f6   : > { %v13522_v56 = vpop.f32.mrf.mxu0  ;;  %12643 = vmatprep.mubr.msk.bf16.mxu1 %vm542_vm4, %v10286_v24  ;;  %10713 = vmatpush1.bf16.msra.mxu1 %v18932_v16  ;;  %v10548_v53 = vpop.permute.xlu0 %10547  ;;  %vm12650_vm8 = vmpackc.low %vm10217_vm5, %vm10215_vm3  ;;  %v12666_v8 = vsel %vm10586_vm9, 1.0, %v14075_v1 }
 0x6f7   : > { %v8838_v23 = vpop.f32.mrf.mxu1  ;;  %10714 = vmatprep.subr.bf16.mxu1 %v14074_v0  ;;  %v10292_v56 = vpack.c.bf16 %v12633_v35, %v12631_v58  ;;  %vm10588_vm10 = vcmp.eq.s32.totalorder %v10548_v53, %v14319_v48  ;;  %vm10587_vm1 = vcmp.eq.s32.totalorder %v10548_v53, %v14316_v47 }
 0x6f8   : > { %v7763_v45 = vpop.f32.mrf.mxu0  ;;  %v19212_v54 = vpop.permute.xlu1 %10550 }
 0x6f9   : > { %v19137_v3 = vadd.f32 %v7763_v45, %v18941_v50  ;;  %v8839_v13 = vpop.f32.mrf.mxu1  ;;  %vm10590_vm14 = vcmp.eq.s32.totalorder %v19212_v54, %v14319_v48 }
 0x6fa   : > { %v8849_v51 = vpack.c.bf16 %v8839_v13, %v8836_v36  ;;  %v13523_v39 = vpop.f32.mrf.mxu0  ;;  %10715 = vmatpush1.bf16.msra.mxu1 %v18944_v21  ;;  %v12668_v13 = vsel %vm10588_vm10, 1.0, %v14075_v1 }
 0x6fb   : > { %v8841_v16 = vpop.f32.mrf.mxu1  ;;  %10716 = vmatprep.subr.bf16.mxu1 %v14074_v0 }
 0x6fc   : > { %v7768_v40 = vpop.f32.mrf.mxu0  ;;  %13627 = vmatmul.mubr.msk.bf16.gmra.mxu0 %vm234_vm7, %v8849_v51  ;;  %v10670_v16 = vpack.c.bf16 %v12668_v13, %v12666_v8 }
 0x6fd   : > { %v19143_v12 = vadd.f32 %v7768_v40, %v18952_v29  ;;  %v9178_v50 = vpop.f32.mrf.mxu1  ;;  %12645 = vmatmul.mubr.msk.bf16.gmra.mxu1 %vm12644_vm11, %v14078_v61  ;;  %13632 = vmatprep.mubr.msk.bf16.mxu0 %vm14079_vm6, %v14075_v1  ;;  %vm10219_vm11 = vcmp.eq.s32.totalorder %v19160_v37, %v14316_v47 }
 0x6fe   : > { %v13526_v21 = vpop.f32.mrf.mxu0  ;;  %12646 = vmatprep.mubr.msk.bf16.mxu1 %vm542_vm4, %v10288_v34  ;;  %10717 = vmatpush1.bf16.msra.mxu1 %v18962_v2  ;;  %vm12653_vm13 = vmpackc.low %vm10221_vm12, %vm10219_vm11 }
 0x6ff   : > { %v9180_v18 = vpop.f32.mrf.mxu1  ;;  %10718 = vmatprep.subr.bf16.mxu1 %v14074_v0 }
 0x700   : > { %v7771_v29 = vpop.f32.mrf.mxu0 }
 0x701   : > { %v19158_v15 = vadd.f32 %v7771_v29, %v18972_v28  ;;  %v9181_v14 = vpop.f32.mrf.mxu1  ;;  %v10290_v28 = vpack.c.bf16 %v12629_v9, %v12627_v38 }
 0x702   : > { %v9233_v57 = vpack.c.bf16 %v9181_v14, %v9178_v50  ;;  %v13527_v2 = vpop.f32.mrf.mxu0  ;;  %10719 = vmatpush1.bf16.msra.mxu1 %v18977_v52  ;;  %v10554_v50 = vpop.permute.xlu1 %10553 }
 0x703   : > { %v9183_v42 = vpop.f32.mrf.mxu1  ;;  %10726 = vmatprep.subr.bf16.mxu1 %v14074_v0  ;;  %vm10592_vm15 = vcmp.eq.s32.totalorder %v10554_v50, %v14319_v48  ;;  %vm10591_vm9 = vcmp.eq.s32.totalorder %v10554_v50, %v14316_v47 }
 0x704   : > { %v7776_v11 = vpop.f32.mrf.mxu0  ;;  %13633 = vmatmul.mubr.msk.bf16.vlgmr.msra.gmra.mxu0 %vm234_vm7, %v9233_v57  ;;  %v12672_v29 = vsel %vm10592_vm15, 1.0, %v14075_v1  ;;  %v10557_v42 = vpop.permute.xlu0 %10556 }
 0x705   : > { %v19173_v63 = vadd.f32 %v7776_v11, %v18991_v22  ;;  %v9186_v52 = vpop.f32.mrf.mxu1  ;;  %12648 = vmatmul.mubr.msk.bf16.gmra.mxu1 %vm12647_vm0, %v14078_v61  ;;  %13636 = vmatprep.mubr.msk.bf16.mxu0 %vm14079_vm6, %v14075_v1  ;;  %vm10585_vm0 = vcmp.eq.s32.totalorder %v19190_v59, %v14316_v47  ;;  %vm10594_vm5 = vcmp.eq.s32.totalorder %v10557_v42, %v14319_v48 }
 0x706   : > { %v13530_v32 = vpop.f32.mrf.mxu0  ;;  %12649 = vmatprep.mubr.msk.bf16.mxu1 %vm542_vm4, %v10290_v28  ;;  %10727 = vmatpush2.bf16.msra.mxu1 %v19002_v46  ;;  %vm12694_vm2 = vmpackc.low %vm10587_vm1, %vm10585_vm0  ;;  %v10560_v2 = vpop.permute.xlu1 %10559 }
 0x707   : > { %v9188_v62 = vpop.f32.mrf.mxu1  ;;  %10728 = vmatprep.subr.bf16.mxu1 %v14074_v0  ;;  %13661 = vmatpush3.bf16.msra.mxu0 %v13927_v25  ;;  %vm10596_vm3 = vcmp.eq.s32.totalorder %v10560_v2, %v14319_v48  ;;  %v12674_v32 = vsel %vm10594_vm5, 1.0, %v14075_v1 }
 0x708   : > { %v7779_v22 = vpop.f32.mrf.mxu0  ;;  %13690 = vmatprep.subr.bf16.mxu0 %v14075_v1  ;;  %v10563_v53 = vpop.permute.xlu0 %10562 }
 0x709   : > { %v19193_v24 = vadd.f32 %v7779_v22, %v19013_v27  ;;  %v9189_v46 = vpop.f32.mrf.mxu1  ;;  %vm10598_vm12 = vcmp.eq.s32.totalorder %v10563_v53, %v14319_v48 }
 0x70a   : > { %v9234_v49 = vpack.c.bf16 %v9189_v46, %v9186_v52  ;;  %v13531_v7 = vpop.f32.mrf.mxu0  ;;  %10729 = vmatpush2.bf16.msra.mxu1 %v19018_v26 }
 0x70b   : > { %v9191_v36 = vpop.f32.mrf.mxu1  ;;  %10730 = vmatprep.subr.bf16.mxu1 %v14074_v0 }
 0x70c   : > { %v7784_v27 = vpop.f32.mrf.mxu0  ;;  %13637 = vmatmul.mubr.msk.bf16.gmra.mxu0 %vm234_vm7, %v9234_v49  ;;  %v10566_v49 = vpop.permute.xlu1 %10565 }
 0x70d   : > { %v19204_v23 = vadd.f32 %v7784_v27, %v19030_v17  ;;  %v9194_v26 = vpop.f32.mrf.mxu1  ;;  %12651 = vmatmul.mubr.msk.bf16.gmra.mxu1 %vm12650_vm8, %v14078_v61  ;;  %13640 = vmatprep.mubr.msk.bf16.mxu0 %vm14079_vm6, %v14075_v1  ;;  %vm10589_vm8 = vcmp.eq.s32.totalorder %v19212_v54, %v14316_v47  ;;  %vm10600_vm11 = vcmp.eq.s32.totalorder %v10566_v49, %v14319_v48 }
 0x70e   : > { %v13534_v45 = vpop.f32.mrf.mxu0  ;;  %12652 = vmatprep.mubr.msk.bf16.mxu1 %vm542_vm4, %v10292_v56  ;;  %10731 = vmatpush2.bf16.msra.mxu1 %v19037_v20  ;;  %vm12697_vm10 = vmpackc.low %vm10591_vm9, %vm10589_vm8 }
 0x70f   : > { %v9196_v51 = vpop.f32.mrf.mxu1  ;;  %10732 = vmatprep.subr.bf16.mxu1 %v14074_v0  ;;  %v12678_v45 = vsel %vm10598_vm12, 1.0, %v14075_v1 }
 0x710   : > { %v7787_v17 = vpop.f32.mrf.mxu0 }
 0x711   : > { %v19221_v39 = vadd.f32 %v7787_v17, %v19048_v31  ;;  %v9197_v20 = vpop.f32.mrf.mxu1 }
 0x712   : > { %v9235_v34 = vpack.c.bf16 %v9197_v20, %v9194_v26  ;;  %v13535_v4 = vpop.f32.mrf.mxu0  ;;  %10733 = vmatpush2.bf16.msra.mxu1 %v19051_v60 }
 0x713   : > { %v9199_v40 = vpop.f32.mrf.mxu1  ;;  %10734 = vmatprep.subr.bf16.mxu1 %v14074_v0  ;;  %v10569_v4 = vpop.permute.xlu0 %10568 }
 0x714   : > { %v7792_v43 = vpop.f32.mrf.mxu0  ;;  %13641 = vmatmul.mubr.msk.bf16.gmra.mxu0 %vm234_vm7, %v9235_v34  ;;  %vm10602_vm1 = vcmp.eq.s32.totalorder %v10569_v4, %v14319_v48 }
 0x715   : > { %v19227_v21 = vadd.f32 %v7792_v43, %v19057_v41  ;;  %v9202_v18 = vpop.f32.mrf.mxu1  ;;  %12654 = vmatmul.mubr.msk.bf16.gmra.mxu1 %vm12653_vm13, %v14078_v61  ;;  %13644 = vmatprep.mubr.msk.bf16.mxu0 %vm14079_vm6, %v14075_v1  ;;  %v12670_v41 = vsel %vm10590_vm14, 1.0, %v14075_v1  ;;  %vm10595_vm13 = vcmp.eq.s32.totalorder %v10560_v2, %v14316_v47  ;;  %vm10593_vm14 = vcmp.eq.s32.totalorder %v10557_v42, %v14316_v47 }
 0x716   : > { %v13538_v0 = vpop.f32.mrf.mxu0  ;;  %10735 = vmatpush2.bf16.msra.mxu1 %v19065_v5  ;;  %12693 = vmatprep.mubr.msk.bf16.mxu1 %vm542_vm4, %v10670_v16  ;;  %v10672_v57 = vpack.c.bf16 %v12672_v29, %v12670_v41  ;;  %vm12700_vm15 = vmpackc.low %vm10595_vm13, %vm10593_vm14  ;;  %v10572_v16 = vpop.permute.xlu1 %10571 }
 0x717   : > { %v9204_v31 = vpop.f32.mrf.mxu1  ;;  %13780 = vmatprep.subr.bf16.mxu1 %v14075_v1  ;;  %vm10604_vm0 = vcmp.eq.s32.totalorder %v10572_v16, %v14319_v48  ;;  %v12682_v0 = vsel %vm10602_vm1, 1.0, %v14075_v1 }
 0x718   : > { %v7795_v60 = vpop.f32.mrf.mxu0 }
 0x719   : > { %v19244_v38 = vadd.f32 %v7795_v60, %v19076_v19  ;;  %v9205_v9 = vpop.f32.mrf.mxu1 }
 0x71a   : > { %v9236_v5 = vpack.c.bf16 %v9205_v9, %v9202_v18  ;;  %v13539_v14 = vpop.f32.mrf.mxu0 }
 0x71b   : > { %v9207_v37 = vpop.f32.mrf.mxu1  ;;  %v10578_v14 = vpop.permute.xlu1 %10577 }
 0x71c   : > { %v8134_v44 = vpop.f32.mrf.mxu0  ;;  %13645 = vmatmul.mubr.msk.bf16.gmra.mxu0 %vm234_vm7, %v9236_v5  ;;  %vm10608_vm8 = vcmp.eq.s32.totalorder %v10578_v14, %v14319_v48 }
 0x71d   : > { %v19248_v25 = vadd.f32 %v8134_v44, %v19080_v33  ;;  %v9210_v28 = vpop.f32.mrf.mxu1  ;;  %12695 = vmatmul.mubr.msk.bf16.vlgmr.msra.gmra.mxu1 %vm12694_vm2, %v14078_v61  ;;  %13648 = vmatprep.mubr.msk.bf16.mxu0 %vm14079_vm6, %v14075_v1  ;;  %v12676_v33 = vsel %vm10596_vm3, 1.0, %v14075_v1  ;;  %vm10599_vm2 = vcmp.eq.s32.totalorder %v10566_v49, %v14316_v47  ;;  %vm10597_vm3 = vcmp.eq.s32.totalorder %v10563_v53, %v14316_v47 }
 0x71e   : > { %v13544_v19 = vpop.f32.mrf.mxu0  ;;  %12696 = vmatprep.mubr.msk.bf16.mxu1 %vm542_vm4, %v10672_v57  ;;  %v10674_v46 = vpack.c.bf16 %v12676_v33, %v12674_v32  ;;  %vm12703_vm5 = vmpackc.low %vm10599_vm2, %vm10597_vm3  ;;  %v10575_v57 = vpop.permute.xlu0 %10574 }
 0x71f   : > { %v9212_v11 = vpop.f32.mrf.mxu1  ;;  %vm10606_vm9 = vcmp.eq.s32.totalorder %v10575_v57, %v14319_v48  ;;  %v10584_v33 = vpop.permute.xlu1 %10583 }
 0x720   : > { %v8137_v52 = vpop.f32.mrf.mxu0  ;;  %v12686_v19 = vsel %vm10606_vm9, 1.0, %v14075_v1  ;;  %vm10612_vm13 = vcmp.eq.s32.totalorder %v10584_v33, %v14319_v48  ;;  %vm10611_vm2 = vcmp.eq.s32.totalorder %v10584_v33, %v14316_v47 }
 0x721   : > { %v19262_v62 = vadd.f32 %v8137_v52, %v19095_v30  ;;  %v9213_v22 = vpop.f32.mrf.mxu1 }
 0x722   : > { %v9237_v58 = vpack.c.bf16 %v9213_v22, %v9210_v28  ;;  %v13545_v35 = vpop.f32.mrf.mxu0 }
 0x723   : > { %v9215_v59 = vpop.f32.mrf.mxu1  ;;  %v10581_v35 = vpop.permute.xlu0 %10580 }
 0x724   : > { %v8142_v7 = vpop.f32.mrf.mxu0  ;;  %13649 = vmatmul.mubr.msk.bf16.gmra.mxu0 %vm234_vm7, %v9237_v58  ;;  %v13928_v58 = vld [vmem:[%s19706_s3 + $0xc0] sm:$0xff]   ;;  %vm10610_vm14 = vcmp.eq.s32.totalorder %v10581_v35, %v14319_v48  ;;  %vm10609_vm3 = vcmp.eq.s32.totalorder %v10581_v35, %v14316_v47 }
 0x725   : > { %v19266_v36 = vadd.f32 %v8142_v7, %v19101_v55  ;;  %v9218_v56 = vpop.f32.mrf.mxu1  ;;  %12698 = vmatmul.mubr.msk.bf16.gmra.mxu1 %vm12697_vm10, %v14078_v61  ;;  %13652 = vmatprep.mubr.msk.bf16.mxu0 %vm14079_vm6, %v14075_v1  ;;  %v12680_v55 = vsel %vm10600_vm11, 1.0, %v14075_v1  ;;  %vm10603_vm10 = vcmp.eq.s32.totalorder %v10572_v16, %v14316_v47  ;;  %vm10601_vm11 = vcmp.eq.s32.totalorder %v10569_v4, %v14316_v47 }
 0x726   : > { %v13548_v30 = vpop.f32.mrf.mxu0  ;;  %12699 = vmatprep.mubr.msk.bf16.mxu1 %vm542_vm4, %v10674_v46  ;;  %v10676_v20 = vpack.c.bf16 %v12680_v55, %v12678_v45  ;;  %vm12706_vm12 = vmpackc.low %vm10603_vm10, %vm10601_vm11 }
 0x727   : > { %v9220_v27 = vpop.f32.mrf.mxu1  ;;  %v12692_v30 = vsel %vm10612_vm13, 1.0, %v14075_v1 }
 0x728   : > { %v8145_v26 = vpop.f32.mrf.mxu0  ;;  %v12690_v27 = vsel %vm10610_vm14, 1.0, %v14075_v1 }
 0x729   : > { %v19279_v8 = vadd.f32 %v8145_v26, %v19116_v6  ;;  %v9221_v54 = vpop.f32.mrf.mxu1 }
 0x72a   : > { %v9238_v13 = vpack.c.bf16 %v9221_v54, %v9218_v56  ;;  %v13549_v51 = vpop.f32.mrf.mxu0 }
 0x72b   : > { %v9223_v17 = vpop.f32.mrf.mxu1 }
 0x72c   : > { %v8150_v34 = vpop.f32.mrf.mxu0  ;;  %13653 = vmatmul.mubr.msk.bf16.gmra.mxu0 %vm234_vm7, %v9238_v13  ;;  %v10682_v13 = vpack.c.bf16 %v12692_v30, %v12690_v27 }
 0x72d   : > { %v19283_v40 = vadd.f32 %v8150_v34, %v19122_v10  ;;  %v9226_v43 = vpop.f32.mrf.mxu1  ;;  %12701 = vmatmul.mubr.msk.bf16.gmra.mxu1 %vm12700_vm15, %v14078_v61  ;;  %13656 = vmatprep.mubr.msk.bf16.mxu0 %vm14079_vm6, %v14075_v1  ;;  %v12684_v10 = vsel %vm10604_vm0, 1.0, %v14075_v1  ;;  %vm10607_vm15 = vcmp.eq.s32.totalorder %v10578_v14, %v14316_v47  ;;  %vm10605_vm0 = vcmp.eq.s32.totalorder %v10575_v57, %v14316_v47 }
 0x72e   : > { %v13552_v6 = vpop.f32.mrf.mxu0  ;;  %12702 = vmatprep.mubr.msk.bf16.mxu1 %vm542_vm4, %v10676_v20  ;;  %v10678_v5 = vpack.c.bf16 %v12684_v10, %v12682_v0  ;;  %vm12709_vm1 = vmpackc.low %vm10607_vm15, %vm10605_vm0 }
 0x72f   : > { %v9228_v50 = vpop.f32.mrf.mxu1 }
 0x730   : > { %v8153_v18 = vpop.f32.mrf.mxu0 }
 0x731   : > { %v19296_v31 = vadd.f32 %v8153_v18, %v19137_v3  ;;  %v9229_v60 = vpop.f32.mrf.mxu1 }
 0x732   : > { %v9239_v41 = vpack.c.bf16 %v9229_v60, %v9226_v43  ;;  %v13553_v29 = vpop.f32.mrf.mxu0 }
 0x733   : > { %v9231_v9 = vpop.f32.mrf.mxu1 }
 0x734   : > { %v8158_v37 = vpop.f32.mrf.mxu0  ;;  %13657 = vmatmul.mubr.msk.bf16.gmra.mxu0 %vm234_vm7, %v9239_v41 }
 0x735   : > { %v19300_v2 = vadd.f32 %v8158_v37, %v19143_v12  ;;  %v9568_v44 = vpop.f32.mrf.mxu1  ;;  %12704 = vmatmul.mubr.msk.bf16.gmra.mxu1 %vm12703_vm5, %v14078_v61  ;;  %13662 = vmatprep.mubr.msk.bf16.mxu0 %vm14079_vm6, %v14075_v1  ;;  %v12688_v12 = vsel %vm10608_vm8, 1.0, %v14075_v1  ;;  %vm12712_vm5 = vmpackc.low %vm10611_vm2, %vm10609_vm3 }
 0x736   : > { %v13556_v3 = vpop.f32.mrf.mxu0  ;;  %12705 = vmatprep.mubr.msk.bf16.mxu1 %vm542_vm4, %v10678_v5  ;;  %v10680_v46 = vpack.c.bf16 %v12688_v12, %v12686_v19 }
 0x737   : > { %v9570_v42 = vpop.f32.mrf.mxu1 }
 0x738   : > { %v8161_v28 = vpop.f32.mrf.mxu0 }
 0x739   : > { %v19313_v11 = vadd.f32 %v8161_v28, %v19158_v15  ;;  %v9571_v52 = vpop.f32.mrf.mxu1 }
 0x73a   : > { %v9623_v32 = vpack.c.bf16 %v9571_v52, %v9568_v44  ;;  %v13557_v22 = vpop.f32.mrf.mxu0 }
 0x73b   : > { %v9573_v59 = vpop.f32.mrf.mxu1 }
 0x73c   : > { %v8166_v49 = vpop.f32.mrf.mxu0  ;;  %13663 = vmatmul.mubr.msk.bf16.vlgmr.msra.gmra.mxu0 %vm234_vm7, %v9623_v32 }
 0x73d   : > { %v19320_v7 = vadd.f32 %v8166_v49, %v19173_v63  ;;  %v9576_v15 = vpop.f32.mrf.mxu1  ;;  %12707 = vmatmul.mubr.msk.bf16.gmra.mxu1 %vm12706_vm12, %v14078_v61  ;;  %13666 = vmatprep.mubr.msk.bf16.mxu0 %vm14079_vm6, %v14075_v1 }
 0x73e   : > { %v13560_v53 = vpop.f32.mrf.mxu0  ;;  %12708 = vmatprep.mubr.msk.bf16.mxu1 %vm542_vm4, %v10680_v46  ;;  %13691 = vmatpush3.bf16.msra.mxu0 %v13928_v58 }
 0x73f   : > { %v9578_v56 = vpop.f32.mrf.mxu1  ;;  %13720 = vmatprep.subr.bf16.mxu0 %v14075_v1 }
 0x740   : > { %v8169_v63 = vpop.f32.mrf.mxu0 }
 0x741   : > { %v19334_v26 = vadd.f32 %v8169_v63, %v19193_v24  ;;  %v9579_v48 = vpop.f32.mrf.mxu1  ;;  %v19346_v24 = vld [vmem:[%s19706_s3 + $0xd0] sm:$0xff]  }
 0x742   : > { %v9624_v55 = vpack.c.bf16 %v9579_v48, %v9576_v15  ;;  %v13561_v45 = vpop.f32.mrf.mxu0  ;;  %13781 = vmatpush3.bf16.msra.mxu1 %v19346_v24 }
 0x743   : > { %v9581_v54 = vpop.f32.mrf.mxu1 }
 0x744   : > { %v8174_v51 = vpop.f32.mrf.mxu0  ;;  %13667 = vmatmul.mubr.msk.bf16.gmra.mxu0 %vm234_vm7, %v9624_v55 }
 0x745   : > { %v19338_v17 = vadd.f32 %v8174_v51, %v19204_v23  ;;  %v9584_v20 = vpop.f32.mrf.mxu1  ;;  %12710 = vmatmul.mubr.msk.bf16.gmra.mxu1 %vm12709_vm1, %v14078_v61  ;;  %13670 = vmatprep.mubr.msk.bf16.mxu0 %vm14079_vm6, %v14075_v1 }
 0x746   : > { %v13564_v16 = vpop.f32.mrf.mxu0  ;;  %12711 = vmatprep.mubr.msk.bf16.mxu1 %vm542_vm4, %v10682_v13  ;;  %vm11020_vm4 = vcmask 125952  }
 0x747   : > { %v9586_v34 = vpop.f32.mrf.mxu1 }
 0x748   : > { %v8177_v4 = vpop.f32.mrf.mxu0 }
 0x749   : > { %v19353_v23 = vadd.f32 %v8177_v4, %v19221_v39  ;;  %v9587_v43 = vpop.f32.mrf.mxu1 }
 0x74a   : > { %v9625_v6 = vpack.c.bf16 %v9587_v43, %v9584_v20  ;;  %v13565_v50 = vpop.f32.mrf.mxu0  ;;  %v13929_v43 = vld [vmem:[%s19706_s3 + $0xc8] sm:$0xff]  }
 0x74b   : > { %v9589_v18 = vpop.f32.mrf.mxu1 }
 0x74c   : > { %v8182_v10 = vpop.f32.mrf.mxu0  ;;  %13671 = vmatmul.mubr.msk.bf16.gmra.mxu0 %vm234_vm7, %v9625_v6 }
 0x74d   : > { %v19357_v0 = vadd.f32 %v8182_v10, %v19227_v21  ;;  %v9592_v60 = vpop.f32.mrf.mxu1  ;;  %12713 = vmatmul.mubr.msk.bf16.gmra.mxu1 %vm12712_vm5, %v14078_v61  ;;  %13674 = vmatprep.mubr.msk.bf16.mxu0 %vm14079_vm6, %v14075_v1 }
 0x74e   : > { %v13568_v47 = vpop.f32.mrf.mxu0  ;;  %13768 = vmatprep.mubr.msk.bf16.mxu1 %vm14079_vm6, %v14075_v1 }
 0x74f   : > { %v9594_v39 = vpop.f32.mrf.mxu1 }
 0x750   : > { %v8185_v41 = vpop.f32.mrf.mxu0 }
 0x751   : > { %v19365_v29 = vadd.f32 %v8185_v41, %v19244_v38  ;;  %v9595_v9 = vpop.f32.mrf.mxu1 }
 0x752   : > { %v9626_v5 = vpack.c.bf16 %v9595_v9, %v9592_v60  ;;  %v13569_v14 = vpop.f32.mrf.mxu0 }
 0x753   : > { %v9597_v21 = vpop.f32.mrf.mxu1 }
 0x754   : > { %v8524_v37 = vpop.f32.mrf.mxu0  ;;  %13675 = vmatmul.mubr.msk.bf16.gmra.mxu0 %vm234_vm7, %v9626_v5 }
 0x755   : > { %v19369_v61 = vadd.f32 %v8524_v37, %v19248_v25  ;;  %v9600_v57 = vpop.f32.mrf.mxu1  ;;  %13678 = vmatprep.mubr.msk.bf16.mxu0 %vm14079_vm6, %v14075_v1 }
 0x756   : > { %v13574_v44 = vpop.f32.mrf.mxu0 }
 0x757   : > { %v9602_v3 = vpop.f32.mrf.mxu1 }
 0x758   : > { %v8527_v42 = vpop.f32.mrf.mxu0 }
 0x759   : > { %v19374_v38 = vadd.f32 %v8527_v42, %v19262_v62  ;;  %v9603_v28 = vpop.f32.mrf.mxu1 }
 0x75a   : > { %v9627_v12 = vpack.c.bf16 %v9603_v28, %v9600_v57  ;;  %v13575_v19 = vpop.f32.mrf.mxu0 }
 0x75b   : > { %v9605_v52 = vpop.f32.mrf.mxu1 }
 0x75c   : > { %v8532_v33 = vpop.f32.mrf.mxu0  ;;  %13679 = vmatmul.mubr.msk.bf16.gmra.mxu0 %vm234_vm7, %v9627_v12 }
 0x75d   : > { %v19378_v25 = vadd.f32 %v8532_v33, %v19266_v36  ;;  %v9608_v32 = vpop.f32.mrf.mxu1  ;;  %13682 = vmatprep.mubr.msk.bf16.mxu0 %vm14079_vm6, %v14075_v1 }
 0x75e   : > { %v13578_v22 = vpop.f32.mrf.mxu0 }
 0x75f   : > { %v9610_v58 = vpop.f32.mrf.mxu1 }
 0x760   : > { %v8535_v35 = vpop.f32.mrf.mxu0 }
 0x761   : > { %v19383_v62 = vadd.f32 %v8535_v35, %v19279_v8  ;;  %v9611_v59 = vpop.f32.mrf.mxu1 }
 0x762   : > { %v9628_v46 = vpack.c.bf16 %v9611_v59, %v9608_v32  ;;  %v13579_v49 = vpop.f32.mrf.mxu0 }
 0x763   : > { %v9613_v15 = vpop.f32.mrf.mxu1 }
 0x764   : > { %v8540_v53 = vpop.f32.mrf.mxu0  ;;  %13683 = vmatmul.mubr.msk.bf16.gmra.mxu0 %vm234_vm7, %v9628_v46 }
 0x765   : > { %v19387_v36 = vadd.f32 %v8540_v53, %v19283_v40  ;;  %v9616_v56 = vpop.f32.mrf.mxu1  ;;  %13686 = vmatprep.mubr.msk.bf16.mxu0 %vm14079_vm6, %v14075_v1 }
 0x766   : > { %v13582_v63 = vpop.f32.mrf.mxu0 }
 0x767   : > { %v9618_v30 = vpop.f32.mrf.mxu1 }
 0x768   : > { %v8543_v27 = vpop.f32.mrf.mxu0 }
 0x769   : > { %v19392_v8 = vadd.f32 %v8543_v27, %v19296_v31  ;;  %v9619_v48 = vpop.f32.mrf.mxu1 }
 0x76a   : > { %v9629_v55 = vpack.c.bf16 %v9619_v48, %v9616_v56  ;;  %v13583_v45 = vpop.f32.mrf.mxu0 }
 0x76b   : > { %v9621_v54 = vpop.f32.mrf.mxu1 }
 0x76c   : > { %v8548_v13 = vpop.f32.mrf.mxu0  ;;  %13687 = vmatmul.mubr.msk.bf16.gmra.mxu0 %vm234_vm7, %v9629_v55 }
 0x76d   : > { %v19396_v40 = vadd.f32 %v8548_v13, %v19300_v2  ;;  %v9958_v51 = vpop.f32.mrf.mxu1  ;;  %13692 = vmatprep.mubr.msk.bf16.mxu0 %vm14079_vm6, %v14075_v1 }
 0x76e   : > { %v13586_v20 = vpop.f32.mrf.mxu0 }
 0x76f   : > { %v9960_v16 = vpop.f32.mrf.mxu1 }
 0x770   : > { %v8551_v34 = vpop.f32.mrf.mxu0 }
 0x771   : > { %v19401_v31 = vadd.f32 %v8551_v34, %v19313_v11  ;;  %v9961_v4 = vpop.f32.mrf.mxu1 }
 0x772   : > { %v10013_v6 = vpack.c.bf16 %v9961_v4, %v9958_v51  ;;  %v13587_v50 = vpop.f32.mrf.mxu0 }
 0x773   : > { %v9963_v18 = vpop.f32.mrf.mxu1 }
 0x774   : > { %v8556_v2 = vpop.f32.mrf.mxu0  ;;  %13693 = vmatmul.mubr.msk.bf16.vlgmr.msra.gmra.mxu0 %vm234_vm7, %v10013_v6 }
 0x775   : > { %v19408_v10 = vadd.f32 %v8556_v2, %v19320_v7  ;;  %v9966_v60 = vpop.f32.mrf.mxu1  ;;  %13696 = vmatprep.mubr.msk.bf16.mxu0 %vm14079_vm6, %v14075_v1  ;;  %13721 = vmatpush3.bf16.msra.mxu0 %v13929_v43 }
 0x776   : > { %v13590_v11 = vpop.f32.mrf.mxu0  ;;  %13750 = vmatprep.subr.bf16.mxu0 %v14075_v1 }
 0x777   : > { %v9968_v47 = vpop.f32.mrf.mxu1 }
 0x778   : > { %v8559_v39 = vpop.f32.mrf.mxu0 }
 0x779   : > { %v19414_v41 = vadd.f32 %v8559_v39, %v19334_v26  ;;  %v9969_v9 = vpop.f32.mrf.mxu1 }
 0x77a   : > { %v10014_v5 = vpack.c.bf16 %v9969_v9, %v9966_v60  ;;  %v13591_v14 = vpop.f32.mrf.mxu0 }
 0x77b   : > { %v9971_v21 = vpop.f32.mrf.mxu1 }
 0x77c   : > { %v8564_v37 = vpop.f32.mrf.mxu0  ;;  %13697 = vmatmul.mubr.msk.bf16.gmra.mxu0 %vm234_vm7, %v10014_v5 }
 0x77d   : > { %v19418_v7 = vadd.f32 %v8564_v37, %v19338_v17  ;;  %v9974_v57 = vpop.f32.mrf.mxu1  ;;  %13700 = vmatprep.mubr.msk.bf16.mxu0 %vm14079_vm6, %v14075_v1 }
 0x77e   : > { %v13594_v44 = vpop.f32.mrf.mxu0 }
 0x77f   : > { %v9976_v3 = vpop.f32.mrf.mxu1 }
 0x780   : > { %v8567_v42 = vpop.f32.mrf.mxu0 }
 0x781   : > { %v19423_v26 = vadd.f32 %v8567_v42, %v19353_v23  ;;  %v9977_v28 = vpop.f32.mrf.mxu1 }
 0x782   : > { %v10015_v12 = vpack.c.bf16 %v9977_v28, %v9974_v57  ;;  %v13595_v19 = vpop.f32.mrf.mxu0 }
 0x783   : > { %v9979_v52 = vpop.f32.mrf.mxu1 }
 0x784   : > { %v8572_v33 = vpop.f32.mrf.mxu0  ;;  %13701 = vmatmul.mubr.msk.bf16.gmra.mxu0 %vm234_vm7, %v10015_v12 }
 0x785   : > { %v19427_v17 = vadd.f32 %v8572_v33, %v19357_v0  ;;  %v9982_v32 = vpop.f32.mrf.mxu1  ;;  %13704 = vmatprep.mubr.msk.bf16.mxu0 %vm14079_vm6, %v14075_v1 }
 0x786   : > { %v13598_v22 = vpop.f32.mrf.mxu0 }
 0x787   : > { %v9984_v58 = vpop.f32.mrf.mxu1 }
 0x788   : > { %v8575_v35 = vpop.f32.mrf.mxu0 }
 0x789   : > { %v19432_v23 = vadd.f32 %v8575_v35, %v19365_v29  ;;  %v9985_v59 = vpop.f32.mrf.mxu1 }
 0x78a   : > { %v10016_v46 = vpack.c.bf16 %v9985_v59, %v9982_v32  ;;  %v13599_v49 = vpop.f32.mrf.mxu0 }
 0x78b   : > { %v9987_v15 = vpop.f32.mrf.mxu1 }
 0x78c   : > { %v8914_v53 = vpop.f32.mrf.mxu0  ;;  %13705 = vmatmul.mubr.msk.bf16.gmra.mxu0 %vm234_vm7, %v10016_v46 }
 0x78d   : > { %v19436_v0 = vadd.f32 %v8914_v53, %v19369_v61  ;;  %v9990_v56 = vpop.f32.mrf.mxu1  ;;  %13708 = vmatprep.mubr.msk.bf16.mxu0 %vm14079_vm6, %v14075_v1 }
 0x78e   : > { %v13604_v63 = vpop.f32.mrf.mxu0 }
 0x78f   : > { %v9992_v30 = vpop.f32.mrf.mxu1 }
 0x790   : > { %v8917_v27 = vpop.f32.mrf.mxu0 }
 0x791   : > { %v19441_v29 = vadd.f32 %v8917_v27, %v19374_v38  ;;  %v9993_v48 = vpop.f32.mrf.mxu1 }
 0x792   : > { %v10017_v55 = vpack.c.bf16 %v9993_v48, %v9990_v56  ;;  %v13605_v45 = vpop.f32.mrf.mxu0 }
 0x793   : > { %v9995_v54 = vpop.f32.mrf.mxu1 }
 0x794   : > { %v8922_v13 = vpop.f32.mrf.mxu0  ;;  %13709 = vmatmul.mubr.msk.bf16.gmra.mxu0 %vm234_vm7, %v10017_v55 }
 0x795   : > { %v19445_v61 = vadd.f32 %v8922_v13, %v19378_v25  ;;  %v9998_v51 = vpop.f32.mrf.mxu1  ;;  %13712 = vmatprep.mubr.msk.bf16.mxu0 %vm14079_vm6, %v14075_v1 }
 0x796   : > { %v13608_v20 = vpop.f32.mrf.mxu0 }
 0x797   : > { %v10000_v16 = vpop.f32.mrf.mxu1 }
 0x798   : > { %v8925_v34 = vpop.f32.mrf.mxu0 }
 0x799   : > { %v19450_v38 = vadd.f32 %v8925_v34, %v19383_v62  ;;  %v10001_v4 = vpop.f32.mrf.mxu1 }
 0x79a   : > { %v10018_v43 = vpack.c.bf16 %v10001_v4, %v9998_v51  ;;  %v13609_v6 = vpop.f32.mrf.mxu0 }
 0x79b   : > { %v10003_v50 = vpop.f32.mrf.mxu1 }
 0x79c   : > { %v8930_v18 = vpop.f32.mrf.mxu0  ;;  %13713 = vmatmul.mubr.msk.bf16.gmra.mxu0 %vm234_vm7, %v10018_v43 }
 0x79d   : > { %v19454_v25 = vadd.f32 %v8930_v18, %v19387_v36  ;;  %v10006_v2 = vpop.f32.mrf.mxu1  ;;  %13716 = vmatprep.mubr.msk.bf16.mxu0 %vm14079_vm6, %v14075_v1 }
 0x79e   : > { %v13612_v60 = vpop.f32.mrf.mxu0 }
 0x79f   : > { %v10008_v11 = vpop.f32.mrf.mxu1 }
 0x7a0   : > { %v8933_v47 = vpop.f32.mrf.mxu0 }
 0x7a1   : > { %v19459_v62 = vadd.f32 %v8933_v47, %v19392_v8  ;;  %v10009_v39 = vpop.f32.mrf.mxu1 }
 0x7a2   : > { %v10019_v9 = vpack.c.bf16 %v10009_v39, %v10006_v2  ;;  %v13613_v5 = vpop.f32.mrf.mxu0 }
 0x7a3   : > { %v10011_v14 = vpop.f32.mrf.mxu1 }
 0x7a4   : > { %v8938_v21 = vpop.f32.mrf.mxu0  ;;  %13717 = vmatmul.mubr.msk.bf16.gmra.mxu0 %vm234_vm7, %v10019_v9 }
 0x7a5   : > { %v19463_v36 = vadd.f32 %v8938_v21, %v19396_v40  ;;  %v10348_v37 = vpop.f32.mrf.mxu1  ;;  %13722 = vmatprep.mubr.msk.bf16.mxu0 %vm14079_vm6, %v14075_v1 }
 0x7a6   : > { %v13616_v57 = vpop.f32.mrf.mxu0 }
 0x7a7   : > { %v10350_v44 = vpop.f32.mrf.mxu1 }
 0x7a8   : > { %v8941_v3 = vpop.f32.mrf.mxu0 }
 0x7a9   : > { %v19468_v8 = vadd.f32 %v8941_v3, %v19401_v31  ;;  %v10351_v42 = vpop.f32.mrf.mxu1 }
 0x7aa   : > { %v10403_v28 = vpack.c.bf16 %v10351_v42, %v10348_v37  ;;  %v13617_v12 = vpop.f32.mrf.mxu0 }
 0x7ab   : > { %v10353_v19 = vpop.f32.mrf.mxu1 }
 0x7ac   : > { %v8946_v52 = vpop.f32.mrf.mxu0  ;;  %13723 = vmatmul.mubr.msk.bf16.vlgmr.msra.gmra.mxu0 %vm234_vm7, %v10403_v28 }
 0x7ad   : > { %v19472_v40 = vadd.f32 %v8946_v52, %v19408_v10  ;;  %v10356_v33 = vpop.f32.mrf.mxu1  ;;  %13726 = vmatprep.mubr.msk.bf16.mxu0 %vm14079_vm6, %v14075_v1  ;;  %13751 = vmatpush3.bf16.msra.mxu0 %v19346_v24 }
 0x7ae   : > { %v13620_v32 = vpop.f32.mrf.mxu0 }
 0x7af   : > { %v10358_v22 = vpop.f32.mrf.mxu1 }
 0x7b0   : > { %v8949_v31 = vpop.f32.mrf.mxu0 }
 0x7b1   : > { %v19478_v58 = vadd.f32 %v8949_v31, %v19414_v41  ;;  %v10359_v35 = vpop.f32.mrf.mxu1 }
 0x7b2   : > { %v10404_v59 = vpack.c.bf16 %v10359_v35, %v10356_v33  ;;  %v13621_v46 = vpop.f32.mrf.mxu0 }
 0x7b3   : > { %v10361_v49 = vpop.f32.mrf.mxu1 }
 0x7b4   : > { %v8954_v15 = vpop.f32.mrf.mxu0  ;;  %13727 = vmatmul.mubr.msk.bf16.gmra.mxu0 %vm234_vm7, %v10404_v59 }
 0x7b5   : > { %v19482_v10 = vadd.f32 %v8954_v15, %v19418_v7  ;;  %v10364_v53 = vpop.f32.mrf.mxu1  ;;  %13730 = vmatprep.mubr.msk.bf16.mxu0 %vm14079_vm6, %v14075_v1 }
 0x7b6   : > { %v13624_v24 = vpop.f32.mrf.mxu0 }
 0x7b7   : > { %v10366_v56 = vpop.f32.mrf.mxu1 }
 0x7b8   : > { %v8957_v63 = vpop.f32.mrf.mxu0 }
 0x7b9   : > { %v19487_v41 = vadd.f32 %v8957_v63, %v19423_v26  ;;  %v10367_v30 = vpop.f32.mrf.mxu1 }
 0x7ba   : > { %v10405_v27 = vpack.c.bf16 %v10367_v30, %v10364_v53  ;;  %v13625_v48 = vpop.f32.mrf.mxu0 }
 0x7bb   : > { %v10369_v55 = vpop.f32.mrf.mxu1 }
 0x7bc   : > { %v8962_v45 = vpop.f32.mrf.mxu0  ;;  %13731 = vmatmul.mubr.msk.bf16.gmra.mxu0 %vm234_vm7, %v10405_v27 }
 0x7bd   : > { %v19491_v7 = vadd.f32 %v8962_v45, %v19427_v17  ;;  %v10372_v54 = vpop.f32.mrf.mxu1  ;;  %13734 = vmatprep.mubr.msk.bf16.mxu0 %vm14079_vm6, %v14075_v1 }
 0x7be   : > { %v13628_v13 = vpop.f32.mrf.mxu0 }
 0x7bf   : > { %v10374_v51 = vpop.f32.mrf.mxu1 }
 0x7c0   : > { %v8965_v20 = vpop.f32.mrf.mxu0 }
 0x7c1   : > { %v19496_v26 = vadd.f32 %v8965_v20, %v19432_v23  ;;  %v10375_v16 = vpop.f32.mrf.mxu1 }
 0x7c2   : > { %v10406_v34 = vpack.c.bf16 %v10375_v16, %v10372_v54  ;;  %v13629_v4 = vpop.f32.mrf.mxu0 }
 0x7c3   : > { %v10377_v43 = vpop.f32.mrf.mxu1 }
 0x7c4   : > { %v9304_v6 = vpop.f32.mrf.mxu0  ;;  %13735 = vmatmul.mubr.msk.bf16.gmra.mxu0 %vm234_vm7, %v10406_v34 }
 0x7c5   : > { %v19500_v17 = vadd.f32 %v9304_v6, %v19436_v0  ;;  %v10380_v50 = vpop.f32.mrf.mxu1  ;;  %13738 = vmatprep.mubr.msk.bf16.mxu0 %vm14079_vm6, %v14075_v1 }
 0x7c6   : > { %v13634_v18 = vpop.f32.mrf.mxu0 }
 0x7c7   : > { %v10382_v2 = vpop.f32.mrf.mxu1 }
 0x7c8   : > { %v9307_v60 = vpop.f32.mrf.mxu0 }
 0x7c9   : > { %v19505_v23 = vadd.f32 %v9307_v60, %v19441_v29  ;;  %v10383_v11 = vpop.f32.mrf.mxu1 }
 0x7ca   : > { %v10407_v47 = vpack.c.bf16 %v10383_v11, %v10380_v50  ;;  %v13635_v39 = vpop.f32.mrf.mxu0 }
 0x7cb   : > { %v10385_v9 = vpop.f32.mrf.mxu1 }
 0x7cc   : > { %v9312_v5 = vpop.f32.mrf.mxu0  ;;  %13739 = vmatmul.mubr.msk.bf16.gmra.mxu0 %vm234_vm7, %v10407_v47 }
 0x7cd   : > { %v19509_v0 = vadd.f32 %v9312_v5, %v19445_v61  ;;  %v10388_v14 = vpop.f32.mrf.mxu1  ;;  %13742 = vmatprep.mubr.msk.bf16.mxu0 %vm14079_vm6, %v14075_v1 }
 0x7ce   : > { %v13638_v21 = vpop.f32.mrf.mxu0 }
 0x7cf   : > { %v10390_v37 = vpop.f32.mrf.mxu1 }
 0x7d0   : > { %v9315_v57 = vpop.f32.mrf.mxu0 }
 0x7d1   : > { %v19514_v29 = vadd.f32 %v9315_v57, %v19450_v38  ;;  %v10391_v44 = vpop.f32.mrf.mxu1 }
 0x7d2   : > { %v10408_v3 = vpack.c.bf16 %v10391_v44, %v10388_v14  ;;  %v13639_v42 = vpop.f32.mrf.mxu0 }
 0x7d3   : > { %v10393_v28 = vpop.f32.mrf.mxu1 }
 0x7d4   : > { %v9320_v12 = vpop.f32.mrf.mxu0  ;;  %13743 = vmatmul.mubr.msk.bf16.gmra.mxu0 %vm234_vm7, %v10408_v3 }
 0x7d5   : > { %v19518_v61 = vadd.f32 %v9320_v12, %v19454_v25  ;;  %v10396_v19 = vpop.f32.mrf.mxu1  ;;  %13746 = vmatprep.mubr.msk.bf16.mxu0 %vm14079_vm6, %v14075_v1 }
 0x7d6   : > { %v13642_v52 = vpop.f32.mrf.mxu0 }
 0x7d7   : > { %v10398_v33 = vpop.f32.mrf.mxu1 }
 0x7d8   : > { %v9323_v32 = vpop.f32.mrf.mxu0 }
 0x7d9   : > { %v19523_v38 = vadd.f32 %v9323_v32, %v19459_v62  ;;  %v10399_v22 = vpop.f32.mrf.mxu1 }
 0x7da   : > { %v10409_v31 = vpack.c.bf16 %v10399_v22, %v10396_v19  ;;  %v13643_v35 = vpop.f32.mrf.mxu0 }
 0x7db   : > { %v10401_v59 = vpop.f32.mrf.mxu1 }
 0x7dc   : > { %v9328_v46 = vpop.f32.mrf.mxu0  ;;  %13747 = vmatmul.mubr.msk.bf16.gmra.mxu0 %vm234_vm7, %v10409_v31 }
 0x7dd   : > { %v19527_v25 = vadd.f32 %v9328_v46, %v19463_v36  ;;  %v10738_v49 = vpop.f32.mrf.mxu1  ;;  %13752 = vmatprep.mubr.msk.bf16.mxu0 %vm14079_vm6, %v14075_v1 }
 0x7de   : > { %v13646_v15 = vpop.f32.mrf.mxu0 }
 0x7df   : > { %v10740_v53 = vpop.f32.mrf.mxu1 }
 0x7e0   : > { %v9331_v24 = vpop.f32.mrf.mxu0 }
 0x7e1   : > { %v19532_v62 = vadd.f32 %v9331_v24, %v19468_v8  ;;  %v10741_v56 = vpop.f32.mrf.mxu1 }
 0x7e2   : > { %v10793_v63 = vpack.c.bf16 %v10741_v56, %v10738_v49  ;;  %v13647_v30 = vpop.f32.mrf.mxu0 }
 0x7e3   : > { %v10743_v27 = vpop.f32.mrf.mxu1 }
 0x7e4   : > { %v9336_v48 = vpop.f32.mrf.mxu0  ;;  %13753 = vmatmul.mubr.msk.bf16.vlgmr.msra.gmra.mxu0 %vm234_vm7, %v10793_v63 }
 0x7e5   : > { %v19536_v36 = vadd.f32 %v9336_v48, %v19472_v40  ;;  %v10746_v55 = vpop.f32.mrf.mxu1  ;;  %13756 = vmatprep.mubr.msk.bf16.mxu0 %vm14079_vm6, %v14075_v1 }
 0x7e6   : > { %v13650_v45 = vpop.f32.mrf.mxu0 }
 0x7e7   : > { %v10748_v54 = vpop.f32.mrf.mxu1 }
 0x7e8   : > { %v9339_v13 = vpop.f32.mrf.mxu0 }
 0x7e9   : > { %v19541_v8 = vadd.f32 %v9339_v13, %v19478_v58  ;;  %v10749_v51 = vpop.f32.mrf.mxu1 }
 0x7ea   : > { %v10794_v20 = vpack.c.bf16 %v10749_v51, %v10746_v55  ;;  %v13651_v16 = vpop.f32.mrf.mxu0 }
 0x7eb   : > { %v10751_v34 = vpop.f32.mrf.mxu1 }
 0x7ec   : > { %v9344_v4 = vpop.f32.mrf.mxu0  ;;  %13757 = vmatmul.mubr.msk.bf16.gmra.mxu0 %vm234_vm7, %v10794_v20 }
 0x7ed   : > { %v19545_v40 = vadd.f32 %v9344_v4, %v19482_v10  ;;  %v10754_v43 = vpop.f32.mrf.mxu1  ;;  %13760 = vmatprep.mubr.msk.bf16.mxu0 %vm14079_vm6, %v14075_v1 }
 0x7ee   : > { %v13654_v6 = vpop.f32.mrf.mxu0 }
 0x7ef   : > { %v10756_v50 = vpop.f32.mrf.mxu1 }
 0x7f0   : > { %v9347_v18 = vpop.f32.mrf.mxu0 }
 0x7f1   : > { %v19550_v58 = vadd.f32 %v9347_v18, %v19487_v41  ;;  %v10757_v2 = vpop.f32.mrf.mxu1 }
 0x7f2   : > { %v10795_v60 = vpack.c.bf16 %v10757_v2, %v10754_v43  ;;  %v13655_v11 = vpop.f32.mrf.mxu0 }
 0x7f3   : > { %v10759_v47 = vpop.f32.mrf.mxu1 }
 0x7f4   : > { %v9352_v39 = vpop.f32.mrf.mxu0  ;;  %13761 = vmatmul.mubr.msk.bf16.gmra.mxu0 %vm234_vm7, %v10795_v60 }
 0x7f5   : > { %v19554_v10 = vadd.f32 %v9352_v39, %v19491_v7  ;;  %v10762_v9 = vpop.f32.mrf.mxu1  ;;  %13764 = vmatprep.mubr.msk.bf16.mxu0 %vm14079_vm6, %v14075_v1 }
 0x7f6   : > { %v13658_v5 = vpop.f32.mrf.mxu0 }
 0x7f7   : > { %v10764_v14 = vpop.f32.mrf.mxu1 }
 0x7f8   : > { %v9355_v21 = vpop.f32.mrf.mxu0 }
 0x7f9   : > { %v19559_v41 = vadd.f32 %v9355_v21, %v19496_v26  ;;  %v10765_v37 = vpop.f32.mrf.mxu1 }
 0x7fa   : > { %v10796_v57 = vpack.c.bf16 %v10765_v37, %v10762_v9  ;;  %v13659_v44 = vpop.f32.mrf.mxu0 }
 0x7fb   : > { %v10767_v3 = vpop.f32.mrf.mxu1 }
 0x7fc   : > { %v9694_v42 = vpop.f32.mrf.mxu0  ;;  %13765 = vmatmul.mubr.msk.bf16.gmra.mxu0 %vm234_vm7, %v10796_v57 }
 0x7fd   : > { %v9749_v7 = vadd.f32 %v9694_v42, %v19500_v17  ;;  %v10770_v28 = vpop.f32.mrf.mxu1 }
 0x7fe   : > { %v13664_v12 = vpop.f32.mrf.mxu0 }
 0x7ff   : > { %v10772_v19 = vpop.f32.mrf.mxu1 }
 0x800   : > { %v9697_v52 = vpop.f32.mrf.mxu0 }
 0x801   : > { %v9750_v33 = vadd.f32 %v9697_v52, %v19505_v23  ;;  %v10773_v32 = vpop.f32.mrf.mxu1 }
 0x802   : > { %v10797_v22 = vpack.c.bf16 %v10773_v32, %v10770_v28  ;;  %v13665_v31 = vpop.f32.mrf.mxu0 }
 0x803   : > { %v10775_v26 = vpop.f32.mrf.mxu1 }
 0x804   : > { %v9702_v35 = vpop.f32.mrf.mxu0  ;;  %13769 = vmatmul.mubr.msk.bf16.vlgmr.msra.gmra.mxu1 %vm234_vm7, %v10797_v22 }
 0x805   : > { %v9751_v59 = vadd.f32 %v9702_v35, %v19509_v0  ;;  %v10778_v46 = vpop.f32.mrf.mxu1  ;;  %13772 = vmatprep.mubr.msk.bf16.mxu1 %vm14079_vm6, %v14075_v1 }
 0x806   : > { %v13668_v17 = vpop.f32.mrf.mxu0 }
 0x807   : > { %v10780_v49 = vpop.f32.mrf.mxu1 }
 0x808   : > { %v9705_v15 = vpop.f32.mrf.mxu0 }
 0x809   : > { %v9752_v53 = vadd.f32 %v9705_v15, %v19514_v29  ;;  %v10781_v24 = vpop.f32.mrf.mxu1 }
 0x80a   : > { %v10798_v23 = vpack.c.bf16 %v10781_v24, %v10778_v46  ;;  %v13669_v56 = vpop.f32.mrf.mxu0 }
 0x80b   : > { %v10783_v63 = vpop.f32.mrf.mxu1 }
 0x80c   : > { %v9710_v30 = vpop.f32.mrf.mxu0  ;;  %13773 = vmatmul.mubr.msk.bf16.gmra.mxu1 %vm234_vm7, %v10798_v23 }
 0x80d   : > { %v9753_v27 = vadd.f32 %v9710_v30, %v19518_v61  ;;  %v10786_v48 = vpop.f32.mrf.mxu1  ;;  %13776 = vmatprep.mubr.msk.bf16.mxu1 %vm14079_vm6, %v14075_v1 }
 0x80e   : > { %v13672_v0 = vpop.f32.mrf.mxu0 }
 0x80f   : > { %v10788_v55 = vpop.f32.mrf.mxu1 }
 0x810   : > { %v9713_v45 = vpop.f32.mrf.mxu0 }
 0x811   : > { %v9754_v54 = vadd.f32 %v9713_v45, %v19523_v38  ;;  %v10789_v13 = vpop.f32.mrf.mxu1 }
 0x812   : > { %v10799_v29 = vpack.c.bf16 %v10789_v13, %v10786_v48  ;;  %v13673_v51 = vpop.f32.mrf.mxu0 }
 0x813   : > { %v10791_v20 = vpop.f32.mrf.mxu1 }
 0x814   : > { %v9718_v16 = vpop.f32.mrf.mxu0  ;;  %13777 = vmatmul.mubr.msk.bf16.gmra.mxu1 %vm234_vm7, %v10799_v29 }
 0x815   : > { %v9755_v34 = vadd.f32 %v9718_v16, %v19527_v25 }
 0x816   : > { %v13676_v4 = vpop.f32.mrf.mxu0 }
 0x818   : > { %v9721_v61 = vpop.f32.mrf.mxu0 }
 0x819   : > { %v9756_v43 = vadd.f32 %v9721_v61, %v19532_v62 }
 0x81a   : > { %v13677_v6 = vpop.f32.mrf.mxu0 }
 0x81c   : > { %v9726_v1 = vpop.f32.mrf.mxu0 }
 0x81d   : > { %v9757_v50 = vadd.f32 %v9726_v1, %v19536_v36 }
 0x81e   : > { %v13680_v18 = vpop.f32.mrf.mxu0 }
 0x820   : > { %v9729_v2 = vpop.f32.mrf.mxu0 }
 0x821   : > { %v9758_v38 = vadd.f32 %v9729_v2, %v19541_v8 }
 0x822   : > { %v13681_v60 = vpop.f32.mrf.mxu0 }
 0x824   : > { %v9734_v11 = vpop.f32.mrf.mxu0 }
 0x825   : > { %v9759_v47 = vadd.f32 %v9734_v11, %v19545_v40 }
 0x826   : > { %v13684_v39 = vpop.f32.mrf.mxu0 }
 0x828   : > { %v9737_v9 = vpop.f32.mrf.mxu0 }
 0x829   : > { %v9760_v25 = vadd.f32 %v9737_v9, %v19550_v58 }
 0x82a   : > { %v13685_v5 = vpop.f32.mrf.mxu0 }
 0x82c   : > { %v9742_v14 = vpop.f32.mrf.mxu0 }
 0x82d   : > { %v9761_v62 = vadd.f32 %v9742_v14, %v19554_v10 }
 0x82e   : > { %v13688_v21 = vpop.f32.mrf.mxu0 }
 0x830   : > { %v9745_v37 = vpop.f32.mrf.mxu0 }
 0x831   : > { %v9762_v36 = vadd.f32 %v9745_v37, %v19559_v41 }
 0x832   : > { %v13689_v57 = vpop.f32.mrf.mxu0 }
 0x834   : > { %v10084_v44 = vpop.f32.mrf.mxu0 }
 0x835   : > { %v19583_v3 = vadd.f32 %v10084_v44, %v9749_v7 }
 0x836   : > { %v13694_v8 = vpop.f32.mrf.mxu0 }
 0x838   : > { %v10087_v42 = vpop.f32.mrf.mxu0 }
 0x839   : > { %v19585_v28 = vadd.f32 %v10087_v42, %v9750_v33 }
 0x83a   : > { %v13695_v40 = vpop.f32.mrf.mxu0 }
 0x83c   : > { %v10092_v12 = vpop.f32.mrf.mxu0 }
 0x83d   : > { %v19587_v19 = vadd.f32 %v10092_v12, %v9751_v59 }
 0x83e   : > { %v13698_v58 = vpop.f32.mrf.mxu0 }
 0x840   : > { %v10095_v52 = vpop.f32.mrf.mxu0 }
 0x841   : > { %v19589_v32 = vadd.f32 %v10095_v52, %v9752_v53 }
 0x842   : > { %v13699_v10 = vpop.f32.mrf.mxu0 }
 0x844   : > { %v10100_v22 = vpop.f32.mrf.mxu0 }
 0x845   : > { %v19591_v31 = vadd.f32 %v10100_v22, %v9753_v27 }
 0x846   : > { %v13702_v41 = vpop.f32.mrf.mxu0 }
 0x848   : > { %v10103_v26 = vpop.f32.mrf.mxu0 }
 0x849   : > { %v19593_v7 = vadd.f32 %v10103_v26, %v9754_v54 }
 0x84a   : > { %v13703_v35 = vpop.f32.mrf.mxu0 }
 0x84c   : > { %v10108_v46 = vpop.f32.mrf.mxu0 }
 0x84d   : > { %v19595_v33 = vadd.f32 %v10108_v46, %v9755_v34 }
 0x84e   : > { %v13706_v17 = vpop.f32.mrf.mxu0 }
 0x850   : > { %v10111_v49 = vpop.f32.mrf.mxu0 }
 0x851   : > { %v19597_v59 = vadd.f32 %v10111_v49, %v9756_v43 }
 0x852   : > { %v13707_v15 = vpop.f32.mrf.mxu0 }
 0x854   : > { %v10116_v24 = vpop.f32.mrf.mxu0 }
 0x855   : > { %v19599_v53 = vadd.f32 %v10116_v24, %v9757_v50 }
 0x856   : > { %v13710_v23 = vpop.f32.mrf.mxu0 }
 0x858   : > { %v10119_v56 = vpop.f32.mrf.mxu0 }
 0x859   : > { %v19601_v63 = vadd.f32 %v10119_v56, %v9758_v38 }
 0x85a   : > { %v13711_v30 = vpop.f32.mrf.mxu0 }
 0x85c   : > { %v10124_v27 = vpop.f32.mrf.mxu0 }
 0x85d   : > { %v19603_v48 = vadd.f32 %v10124_v27, %v9759_v47 }
 0x85e   : > { %v13714_v0 = vpop.f32.mrf.mxu0 }
 0x860   : > { %v10127_v55 = vpop.f32.mrf.mxu0 }
 0x861   : > { %v19605_v45 = vadd.f32 %v10127_v55, %v9760_v25 }
 0x862   : > { %v13715_v54 = vpop.f32.mrf.mxu0 }
 0x864   : > { %v10132_v13 = vpop.f32.mrf.mxu0 }
 0x865   : > { %v19607_v29 = vadd.f32 %v10132_v13, %v9761_v62 }
 0x866   : > { %v13718_v51 = vpop.f32.mrf.mxu0 }
 0x868   : > { %v10135_v20 = vpop.f32.mrf.mxu0 }
 0x869   : > { %v19609_v16 = vadd.f32 %v10135_v20, %v9762_v36 }
 0x86a   : > { %v13719_v34 = vpop.f32.mrf.mxu0 }
 0x86c   : > { %v10474_v4 = vpop.f32.mrf.mxu0 }
 0x86d   : > { %v10529_v52 = vadd.f32 %v10474_v4, %v19583_v3 }
 0x86e   : > { %v13724_v61 = vpop.f32.mrf.mxu0 }
 0x870   : > { %v10477_v43 = vpop.f32.mrf.mxu0 }
 0x871   : > { %v10530_v26 = vadd.f32 %v10477_v43, %v19585_v28 }
 0x872   : > { %v13725_v6 = vpop.f32.mrf.mxu0 }
 0x874   : > { %v10482_v1 = vpop.f32.mrf.mxu0 }
 0x875   : > { %v10531_v49 = vadd.f32 %v10482_v1, %v19587_v19 }
 0x876   : > { %v13728_v50 = vpop.f32.mrf.mxu0 }
 0x878   : > { %v10485_v18 = vpop.f32.mrf.mxu0 }
 0x879   : > { %v10532_v23 = vadd.f32 %v10485_v18, %v19589_v32 }
 0x87a   : > { %v13729_v2 = vpop.f32.mrf.mxu0 }
 0x87c   : > { %v10490_v38 = vpop.f32.mrf.mxu0 }
 0x87d   : > { %v10533_v55 = vadd.f32 %v10490_v38, %v19591_v31 }
 0x87e   : > { %v13732_v60 = vpop.f32.mrf.mxu0 }
 0x880   : > { %v10493_v11 = vpop.f32.mrf.mxu0 }
 0x881   : > { %v10534_v34 = vadd.f32 %v10493_v11, %v19593_v7 }
 0x882   : > { %v13733_v47 = vpop.f32.mrf.mxu0 }
 0x884   : > { %v10498_v39 = vpop.f32.mrf.mxu0 }
 0x885   : > { %v10535_v1 = vadd.f32 %v10498_v39, %v19595_v33 }
 0x886   : > { %v13736_v9 = vpop.f32.mrf.mxu0 }
 0x888   : > { %v19611_v25 = vpop.f32.mrf.mxu0 }
 0x889   : > { %v10536_v60 = vadd.f32 %v19611_v25, %v19597_v59 }
 0x88a   : > { %v13737_v5 = vpop.f32.mrf.mxu0 }
 0x88c   : > { %v19613_v14 = vpop.f32.mrf.mxu0 }
 0x88d   : > { %v10537_v5 = vadd.f32 %v19613_v14, %v19599_v53 }
 0x88e   : > { %v13740_v62 = vpop.f32.mrf.mxu0 }
 0x890   : > { %v19615_v21 = vpop.f32.mrf.mxu0 }
 0x892   : > { %v13741_v37 = vpop.f32.mrf.mxu0 }
 0x894   : > { %v19617_v36 = vpop.f32.mrf.mxu0 }
 0x896   : > { %v13744_v57 = vpop.f32.mrf.mxu0 }
 0x898   : > { %v19619_v44 = vpop.f32.mrf.mxu0 }
 0x89a   : > { %v13745_v8 = vpop.f32.mrf.mxu0 }
 0x89b   : > { %v10538_v8 = vadd.f32 %v19615_v21, %v19601_v63 }
 0x89c   : > { %v19621_v42 = vpop.f32.mrf.mxu0 }
 0x89e   : > { %v13748_v40 = vpop.f32.mrf.mxu0 }
 0x8a0   : > { %v19623_v12 = vpop.f32.mrf.mxu0 }
 0x8a2   : > { %v13749_v58 = vpop.f32.mrf.mxu0 }
 0x8a4   : > { %v10864_v10 = vpop.f32.mrf.mxu0 }
 0x8a5   : > { %v10919_v22 = vadd.f32 %v10864_v10, %v10529_v52  ;;  %v10539_v10 = vadd.f32 %v19617_v36, %v19603_v48 }
 0x8a6   : > { %v13754_v41 = vpop.f32.mrf.mxu0 }
 0x8a7   : > { %10933 = vst.msk [vmem:[#allocation2] sm:$0xff] %vm234_vm7, %v10919_v22 }
 0x8a8   : > { %v10867_v35 = vpop.f32.mrf.mxu0 }
 0x8a9   : > { %v10920_v46 = vadd.f32 %v10867_v35, %v10530_v26  ;;  %v10540_v35 = vadd.f32 %v19619_v44, %v19605_v45 }
 0x8aa   : > { %v13755_v17 = vpop.f32.mrf.mxu0 }
 0x8ab   : > { %10934 = vst.msk [vmem:[#allocation2 + $0x8] sm:$0xff] %vm234_vm7, %v10920_v46 }
 0x8ac   : > { %v10872_v15 = vpop.f32.mrf.mxu0 }
 0x8ad   : > { %v10921_v24 = vadd.f32 %v10872_v15, %v10531_v49  ;;  %v10541_v15 = vadd.f32 %v19621_v42, %v19607_v29 }
 0x8ae   : > { %v10950_v3 = vld [vmem:[#allocation2] sm:$0xff]  ;;  %v13758_v28 = vpop.f32.mrf.mxu0 }
 0x8af   : > { %v12740_v56 = vpack.c.bf16 %v10950_v3, %v10950_v3  ;;  %10935 = vst.msk [vmem:[#allocation2 + $0x10] sm:$0xff] %vm234_vm7, %v10921_v24 }
 0x8b0   : > { %v10875_v19 = vpop.f32.mrf.mxu0 }
 0x8b1   : > { %11021 = vst.msk [vmem:[%s19634_s25] sm:$0xf] %vm11020_vm4, %v12740_v56  ;;  %v10922_v30 = vadd.f32 %v10875_v19, %v10532_v23  ;;  %v10542_v23 = vadd.f32 %v19623_v12, %v19609_v16 }
 0x8b2   : > { %v10951_v27 = vld [vmem:[#allocation2 + $0x8] sm:$0xff]  ;;  %v13759_v0 = vpop.f32.mrf.mxu0 }
 0x8b3   : > { %v12741_v54 = vpack.c.bf16 %v10951_v27, %v10951_v27  ;;  %10936 = vst.msk [vmem:[#allocation2 + $0x18] sm:$0xff] %vm234_vm7, %v10922_v30 }
 0x8b4   : > { %v10880_v13 = vpop.f32.mrf.mxu0 }
 0x8b5   : > { %11022 = vst.msk [vmem:[%s19634_s25 + $0x4] sm:$0xf] %vm11020_vm4, %v12741_v54  ;;  %v10923_v32 = vadd.f32 %v10880_v13, %v10533_v55 }
 0x8b6   : > { %v10952_v51 = vld [vmem:[#allocation2 + $0x10] sm:$0xff]  ;;  %v13762_v20 = vpop.f32.mrf.mxu0 }
 0x8b7   : > { %v12742_v4 = vpack.c.bf16 %v10952_v51, %v10952_v51  ;;  %10937 = vst.msk [vmem:[#allocation2 + $0x20] sm:$0xff] %vm234_vm7, %v10923_v32 }
 0x8b8   : > { %v10883_v61 = vpop.f32.mrf.mxu0 }
 0x8b9   : > { %11023 = vst.msk [vmem:[%s19634_s25 + $0x8] sm:$0xf] %vm11020_vm4, %v12742_v4  ;;  %v10924_v31 = vadd.f32 %v10883_v61, %v10534_v34 }
 0x8ba   : > { %v10953_v43 = vld [vmem:[#allocation2 + $0x18] sm:$0xff]  ;;  %v13763_v6 = vpop.f32.mrf.mxu0 }
 0x8bb   : > { %v12743_v50 = vpack.c.bf16 %v10953_v43, %v10953_v43  ;;  %10938 = vst.msk [vmem:[#allocation2 + $0x28] sm:$0xff] %vm234_vm7, %v10924_v31 }
 0x8bc   : > { %v10888_v18 = vpop.f32.mrf.mxu0 }
 0x8bd   : > { %11024 = vst.msk [vmem:[%s19634_s25 + $0xc] sm:$0xf] %vm11020_vm4, %v12743_v50  ;;  %v10925_v7 = vadd.f32 %v10888_v18, %v10535_v1 }
 0x8be   : > { %v10954_v2 = vld [vmem:[#allocation2 + $0x20] sm:$0xff]  ;;  %v13766_v38 = vpop.f32.mrf.mxu0 }
 0x8bf   : > { %v12744_v11 = vpack.c.bf16 %v10954_v2, %v10954_v2  ;;  %10939 = vst.msk [vmem:[#allocation2 + $0x30] sm:$0xff] %vm234_vm7, %v10925_v7 }
 0x8c0   : > { %v10891_v47 = vpop.f32.mrf.mxu0 }
 0x8c1   : > { %11025 = vst.msk [vmem:[%s19634_s25 + $0x10] sm:$0xf] %vm11020_vm4, %v12744_v11  ;;  %v10926_v33 = vadd.f32 %v10891_v47, %v10536_v60 }
 0x8c2   : > { %v10955_v39 = vld [vmem:[#allocation2 + $0x28] sm:$0xff]  ;;  %v13767_v9 = vpop.f32.mrf.mxu0 }
 0x8c3   : > { %v12745_v62 = vpack.c.bf16 %v10955_v39, %v10955_v39  ;;  %10940 = vst.msk [vmem:[#allocation2 + $0x38] sm:$0xff] %vm234_vm7, %v10926_v33 }
 0x8c4   : > { %v10896_v37 = vpop.f32.mrf.mxu1 }
 0x8c5   : > { %11026 = vst.msk [vmem:[%s19634_s25 + $0x14] sm:$0xf] %vm11020_vm4, %v12745_v62  ;;  %v10927_v59 = vadd.f32 %v10896_v37, %v10537_v5 }
 0x8c6   : > { %v10956_v25 = vld [vmem:[#allocation2 + $0x30] sm:$0xff]  ;;  %v13770_v57 = vpop.f32.mrf.mxu1 }
 0x8c7   : > { %v12746_v40 = vpack.c.bf16 %v10956_v25, %v10956_v25  ;;  %10941 = vst.msk [vmem:[#allocation2 + $0x40] sm:$0xff] %vm234_vm7, %v10927_v59 }
 0x8c8   : > { %v10899_v58 = vpop.f32.mrf.mxu1 }
 0x8c9   : > { %11027 = vst.msk [vmem:[%s19634_s25 + $0x18] sm:$0xf] %vm11020_vm4, %v12746_v40  ;;  %v10928_v53 = vadd.f32 %v10899_v58, %v10538_v8 }
 0x8ca   : > { %v10957_v14 = vld [vmem:[#allocation2 + $0x38] sm:$0xff]  ;;  %v13771_v52 = vpop.f32.mrf.mxu1 }
 0x8cb   : > { %v12747_v22 = vpack.c.bf16 %v10957_v14, %v10957_v14  ;;  %10942 = vst.msk [vmem:[#allocation2 + $0x48] sm:$0xff] %vm234_vm7, %v10928_v53 }
 0x8cc   : > { %v10904_v41 = vpop.f32.mrf.mxu1 }
 0x8cd   : > { %11028 = vst.msk [vmem:[%s19634_s25 + $0x1c] sm:$0xf] %vm11020_vm4, %v12747_v22  ;;  %v10929_v63 = vadd.f32 %v10904_v41, %v10539_v10 }
 0x8ce   : > { %v10958_v21 = vld [vmem:[#allocation2 + $0x40] sm:$0xff]  ;;  %v13774_v26 = vpop.f32.mrf.mxu1 }
 0x8cf   : > { %v12748_v46 = vpack.c.bf16 %v10958_v21, %v10958_v21  ;;  %10943 = vst.msk [vmem:[#allocation2 + $0x50] sm:$0xff] %vm234_vm7, %v10929_v63 }
 0x8d0   : > { %v10907_v17 = vpop.f32.mrf.mxu1 }
 0x8d1   : > { %11029 = vst.msk [vmem:[%s19634_s25 + $0x20] sm:$0xf] %vm11020_vm4, %v12748_v46  ;;  %v10930_v48 = vadd.f32 %v10907_v17, %v10540_v35 }
 0x8d2   : > { %v10959_v36 = vld [vmem:[#allocation2 + $0x48] sm:$0xff]  ;;  %v13775_v49 = vpop.f32.mrf.mxu1 }
 0x8d3   : > { %v12749_v24 = vpack.c.bf16 %v10959_v36, %v10959_v36  ;;  %10944 = vst.msk [vmem:[#allocation2 + $0x58] sm:$0xff] %vm234_vm7, %v10930_v48 }
 0x8d4   : > { %v10912_v3 = vpop.f32.mrf.mxu1 }
 0x8d5   : > { %11030 = vst.msk [vmem:[%s19634_s25 + $0x24] sm:$0xf] %vm11020_vm4, %v12749_v24  ;;  %v10931_v45 = vadd.f32 %v10912_v3, %v10541_v15 }
 0x8d6   : > { %v10960_v44 = vld [vmem:[#allocation2 + $0x50] sm:$0xff]  ;;  %v13778_v28 = vpop.f32.mrf.mxu1 }
 0x8d7   : > { %v12750_v56 = vpack.c.bf16 %v10960_v44, %v10960_v44  ;;  %10945 = vst.msk [vmem:[#allocation2 + $0x60] sm:$0xff] %vm234_vm7, %v10931_v45 }
 0x8d8   : > { %v10915_v19 = vpop.f32.mrf.mxu1 }
 0x8d9   : > { %11031 = vst.msk [vmem:[%s19634_s25 + $0x28] sm:$0xf] %vm11020_vm4, %v12750_v56  ;;  %v10932_v29 = vadd.f32 %v10915_v19, %v10542_v23 }
 0x8da   : > { %v10961_v42 = vld [vmem:[#allocation2 + $0x58] sm:$0xff]  ;;  %v13779_v30 = vpop.f32.mrf.mxu1 }
 0x8db   : > { %v12751_v27 = vpack.c.bf16 %v10961_v42, %v10961_v42  ;;  %10946 = vst.msk [vmem:[#allocation2 + $0x68] sm:$0xff] %vm234_vm7, %v10932_v29 }
 0x8dd   : > { %11032 = vst.msk [vmem:[%s19634_s25 + $0x2c] sm:$0xf] %vm11020_vm4, %v12751_v27 }
 0x8de   : > { %v10962_v0 = vld [vmem:[#allocation2 + $0x60] sm:$0xff] }
 0x8df   : > { %v12752_v55 = vpack.c.bf16 %v10962_v0, %v10962_v0 }
 0x8e1   : > { %11033 = vst.msk [vmem:[%s19634_s25 + $0x30] sm:$0xf] %vm11020_vm4, %v12752_v55 }
 0x8e2   : > { %v10963_v16 = vld [vmem:[#allocation2 + $0x68] sm:$0xff] }
 0x8e3   : > { %v12753_v12 = vpack.c.bf16 %v10963_v16, %v10963_v16 }
 0x8e5   : > { %11034 = vst.msk [vmem:[%s19634_s25 + $0x34] sm:$0xf] %vm11020_vm4, %v12753_v12 }
 0x8e6 PF: > { %s20_s22 = sadd.s32 1, %s14071_s22   ;;  %s19708_s20 = smov %s14067_s21 }
 0x8e7   : > { %p17_p11 = scmp.ge.s32.totalorder %s20_s22, 4   ;;  %s19709_s21 = smov %s19711_s0 }
 0x8e9   :  { %19 = sbr.rel (!%p17_p11) target bundleno = 17 (0x11), region = 99 }

</bundles_post_ra>
